<compile_context>
chip_gen: v7x
topology: tpu7x:2x2x1
jax: 0.10.0
libtpu: 0.0.40
codegen_flags: <defaults>
</compile_context>

<pallas_src>
import functools

import numpy as np
import jax
import jax.numpy as jnp
from jax import lax
from jax.experimental import pallas as pl
from jax.experimental.pallas import tpu as pltpu

BN_EPS = 1e-5
VMEM_LIMIT = 32 * 1024 * 1024      # safe on v5e/v6e (128 MiB) and v7x (64 MiB)
TILE_BUDGET = 20 * 1024 * 1024     # budget for double-buffered matmul tiles

NZ, NGF, NGA, NGFA, NC = 1024, 512, 256, 128, 3


def _round_up(x, m):
    return (x + m - 1) // m * m


# ----------------------------- Pallas kernels ------------------------------

def _mm_kernel(a_ref, b_ref, o_ref):
    # Single K step per output block -> no scratch accumulator, direct store.
    o_ref[...] = jnp.dot(a_ref[...], b_ref[...],
                         preferred_element_type=jnp.float32)


def pallas_matmul(a, b):
    """a: (M, K) float -> bf16; b: (K, Np) bf16 with K, Np multiples of 128.

    Returns f32 (Mp, Np) with Mp = padded M; caller slices the valid rows.
    K is never split (all Ks in this network fit a single VMEM block)."""
    M, K = a.shape
    K2, Np = b.shape
    assert K == K2 and K % 128 == 0 and Np % 128 == 0

    Mp = _round_up(M, 8)
    if Mp > 512:                       # split M so v7x megacore gets 2 shards
        TM = _round_up((Mp + 1) // 2, 8)
        Mp = 2 * TM
        gi = 2
    else:
        TM = Mp
        gi = 1

    # Widest 128-multiple divisor of Np (<=2048) fitting the VMEM tile budget.
    q = Np // 128
    TN = 128
    for d in range(1, q + 1):
        if q % d:
            continue
        cand = 128 * d
        if cand > 2048:
            break
        vmem = 2 * 2 * (TM * K + K * cand) + 2 * TM * cand * 4
        if vmem <= TILE_BUDGET:
            TN = cand
    gj = Np // TN

    a_p = jnp.pad(a.astype(jnp.bfloat16), ((0, Mp - M), (0, 0)))

    return pl.pallas_call(
        _mm_kernel,
        out_shape=jax.ShapeDtypeStruct((Mp, Np), jnp.float32),
        grid_spec=pltpu.PrefetchScalarGridSpec(
            num_scalar_prefetch=0,
            grid=(gi, gj),
            in_specs=[
                pl.BlockSpec((TM, K), lambda i, j: (i, 0)),
                pl.BlockSpec((K, TN), lambda i, j: (0, j)),
            ],
            out_specs=pl.BlockSpec((TM, TN), lambda i, j: (i, j)),
        ),
        compiler_params=pltpu.CompilerParams(
            dimension_semantics=("parallel", "parallel"),
            vmem_limit_bytes=VMEM_LIMIT),
    )(a_p, b)


def _bn_relu_kernel(y_ref, g_ref, b_ref, o_ref):
    y = y_ref[...]
    # Training-mode BatchNorm: biased batch statistics, two-pass (exact) form.
    mean = jnp.mean(y, axis=0, keepdims=True)
    var = jnp.mean(jnp.square(y - mean), axis=0, keepdims=True)
    scale = lax.rsqrt(var + BN_EPS) * g_ref[...]
    out = (y - mean) * scale + b_ref[...]
    o_ref[...] = jnp.maximum(out, 0.0).astype(o_ref.dtype)


def bn_relu(y, gamma, beta):
    """BatchNorm2d(batch stats) + ReLU on y: (M, C) f32 conv output.

    Single full-array block (the whole tensor is tiny); emits bf16 so it feeds
    the next layer's matmul directly."""
    M, C = y.shape
    return pl.pallas_call(
        _bn_relu_kernel,
        out_shape=jax.ShapeDtypeStruct((M, C), jnp.bfloat16),
        grid_spec=pltpu.PrefetchScalarGridSpec(
            num_scalar_prefetch=0,
            grid=(1,),
            in_specs=[
                pl.BlockSpec((M, C), lambda i: (0, 0)),
                pl.BlockSpec((1, C), lambda i: (0, 0)),
                pl.BlockSpec((1, C), lambda i: (0, 0)),
            ],
            out_specs=pl.BlockSpec((M, C), lambda i: (0, 0)),
        ),
        compiler_params=pltpu.CompilerParams(
            dimension_semantics=("arbitrary",),
            vmem_limit_bytes=VMEM_LIMIT),
    )(y, gamma.reshape(1, C), beta.reshape(1, C))


# ----------------------- static (trace-time) constants ----------------------

def _col2im_matrix(h_out, h_in, k, stride, pad):
    """S[o, i, kk] = 1 iff o == i*stride - pad + kk  (transposed-conv scatter)."""
    S = np.zeros((h_out, h_in, k), np.float32)
    for i in range(h_in):
        for kk in range(k):
            o = i * stride - pad + kk
            if 0 <= o < h_out:
                S[o, i, kk] = 1.0
    return jnp.asarray(S)


def col2im(z, b, h_in, w_in, k, c_out, s_h, s_w):
    """Overlap-add of per-tap matmul results -> transposed-conv output (tiny)."""
    zr = z.reshape(b, h_in, w_in, k, k, c_out)
    t = jnp.einsum('xik,bijklc->bxjlc', s_h, zr,
                   precision=lax.Precision.HIGHEST)
    return jnp.einsum('yjl,bxjlc->bxyc', s_w, t,
                      precision=lax.Precision.HIGHEST)


def _bilinear_matrix(out_size, in_size):
    # PyTorch F.interpolate(mode='bilinear', align_corners=False) weights.
    dst = np.arange(out_size, dtype=np.float64)
    src = np.maximum((dst + 0.5) * (in_size / out_size) - 0.5, 0.0)
    i0 = np.minimum(np.floor(src).astype(np.int64), in_size - 1)
    i1 = np.minimum(i0 + 1, in_size - 1)
    frac = src - i0
    R = np.zeros((out_size, in_size), dtype=np.float32)
    R[np.arange(out_size), i0] += 1.0 - frac
    R[np.arange(out_size), i1] += frac
    return jnp.asarray(R)


# ------------------------------- parameters ---------------------------------

def init_generator_params(key):
    specs = [(NZ, NGF, 5), (NGF, NGA, 5), (NGA, NGFA, 7), (NGFA, NC, 7)]
    keys = jax.random.split(key, 10)
    params, ki = {}, 0
    for idx, (cin, cout, k) in enumerate(specs, start=1):
        params[f"w{idx}"] = 0.02 * jax.random.normal(
            keys[ki], (cin, cout, k, k), jnp.float32)
        ki += 1
        if idx < 4:  # BatchNorm affine params for the first three blocks
            params[f"g{idx}"] = 1.0 + 0.05 * jax.random.normal(
                keys[ki], (cout,), jnp.float32)
            ki += 1
            params[f"b{idx}"] = 0.05 * jax.random.normal(
                keys[ki], (cout,), jnp.float32)
            ki += 1
    return params


def prepare_generator_params(params):
    """One-time weight reformatting (hoisted out of the forward pass).

    Wmat[l][ci, ((kh*K)+kw)*Cout + co] = w[l][ci, co, kh, kw], bf16, lane-padded.
    Layer 1 acts on a 1x1 spatial input, so only its interior (cropped) taps
    survive and its matmul output is directly the 3x3 spatial map."""
    w1m = params["w1"][:, :, 1:4, 1:4].transpose(0, 2, 3, 1).reshape(NZ, 9 * NGF)
    w2m = params["w2"].transpose(0, 2, 3, 1).reshape(NGF, 25 * NGA)
    w3m = params["w3"].transpose(0, 2, 3, 1).reshape(NGA, 49 * NGFA)
    w4m = params["w4"].transpose(0, 2, 3, 1).reshape(NGFA, 49 * NC)
    w4m = jnp.pad(w4m, ((0, 0), (0, _round_up(49 * NC, 128) - 49 * NC)))
    return {
        "w1m": w1m.astype(jnp.bfloat16),
        "w2m": w2m.astype(jnp.bfloat16),
        "w3m": w3m.astype(jnp.bfloat16),
        "w4m": w4m.astype(jnp.bfloat16),
        "g1": params["g1"], "b1": params["b1"],
        "g2": params["g2"], "b2": params["b2"],
        "g3": params["g3"], "b3": params["b3"],
    }


# ------------------------------- Generator ----------------------------------

def generator_forward(prep, x, crop_size):
    B = x.shape[0]

    # Layer 1: ConvTranspose2d(1024, 512, 5, 3, 1) over a 1x1 input + BN + ReLU.
    x1 = x.reshape(B, NZ)
    y1 = pallas_matmul(x1, prep["w1m"])[:B]                 # (B, 9*512)
    h1 = bn_relu(y1.reshape(B * 9, NGF), prep["g1"], prep["b1"])   # (B*9, 512)

    # Layer 2: ConvTranspose2d(512, 256, 5, 2, 0) + BN + ReLU   (3x3 -> 9x9)
    z2 = pallas_matmul(h1, prep["w2m"])[:B * 9]             # (B*9, 25*256)
    s2 = _col2im_matrix(9, 3, 5, 2, 0)
    c2 = col2im(z2, B, 3, 3, 5, NGA, s2, s2)                # (B, 9, 9, 256)
    h2 = bn_relu(c2.reshape(B * 81, NGA), prep["g2"], prep["b2"])

    # Layer 3: ConvTranspose2d(256, 128, 7, 2, 1) + BN + ReLU   (9x9 -> 21x21)
    z3 = pallas_matmul(h2, prep["w3m"])[:B * 81]            # (B*81, 49*128)
    s3 = _col2im_matrix(21, 9, 7, 2, 1)
    c3 = col2im(z3, B, 9, 9, 7, NGFA, s3, s3)               # (B, 21, 21, 128)
    h3 = bn_relu(c3.reshape(B * 441, NGFA), prep["g3"], prep["b3"])

    # Layer 4: ConvTranspose2d(128, 3, 7, 2, 1) + Tanh          (21x21 -> 45x45)
    z4 = pallas_matmul(h3, prep["w4m"])[:B * 441, :49 * NC]
    s4 = _col2im_matrix(45, 21, 7, 2, 1)
    c4 = jnp.tanh(col2im(z4, B, 21, 21, 7, NC, s4, s4))     # (B, 45, 45, 3)

    # Bilinear resize (align_corners=False) as exact-matrix einsums, then NCHW.
    rh = _bilinear_matrix(crop_size, 45)
    rw = _bilinear_matrix(crop_size, 45)
    r = jnp.einsum('Xx,bxyc->bXyc', rh, c4, precision=lax.Precision.HIGHEST)
    r = jnp.einsum('Yy,bXyc->bXYc', rw, r, precision=lax.Precision.HIGHEST)
    return r.transpose(0, 3, 1, 2)                          # (B, 3, crop, crop)


# Pure-XLA reference (same bf16 inputs / f32 accumulation) for a self-check.
def reference_forward(params, x, crop_size):
    def convT(h, w, s, p):
        K = w.shape[2]
        rhs = jnp.flip(w, (2, 3)).transpose(1, 0, 2, 3)
        return lax.conv_general_dilated(
            h.astype(jnp.bfloat16), rhs.astype(jnp.bfloat16),
            window_strides=(1, 1), padding=[(K - 1 - p, K - 1 - p)] * 2,
            lhs_dilation=(s, s), rhs_dilation=(1, 1),
            dimension_numbers=("NCHW", "OIHW", "NCHW"),
            preferred_element_type=jnp.float32)

    def bn_relu_ref(y, g, b):
        mean = y.mean(axis=(0, 2, 3), keepdims=True)
        var = y.var(axis=(0, 2, 3), keepdims=True)
        yn = (y - mean) * lax.rsqrt(var + BN_EPS)
        return jnp.maximum(yn * g.reshape(1, -1, 1, 1)
                           + b.reshape(1, -1, 1, 1), 0.0)

    h = bn_relu_ref(convT(x, params["w1"], 3, 1), params["g1"], params["b1"])
    h = bn_relu_ref(convT(h, params["w2"], 2, 0), params["g2"], params["b2"])
    h = bn_relu_ref(convT(h, params["w3"], 2, 1), params["g3"], params["b3"])
    h = jnp.tanh(convT(h, params["w4"], 2, 1))
    Rh = _bilinear_matrix(crop_size, h.shape[2])
    Rw = _bilinear_matrix(crop_size, h.shape[3])
    return jnp.einsum("ij,bcjk,lk->bcil", Rh, h, Rw,
                      precision=lax.Precision.HIGHEST)


if __name__ == "__main__":
    CROP = 64
    key = jax.random.PRNGKey(0)
    k_params, k_x = jax.random.split(key)
    params = init_generator_params(k_params)
    prep = jax.tree_util.tree_map(jax.block_until_ready,
                                  prepare_generator_params(params))
    x = jax.random.normal(k_x, (2, NZ, 1, 1), jnp.float32)  # latent (B, nz, 1, 1)

    fwd = jax.jit(functools.partial(generator_forward, crop_size=CROP))
    out = jax.block_until_ready(fwd(prep, x))
    assert out.shape == (2, NC, CROP, CROP), out.shape
    assert bool(jnp.all(jnp.isfinite(out)))

    # Correctness self-check against a pure-XLA transposed-conv reference.
    ref = jax.block_until_ready(
        jax.jit(functools.partial(reference_forward, crop_size=CROP))(params, x))
    np.testing.assert_allclose(np.asarray(out), np.asarray(ref),
                               rtol=2e-2, atol=2e-2)

    print("KERNEL_OK")
</pallas_src>

<mosaic_0001>
module attributes {stable_mosaic.version = 11 : i64} {
  func.func @_mm_kernel(%arg0: i32, %arg1: i32, %arg2: memref<8x1024xbf16, #tpu.memory_space<vmem>>, %arg3: memref<1024x1536xbf16, #tpu.memory_space<vmem>>, %arg4: memref<8x1536xf32, #tpu.memory_space<vmem>>) attributes {dimension_semantics = [#tpu.dimension_semantics<parallel>, #tpu.dimension_semantics<parallel>], iteration_bounds = array<i64: 1, 3>, scalar_prefetch = 0 : i64, scratch_operands = 0 : i64, tpu.core_type = #tpu.core_type<tc>, window_params = [{transform_indices = @transform_0, window_bounds = array<i64: 8, 1024>}, {transform_indices = @transform_1, window_bounds = array<i64: 1024, 1536>}, {transform_indices = @transform_2, window_bounds = array<i64: 8, 1536>}]} {
    %c0 = arith.constant 0 : index
    %c0_0 = arith.constant 0 : index
    %0 = vector.load %arg2[%c0, %c0_0] : memref<8x1024xbf16, #tpu.memory_space<vmem>>, vector<8x1024xbf16>
    %c0_1 = arith.constant 0 : index
    %c0_2 = arith.constant 0 : index
    %1 = vector.load %arg3[%c0_1, %c0_2] : memref<1024x1536xbf16, #tpu.memory_space<vmem>>, vector<1024x1536xbf16>
    %cst = arith.constant dense<0.000000e+00> : vector<8x1536xf32>
    %2 = tpu.matmul %0, %1, %cst {dimension_numbers = #tpu.dot_dimension_numbers<[1], [0], [0], [1], [0, 0, 1, 1], [], []>} : vector<8x1024xbf16>, vector<1024x1536xbf16>, vector<8x1536xf32> -> vector<8x1536xf32>
    %c0_3 = arith.constant 0 : index
    %c0_4 = arith.constant 0 : index
    %3 = vector.load %arg4[%c0_3, %c0_4] : memref<8x1536xf32, #tpu.memory_space<vmem>>, vector<8x1536xf32>
    tpu.vector_store %arg4[%c0_3, %c0_4], %2 {strides = array<i32>} : memref<8x1536xf32, #tpu.memory_space<vmem>>, vector<8x1536xf32>,
    return
  }
  func.func @transform_0(%arg0: i32, %arg1: i32) -> (i32, i32) {
    %c0_i32 = arith.constant 0 : i32
    %c0_i32_0 = arith.constant 0 : i32
    return %arg0, %c0_i32 : i32, i32
  }
  func.func @transform_1(%arg0: i32, %arg1: i32) -> (i32, i32) {
    %c0_i32 = arith.constant 0 : i32
    %c0_i32_0 = arith.constant 0 : i32
    return %c0_i32, %arg1 : i32, i32
  }
  func.func @transform_2(%arg0: i32, %arg1: i32) -> (i32, i32) {
    %c0_i32 = arith.constant 0 : i32
    return %arg0, %arg1 : i32, i32
  }
}

module attributes {stable_mosaic.version = 11 : i64} {
  func.func @_bn_relu_kernel(%arg0: i32, %arg1: memref<18x512xf32, #tpu.memory_space<vmem>>, %arg2: memref<1x512xf32, #tpu.memory_space<vmem>>, %arg3: memref<1x512xf32, #tpu.memory_space<vmem>>, %arg4: memref<18x512xbf16, #tpu.memory_space<vmem>>) attributes {dimension_semantics = [#tpu.dimension_semantics<arbitrary>], iteration_bounds = array<i64: 1>, scalar_prefetch = 0 : i64, scratch_operands = 0 : i64, tpu.core_type = #tpu.core_type<tc>, window_params = [{pipeline_mode = #tpu.pipeline_mode<synchronous>, transform_indices = @transform_0, window_bounds = array<i64: 18, 512>}, {pipeline_mode = #tpu.pipeline_mode<synchronous>, transform_indices = @transform_1, window_bounds = array<i64: 1, 512>}, {pipeline_mode = #tpu.pipeline_mode<synchronous>, transform_indices = @transform_2, window_bounds = array<i64: 1, 512>}, {pipeline_mode = #tpu.pipeline_mode<synchronous>, transform_indices = @transform_3, window_bounds = array<i64: 18, 512>}]} {
    %c0 = arith.constant 0 : index
    %c0_0 = arith.constant 0 : index
    %0 = vector.load %arg1[%c0, %c0_0] : memref<18x512xf32, #tpu.memory_space<vmem>>, vector<18x512xf32>
    %cst = arith.constant dense<0.000000e+00> : vector<512xf32>
    %1 = vector.multi_reduction <add>, %0, %cst [0] : vector<18x512xf32> to vector<512xf32>
    %2 = vector.shape_cast %1 : vector<512xf32> to vector<1x512xf32>
    %cst_1 = arith.constant 1.800000e+01 : f32
    %3 = vector.broadcast %cst_1 : f32 to vector<1x512xf32>
    %4 = arith.divf %2, %3 : vector<1x512xf32>
    %5 = vector.broadcast %4 : vector<1x512xf32> to vector<18x512xf32>
    %6 = arith.subf %0, %5 : vector<18x512xf32>
    %7 = arith.mulf %6, %6 : vector<18x512xf32>
    %cst_2 = arith.constant dense<0.000000e+00> : vector<512xf32>
    %8 = vector.multi_reduction <add>, %7, %cst_2 [0] : vector<18x512xf32> to vector<512xf32>
    %9 = vector.shape_cast %8 : vector<512xf32> to vector<1x512xf32>
    %cst_3 = arith.constant 1.800000e+01 : f32
    %10 = vector.broadcast %cst_3 : f32 to vector<1x512xf32>
    %11 = arith.divf %9, %10 : vector<1x512xf32>
    %cst_4 = arith.constant 9.99999974E-6 : f32
    %12 = vector.broadcast %cst_4 : f32 to vector<1x512xf32>
    %13 = arith.addf %11, %12 : vector<1x512xf32>
    %14 = math.rsqrt %13 : vector<1x512xf32>
    %c0_5 = arith.constant 0 : index
    %c0_6 = arith.constant 0 : index
    %15 = vector.load %arg2[%c0_5, %c0_6] : memref<1x512xf32, #tpu.memory_space<vmem>>, vector<1x512xf32>
    %16 = arith.mulf %14, %15 : vector<1x512xf32>
    %17 = vector.broadcast %4 : vector<1x512xf32> to vector<18x512xf32>
    %18 = arith.subf %0, %17 : vector<18x512xf32>
    %19 = vector.broadcast %16 : vector<1x512xf32> to vector<18x512xf32>
    %20 = arith.mulf %18, %19 : vector<18x512xf32>
    %c0_7 = arith.constant 0 : index
    %c0_8 = arith.constant 0 : index
    %21 = vector.load %arg3[%c0_7, %c0_8] : memref<1x512xf32, #tpu.memory_space<vmem>>, vector<1x512xf32>
    %22 = vector.broadcast %21 : vector<1x512xf32> to vector<18x512xf32>
    %23 = arith.addf %20, %22 : vector<18x512xf32>
    %cst_9 = arith.constant 0.000000e+00 : f32
    %24 = vector.broadcast %cst_9 : f32 to vector<18x512xf32>
    %25 = arith.maximumf %23, %24 : vector<18x512xf32>
    %26 = arith.truncf %25 : vector<18x512xf32> to vector<18x512xbf16>
    %c0_10 = arith.constant 0 : index
    %c0_11 = arith.constant 0 : index
    %27 = vector.load %arg4[%c0_10, %c0_11] : memref<18x512xbf16, #tpu.memory_space<vmem>>, vector<18x512xbf16>
    tpu.vector_store %arg4[%c0_10, %c0_11], %26 {strides = array<i32>} : memref<18x512xbf16, #tpu.memory_space<vmem>>, vector<18x512xbf16>,
    return
  }
  func.func @transform_0(%arg0: i32) -> (i32, i32) {
    %c0_i32 = arith.constant 0 : i32
    %c0_i32_0 = arith.constant 0 : i32
    %c0_i32_1 = arith.constant 0 : i32
    return %c0_i32, %c0_i32_0 : i32, i32
  }
  func.func @transform_1(%arg0: i32) -> (i32, i32) {
    %c0_i32 = arith.constant 0 : i32
    %c0_i32_0 = arith.constant 0 : i32
    %c0_i32_1 = arith.constant 0 : i32
    return %c0_i32, %c0_i32_0 : i32, i32
  }
  func.func @transform_2(%arg0: i32) -> (i32, i32) {
    %c0_i32 = arith.constant 0 : i32
    %c0_i32_0 = arith.constant 0 : i32
    %c0_i32_1 = arith.constant 0 : i32
    return %c0_i32, %c0_i32_0 : i32, i32
  }
  func.func @transform_3(%arg0: i32) -> (i32, i32) {
    %c0_i32 = arith.constant 0 : i32
    %c0_i32_0 = arith.constant 0 : i32
    %c0_i32_1 = arith.constant 0 : i32
    return %c0_i32, %c0_i32_0 : i32, i32
  }
}

module attributes {stable_mosaic.version = 11 : i64} {
  func.func @_mm_kernel(%arg0: i32, %arg1: i32, %arg2: memref<24x512xbf16, #tpu.memory_space<vmem>>, %arg3: memref<512x1280xbf16, #tpu.memory_space<vmem>>, %arg4: memref<24x1280xf32, #tpu.memory_space<vmem>>) attributes {dimension_semantics = [#tpu.dimension_semantics<parallel>, #tpu.dimension_semantics<parallel>], iteration_bounds = array<i64: 1, 5>, scalar_prefetch = 0 : i64, scratch_operands = 0 : i64, tpu.core_type = #tpu.core_type<tc>, window_params = [{transform_indices = @transform_0, window_bounds = array<i64: 24, 512>}, {transform_indices = @transform_1, window_bounds = array<i64: 512, 1280>}, {transform_indices = @transform_2, window_bounds = array<i64: 24, 1280>}]} {
    %c0 = arith.constant 0 : index
    %c0_0 = arith.constant 0 : index
    %0 = vector.load %arg2[%c0, %c0_0] : memref<24x512xbf16, #tpu.memory_space<vmem>>, vector<24x512xbf16>
    %c0_1 = arith.constant 0 : index
    %c0_2 = arith.constant 0 : index
    %1 = vector.load %arg3[%c0_1, %c0_2] : memref<512x1280xbf16, #tpu.memory_space<vmem>>, vector<512x1280xbf16>
    %cst = arith.constant dense<0.000000e+00> : vector<24x1280xf32>
    %2 = tpu.matmul %0, %1, %cst {dimension_numbers = #tpu.dot_dimension_numbers<[1], [0], [0], [1], [0, 0, 1, 1], [], []>} : vector<24x512xbf16>, vector<512x1280xbf16>, vector<24x1280xf32> -> vector<24x1280xf32>
    %c0_3 = arith.constant 0 : index
    %c0_4 = arith.constant 0 : index
    %3 = vector.load %arg4[%c0_3, %c0_4] : memref<24x1280xf32, #tpu.memory_space<vmem>>, vector<24x1280xf32>
    tpu.vector_store %arg4[%c0_3, %c0_4], %2 {strides = array<i32>} : memref<24x1280xf32, #tpu.memory_space<vmem>>, vector<24x1280xf32>,
    return
  }
  func.func @transform_0(%arg0: i32, %arg1: i32) -> (i32, i32) {
    %c0_i32 = arith.constant 0 : i32
    %c0_i32_0 = arith.constant 0 : i32
    return %arg0, %c0_i32 : i32, i32
  }
  func.func @transform_1(%arg0: i32, %arg1: i32) -> (i32, i32) {
    %c0_i32 = arith.constant 0 : i32
    %c0_i32_0 = arith.constant 0 : i32
    return %c0_i32, %arg1 : i32, i32
  }
  func.func @transform_2(%arg0: i32, %arg1: i32) -> (i32, i32) {
    %c0_i32 = arith.constant 0 : i32
    return %arg0, %arg1 : i32, i32
  }
}

module attributes {stable_mosaic.version = 11 : i64} {
  func.func @_bn_relu_kernel(%arg0: i32, %arg1: memref<162x256xf32, #tpu.memory_space<vmem>>, %arg2: memref<1x256xf32, #tpu.memory_space<vmem>>, %arg3: memref<1x256xf32, #tpu.memory_space<vmem>>, %arg4: memref<162x256xbf16, #tpu.memory_space<vmem>>) attributes {dimension_semantics = [#tpu.dimension_semantics<arbitrary>], iteration_bounds = array<i64: 1>, scalar_prefetch = 0 : i64, scratch_operands = 0 : i64, tpu.core_type = #tpu.core_type<tc>, window_params = [{pipeline_mode = #tpu.pipeline_mode<synchronous>, transform_indices = @transform_0, window_bounds = array<i64: 162, 256>}, {pipeline_mode = #tpu.pipeline_mode<synchronous>, transform_indices = @transform_1, window_bounds = array<i64: 1, 256>}, {pipeline_mode = #tpu.pipeline_mode<synchronous>, transform_indices = @transform_2, window_bounds = array<i64: 1, 256>}, {pipeline_mode = #tpu.pipeline_mode<synchronous>, transform_indices = @transform_3, window_bounds = array<i64: 162, 256>}]} {
    %c0 = arith.constant 0 : index
    %c0_0 = arith.constant 0 : index
    %0 = vector.load %arg1[%c0, %c0_0] : memref<162x256xf32, #tpu.memory_space<vmem>>, vector<162x256xf32>
    %cst = arith.constant dense<0.000000e+00> : vector<256xf32>
    %1 = vector.multi_reduction <add>, %0, %cst [0] : vector<162x256xf32> to vector<256xf32>
    %2 = vector.shape_cast %1 : vector<256xf32> to vector<1x256xf32>
    %cst_1 = arith.constant 1.620000e+02 : f32
    %3 = vector.broadcast %cst_1 : f32 to vector<1x256xf32>
    %4 = arith.divf %2, %3 : vector<1x256xf32>
    %5 = vector.broadcast %4 : vector<1x256xf32> to vector<162x256xf32>
    %6 = arith.subf %0, %5 : vector<162x256xf32>
    %7 = arith.mulf %6, %6 : vector<162x256xf32>
    %cst_2 = arith.constant dense<0.000000e+00> : vector<256xf32>
    %8 = vector.multi_reduction <add>, %7, %cst_2 [0] : vector<162x256xf32> to vector<256xf32>
    %9 = vector.shape_cast %8 : vector<256xf32> to vector<1x256xf32>
    %cst_3 = arith.constant 1.620000e+02 : f32
    %10 = vector.broadcast %cst_3 : f32 to vector<1x256xf32>
    %11 = arith.divf %9, %10 : vector<1x256xf32>
    %cst_4 = arith.constant 9.99999974E-6 : f32
    %12 = vector.broadcast %cst_4 : f32 to vector<1x256xf32>
    %13 = arith.addf %11, %12 : vector<1x256xf32>
    %14 = math.rsqrt %13 : vector<1x256xf32>
    %c0_5 = arith.constant 0 : index
    %c0_6 = arith.constant 0 : index
    %15 = vector.load %arg2[%c0_5, %c0_6] : memref<1x256xf32, #tpu.memory_space<vmem>>, vector<1x256xf32>
    %16 = arith.mulf %14, %15 : vector<1x256xf32>
    %17 = vector.broadcast %4 : vector<1x256xf32> to vector<162x256xf32>
    %18 = arith.subf %0, %17 : vector<162x256xf32>
    %19 = vector.broadcast %16 : vector<1x256xf32> to vector<162x256xf32>
    %20 = arith.mulf %18, %19 : vector<162x256xf32>
    %c0_7 = arith.constant 0 : index
    %c0_8 = arith.constant 0 : index
    %21 = vector.load %arg3[%c0_7, %c0_8] : memref<1x256xf32, #tpu.memory_space<vmem>>, vector<1x256xf32>
    %22 = vector.broadcast %21 : vector<1x256xf32> to vector<162x256xf32>
    %23 = arith.addf %20, %22 : vector<162x256xf32>
    %cst_9 = arith.constant 0.000000e+00 : f32
    %24 = vector.broadcast %cst_9 : f32 to vector<162x256xf32>
    %25 = arith.maximumf %23, %24 : vector<162x256xf32>
    %26 = arith.truncf %25 : vector<162x256xf32> to vector<162x256xbf16>
    %c0_10 = arith.constant 0 : index
    %c0_11 = arith.constant 0 : index
    %27 = vector.load %arg4[%c0_10, %c0_11] : memref<162x256xbf16, #tpu.memory_space<vmem>>, vector<162x256xbf16>
    tpu.vector_store %arg4[%c0_10, %c0_11], %26 {strides = array<i32>} : memref<162x256xbf16, #tpu.memory_space<vmem>>, vector<162x256xbf16>,
    return
  }
  func.func @transform_0(%arg0: i32) -> (i32, i32) {
    %c0_i32 = arith.constant 0 : i32
    %c0_i32_0 = arith.constant 0 : i32
    %c0_i32_1 = arith.constant 0 : i32
    return %c0_i32, %c0_i32_0 : i32, i32
  }
  func.func @transform_1(%arg0: i32) -> (i32, i32) {
    %c0_i32 = arith.constant 0 : i32
    %c0_i32_0 = arith.constant 0 : i32
    %c0_i32_1 = arith.constant 0 : i32
    return %c0_i32, %c0_i32_0 : i32, i32
  }
  func.func @transform_2(%arg0: i32) -> (i32, i32) {
    %c0_i32 = arith.constant 0 : i32
    %c0_i32_0 = arith.constant 0 : i32
    %c0_i32_1 = arith.constant 0 : i32
    return %c0_i32, %c0_i32_0 : i32, i32
  }
  func.func @transform_3(%arg0: i32) -> (i32, i32) {
    %c0_i32 = arith.constant 0 : i32
    %c0_i32_0 = arith.constant 0 : i32
    %c0_i32_1 = arith.constant 0 : i32
    return %c0_i32, %c0_i32_0 : i32, i32
  }
}

module attributes {stable_mosaic.version = 11 : i64} {
  func.func @_mm_kernel(%arg0: i32, %arg1: i32, %arg2: memref<168x256xbf16, #tpu.memory_space<vmem>>, %arg3: memref<256x896xbf16, #tpu.memory_space<vmem>>, %arg4: memref<168x896xf32, #tpu.memory_space<vmem>>) attributes {dimension_semantics = [#tpu.dimension_semantics<parallel>, #tpu.dimension_semantics<parallel>], iteration_bounds = array<i64: 1, 7>, scalar_prefetch = 0 : i64, scratch_operands = 0 : i64, tpu.core_type = #tpu.core_type<tc>, window_params = [{transform_indices = @transform_0, window_bounds = array<i64: 168, 256>}, {transform_indices = @transform_1, window_bounds = array<i64: 256, 896>}, {transform_indices = @transform_2, window_bounds = array<i64: 168, 896>}]} {
    %c0 = arith.constant 0 : index
    %c0_0 = arith.constant 0 : index
    %0 = vector.load %arg2[%c0, %c0_0] : memref<168x256xbf16, #tpu.memory_space<vmem>>, vector<168x256xbf16>
    %c0_1 = arith.constant 0 : index
    %c0_2 = arith.constant 0 : index
    %1 = vector.load %arg3[%c0_1, %c0_2] : memref<256x896xbf16, #tpu.memory_space<vmem>>, vector<256x896xbf16>
    %cst = arith.constant dense<0.000000e+00> : vector<168x896xf32>
    %2 = tpu.matmul %0, %1, %cst {dimension_numbers = #tpu.dot_dimension_numbers<[1], [0], [0], [1], [0, 0, 1, 1], [], []>} : vector<168x256xbf16>, vector<256x896xbf16>, vector<168x896xf32> -> vector<168x896xf32>
    %c0_3 = arith.constant 0 : index
    %c0_4 = arith.constant 0 : index
    %3 = vector.load %arg4[%c0_3, %c0_4] : memref<168x896xf32, #tpu.memory_space<vmem>>, vector<168x896xf32>
    tpu.vector_store %arg4[%c0_3, %c0_4], %2 {strides = array<i32>} : memref<168x896xf32, #tpu.memory_space<vmem>>, vector<168x896xf32>,
    return
  }
  func.func @transform_0(%arg0: i32, %arg1: i32) -> (i32, i32) {
    %c0_i32 = arith.constant 0 : i32
    %c0_i32_0 = arith.constant 0 : i32
    return %arg0, %c0_i32 : i32, i32
  }
  func.func @transform_1(%arg0: i32, %arg1: i32) -> (i32, i32) {
    %c0_i32 = arith.constant 0 : i32
    %c0_i32_0 = arith.constant 0 : i32
    return %c0_i32, %arg1 : i32, i32
  }
  func.func @transform_2(%arg0: i32, %arg1: i32) -> (i32, i32) {
    %c0_i32 = arith.constant 0 : i32
    return %arg0, %arg1 : i32, i32
  }
}

module attributes {stable_mosaic.version = 11 : i64} {
  func.func @_bn_relu_kernel(%arg0: i32, %arg1: memref<882x128xf32, #tpu.memory_space<vmem>>, %arg2: memref<1x128xf32, #tpu.memory_space<vmem>>, %arg3: memref<1x128xf32, #tpu.memory_space<vmem>>, %arg4: memref<882x128xbf16, #tpu.memory_space<vmem>>) attributes {dimension_semantics = [#tpu.dimension_semantics<arbitrary>], iteration_bounds = array<i64: 1>, scalar_prefetch = 0 : i64, scratch_operands = 0 : i64, tpu.core_type = #tpu.core_type<tc>, window_params = [{pipeline_mode = #tpu.pipeline_mode<synchronous>, transform_indices = @transform_0, window_bounds = array<i64: 882, 128>}, {pipeline_mode = #tpu.pipeline_mode<synchronous>, transform_indices = @transform_1, window_bounds = array<i64: 1, 128>}, {pipeline_mode = #tpu.pipeline_mode<synchronous>, transform_indices = @transform_2, window_bounds = array<i64: 1, 128>}, {pipeline_mode = #tpu.pipeline_mode<synchronous>, transform_indices = @transform_3, window_bounds = array<i64: 882, 128>}]} {
    %c0 = arith.constant 0 : index
    %c0_0 = arith.constant 0 : index
    %0 = vector.load %arg1[%c0, %c0_0] : memref<882x128xf32, #tpu.memory_space<vmem>>, vector<882x128xf32>
    %cst = arith.constant dense<0.000000e+00> : vector<128xf32>
    %1 = vector.multi_reduction <add>, %0, %cst [0] : vector<882x128xf32> to vector<128xf32>
    %2 = vector.shape_cast %1 : vector<128xf32> to vector<1x128xf32>
    %cst_1 = arith.constant 8.820000e+02 : f32
    %3 = vector.broadcast %cst_1 : f32 to vector<1x128xf32>
    %4 = arith.divf %2, %3 : vector<1x128xf32>
    %5 = vector.broadcast %4 : vector<1x128xf32> to vector<882x128xf32>
    %6 = arith.subf %0, %5 : vector<882x128xf32>
    %7 = arith.mulf %6, %6 : vector<882x128xf32>
    %cst_2 = arith.constant dense<0.000000e+00> : vector<128xf32>
    %8 = vector.multi_reduction <add>, %7, %cst_2 [0] : vector<882x128xf32> to vector<128xf32>
    %9 = vector.shape_cast %8 : vector<128xf32> to vector<1x128xf32>
    %cst_3 = arith.constant 8.820000e+02 : f32
    %10 = vector.broadcast %cst_3 : f32 to vector<1x128xf32>
    %11 = arith.divf %9, %10 : vector<1x128xf32>
    %cst_4 = arith.constant 9.99999974E-6 : f32
    %12 = vector.broadcast %cst_4 : f32 to vector<1x128xf32>
    %13 = arith.addf %11, %12 : vector<1x128xf32>
    %14 = math.rsqrt %13 : vector<1x128xf32>
    %c0_5 = arith.constant 0 : index
    %c0_6 = arith.constant 0 : index
    %15 = vector.load %arg2[%c0_5, %c0_6] : memref<1x128xf32, #tpu.memory_space<vmem>>, vector<1x128xf32>
    %16 = arith.mulf %14, %15 : vector<1x128xf32>
    %17 = vector.broadcast %4 : vector<1x128xf32> to vector<882x128xf32>
    %18 = arith.subf %0, %17 : vector<882x128xf32>
    %19 = vector.broadcast %16 : vector<1x128xf32> to vector<882x128xf32>
    %20 = arith.mulf %18, %19 : vector<882x128xf32>
    %c0_7 = arith.constant 0 : index
    %c0_8 = arith.constant 0 : index
    %21 = vector.load %arg3[%c0_7, %c0_8] : memref<1x128xf32, #tpu.memory_space<vmem>>, vector<1x128xf32>
    %22 = vector.broadcast %21 : vector<1x128xf32> to vector<882x128xf32>
    %23 = arith.addf %20, %22 : vector<882x128xf32>
    %cst_9 = arith.constant 0.000000e+00 : f32
    %24 = vector.broadcast %cst_9 : f32 to vector<882x128xf32>
    %25 = arith.maximumf %23, %24 : vector<882x128xf32>
    %26 = arith.truncf %25 : vector<882x128xf32> to vector<882x128xbf16>
    %c0_10 = arith.constant 0 : index
    %c0_11 = arith.constant 0 : index
    %27 = vector.load %arg4[%c0_10, %c0_11] : memref<882x128xbf16, #tpu.memory_space<vmem>>, vector<882x128xbf16>
    tpu.vector_store %arg4[%c0_10, %c0_11], %26 {strides = array<i32>} : memref<882x128xbf16, #tpu.memory_space<vmem>>, vector<882x128xbf16>,
    return
  }
  func.func @transform_0(%arg0: i32) -> (i32, i32) {
    %c0_i32 = arith.constant 0 : i32
    %c0_i32_0 = arith.constant 0 : i32
    %c0_i32_1 = arith.constant 0 : i32
    return %c0_i32, %c0_i32_0 : i32, i32
  }
  func.func @transform_1(%arg0: i32) -> (i32, i32) {
    %c0_i32 = arith.constant 0 : i32
    %c0_i32_0 = arith.constant 0 : i32
    %c0_i32_1 = arith.constant 0 : i32
    return %c0_i32, %c0_i32_0 : i32, i32
  }
  func.func @transform_2(%arg0: i32) -> (i32, i32) {
    %c0_i32 = arith.constant 0 : i32
    %c0_i32_0 = arith.constant 0 : i32
    %c0_i32_1 = arith.constant 0 : i32
    return %c0_i32, %c0_i32_0 : i32, i32
  }
  func.func @transform_3(%arg0: i32) -> (i32, i32) {
    %c0_i32 = arith.constant 0 : i32
    %c0_i32_0 = arith.constant 0 : i32
    %c0_i32_1 = arith.constant 0 : i32
    return %c0_i32, %c0_i32_0 : i32, i32
  }
}

module attributes {stable_mosaic.version = 11 : i64} {
  func.func @_mm_kernel(%arg0: i32, %arg1: i32, %arg2: memref<448x128xbf16, #tpu.memory_space<vmem>>, %arg3: memref<128x256xbf16, #tpu.memory_space<vmem>>, %arg4: memref<448x256xf32, #tpu.memory_space<vmem>>) attributes {dimension_semantics = [#tpu.dimension_semantics<parallel>, #tpu.dimension_semantics<parallel>], iteration_bounds = array<i64: 2, 1>, scalar_prefetch = 0 : i64, scratch_operands = 0 : i64, tpu.core_type = #tpu.core_type<tc>, window_params = [{transform_indices = @transform_0, window_bounds = array<i64: 448, 128>}, {transform_indices = @transform_1, window_bounds = array<i64: 128, 256>}, {transform_indices = @transform_2, window_bounds = array<i64: 448, 256>}]} {
    %c0 = arith.constant 0 : index
    %c0_0 = arith.constant 0 : index
    %0 = vector.load %arg2[%c0, %c0_0] : memref<448x128xbf16, #tpu.memory_space<vmem>>, vector<448x128xbf16>
    %c0_1 = arith.constant 0 : index
    %c0_2 = arith.constant 0 : index
    %1 = vector.load %arg3[%c0_1, %c0_2] : memref<128x256xbf16, #tpu.memory_space<vmem>>, vector<128x256xbf16>
    %cst = arith.constant dense<0.000000e+00> : vector<448x256xf32>
    %2 = tpu.matmul %0, %1, %cst {dimension_numbers = #tpu.dot_dimension_numbers<[1], [0], [0], [1], [0, 0, 1, 1], [], []>} : vector<448x128xbf16>, vector<128x256xbf16>, vector<448x256xf32> -> vector<448x256xf32>
    %c0_3 = arith.constant 0 : index
    %c0_4 = arith.constant 0 : index
    %3 = vector.load %arg4[%c0_3, %c0_4] : memref<448x256xf32, #tpu.memory_space<vmem>>, vector<448x256xf32>
    tpu.vector_store %arg4[%c0_3, %c0_4], %2 {strides = array<i32>} : memref<448x256xf32, #tpu.memory_space<vmem>>, vector<448x256xf32>,
    return
  }
  func.func @transform_0(%arg0: i32, %arg1: i32) -> (i32, i32) {
    %c0_i32 = arith.constant 0 : i32
    %c0_i32_0 = arith.constant 0 : i32
    return %arg0, %c0_i32 : i32, i32
  }
  func.func @transform_1(%arg0: i32, %arg1: i32) -> (i32, i32) {
    %c0_i32 = arith.constant 0 : i32
    %c0_i32_0 = arith.constant 0 : i32
    return %c0_i32, %arg1 : i32, i32
  }
  func.func @transform_2(%arg0: i32, %arg1: i32) -> (i32, i32) {
    %c0_i32 = arith.constant 0 : i32
    return %arg0, %arg1 : i32, i32
  }
}

</mosaic_0001>

<bundles_post_ra>
// kernel: generator_forward.8
= control target key start
LH: loop header
LB: loop body
LE: loop exit
PB: predicated region body
PF: predicated region fallthrough
CT: control target
= control target key end

     0   :  { %vm27_vm0 = vcmask 1041408   ;;  %s458_s0 = inlined_call_operand.vmem [shape: f32[18,512], index: 0, kind: input, shape index: {}]   ;;  %s459_s1 = inlined_call_operand.vmem [shape: f32[1,512], index: 1, kind: input, shape index: {}]   ;;  %s460_s2 = inlined_call_operand.vmem [shape: f32[1,512], index: 2, kind: input, shape index: {}]   ;;  %s461_s3 = inlined_call_operand.vmem [shape: bf16[18,512], index: 3, kind: output, shape index: {}]  }
   0x1   :  { %v14_v0 = vld [vmem:[%s458_s0] sm:$0xff]  ;;  %v15_v1 = vld [vmem:[%s458_s0 + $0x8] sm:$0xff]  ;;  %v16_v11 = vld [vmem:[%s458_s0 + $0x10] sm:$0xff] }
   0x2   :  { %v18_v2 = vld [vmem:[%s458_s0 + $0x20] sm:$0xff]  ;;  %v19_v3 = vld [vmem:[%s458_s0 + $0x28] sm:$0xff]  ;;  %v17_v12 = vld [vmem:[%s458_s0 + $0x18] sm:$0xff] }
   0x3   :  { %v22_v4 = vld [vmem:[%s458_s0 + $0x40] sm:$0x3]  ;;  %v23_v5 = vld [vmem:[%s458_s0 + $0x48] sm:$0x3]  ;;  %v26_v6 = vadd.f32 %v18_v2, %v14_v0  ;;  %v36_v8 = vadd.f32 %v19_v3, %v15_v1  ;;  %v20_v13 = vld [vmem:[%s458_s0 + $0x30] sm:$0xff] }
   0x4   :  { %v28_v7 = vsel %vm27_vm0, %v22_v4, 0.0  ;;  %v37_v9 = vsel %vm27_vm0, %v23_v5, 0.0  ;;  %v21_v15 = vld [vmem:[%s458_s0 + $0x38] sm:$0xff]  ;;  %v24_v16 = vld [vmem:[%s458_s0 + $0x50] sm:$0x3]  ;;  %v45_v18 = vadd.f32 %v20_v13, %v16_v11 }
   0x5   :  { %v29_v10 = vadd.f32 %v28_v7, %v26_v6  ;;  %v38_v14 = vadd.f32 %v37_v9, %v36_v8  ;;  %v25_v17 = vld [vmem:[%s458_s0 + $0x58] sm:$0x3]  ;;  %v46_v21 = vsel %vm27_vm0, %v24_v16, 0.0  ;;  %v54_v22 = vadd.f32 %v21_v15, %v17_v12 }
   0x6   :  { %v47_v24 = vadd.f32 %v46_v21, %v45_v18  ;;  %v55_v25 = vsel %vm27_vm0, %v25_v17, 0.0 }
   0x7   :  { %v30_v19 = vrot.slane %v29_v10, 4  ;;  %v39_v20 = vrot.slane %v38_v14, 4  ;;  %v56_v27 = vadd.f32 %v55_v25, %v54_v22 }
   0x8   :  { %v48_v29 = vrot.slane %v47_v24, 4 }
   0x9   :  { %v31_v23 = vadd.f32 %v30_v19, %v29_v10  ;;  %v40_v26 = vadd.f32 %v39_v20, %v38_v14  ;;  %v57_v31 = vrot.slane %v56_v27, 4 }
   0xa   :  { %v49_v33 = vadd.f32 %v48_v29, %v47_v24 }
   0xb   :  { %v32_v28 = vrot.slane %v31_v23, 2  ;;  %v41_v30 = vrot.slane %v40_v26, 2  ;;  %v58_v35 = vadd.f32 %v57_v31, %v56_v27 }
   0xc   :  { %v50_v37 = vrot.slane %v49_v33, 2 }
   0xd   :  { %v33_v32 = vadd.f32 %v32_v28, %v31_v23  ;;  %v42_v34 = vadd.f32 %v41_v30, %v40_v26  ;;  %v59_v39 = vrot.slane %v58_v35, 2 }
   0xe   :  { %v51_v41 = vadd.f32 %v50_v37, %v49_v33 }
   0xf   :  { %v34_v36 = vrot.slane %v33_v32, 1  ;;  %v43_v38 = vrot.slane %v42_v34, 1  ;;  %v60_v43 = vadd.f32 %v59_v39, %v58_v35 }
  0x10   :  { %v52_v45 = vrot.slane %v51_v41, 1 }
  0x11   :  { %v35_v40 = vadd.f32 %v34_v36, %v33_v32  ;;  %v44_v42 = vadd.f32 %v43_v38, %v42_v34  ;;  %v61_v47 = vrot.slane %v60_v43, 1 }
  0x12   :  { %v53_v51 = vadd.f32 %v52_v45, %v51_v41 }
  0x13   :  { %v64_v44 = vmul.f32 0.055555556, %v35_v40  ;;  %v65_v46 = vmul.f32 0.055555556, %v44_v42  ;;  %v62_v55 = vadd.f32 %v61_v47, %v60_v43  ;;  %v142_v42 = vlaneseq }
  0x14   :  { %v66_v59 = vmul.f32 0.055555556, %v53_v51 }
  0x15   :  { %v370_v48 = vsub.f32 %v14_v0, %v64_v44  ;;  %v372_v49 = vsub.f32 %v18_v2, %v64_v44  ;;  %v374_v50 = vsub.f32 %v22_v4, %v64_v44  ;;  %v376_v52 = vsub.f32 %v15_v1, %v65_v46 }
  0x16   :  { %v378_v53 = vsub.f32 %v19_v3, %v65_v46  ;;  %v380_v54 = vsub.f32 %v23_v5, %v65_v46  ;;  %v67_v63 = vmul.f32 0.055555556, %v62_v55  ;;  %v395_v2 = vsub.f32 %v16_v11, %v66_v59 }
  0x17   :  { %v80_v56 = vmul.f32 %v370_v48, %v370_v48  ;;  %v84_v57 = vmul.f32 %v372_v49, %v372_v49  ;;  %v88_v58 = vmul.f32 %v374_v50, %v374_v50  ;;  %v81_v60 = vmul.f32 %v376_v52, %v376_v52 }
  0x18   :  { %v85_v61 = vmul.f32 %v378_v53, %v378_v53  ;;  %v89_v62 = vmul.f32 %v380_v54, %v380_v54  ;;  %v397_v3 = vsub.f32 %v20_v13, %v66_v59  ;;  %v400_v6 = vsub.f32 %v17_v12, %v67_v63 }
  0x19   :  { %v92_v0 = vadd.f32 %v84_v57, %v80_v56  ;;  %v93_v1 = vsel %vm27_vm0, %v88_v58, 0.0  ;;  %v402_v7 = vsub.f32 %v21_v15, %v67_v63  ;;  %v404_v9 = vsub.f32 %v24_v16, %v66_v59 }
  0x1a   :  { %v101_v4 = vadd.f32 %v85_v61, %v81_v60  ;;  %v102_v5 = vsel %vm27_vm0, %v89_v62, 0.0  ;;  %v406_v10 = vsub.f32 %v25_v17, %v67_v63  ;;  %v82_v14 = vmul.f32 %v395_v2, %v395_v2 }
  0x1b   :  { %v94_v8 = vadd.f32 %v93_v1, %v92_v0  ;;  %v83_v11 = vmul.f32 %v400_v6, %v400_v6  ;;  %v86_v13 = vmul.f32 %v397_v3, %v397_v3  ;;  %v87_v12 = vmul.f32 %v402_v7, %v402_v7  ;;  %v140_v1 = vld [vmem:[%s459_s1] sm:$0xf] }
  0x1c   :  { %v103_v18 = vadd.f32 %v102_v5, %v101_v4  ;;  %v90_v16 = vmul.f32 %v404_v9, %v404_v9  ;;  %v91_v17 = vmul.f32 %v406_v10, %v406_v10  ;;  %v143_v57 = vshrl.u32 %v142_v42, 7 }
  0x1d   :  { %v95_v15 = vrot.slane %v94_v8, 4  ;;  %v110_v20 = vadd.f32 %v86_v13, %v82_v14  ;;  %v119_v21 = vadd.f32 %v87_v12, %v83_v11  ;;  %v194_v13 = vld [vmem:[%s460_s2] sm:$0xf] }
  0x1e   :  { %v104_v19 = vrot.slane %v103_v18, 4  ;;  %v111_v23 = vsel %vm27_vm0, %v90_v16, 0.0  ;;  %v120_v24 = vsel %vm27_vm0, %v91_v17, 0.0  ;;  %v144_v62 = vsub.s32 0, %v143_v57 }
  0x1f   :  { %v96_v22 = vadd.f32 %v95_v15, %v94_v8  ;;  %v112_v26 = vadd.f32 %v111_v23, %v110_v20  ;;  %v121_v27 = vadd.f32 %v120_v24, %v119_v21  ;;  %v148_v4 = vsub.s32 1, %v143_v57 }
  0x20   :  { %v105_v25 = vadd.f32 %v104_v19, %v103_v18  ;;  %v145_v5 = vrot.slane %v140_v1, %v144_v62  ;;  %v152_v14 = vsub.s32 2, %v143_v57  ;;  %v156_v18 = vsub.s32 3, %v143_v57 }
  0x21   :  { %v97_v28 = vrot.slane %v96_v22, 2  ;;  %v113_v30 = vrot.slane %v112_v26, 4  ;;  %v122_v31 = vrot.slane %v121_v27, 4  ;;  %v149_v8 = vrot.slane %v140_v1, %v148_v4 }
  0x22   :  { %v106_v29 = vrot.slane %v105_v25, 2  ;;  %v153_v17 = vrot.slane %v140_v1, %v152_v14  ;;  %v199_v20 = vrot.slane %v194_v13, %v144_v62  ;;  %v157_v21 = vrot.slane %v140_v1, %v156_v18 }
  0x23   :  { %v98_v32 = vadd.f32 %v97_v28, %v96_v22  ;;  %v114_v34 = vadd.f32 %v113_v30, %v112_v26  ;;  %v123_v35 = vadd.f32 %v122_v31, %v121_v27  ;;  %v203_v23 = vrot.slane %v194_v13, %v148_v4 }
  0x24   :  { %v107_v33 = vadd.f32 %v106_v29, %v105_v25  ;;  %v207_v24 = vrot.slane %v194_v13, %v152_v14  ;;  %v211_v27 = vrot.slane %v194_v13, %v156_v18 }
  0x25   :  { %v99_v36 = vrot.slane %v98_v32, 1  ;;  %v115_v38 = vrot.slane %v114_v34, 2  ;;  %v124_v39 = vrot.slane %v123_v35, 2 }
  0x26   :  { %v108_v37 = vrot.slane %v107_v33, 1 }
  0x27   :  { %v100_v40 = vadd.f32 %v99_v36, %v98_v32  ;;  %v116_v43 = vadd.f32 %v115_v38, %v114_v34  ;;  %v125_v44 = vadd.f32 %v124_v39, %v123_v35 }
  0x28   :  { %v109_v41 = vadd.f32 %v108_v37, %v107_v33 }
  0x29   :  { %v128_v45 = vmul.f32 0.055555556, %v100_v40  ;;  %v117_v47 = vrot.slane %v116_v43, 1  ;;  %v126_v51 = vrot.slane %v125_v44, 1 }
  0x2a   :  { %v129_v46 = vmul.f32 0.055555556, %v109_v41 }
  0x2b   :  { %v132_v55 = vadd.f32 1e-05, %v128_v45  ;;  %v118_v58 = vadd.f32 %v117_v47, %v116_v43  ;;  %v127_v59 = vadd.f32 %v126_v51, %v125_v44 }
  0x2c   :  { %v133_v56 = vadd.f32 1e-05, %v129_v46 }
  0x2d   :  { %302 = vrsqrt.f32 %v132_v55  ;;  %v130_v60 = vmul.f32 0.055555556, %v118_v58  ;;  %v131_v61 = vmul.f32 0.055555556, %v127_v59 }
  0x2e   :  { %304 = vrsqrt.f32 %v133_v56 }
  0x2f   :  { %v134_v63 = vadd.f32 1e-05, %v130_v60  ;;  %v135_v0 = vadd.f32 1e-05, %v131_v61 }
  0x31   :  { %306 = vrsqrt.f32 %v134_v63 }
  0x32   :  { %308 = vrsqrt.f32 %v135_v0 }
  0x37   :  { %v303_v11 = vpop.eup %302 }
  0x38   :  { %v305_v12 = vpop.eup %304  ;;  %v162_v15 = vmul.f32 %v303_v11, %v145_v5 }
  0x39   :  { %v163_v16 = vmul.f32 %v305_v12, %v149_v8 }
  0x3a   :  { %v169_v19 = vrot.slane %v162_v15, %v144_v62 }
  0x3b   :  { %v173_v22 = vrot.slane %v163_v16, %v144_v62  ;;  %v307_v25 = vpop.eup %306 }
  0x3c   :  { %v182_v26 = vmul.f32 %v169_v19, %v370_v48  ;;  %v186_v28 = vmul.f32 %v169_v19, %v372_v49  ;;  %v190_v29 = vmul.f32 %v169_v19, %v374_v50  ;;  %v309_v30 = vpop.eup %308  ;;  %v164_v32 = vmul.f32 %v307_v25, %v153_v17 }
  0x3d   :  { %v183_v31 = vmul.f32 %v173_v22, %v376_v52  ;;  %v187_v33 = vmul.f32 %v173_v22, %v378_v53  ;;  %v191_v34 = vmul.f32 %v173_v22, %v380_v54  ;;  %v165_v36 = vmul.f32 %v309_v30, %v157_v21 }
  0x3e   :  { %v216_v35 = vadd.f32 %v199_v20, %v182_v26  ;;  %v220_v37 = vadd.f32 %v199_v20, %v186_v28  ;;  %v224_v38 = vadd.f32 %v199_v20, %v190_v29  ;;  %v177_v40 = vrot.slane %v164_v32, %v144_v62 }
  0x3f   :  { %v217_v39 = vadd.f32 %v203_v23, %v183_v31  ;;  %v221_v48 = vadd.f32 %v203_v23, %v187_v33  ;;  %v225_v41 = vadd.f32 %v203_v23, %v191_v34  ;;  %v181_v49 = vrot.slane %v165_v36, %v144_v62 }
  0x40   :  { %v228_v42 = vmax.f32 %v216_v35, 0.0  ;;  %v232_v43 = vmax.f32 %v220_v37, 0.0  ;;  %v236_v50 = vmax.f32 %v224_v38, 0.0  ;;  %v184_v52 = vmul.f32 %v177_v40, %v395_v2 }
  0x41   :  { %v229_v44 = vmax.f32 %v217_v39, 0.0  ;;  %v233_v45 = vmax.f32 %v221_v48, 0.0  ;;  %v188_v53 = vmul.f32 %v177_v40, %v397_v3  ;;  %v185_v54 = vmul.f32 %v181_v49, %v400_v6 }
  0x42   :  { %v189_v46 = vmul.f32 %v181_v49, %v402_v7  ;;  %v237_v47 = vmax.f32 %v225_v41, 0.0  ;;  %v192_v51 = vmul.f32 %v177_v40, %v404_v9  ;;  %v218_v56 = vadd.f32 %v207_v24, %v184_v52 }
  0x43   :  { %v296_v55 = vpack.c.bf16 %v229_v44, %v228_v42  ;;  %v298_v57 = vpack.c.bf16 %v233_v45, %v232_v43  ;;  %v222_v58 = vadd.f32 %v207_v24, %v188_v53  ;;  %v219_v59 = vadd.f32 %v211_v27, %v185_v54 }
  0x44   :  { %v223_v60 = vadd.f32 %v211_v27, %v189_v46  ;;  %v300_v61 = vpack.c.bf16 %v237_v47, %v236_v50  ;;  %v193_v62 = vmul.f32 %v181_v49, %v406_v10  ;;  %v230_v2 = vmax.f32 %v218_v56, 0.0 }
  0x45   :  { %280 = vst [vmem:[%s461_s3] sm:$0xff] %v296_v55  ;;  %282 = vst [vmem:[%s461_s3 + $0x10] sm:$0xff] %v298_v57  ;;  %v234_v3 = vmax.f32 %v222_v58, 0.0  ;;  %v226_v6 = vadd.f32 %v207_v24, %v192_v51  ;;  %v231_v7 = vmax.f32 %v219_v59, 0.0 }
  0x46   :  { %v235_v9 = vmax.f32 %v223_v60, 0.0  ;;  %284 = vst [vmem:[%s461_s3 + $0x20] sm:$0x11] %v300_v61  ;;  %v227_v63 = vadd.f32 %v211_v27, %v193_v62 }
  0x47   :  { %v238_v0 = vmax.f32 %v226_v6, 0.0  ;;  %v297_v10 = vpack.c.bf16 %v231_v7, %v230_v2 }
  0x48   :  { %v299_v1 = vpack.c.bf16 %v235_v9, %v234_v3  ;;  %v239_v4 = vmax.f32 %v227_v63, 0.0 }
  0x49   :  { %281 = vst [vmem:[%s461_s3 + $0x8] sm:$0xff] %v297_v10 }
  0x4a   :  { %283 = vst [vmem:[%s461_s3 + $0x18] sm:$0xff] %v299_v1  ;;  %v301_v5 = vpack.c.bf16 %v239_v4, %v238_v0 }
  0x4c   :  { %285 = vst [vmem:[%s461_s3 + $0x28] sm:$0x11] %v301_v5 }

// kernel: generator_forward.9
= control target key start
LH: loop header
LB: loop body
LE: loop exit
PB: predicated region body
PF: predicated region fallthrough
CT: control target
= control target key end

     0   :  { %s4479_s9 = smov 0   ;;  %s4481_s10 = smov 0   ;;  %s5694_s0 = inlined_call_operand.vmem [shape: bf16[24,512], index: 0, kind: input, shape index: {}]   ;;  %s5695_s1 = inlined_call_operand.vmem [shape: bf16[512,6400], index: 1, kind: input, shape index: {}]   ;;  %s5696_s2 = inlined_call_operand.vmem [shape: f32[24,6400], index: 2, kind: output, shape index: {}]  }
   0x1   :  { %s4483_s11 = smov 0   ;;  %s4485_s12 = smov 0  }
   0x2   :  { %s4487_s13 = smov 0  }
   0x3 LB: > { %s21_s14 = sadd.s32 1, %s4458_s12  ;;  %s3509_s15 = sadd.s32 4294967295, %s4462_s13   ;;  %s4462_s13 = sphi %s4487_s13, %s12_s13   ;;  %s4458_s12 = sphi %s4485_s12, %s5701_s12   ;;  %s4454_s11 = sphi %s4483_s11, %s5700_s11   ;;  %s4450_s10 = sphi %s4481_s10, %s5699_s10   ;;  %s4446_s9 = sphi %s4479_s9, %s5698_s9  }
   0x4   : > { %p22_p0 = scmp.ge.s32.totalorder %s21_s14, 5  ;;  %p64_p1 = scmp.ne.s32.totalorder %s4450_s10, %s4446_s9 }
   0x5   : > { %p65_p2 = scmp.eq.s32.totalorder %s4462_s13, 0  ;;  %p96_p4 = scmp.eq.s32.totalorder %s3509_s15, 4 }
   0x6   : > { %s5703_s14 = smov (%p22_p0, %s21_s14), 0  ;;  %s57_s17 = sadd.s32 1, %s4450_s10 }
   0x7   : > { %p66_p3 = por %p65_p2, %p64_p1  ;;  %s54_s16 = ssub.s32 %s4458_s12, %s5703_s14 }
   0x8   : > { %p55_p5 = scmp.eq.s32.totalorder %s54_s16, 0  ;;  %p4514_p6 = por %p96_p4, %p64_p1 }
   0x9   : > { %p3513_p7 = scmp.ge.s32.totalorder %s4462_s13, 5 }
   0xa   : > { %s4519_s19 = scalar_select %p55_p5, %s4450_s10, %s57_s17  }
   0xb   : > { %128 = sbr.rel (%p3513_p7) target bundleno = 183 (0xb7), region = 20 }
  0x12   : > { %131 = sbr.rel (!%p66_p3) target bundleno = 183 (0xb7), region = 24  ;;  %s133_s20 = sand.u32 (%p66_p3), 1, %s4450_s10  }
  0x13   : > { %s3847_s21 = smul.u32 (%p66_p3), 40, %s4458_s12 }
  0x14   : > { %s3887_s22 = smul.u32 (%p66_p3), 2560, %s133_s20 }
  0x15   : > { %s4527_s25 = scalar_lea.vmem (%p66_p3), %s5695_s1, %s3847_s21 }
  0x16   : > { %v151_v0 = vld [vmem:[%s4527_s25] sm:$0xff] (%p66_p3)  ;;  %v153_v1 = vld [vmem:[%s4527_s25 + $0x8] sm:$0xff] (%p66_p3)  ;;  %v155_v2 = vld [vmem:[%s4527_s25 + $0x10] sm:$0xff] (%p66_p3)  ;;  %s4532_s26 = scalar_lea.vmem (%p66_p3), [#allocation2], %s3887_s22 }
  0x17   : > { %152 = vst [vmem:[%s4532_s26] sm:$0xff] (%p66_p3), %v151_v0  ;;  %154 = vst [vmem:[%s4532_s26 + $0x8] sm:$0xff] (%p66_p3), %v153_v1  ;;  %v157_v3 = vld [vmem:[%s4527_s25 + $0x18] sm:$0xff] (%p66_p3)  ;;  %v159_v4 = vld [vmem:[%s4527_s25 + $0x20] sm:$0xff] (%p66_p3) }
  0x18   : > { %156 = vst [vmem:[%s4532_s26 + $0x10] sm:$0xff] (%p66_p3), %v155_v2  ;;  %v161_v5 = vld [vmem:[%s4527_s25 + $0xc8] sm:$0xff] (%p66_p3)  ;;  %158 = vst [vmem:[%s4532_s26 + $0x18] sm:$0xff] (%p66_p3), %v157_v3  ;;  %v163_v6 = vld [vmem:[%s4527_s25 + $0xd0] sm:$0xff] (%p66_p3) }
  0x19   : > { %160 = vst [vmem:[%s4532_s26 + $0x20] sm:$0xff] %v159_v4  ;;  %162 = vst [vmem:[%s4532_s26 + $0x28] sm:$0xff] %v161_v5  ;;  %v165_v7 = vld [vmem:[%s4527_s25 + $0xd8] sm:$0xff]  ;;  %v167_v8 = vld [vmem:[%s4527_s25 + $0xe0] sm:$0xff] }
  0x1a   : > { %164 = vst [vmem:[%s4532_s26 + $0x30] sm:$0xff] %v163_v6  ;;  %166 = vst [vmem:[%s4532_s26 + $0x38] sm:$0xff] %v165_v7  ;;  %v169_v9 = vld [vmem:[%s4527_s25 + $0xe8] sm:$0xff]  ;;  %v171_v10 = vld [vmem:[%s4527_s25 + $0x190] sm:$0xff] }
  0x1b   : > { %168 = vst [vmem:[%s4532_s26 + $0x40] sm:$0xff] %v167_v8  ;;  %v173_v11 = vld [vmem:[%s4527_s25 + $0x198] sm:$0xff]  ;;  %170 = vst [vmem:[%s4532_s26 + $0x48] sm:$0xff] %v169_v9  ;;  %v175_v12 = vld [vmem:[%s4527_s25 + $0x1a0] sm:$0xff] }
  0x1c   : > { %172 = vst [vmem:[%s4532_s26 + $0x50] sm:$0xff] %v171_v10  ;;  %174 = vst [vmem:[%s4532_s26 + $0x58] sm:$0xff] %v173_v11  ;;  %v177_v13 = vld [vmem:[%s4527_s25 + $0x1a8] sm:$0xff]  ;;  %v179_v14 = vld [vmem:[%s4527_s25 + $0x1b0] sm:$0xff] }
  0x1d   : > { %176 = vst [vmem:[%s4532_s26 + $0x60] sm:$0xff] %v175_v12  ;;  %178 = vst [vmem:[%s4532_s26 + $0x68] sm:$0xff] %v177_v13  ;;  %v181_v15 = vld [vmem:[%s4527_s25 + $0x258] sm:$0xff]  ;;  %v183_v16 = vld [vmem:[%s4527_s25 + $0x260] sm:$0xff] }
  0x1e   : > { %180 = vst [vmem:[%s4532_s26 + $0x70] sm:$0xff] %v179_v14  ;;  %v185_v17 = vld [vmem:[%s4527_s25 + $0x268] sm:$0xff]  ;;  %182 = vst [vmem:[%s4532_s26 + $0x78] sm:$0xff] %v181_v15  ;;  %v187_v18 = vld [vmem:[%s4527_s25 + $0x270] sm:$0xff] }
  0x1f   : > { %184 = vst [vmem:[%s4532_s26 + $0x80] sm:$0xff] %v183_v16  ;;  %186 = vst [vmem:[%s4532_s26 + $0x88] sm:$0xff] %v185_v17  ;;  %v189_v19 = vld [vmem:[%s4527_s25 + $0x278] sm:$0xff]  ;;  %v191_v20 = vld [vmem:[%s4527_s25 + $0x320] sm:$0xff] }
  0x20   : > { %188 = vst [vmem:[%s4532_s26 + $0x90] sm:$0xff] %v187_v18  ;;  %190 = vst [vmem:[%s4532_s26 + $0x98] sm:$0xff] %v189_v19  ;;  %v193_v21 = vld [vmem:[%s4527_s25 + $0x328] sm:$0xff]  ;;  %v195_v22 = vld [vmem:[%s4527_s25 + $0x330] sm:$0xff] }
  0x21   : > { %192 = vst [vmem:[%s4532_s26 + $0xa0] sm:$0xff] %v191_v20  ;;  %v197_v23 = vld [vmem:[%s4527_s25 + $0x338] sm:$0xff]  ;;  %194 = vst [vmem:[%s4532_s26 + $0xa8] sm:$0xff] %v193_v21  ;;  %v199_v24 = vld [vmem:[%s4527_s25 + $0x340] sm:$0xff] }
  0x22   : > { %196 = vst [vmem:[%s4532_s26 + $0xb0] sm:$0xff] %v195_v22  ;;  %198 = vst [vmem:[%s4532_s26 + $0xb8] sm:$0xff] %v197_v23  ;;  %v201_v25 = vld [vmem:[%s4527_s25 + $0x3e8] sm:$0xff]  ;;  %v203_v26 = vld [vmem:[%s4527_s25 + $0x3f0] sm:$0xff] }
  0x23   : > { %200 = vst [vmem:[%s4532_s26 + $0xc0] sm:$0xff] %v199_v24  ;;  %202 = vst [vmem:[%s4532_s26 + $0xc8] sm:$0xff] %v201_v25  ;;  %v205_v27 = vld [vmem:[%s4527_s25 + $0x3f8] sm:$0xff]  ;;  %v207_v28 = vld [vmem:[%s4527_s25 + $0x400] sm:$0xff] }
  0x24   : > { %204 = vst [vmem:[%s4532_s26 + $0xd0] sm:$0xff] %v203_v26  ;;  %v209_v29 = vld [vmem:[%s4527_s25 + $0x408] sm:$0xff]  ;;  %206 = vst [vmem:[%s4532_s26 + $0xd8] sm:$0xff] %v205_v27  ;;  %v211_v30 = vld [vmem:[%s4527_s25 + $0x4b0] sm:$0xff] }
  0x25   : > { %208 = vst [vmem:[%s4532_s26 + $0xe0] sm:$0xff] %v207_v28  ;;  %210 = vst [vmem:[%s4532_s26 + $0xe8] sm:$0xff] %v209_v29  ;;  %v213_v31 = vld [vmem:[%s4527_s25 + $0x4b8] sm:$0xff]  ;;  %v215_v32 = vld [vmem:[%s4527_s25 + $0x4c0] sm:$0xff] }
  0x26   : > { %212 = vst [vmem:[%s4532_s26 + $0xf0] sm:$0xff] %v211_v30  ;;  %214 = vst [vmem:[%s4532_s26 + $0xf8] sm:$0xff] %v213_v31  ;;  %v217_v33 = vld [vmem:[%s4527_s25 + $0x4c8] sm:$0xff]  ;;  %v219_v34 = vld [vmem:[%s4527_s25 + $0x4d0] sm:$0xff] }
  0x27   : > { %216 = vst [vmem:[%s4532_s26 + $0x100] sm:$0xff] %v215_v32  ;;  %v221_v35 = vld [vmem:[%s4527_s25 + $0x578] sm:$0xff]  ;;  %218 = vst [vmem:[%s4532_s26 + $0x108] sm:$0xff] %v217_v33  ;;  %v223_v36 = vld [vmem:[%s4527_s25 + $0x580] sm:$0xff] }
  0x28   : > { %220 = vst [vmem:[%s4532_s26 + $0x110] sm:$0xff] %v219_v34  ;;  %222 = vst [vmem:[%s4532_s26 + $0x118] sm:$0xff] %v221_v35  ;;  %v225_v37 = vld [vmem:[%s4527_s25 + $0x588] sm:$0xff]  ;;  %v227_v38 = vld [vmem:[%s4527_s25 + $0x590] sm:$0xff] }
  0x29   : > { %224 = vst [vmem:[%s4532_s26 + $0x120] sm:$0xff] %v223_v36  ;;  %226 = vst [vmem:[%s4532_s26 + $0x128] sm:$0xff] %v225_v37  ;;  %v229_v39 = vld [vmem:[%s4527_s25 + $0x598] sm:$0xff]  ;;  %v231_v40 = vld [vmem:[%s4527_s25 + $0x640] sm:$0xff] }
  0x2a   : > { %228 = vst [vmem:[%s4532_s26 + $0x130] sm:$0xff] %v227_v38  ;;  %v233_v41 = vld [vmem:[%s4527_s25 + $0x648] sm:$0xff]  ;;  %230 = vst [vmem:[%s4532_s26 + $0x138] sm:$0xff] %v229_v39  ;;  %v235_v42 = vld [vmem:[%s4527_s25 + $0x650] sm:$0xff] }
  0x2b   : > { %232 = vst [vmem:[%s4532_s26 + $0x140] sm:$0xff] %v231_v40  ;;  %234 = vst [vmem:[%s4532_s26 + $0x148] sm:$0xff] %v233_v41  ;;  %v237_v43 = vld [vmem:[%s4527_s25 + $0x658] sm:$0xff]  ;;  %v239_v44 = vld [vmem:[%s4527_s25 + $0x660] sm:$0xff] }
  0x2c   : > { %236 = vst [vmem:[%s4532_s26 + $0x150] sm:$0xff] %v235_v42  ;;  %238 = vst [vmem:[%s4532_s26 + $0x158] sm:$0xff] %v237_v43  ;;  %v241_v45 = vld [vmem:[%s4527_s25 + $0x708] sm:$0xff]  ;;  %v243_v46 = vld [vmem:[%s4527_s25 + $0x710] sm:$0xff] }
  0x2d   : > { %240 = vst [vmem:[%s4532_s26 + $0x160] sm:$0xff] %v239_v44  ;;  %v245_v47 = vld [vmem:[%s4527_s25 + $0x718] sm:$0xff]  ;;  %242 = vst [vmem:[%s4532_s26 + $0x168] sm:$0xff] %v241_v45  ;;  %v247_v48 = vld [vmem:[%s4527_s25 + $0x720] sm:$0xff] }
  0x2e   : > { %244 = vst [vmem:[%s4532_s26 + $0x170] sm:$0xff] %v243_v46  ;;  %246 = vst [vmem:[%s4532_s26 + $0x178] sm:$0xff] %v245_v47  ;;  %v249_v49 = vld [vmem:[%s4527_s25 + $0x728] sm:$0xff]  ;;  %v251_v50 = vld [vmem:[%s4527_s25 + $0x7d0] sm:$0xff] }
  0x2f   : > { %248 = vst [vmem:[%s4532_s26 + $0x180] sm:$0xff] %v247_v48  ;;  %250 = vst [vmem:[%s4532_s26 + $0x188] sm:$0xff] %v249_v49  ;;  %v253_v51 = vld [vmem:[%s4527_s25 + $0x7d8] sm:$0xff]  ;;  %v255_v52 = vld [vmem:[%s4527_s25 + $0x7e0] sm:$0xff] }
  0x30   : > { %252 = vst [vmem:[%s4532_s26 + $0x190] sm:$0xff] %v251_v50  ;;  %v257_v53 = vld [vmem:[%s4527_s25 + $0x7e8] sm:$0xff]  ;;  %254 = vst [vmem:[%s4532_s26 + $0x198] sm:$0xff] %v253_v51  ;;  %v259_v54 = vld [vmem:[%s4527_s25 + $0x7f0] sm:$0xff] }
  0x31   : > { %256 = vst [vmem:[%s4532_s26 + $0x1a0] sm:$0xff] %v255_v52  ;;  %258 = vst [vmem:[%s4532_s26 + $0x1a8] sm:$0xff] %v257_v53  ;;  %v261_v55 = vld [vmem:[%s4527_s25 + $0x898] sm:$0xff]  ;;  %v263_v56 = vld [vmem:[%s4527_s25 + $0x8a0] sm:$0xff] }
  0x32   : > { %260 = vst [vmem:[%s4532_s26 + $0x1b0] sm:$0xff] %v259_v54  ;;  %262 = vst [vmem:[%s4532_s26 + $0x1b8] sm:$0xff] %v261_v55  ;;  %v265_v57 = vld [vmem:[%s4527_s25 + $0x8a8] sm:$0xff]  ;;  %v267_v58 = vld [vmem:[%s4527_s25 + $0x8b0] sm:$0xff] }
  0x33   : > { %264 = vst [vmem:[%s4532_s26 + $0x1c0] sm:$0xff] %v263_v56  ;;  %v269_v59 = vld [vmem:[%s4527_s25 + $0x8b8] sm:$0xff]  ;;  %266 = vst [vmem:[%s4532_s26 + $0x1c8] sm:$0xff] %v265_v57  ;;  %v271_v60 = vld [vmem:[%s4527_s25 + $0x960] sm:$0xff] }
  0x34   : > { %268 = vst [vmem:[%s4532_s26 + $0x1d0] sm:$0xff] %v267_v58  ;;  %270 = vst [vmem:[%s4532_s26 + $0x1d8] sm:$0xff] %v269_v59  ;;  %v273_v61 = vld [vmem:[%s4527_s25 + $0x968] sm:$0xff]  ;;  %v275_v62 = vld [vmem:[%s4527_s25 + $0x970] sm:$0xff] }
  0x35   : > { %272 = vst [vmem:[%s4532_s26 + $0x1e0] sm:$0xff] %v271_v60  ;;  %274 = vst [vmem:[%s4532_s26 + $0x1e8] sm:$0xff] %v273_v61  ;;  %v277_v63 = vld [vmem:[%s4527_s25 + $0x978] sm:$0xff]  ;;  %v279_v0 = vld [vmem:[%s4527_s25 + $0x980] sm:$0xff] }
  0x36   : > { %276 = vst [vmem:[%s4532_s26 + $0x1f0] sm:$0xff] %v275_v62  ;;  %v281_v1 = vld [vmem:[%s4527_s25 + $0xa28] sm:$0xff]  ;;  %278 = vst [vmem:[%s4532_s26 + $0x1f8] sm:$0xff] %v277_v63  ;;  %v283_v2 = vld [vmem:[%s4527_s25 + $0xa30] sm:$0xff] }
  0x37   : > { %280 = vst [vmem:[%s4532_s26 + $0x200] sm:$0xff] %v279_v0  ;;  %282 = vst [vmem:[%s4532_s26 + $0x208] sm:$0xff] %v281_v1  ;;  %v285_v3 = vld [vmem:[%s4527_s25 + $0xa38] sm:$0xff]  ;;  %v287_v4 = vld [vmem:[%s4527_s25 + $0xa40] sm:$0xff] }
  0x38   : > { %284 = vst [vmem:[%s4532_s26 + $0x210] sm:$0xff] %v283_v2  ;;  %286 = vst [vmem:[%s4532_s26 + $0x218] sm:$0xff] %v285_v3  ;;  %v289_v5 = vld [vmem:[%s4527_s25 + $0xa48] sm:$0xff]  ;;  %v291_v6 = vld [vmem:[%s4527_s25 + $0xaf0] sm:$0xff] }
  0x39   : > { %288 = vst [vmem:[%s4532_s26 + $0x220] sm:$0xff] %v287_v4  ;;  %v293_v7 = vld [vmem:[%s4527_s25 + $0xaf8] sm:$0xff]  ;;  %290 = vst [vmem:[%s4532_s26 + $0x228] sm:$0xff] %v289_v5  ;;  %v295_v8 = vld [vmem:[%s4527_s25 + $0xb00] sm:$0xff] }
  0x3a   : > { %292 = vst [vmem:[%s4532_s26 + $0x230] sm:$0xff] %v291_v6  ;;  %294 = vst [vmem:[%s4532_s26 + $0x238] sm:$0xff] %v293_v7  ;;  %v297_v9 = vld [vmem:[%s4527_s25 + $0xb08] sm:$0xff]  ;;  %v299_v10 = vld [vmem:[%s4527_s25 + $0xb10] sm:$0xff] }
  0x3b   : > { %296 = vst [vmem:[%s4532_s26 + $0x240] sm:$0xff] %v295_v8  ;;  %298 = vst [vmem:[%s4532_s26 + $0x248] sm:$0xff] %v297_v9  ;;  %v301_v11 = vld [vmem:[%s4527_s25 + $0xbb8] sm:$0xff]  ;;  %v303_v12 = vld [vmem:[%s4527_s25 + $0xbc0] sm:$0xff] }
  0x3c   : > { %300 = vst [vmem:[%s4532_s26 + $0x250] sm:$0xff] %v299_v10  ;;  %v305_v13 = vld [vmem:[%s4527_s25 + $0xbc8] sm:$0xff]  ;;  %302 = vst [vmem:[%s4532_s26 + $0x258] sm:$0xff] %v301_v11  ;;  %v307_v14 = vld [vmem:[%s4527_s25 + $0xbd0] sm:$0xff] }
  0x3d   : > { %304 = vst [vmem:[%s4532_s26 + $0x260] sm:$0xff] %v303_v12  ;;  %306 = vst [vmem:[%s4532_s26 + $0x268] sm:$0xff] %v305_v13  ;;  %v309_v15 = vld [vmem:[%s4527_s25 + $0xbd8] sm:$0xff]  ;;  %v311_v16 = vld [vmem:[%s4527_s25 + $0xc80] sm:$0xff] }
  0x3e   : > { %308 = vst [vmem:[%s4532_s26 + $0x270] sm:$0xff] %v307_v14  ;;  %310 = vst [vmem:[%s4532_s26 + $0x278] sm:$0xff] %v309_v15  ;;  %v313_v17 = vld [vmem:[%s4527_s25 + $0xc88] sm:$0xff]  ;;  %v315_v18 = vld [vmem:[%s4527_s25 + $0xc90] sm:$0xff] }
  0x3f   : > { %312 = vst [vmem:[%s4532_s26 + $0x280] sm:$0xff] %v311_v16  ;;  %v317_v19 = vld [vmem:[%s4527_s25 + $0xc98] sm:$0xff]  ;;  %314 = vst [vmem:[%s4532_s26 + $0x288] sm:$0xff] %v313_v17  ;;  %v319_v20 = vld [vmem:[%s4527_s25 + $0xca0] sm:$0xff] }
  0x40   : > { %316 = vst [vmem:[%s4532_s26 + $0x290] sm:$0xff] %v315_v18  ;;  %318 = vst [vmem:[%s4532_s26 + $0x298] sm:$0xff] %v317_v19  ;;  %v321_v21 = vld [vmem:[%s4527_s25 + $0xd48] sm:$0xff]  ;;  %v323_v22 = vld [vmem:[%s4527_s25 + $0xd50] sm:$0xff] }
  0x41   : > { %320 = vst [vmem:[%s4532_s26 + $0x2a0] sm:$0xff] %v319_v20  ;;  %322 = vst [vmem:[%s4532_s26 + $0x2a8] sm:$0xff] %v321_v21  ;;  %v325_v23 = vld [vmem:[%s4527_s25 + $0xd58] sm:$0xff]  ;;  %v327_v24 = vld [vmem:[%s4527_s25 + $0xd60] sm:$0xff] }
  0x42   : > { %324 = vst [vmem:[%s4532_s26 + $0x2b0] sm:$0xff] %v323_v22  ;;  %v329_v25 = vld [vmem:[%s4527_s25 + $0xd68] sm:$0xff]  ;;  %326 = vst [vmem:[%s4532_s26 + $0x2b8] sm:$0xff] %v325_v23  ;;  %v331_v26 = vld [vmem:[%s4527_s25 + $0xe10] sm:$0xff] }
  0x43   : > { %328 = vst [vmem:[%s4532_s26 + $0x2c0] sm:$0xff] %v327_v24  ;;  %330 = vst [vmem:[%s4532_s26 + $0x2c8] sm:$0xff] %v329_v25  ;;  %v333_v27 = vld [vmem:[%s4527_s25 + $0xe18] sm:$0xff]  ;;  %v335_v28 = vld [vmem:[%s4527_s25 + $0xe20] sm:$0xff] }
  0x44   : > { %332 = vst [vmem:[%s4532_s26 + $0x2d0] sm:$0xff] %v331_v26  ;;  %334 = vst [vmem:[%s4532_s26 + $0x2d8] sm:$0xff] %v333_v27  ;;  %v337_v29 = vld [vmem:[%s4527_s25 + $0xe28] sm:$0xff]  ;;  %v339_v30 = vld [vmem:[%s4527_s25 + $0xe30] sm:$0xff] }
  0x45   : > { %336 = vst [vmem:[%s4532_s26 + $0x2e0] sm:$0xff] %v335_v28  ;;  %v341_v31 = vld [vmem:[%s4527_s25 + $0xed8] sm:$0xff]  ;;  %338 = vst [vmem:[%s4532_s26 + $0x2e8] sm:$0xff] %v337_v29  ;;  %v343_v32 = vld [vmem:[%s4527_s25 + $0xee0] sm:$0xff] }
  0x46   : > { %340 = vst [vmem:[%s4532_s26 + $0x2f0] sm:$0xff] %v339_v30  ;;  %342 = vst [vmem:[%s4532_s26 + $0x2f8] sm:$0xff] %v341_v31  ;;  %v345_v33 = vld [vmem:[%s4527_s25 + $0xee8] sm:$0xff]  ;;  %v347_v34 = vld [vmem:[%s4527_s25 + $0xef0] sm:$0xff] }
  0x47   : > { %344 = vst [vmem:[%s4532_s26 + $0x300] sm:$0xff] %v343_v32  ;;  %346 = vst [vmem:[%s4532_s26 + $0x308] sm:$0xff] %v345_v33  ;;  %v349_v35 = vld [vmem:[%s4527_s25 + $0xef8] sm:$0xff]  ;;  %v351_v36 = vld [vmem:[%s4527_s25 + $0xfa0] sm:$0xff] }
  0x48   : > { %348 = vst [vmem:[%s4532_s26 + $0x310] sm:$0xff] %v347_v34  ;;  %v353_v37 = vld [vmem:[%s4527_s25 + $0xfa8] sm:$0xff]  ;;  %350 = vst [vmem:[%s4532_s26 + $0x318] sm:$0xff] %v349_v35  ;;  %v355_v38 = vld [vmem:[%s4527_s25 + $0xfb0] sm:$0xff] }
  0x49   : > { %352 = vst [vmem:[%s4532_s26 + $0x320] sm:$0xff] %v351_v36  ;;  %354 = vst [vmem:[%s4532_s26 + $0x328] sm:$0xff] %v353_v37  ;;  %v357_v39 = vld [vmem:[%s4527_s25 + $0xfb8] sm:$0xff]  ;;  %v359_v40 = vld [vmem:[%s4527_s25 + $0xfc0] sm:$0xff] }
  0x4a   : > { %356 = vst [vmem:[%s4532_s26 + $0x330] sm:$0xff] %v355_v38  ;;  %358 = vst [vmem:[%s4532_s26 + $0x338] sm:$0xff] %v357_v39  ;;  %v361_v41 = vld [vmem:[%s4527_s25 + $0x1068] sm:$0xff]  ;;  %v363_v42 = vld [vmem:[%s4527_s25 + $0x1070] sm:$0xff] }
  0x4b   : > { %360 = vst [vmem:[%s4532_s26 + $0x340] sm:$0xff] %v359_v40  ;;  %v365_v43 = vld [vmem:[%s4527_s25 + $0x1078] sm:$0xff]  ;;  %362 = vst [vmem:[%s4532_s26 + $0x348] sm:$0xff] %v361_v41  ;;  %v367_v44 = vld [vmem:[%s4527_s25 + $0x1080] sm:$0xff] }
  0x4c   : > { %364 = vst [vmem:[%s4532_s26 + $0x350] sm:$0xff] %v363_v42  ;;  %366 = vst [vmem:[%s4532_s26 + $0x358] sm:$0xff] %v365_v43  ;;  %v369_v45 = vld [vmem:[%s4527_s25 + $0x1088] sm:$0xff]  ;;  %v371_v46 = vld [vmem:[%s4527_s25 + $0x1130] sm:$0xff] }
  0x4d   : > { %368 = vst [vmem:[%s4532_s26 + $0x360] sm:$0xff] %v367_v44  ;;  %370 = vst [vmem:[%s4532_s26 + $0x368] sm:$0xff] %v369_v45  ;;  %v373_v47 = vld [vmem:[%s4527_s25 + $0x1138] sm:$0xff]  ;;  %v375_v48 = vld [vmem:[%s4527_s25 + $0x1140] sm:$0xff] }
  0x4e   : > { %372 = vst [vmem:[%s4532_s26 + $0x370] sm:$0xff] %v371_v46  ;;  %v377_v49 = vld [vmem:[%s4527_s25 + $0x1148] sm:$0xff]  ;;  %374 = vst [vmem:[%s4532_s26 + $0x378] sm:$0xff] %v373_v47  ;;  %v379_v50 = vld [vmem:[%s4527_s25 + $0x1150] sm:$0xff] }
  0x4f   : > { %376 = vst [vmem:[%s4532_s26 + $0x380] sm:$0xff] %v375_v48  ;;  %378 = vst [vmem:[%s4532_s26 + $0x388] sm:$0xff] %v377_v49  ;;  %v381_v51 = vld [vmem:[%s4527_s25 + $0x11f8] sm:$0xff]  ;;  %v383_v52 = vld [vmem:[%s4527_s25 + $0x1200] sm:$0xff] }
  0x50   : > { %380 = vst [vmem:[%s4532_s26 + $0x390] sm:$0xff] %v379_v50  ;;  %382 = vst [vmem:[%s4532_s26 + $0x398] sm:$0xff] %v381_v51  ;;  %v385_v53 = vld [vmem:[%s4527_s25 + $0x1208] sm:$0xff]  ;;  %v387_v54 = vld [vmem:[%s4527_s25 + $0x1210] sm:$0xff] }
  0x51   : > { %384 = vst [vmem:[%s4532_s26 + $0x3a0] sm:$0xff] %v383_v52  ;;  %v389_v55 = vld [vmem:[%s4527_s25 + $0x1218] sm:$0xff]  ;;  %386 = vst [vmem:[%s4532_s26 + $0x3a8] sm:$0xff] %v385_v53  ;;  %v391_v56 = vld [vmem:[%s4527_s25 + $0x12c0] sm:$0xff] }
  0x52   : > { %388 = vst [vmem:[%s4532_s26 + $0x3b0] sm:$0xff] %v387_v54  ;;  %390 = vst [vmem:[%s4532_s26 + $0x3b8] sm:$0xff] %v389_v55  ;;  %v393_v57 = vld [vmem:[%s4527_s25 + $0x12c8] sm:$0xff]  ;;  %v395_v58 = vld [vmem:[%s4527_s25 + $0x12d0] sm:$0xff] }
  0x53   : > { %392 = vst [vmem:[%s4532_s26 + $0x3c0] sm:$0xff] %v391_v56  ;;  %394 = vst [vmem:[%s4532_s26 + $0x3c8] sm:$0xff] %v393_v57  ;;  %v397_v59 = vld [vmem:[%s4527_s25 + $0x12d8] sm:$0xff]  ;;  %v399_v60 = vld [vmem:[%s4527_s25 + $0x12e0] sm:$0xff] }
  0x54   : > { %396 = vst [vmem:[%s4532_s26 + $0x3d0] sm:$0xff] %v395_v58  ;;  %v401_v61 = vld [vmem:[%s4527_s25 + $0x1388] sm:$0xff]  ;;  %398 = vst [vmem:[%s4532_s26 + $0x3d8] sm:$0xff] %v397_v59  ;;  %v403_v62 = vld [vmem:[%s4527_s25 + $0x1390] sm:$0xff] }
  0x55   : > { %400 = vst [vmem:[%s4532_s26 + $0x3e0] sm:$0xff] %v399_v60  ;;  %402 = vst [vmem:[%s4532_s26 + $0x3e8] sm:$0xff] %v401_v61  ;;  %v405_v63 = vld [vmem:[%s4527_s25 + $0x1398] sm:$0xff]  ;;  %v407_v0 = vld [vmem:[%s4527_s25 + $0x13a0] sm:$0xff] }
  0x56   : > { %404 = vst [vmem:[%s4532_s26 + $0x3f0] sm:$0xff] %v403_v62  ;;  %406 = vst [vmem:[%s4532_s26 + $0x3f8] sm:$0xff] %v405_v63  ;;  %v409_v1 = vld [vmem:[%s4527_s25 + $0x13a8] sm:$0xff]  ;;  %v411_v2 = vld [vmem:[%s4527_s25 + $0x1450] sm:$0xff] }
  0x57   : > { %408 = vst [vmem:[%s4532_s26 + $0x400] sm:$0xff] %v407_v0  ;;  %v413_v3 = vld [vmem:[%s4527_s25 + $0x1458] sm:$0xff]  ;;  %410 = vst [vmem:[%s4532_s26 + $0x408] sm:$0xff] %v409_v1  ;;  %v415_v4 = vld [vmem:[%s4527_s25 + $0x1460] sm:$0xff] }
  0x58   : > { %412 = vst [vmem:[%s4532_s26 + $0x410] sm:$0xff] %v411_v2  ;;  %414 = vst [vmem:[%s4532_s26 + $0x418] sm:$0xff] %v413_v3  ;;  %v417_v5 = vld [vmem:[%s4527_s25 + $0x1468] sm:$0xff]  ;;  %v419_v6 = vld [vmem:[%s4527_s25 + $0x1470] sm:$0xff] }
  0x59   : > { %416 = vst [vmem:[%s4532_s26 + $0x420] sm:$0xff] %v415_v4  ;;  %418 = vst [vmem:[%s4532_s26 + $0x428] sm:$0xff] %v417_v5  ;;  %v421_v7 = vld [vmem:[%s4527_s25 + $0x1518] sm:$0xff]  ;;  %v423_v8 = vld [vmem:[%s4527_s25 + $0x1520] sm:$0xff] }
  0x5a   : > { %420 = vst [vmem:[%s4532_s26 + $0x430] sm:$0xff] %v419_v6  ;;  %v425_v9 = vld [vmem:[%s4527_s25 + $0x1528] sm:$0xff]  ;;  %422 = vst [vmem:[%s4532_s26 + $0x438] sm:$0xff] %v421_v7  ;;  %v427_v10 = vld [vmem:[%s4527_s25 + $0x1530] sm:$0xff] }
  0x5b   : > { %424 = vst [vmem:[%s4532_s26 + $0x440] sm:$0xff] %v423_v8  ;;  %426 = vst [vmem:[%s4532_s26 + $0x448] sm:$0xff] %v425_v9  ;;  %v429_v11 = vld [vmem:[%s4527_s25 + $0x1538] sm:$0xff]  ;;  %v431_v12 = vld [vmem:[%s4527_s25 + $0x15e0] sm:$0xff] }
  0x5c   : > { %428 = vst [vmem:[%s4532_s26 + $0x450] sm:$0xff] %v427_v10  ;;  %430 = vst [vmem:[%s4532_s26 + $0x458] sm:$0xff] %v429_v11  ;;  %v433_v13 = vld [vmem:[%s4527_s25 + $0x15e8] sm:$0xff]  ;;  %v435_v14 = vld [vmem:[%s4527_s25 + $0x15f0] sm:$0xff] }
  0x5d   : > { %432 = vst [vmem:[%s4532_s26 + $0x460] sm:$0xff] %v431_v12  ;;  %v437_v15 = vld [vmem:[%s4527_s25 + $0x15f8] sm:$0xff]  ;;  %434 = vst [vmem:[%s4532_s26 + $0x468] sm:$0xff] %v433_v13  ;;  %v439_v16 = vld [vmem:[%s4527_s25 + $0x1600] sm:$0xff] }
  0x5e   : > { %436 = vst [vmem:[%s4532_s26 + $0x470] sm:$0xff] %v435_v14  ;;  %438 = vst [vmem:[%s4532_s26 + $0x478] sm:$0xff] %v437_v15  ;;  %v441_v17 = vld [vmem:[%s4527_s25 + $0x16a8] sm:$0xff]  ;;  %v443_v18 = vld [vmem:[%s4527_s25 + $0x16b0] sm:$0xff] }
  0x5f   : > { %440 = vst [vmem:[%s4532_s26 + $0x480] sm:$0xff] %v439_v16  ;;  %442 = vst [vmem:[%s4532_s26 + $0x488] sm:$0xff] %v441_v17  ;;  %v445_v19 = vld [vmem:[%s4527_s25 + $0x16b8] sm:$0xff]  ;;  %v447_v20 = vld [vmem:[%s4527_s25 + $0x16c0] sm:$0xff] }
  0x60   : > { %444 = vst [vmem:[%s4532_s26 + $0x490] sm:$0xff] %v443_v18  ;;  %v449_v21 = vld [vmem:[%s4527_s25 + $0x16c8] sm:$0xff]  ;;  %446 = vst [vmem:[%s4532_s26 + $0x498] sm:$0xff] %v445_v19  ;;  %v451_v22 = vld [vmem:[%s4527_s25 + $0x1770] sm:$0xff] }
  0x61   : > { %448 = vst [vmem:[%s4532_s26 + $0x4a0] sm:$0xff] %v447_v20  ;;  %450 = vst [vmem:[%s4532_s26 + $0x4a8] sm:$0xff] %v449_v21  ;;  %v453_v23 = vld [vmem:[%s4527_s25 + $0x1778] sm:$0xff]  ;;  %v455_v24 = vld [vmem:[%s4527_s25 + $0x1780] sm:$0xff] }
  0x62   : > { %452 = vst [vmem:[%s4532_s26 + $0x4b0] sm:$0xff] %v451_v22  ;;  %454 = vst [vmem:[%s4532_s26 + $0x4b8] sm:$0xff] %v453_v23  ;;  %v457_v25 = vld [vmem:[%s4527_s25 + $0x1788] sm:$0xff]  ;;  %v459_v26 = vld [vmem:[%s4527_s25 + $0x1790] sm:$0xff] }
  0x63   : > { %456 = vst [vmem:[%s4532_s26 + $0x4c0] sm:$0xff] %v455_v24  ;;  %v461_v27 = vld [vmem:[%s4527_s25 + $0x1838] sm:$0xff]  ;;  %458 = vst [vmem:[%s4532_s26 + $0x4c8] sm:$0xff] %v457_v25  ;;  %v463_v28 = vld [vmem:[%s4527_s25 + $0x1840] sm:$0xff] }
  0x64   : > { %460 = vst [vmem:[%s4532_s26 + $0x4d0] sm:$0xff] %v459_v26  ;;  %462 = vst [vmem:[%s4532_s26 + $0x4d8] sm:$0xff] %v461_v27  ;;  %v465_v29 = vld [vmem:[%s4527_s25 + $0x1848] sm:$0xff]  ;;  %v467_v30 = vld [vmem:[%s4527_s25 + $0x1850] sm:$0xff] }
  0x65   : > { %464 = vst [vmem:[%s4532_s26 + $0x4e0] sm:$0xff] %v463_v28  ;;  %466 = vst [vmem:[%s4532_s26 + $0x4e8] sm:$0xff] %v465_v29  ;;  %v469_v31 = vld [vmem:[%s4527_s25 + $0x1858] sm:$0xff]  ;;  %v471_v32 = vld [vmem:[%s4527_s25 + $0x1900] sm:$0xff] }
  0x66   : > { %468 = vst [vmem:[%s4532_s26 + $0x4f0] sm:$0xff] %v467_v30  ;;  %v473_v33 = vld [vmem:[%s4527_s25 + $0x1908] sm:$0xff]  ;;  %470 = vst [vmem:[%s4532_s26 + $0x4f8] sm:$0xff] %v469_v31  ;;  %v475_v34 = vld [vmem:[%s4527_s25 + $0x1910] sm:$0xff] }
  0x67   : > { %472 = vst [vmem:[%s4532_s26 + $0x500] sm:$0xff] %v471_v32  ;;  %474 = vst [vmem:[%s4532_s26 + $0x508] sm:$0xff] %v473_v33  ;;  %v477_v35 = vld [vmem:[%s4527_s25 + $0x1918] sm:$0xff]  ;;  %v479_v36 = vld [vmem:[%s4527_s25 + $0x1920] sm:$0xff] }
  0x68   : > { %476 = vst [vmem:[%s4532_s26 + $0x510] sm:$0xff] %v475_v34  ;;  %478 = vst [vmem:[%s4532_s26 + $0x518] sm:$0xff] %v477_v35  ;;  %v481_v37 = vld [vmem:[%s4527_s25 + $0x19c8] sm:$0xff]  ;;  %v483_v38 = vld [vmem:[%s4527_s25 + $0x19d0] sm:$0xff] }
  0x69   : > { %480 = vst [vmem:[%s4532_s26 + $0x520] sm:$0xff] %v479_v36  ;;  %v485_v39 = vld [vmem:[%s4527_s25 + $0x19d8] sm:$0xff]  ;;  %482 = vst [vmem:[%s4532_s26 + $0x528] sm:$0xff] %v481_v37  ;;  %v487_v40 = vld [vmem:[%s4527_s25 + $0x19e0] sm:$0xff] }
  0x6a   : > { %484 = vst [vmem:[%s4532_s26 + $0x530] sm:$0xff] %v483_v38  ;;  %486 = vst [vmem:[%s4532_s26 + $0x538] sm:$0xff] %v485_v39  ;;  %v489_v41 = vld [vmem:[%s4527_s25 + $0x19e8] sm:$0xff]  ;;  %v491_v42 = vld [vmem:[%s4527_s25 + $0x1a90] sm:$0xff] }
  0x6b   : > { %488 = vst [vmem:[%s4532_s26 + $0x540] sm:$0xff] %v487_v40  ;;  %490 = vst [vmem:[%s4532_s26 + $0x548] sm:$0xff] %v489_v41  ;;  %v493_v43 = vld [vmem:[%s4527_s25 + $0x1a98] sm:$0xff]  ;;  %v495_v44 = vld [vmem:[%s4527_s25 + $0x1aa0] sm:$0xff] }
  0x6c   : > { %492 = vst [vmem:[%s4532_s26 + $0x550] sm:$0xff] %v491_v42  ;;  %v497_v45 = vld [vmem:[%s4527_s25 + $0x1aa8] sm:$0xff]  ;;  %494 = vst [vmem:[%s4532_s26 + $0x558] sm:$0xff] %v493_v43  ;;  %v499_v46 = vld [vmem:[%s4527_s25 + $0x1ab0] sm:$0xff] }
  0x6d   : > { %496 = vst [vmem:[%s4532_s26 + $0x560] sm:$0xff] %v495_v44  ;;  %498 = vst [vmem:[%s4532_s26 + $0x568] sm:$0xff] %v497_v45  ;;  %v501_v47 = vld [vmem:[%s4527_s25 + $0x1b58] sm:$0xff]  ;;  %v503_v48 = vld [vmem:[%s4527_s25 + $0x1b60] sm:$0xff] }
  0x6e   : > { %500 = vst [vmem:[%s4532_s26 + $0x570] sm:$0xff] %v499_v46  ;;  %502 = vst [vmem:[%s4532_s26 + $0x578] sm:$0xff] %v501_v47  ;;  %v505_v49 = vld [vmem:[%s4527_s25 + $0x1b68] sm:$0xff]  ;;  %v507_v50 = vld [vmem:[%s4527_s25 + $0x1b70] sm:$0xff] }
  0x6f   : > { %504 = vst [vmem:[%s4532_s26 + $0x580] sm:$0xff] %v503_v48  ;;  %v509_v51 = vld [vmem:[%s4527_s25 + $0x1b78] sm:$0xff]  ;;  %506 = vst [vmem:[%s4532_s26 + $0x588] sm:$0xff] %v505_v49  ;;  %v511_v52 = vld [vmem:[%s4527_s25 + $0x1c20] sm:$0xff] }
  0x70   : > { %508 = vst [vmem:[%s4532_s26 + $0x590] sm:$0xff] %v507_v50  ;;  %510 = vst [vmem:[%s4532_s26 + $0x598] sm:$0xff] %v509_v51  ;;  %v513_v53 = vld [vmem:[%s4527_s25 + $0x1c28] sm:$0xff]  ;;  %v515_v54 = vld [vmem:[%s4527_s25 + $0x1c30] sm:$0xff] }
  0x71   : > { %512 = vst [vmem:[%s4532_s26 + $0x5a0] sm:$0xff] %v511_v52  ;;  %514 = vst [vmem:[%s4532_s26 + $0x5a8] sm:$0xff] %v513_v53  ;;  %v517_v55 = vld [vmem:[%s4527_s25 + $0x1c38] sm:$0xff]  ;;  %v519_v56 = vld [vmem:[%s4527_s25 + $0x1c40] sm:$0xff] }
  0x72   : > { %516 = vst [vmem:[%s4532_s26 + $0x5b0] sm:$0xff] %v515_v54  ;;  %v521_v57 = vld [vmem:[%s4527_s25 + $0x1ce8] sm:$0xff]  ;;  %518 = vst [vmem:[%s4532_s26 + $0x5b8] sm:$0xff] %v517_v55  ;;  %v523_v58 = vld [vmem:[%s4527_s25 + $0x1cf0] sm:$0xff] }
  0x73   : > { %520 = vst [vmem:[%s4532_s26 + $0x5c0] sm:$0xff] %v519_v56  ;;  %522 = vst [vmem:[%s4532_s26 + $0x5c8] sm:$0xff] %v521_v57  ;;  %v525_v59 = vld [vmem:[%s4527_s25 + $0x1cf8] sm:$0xff]  ;;  %v527_v60 = vld [vmem:[%s4527_s25 + $0x1d00] sm:$0xff] }
  0x74   : > { %524 = vst [vmem:[%s4532_s26 + $0x5d0] sm:$0xff] %v523_v58  ;;  %526 = vst [vmem:[%s4532_s26 + $0x5d8] sm:$0xff] %v525_v59  ;;  %v529_v61 = vld [vmem:[%s4527_s25 + $0x1d08] sm:$0xff]  ;;  %v531_v62 = vld [vmem:[%s4527_s25 + $0x1db0] sm:$0xff] }
  0x75   : > { %528 = vst [vmem:[%s4532_s26 + $0x5e0] sm:$0xff] %v527_v60  ;;  %v533_v63 = vld [vmem:[%s4527_s25 + $0x1db8] sm:$0xff]  ;;  %530 = vst [vmem:[%s4532_s26 + $0x5e8] sm:$0xff] %v529_v61  ;;  %v535_v0 = vld [vmem:[%s4527_s25 + $0x1dc0] sm:$0xff] }
  0x76   : > { %532 = vst [vmem:[%s4532_s26 + $0x5f0] sm:$0xff] %v531_v62  ;;  %534 = vst [vmem:[%s4532_s26 + $0x5f8] sm:$0xff] %v533_v63  ;;  %v537_v1 = vld [vmem:[%s4527_s25 + $0x1dc8] sm:$0xff]  ;;  %v539_v2 = vld [vmem:[%s4527_s25 + $0x1dd0] sm:$0xff] }
  0x77   : > { %536 = vst [vmem:[%s4532_s26 + $0x600] sm:$0xff] %v535_v0  ;;  %538 = vst [vmem:[%s4532_s26 + $0x608] sm:$0xff] %v537_v1  ;;  %v541_v3 = vld [vmem:[%s4527_s25 + $0x1e78] sm:$0xff]  ;;  %v543_v4 = vld [vmem:[%s4527_s25 + $0x1e80] sm:$0xff] }
  0x78   : > { %540 = vst [vmem:[%s4532_s26 + $0x610] sm:$0xff] %v539_v2  ;;  %v545_v5 = vld [vmem:[%s4527_s25 + $0x1e88] sm:$0xff]  ;;  %542 = vst [vmem:[%s4532_s26 + $0x618] sm:$0xff] %v541_v3  ;;  %v547_v6 = vld [vmem:[%s4527_s25 + $0x1e90] sm:$0xff] }
  0x79   : > { %544 = vst [vmem:[%s4532_s26 + $0x620] sm:$0xff] %v543_v4  ;;  %546 = vst [vmem:[%s4532_s26 + $0x628] sm:$0xff] %v545_v5  ;;  %v549_v7 = vld [vmem:[%s4527_s25 + $0x1e98] sm:$0xff]  ;;  %v551_v8 = vld [vmem:[%s4527_s25 + $0x1f40] sm:$0xff] }
  0x7a   : > { %548 = vst [vmem:[%s4532_s26 + $0x630] sm:$0xff] %v547_v6  ;;  %550 = vst [vmem:[%s4532_s26 + $0x638] sm:$0xff] %v549_v7  ;;  %v553_v9 = vld [vmem:[%s4527_s25 + $0x1f48] sm:$0xff]  ;;  %v555_v10 = vld [vmem:[%s4527_s25 + $0x1f50] sm:$0xff] }
  0x7b   : > { %552 = vst [vmem:[%s4532_s26 + $0x640] sm:$0xff] %v551_v8  ;;  %v557_v11 = vld [vmem:[%s4527_s25 + $0x1f58] sm:$0xff]  ;;  %554 = vst [vmem:[%s4532_s26 + $0x648] sm:$0xff] %v553_v9  ;;  %v559_v12 = vld [vmem:[%s4527_s25 + $0x1f60] sm:$0xff] }
  0x7c   : > { %556 = vst [vmem:[%s4532_s26 + $0x650] sm:$0xff] %v555_v10  ;;  %558 = vst [vmem:[%s4532_s26 + $0x658] sm:$0xff] %v557_v11  ;;  %v561_v13 = vld [vmem:[%s4527_s25 + $0x2008] sm:$0xff]  ;;  %v563_v14 = vld [vmem:[%s4527_s25 + $0x2010] sm:$0xff] }
  0x7d   : > { %560 = vst [vmem:[%s4532_s26 + $0x660] sm:$0xff] %v559_v12  ;;  %562 = vst [vmem:[%s4532_s26 + $0x668] sm:$0xff] %v561_v13  ;;  %v565_v15 = vld [vmem:[%s4527_s25 + $0x2018] sm:$0xff]  ;;  %v567_v16 = vld [vmem:[%s4527_s25 + $0x2020] sm:$0xff] }
  0x7e   : > { %564 = vst [vmem:[%s4532_s26 + $0x670] sm:$0xff] %v563_v14  ;;  %v569_v17 = vld [vmem:[%s4527_s25 + $0x2028] sm:$0xff]  ;;  %566 = vst [vmem:[%s4532_s26 + $0x678] sm:$0xff] %v565_v15  ;;  %v571_v18 = vld [vmem:[%s4527_s25 + $0x20d0] sm:$0xff] }
  0x7f   : > { %568 = vst [vmem:[%s4532_s26 + $0x680] sm:$0xff] %v567_v16  ;;  %570 = vst [vmem:[%s4532_s26 + $0x688] sm:$0xff] %v569_v17  ;;  %v573_v19 = vld [vmem:[%s4527_s25 + $0x20d8] sm:$0xff]  ;;  %v575_v20 = vld [vmem:[%s4527_s25 + $0x20e0] sm:$0xff] }
  0x80   : > { %572 = vst [vmem:[%s4532_s26 + $0x690] sm:$0xff] %v571_v18  ;;  %574 = vst [vmem:[%s4532_s26 + $0x698] sm:$0xff] %v573_v19  ;;  %v577_v21 = vld [vmem:[%s4527_s25 + $0x20e8] sm:$0xff]  ;;  %v579_v22 = vld [vmem:[%s4527_s25 + $0x20f0] sm:$0xff] }
  0x81   : > { %576 = vst [vmem:[%s4532_s26 + $0x6a0] sm:$0xff] %v575_v20  ;;  %v581_v23 = vld [vmem:[%s4527_s25 + $0x2198] sm:$0xff]  ;;  %578 = vst [vmem:[%s4532_s26 + $0x6a8] sm:$0xff] %v577_v21  ;;  %v583_v24 = vld [vmem:[%s4527_s25 + $0x21a0] sm:$0xff] }
  0x82   : > { %580 = vst [vmem:[%s4532_s26 + $0x6b0] sm:$0xff] %v579_v22  ;;  %582 = vst [vmem:[%s4532_s26 + $0x6b8] sm:$0xff] %v581_v23  ;;  %v585_v25 = vld [vmem:[%s4527_s25 + $0x21a8] sm:$0xff]  ;;  %v587_v26 = vld [vmem:[%s4527_s25 + $0x21b0] sm:$0xff] }
  0x83   : > { %584 = vst [vmem:[%s4532_s26 + $0x6c0] sm:$0xff] %v583_v24  ;;  %586 = vst [vmem:[%s4532_s26 + $0x6c8] sm:$0xff] %v585_v25  ;;  %v589_v27 = vld [vmem:[%s4527_s25 + $0x21b8] sm:$0xff]  ;;  %v591_v28 = vld [vmem:[%s4527_s25 + $0x2260] sm:$0xff] }
  0x84   : > { %588 = vst [vmem:[%s4532_s26 + $0x6d0] sm:$0xff] %v587_v26  ;;  %v593_v29 = vld [vmem:[%s4527_s25 + $0x2268] sm:$0xff]  ;;  %590 = vst [vmem:[%s4532_s26 + $0x6d8] sm:$0xff] %v589_v27  ;;  %v595_v30 = vld [vmem:[%s4527_s25 + $0x2270] sm:$0xff] }
  0x85   : > { %592 = vst [vmem:[%s4532_s26 + $0x6e0] sm:$0xff] %v591_v28  ;;  %594 = vst [vmem:[%s4532_s26 + $0x6e8] sm:$0xff] %v593_v29  ;;  %v597_v31 = vld [vmem:[%s4527_s25 + $0x2278] sm:$0xff]  ;;  %v599_v32 = vld [vmem:[%s4527_s25 + $0x2280] sm:$0xff] }
  0x86   : > { %596 = vst [vmem:[%s4532_s26 + $0x6f0] sm:$0xff] %v595_v30  ;;  %598 = vst [vmem:[%s4532_s26 + $0x6f8] sm:$0xff] %v597_v31  ;;  %v601_v33 = vld [vmem:[%s4527_s25 + $0x2328] sm:$0xff]  ;;  %v603_v34 = vld [vmem:[%s4527_s25 + $0x2330] sm:$0xff] }
  0x87   : > { %600 = vst [vmem:[%s4532_s26 + $0x700] sm:$0xff] %v599_v32  ;;  %v605_v35 = vld [vmem:[%s4527_s25 + $0x2338] sm:$0xff]  ;;  %602 = vst [vmem:[%s4532_s26 + $0x708] sm:$0xff] %v601_v33  ;;  %v607_v36 = vld [vmem:[%s4527_s25 + $0x2340] sm:$0xff] }
  0x88   : > { %604 = vst [vmem:[%s4532_s26 + $0x710] sm:$0xff] %v603_v34  ;;  %606 = vst [vmem:[%s4532_s26 + $0x718] sm:$0xff] %v605_v35  ;;  %v609_v37 = vld [vmem:[%s4527_s25 + $0x2348] sm:$0xff]  ;;  %v611_v38 = vld [vmem:[%s4527_s25 + $0x23f0] sm:$0xff] }
  0x89   : > { %608 = vst [vmem:[%s4532_s26 + $0x720] sm:$0xff] %v607_v36  ;;  %610 = vst [vmem:[%s4532_s26 + $0x728] sm:$0xff] %v609_v37  ;;  %v613_v39 = vld [vmem:[%s4527_s25 + $0x23f8] sm:$0xff]  ;;  %v615_v40 = vld [vmem:[%s4527_s25 + $0x2400] sm:$0xff] }
  0x8a   : > { %612 = vst [vmem:[%s4532_s26 + $0x730] sm:$0xff] %v611_v38  ;;  %v617_v41 = vld [vmem:[%s4527_s25 + $0x2408] sm:$0xff]  ;;  %614 = vst [vmem:[%s4532_s26 + $0x738] sm:$0xff] %v613_v39  ;;  %v619_v42 = vld [vmem:[%s4527_s25 + $0x2410] sm:$0xff] }
  0x8b   : > { %616 = vst [vmem:[%s4532_s26 + $0x740] sm:$0xff] %v615_v40  ;;  %618 = vst [vmem:[%s4532_s26 + $0x748] sm:$0xff] %v617_v41  ;;  %v621_v43 = vld [vmem:[%s4527_s25 + $0x24b8] sm:$0xff]  ;;  %v623_v44 = vld [vmem:[%s4527_s25 + $0x24c0] sm:$0xff] }
  0x8c   : > { %620 = vst [vmem:[%s4532_s26 + $0x750] sm:$0xff] %v619_v42  ;;  %622 = vst [vmem:[%s4532_s26 + $0x758] sm:$0xff] %v621_v43  ;;  %v625_v45 = vld [vmem:[%s4527_s25 + $0x24c8] sm:$0xff]  ;;  %v627_v46 = vld [vmem:[%s4527_s25 + $0x24d0] sm:$0xff] }
  0x8d   : > { %624 = vst [vmem:[%s4532_s26 + $0x760] sm:$0xff] %v623_v44  ;;  %v629_v47 = vld [vmem:[%s4527_s25 + $0x24d8] sm:$0xff]  ;;  %626 = vst [vmem:[%s4532_s26 + $0x768] sm:$0xff] %v625_v45  ;;  %v631_v48 = vld [vmem:[%s4527_s25 + $0x2580] sm:$0xff] }
  0x8e   : > { %628 = vst [vmem:[%s4532_s26 + $0x770] sm:$0xff] %v627_v46  ;;  %630 = vst [vmem:[%s4532_s26 + $0x778] sm:$0xff] %v629_v47  ;;  %v633_v49 = vld [vmem:[%s4527_s25 + $0x2588] sm:$0xff]  ;;  %v635_v50 = vld [vmem:[%s4527_s25 + $0x2590] sm:$0xff] }
  0x8f   : > { %632 = vst [vmem:[%s4532_s26 + $0x780] sm:$0xff] %v631_v48  ;;  %634 = vst [vmem:[%s4532_s26 + $0x788] sm:$0xff] %v633_v49  ;;  %v637_v51 = vld [vmem:[%s4527_s25 + $0x2598] sm:$0xff]  ;;  %v639_v52 = vld [vmem:[%s4527_s25 + $0x25a0] sm:$0xff] }
  0x90   : > { %636 = vst [vmem:[%s4532_s26 + $0x790] sm:$0xff] %v635_v50  ;;  %v641_v53 = vld [vmem:[%s4527_s25 + $0x2648] sm:$0xff]  ;;  %638 = vst [vmem:[%s4532_s26 + $0x798] sm:$0xff] %v637_v51  ;;  %v643_v54 = vld [vmem:[%s4527_s25 + $0x2650] sm:$0xff] }
  0x91   : > { %640 = vst [vmem:[%s4532_s26 + $0x7a0] sm:$0xff] %v639_v52  ;;  %642 = vst [vmem:[%s4532_s26 + $0x7a8] sm:$0xff] %v641_v53  ;;  %v645_v55 = vld [vmem:[%s4527_s25 + $0x2658] sm:$0xff]  ;;  %v647_v56 = vld [vmem:[%s4527_s25 + $0x2660] sm:$0xff] }
  0x92   : > { %644 = vst [vmem:[%s4532_s26 + $0x7b0] sm:$0xff] %v643_v54  ;;  %646 = vst [vmem:[%s4532_s26 + $0x7b8] sm:$0xff] %v645_v55  ;;  %v649_v57 = vld [vmem:[%s4527_s25 + $0x2668] sm:$0xff]  ;;  %v651_v58 = vld [vmem:[%s4527_s25 + $0x2710] sm:$0xff] }
  0x93   : > { %648 = vst [vmem:[%s4532_s26 + $0x7c0] sm:$0xff] %v647_v56  ;;  %v653_v59 = vld [vmem:[%s4527_s25 + $0x2718] sm:$0xff]  ;;  %650 = vst [vmem:[%s4532_s26 + $0x7c8] sm:$0xff] %v649_v57  ;;  %v655_v60 = vld [vmem:[%s4527_s25 + $0x2720] sm:$0xff] }
  0x94   : > { %652 = vst [vmem:[%s4532_s26 + $0x7d0] sm:$0xff] %v651_v58  ;;  %654 = vst [vmem:[%s4532_s26 + $0x7d8] sm:$0xff] %v653_v59  ;;  %v657_v61 = vld [vmem:[%s4527_s25 + $0x2728] sm:$0xff]  ;;  %v659_v62 = vld [vmem:[%s4527_s25 + $0x2730] sm:$0xff] }
  0x95   : > { %656 = vst [vmem:[%s4532_s26 + $0x7e0] sm:$0xff] %v655_v60  ;;  %658 = vst [vmem:[%s4532_s26 + $0x7e8] sm:$0xff] %v657_v61  ;;  %v661_v63 = vld [vmem:[%s4527_s25 + $0x27d8] sm:$0xff]  ;;  %v663_v0 = vld [vmem:[%s4527_s25 + $0x27e0] sm:$0xff] }
  0x96   : > { %660 = vst [vmem:[%s4532_s26 + $0x7f0] sm:$0xff] %v659_v62  ;;  %v665_v1 = vld [vmem:[%s4527_s25 + $0x27e8] sm:$0xff]  ;;  %662 = vst [vmem:[%s4532_s26 + $0x7f8] sm:$0xff] %v661_v63  ;;  %v667_v2 = vld [vmem:[%s4527_s25 + $0x27f0] sm:$0xff] }
  0x97   : > { %664 = vst [vmem:[%s4532_s26 + $0x800] sm:$0xff] %v663_v0  ;;  %666 = vst [vmem:[%s4532_s26 + $0x808] sm:$0xff] %v665_v1  ;;  %v669_v3 = vld [vmem:[%s4527_s25 + $0x27f8] sm:$0xff]  ;;  %v671_v4 = vld [vmem:[%s4527_s25 + $0x28a0] sm:$0xff] }
  0x98   : > { %668 = vst [vmem:[%s4532_s26 + $0x810] sm:$0xff] %v667_v2  ;;  %670 = vst [vmem:[%s4532_s26 + $0x818] sm:$0xff] %v669_v3  ;;  %v673_v5 = vld [vmem:[%s4527_s25 + $0x28a8] sm:$0xff]  ;;  %v675_v6 = vld [vmem:[%s4527_s25 + $0x28b0] sm:$0xff] }
  0x99   : > { %672 = vst [vmem:[%s4532_s26 + $0x820] sm:$0xff] %v671_v4  ;;  %v677_v7 = vld [vmem:[%s4527_s25 + $0x28b8] sm:$0xff]  ;;  %674 = vst [vmem:[%s4532_s26 + $0x828] sm:$0xff] %v673_v5  ;;  %v679_v8 = vld [vmem:[%s4527_s25 + $0x28c0] sm:$0xff] }
  0x9a   : > { %676 = vst [vmem:[%s4532_s26 + $0x830] sm:$0xff] %v675_v6  ;;  %678 = vst [vmem:[%s4532_s26 + $0x838] sm:$0xff] %v677_v7  ;;  %v681_v9 = vld [vmem:[%s4527_s25 + $0x2968] sm:$0xff]  ;;  %v683_v10 = vld [vmem:[%s4527_s25 + $0x2970] sm:$0xff] }
  0x9b   : > { %680 = vst [vmem:[%s4532_s26 + $0x840] sm:$0xff] %v679_v8  ;;  %682 = vst [vmem:[%s4532_s26 + $0x848] sm:$0xff] %v681_v9  ;;  %v685_v11 = vld [vmem:[%s4527_s25 + $0x2978] sm:$0xff]  ;;  %v687_v12 = vld [vmem:[%s4527_s25 + $0x2980] sm:$0xff] }
  0x9c   : > { %684 = vst [vmem:[%s4532_s26 + $0x850] sm:$0xff] %v683_v10  ;;  %v689_v13 = vld [vmem:[%s4527_s25 + $0x2988] sm:$0xff]  ;;  %686 = vst [vmem:[%s4532_s26 + $0x858] sm:$0xff] %v685_v11  ;;  %v691_v14 = vld [vmem:[%s4527_s25 + $0x2a30] sm:$0xff] }
  0x9d   : > { %688 = vst [vmem:[%s4532_s26 + $0x860] sm:$0xff] %v687_v12  ;;  %690 = vst [vmem:[%s4532_s26 + $0x868] sm:$0xff] %v689_v13  ;;  %v693_v15 = vld [vmem:[%s4527_s25 + $0x2a38] sm:$0xff]  ;;  %v695_v16 = vld [vmem:[%s4527_s25 + $0x2a40] sm:$0xff] }
  0x9e   : > { %692 = vst [vmem:[%s4532_s26 + $0x870] sm:$0xff] %v691_v14  ;;  %694 = vst [vmem:[%s4532_s26 + $0x878] sm:$0xff] %v693_v15  ;;  %v697_v17 = vld [vmem:[%s4527_s25 + $0x2a48] sm:$0xff]  ;;  %v699_v18 = vld [vmem:[%s4527_s25 + $0x2a50] sm:$0xff] }
  0x9f   : > { %696 = vst [vmem:[%s4532_s26 + $0x880] sm:$0xff] %v695_v16  ;;  %v701_v19 = vld [vmem:[%s4527_s25 + $0x2af8] sm:$0xff]  ;;  %698 = vst [vmem:[%s4532_s26 + $0x888] sm:$0xff] %v697_v17  ;;  %v703_v20 = vld [vmem:[%s4527_s25 + $0x2b00] sm:$0xff] }
  0xa0   : > { %700 = vst [vmem:[%s4532_s26 + $0x890] sm:$0xff] %v699_v18  ;;  %702 = vst [vmem:[%s4532_s26 + $0x898] sm:$0xff] %v701_v19  ;;  %v705_v21 = vld [vmem:[%s4527_s25 + $0x2b08] sm:$0xff]  ;;  %v707_v22 = vld [vmem:[%s4527_s25 + $0x2b10] sm:$0xff] }
  0xa1   : > { %704 = vst [vmem:[%s4532_s26 + $0x8a0] sm:$0xff] %v703_v20  ;;  %706 = vst [vmem:[%s4532_s26 + $0x8a8] sm:$0xff] %v705_v21  ;;  %v709_v23 = vld [vmem:[%s4527_s25 + $0x2b18] sm:$0xff]  ;;  %v711_v24 = vld [vmem:[%s4527_s25 + $0x2bc0] sm:$0xff] }
  0xa2   : > { %708 = vst [vmem:[%s4532_s26 + $0x8b0] sm:$0xff] %v707_v22  ;;  %v713_v25 = vld [vmem:[%s4527_s25 + $0x2bc8] sm:$0xff]  ;;  %710 = vst [vmem:[%s4532_s26 + $0x8b8] sm:$0xff] %v709_v23  ;;  %v715_v26 = vld [vmem:[%s4527_s25 + $0x2bd0] sm:$0xff] }
  0xa3   : > { %712 = vst [vmem:[%s4532_s26 + $0x8c0] sm:$0xff] %v711_v24  ;;  %714 = vst [vmem:[%s4532_s26 + $0x8c8] sm:$0xff] %v713_v25  ;;  %v717_v27 = vld [vmem:[%s4527_s25 + $0x2bd8] sm:$0xff]  ;;  %v719_v28 = vld [vmem:[%s4527_s25 + $0x2be0] sm:$0xff] }
  0xa4   : > { %716 = vst [vmem:[%s4532_s26 + $0x8d0] sm:$0xff] %v715_v26  ;;  %718 = vst [vmem:[%s4532_s26 + $0x8d8] sm:$0xff] %v717_v27  ;;  %v721_v29 = vld [vmem:[%s4527_s25 + $0x2c88] sm:$0xff]  ;;  %v723_v30 = vld [vmem:[%s4527_s25 + $0x2c90] sm:$0xff] }
  0xa5   : > { %720 = vst [vmem:[%s4532_s26 + $0x8e0] sm:$0xff] %v719_v28  ;;  %v725_v31 = vld [vmem:[%s4527_s25 + $0x2c98] sm:$0xff]  ;;  %722 = vst [vmem:[%s4532_s26 + $0x8e8] sm:$0xff] %v721_v29  ;;  %v727_v32 = vld [vmem:[%s4527_s25 + $0x2ca0] sm:$0xff] }
  0xa6   : > { %724 = vst [vmem:[%s4532_s26 + $0x8f0] sm:$0xff] %v723_v30  ;;  %726 = vst [vmem:[%s4532_s26 + $0x8f8] sm:$0xff] %v725_v31  ;;  %v729_v33 = vld [vmem:[%s4527_s25 + $0x2ca8] sm:$0xff]  ;;  %v731_v34 = vld [vmem:[%s4527_s25 + $0x2d50] sm:$0xff] }
  0xa7   : > { %728 = vst [vmem:[%s4532_s26 + $0x900] sm:$0xff] %v727_v32  ;;  %730 = vst [vmem:[%s4532_s26 + $0x908] sm:$0xff] %v729_v33  ;;  %v733_v35 = vld [vmem:[%s4527_s25 + $0x2d58] sm:$0xff]  ;;  %v735_v36 = vld [vmem:[%s4527_s25 + $0x2d60] sm:$0xff] }
  0xa8   : > { %732 = vst [vmem:[%s4532_s26 + $0x910] sm:$0xff] %v731_v34  ;;  %v737_v37 = vld [vmem:[%s4527_s25 + $0x2d68] sm:$0xff]  ;;  %734 = vst [vmem:[%s4532_s26 + $0x918] sm:$0xff] %v733_v35  ;;  %v739_v38 = vld [vmem:[%s4527_s25 + $0x2d70] sm:$0xff] }
  0xa9   : > { %736 = vst [vmem:[%s4532_s26 + $0x920] sm:$0xff] %v735_v36  ;;  %738 = vst [vmem:[%s4532_s26 + $0x928] sm:$0xff] %v737_v37  ;;  %v741_v39 = vld [vmem:[%s4527_s25 + $0x2e18] sm:$0xff]  ;;  %v743_v40 = vld [vmem:[%s4527_s25 + $0x2e20] sm:$0xff] }
  0xaa   : > { %740 = vst [vmem:[%s4532_s26 + $0x930] sm:$0xff] %v739_v38  ;;  %742 = vst [vmem:[%s4532_s26 + $0x938] sm:$0xff] %v741_v39  ;;  %v745_v41 = vld [vmem:[%s4527_s25 + $0x2e28] sm:$0xff]  ;;  %v747_v42 = vld [vmem:[%s4527_s25 + $0x2e30] sm:$0xff] }
  0xab   : > { %744 = vst [vmem:[%s4532_s26 + $0x940] sm:$0xff] %v743_v40  ;;  %v749_v43 = vld [vmem:[%s4527_s25 + $0x2e38] sm:$0xff]  ;;  %746 = vst [vmem:[%s4532_s26 + $0x948] sm:$0xff] %v745_v41  ;;  %v751_v44 = vld [vmem:[%s4527_s25 + $0x2ee0] sm:$0xff] }
  0xac   : > { %748 = vst [vmem:[%s4532_s26 + $0x950] sm:$0xff] %v747_v42  ;;  %750 = vst [vmem:[%s4532_s26 + $0x958] sm:$0xff] %v749_v43  ;;  %v753_v45 = vld [vmem:[%s4527_s25 + $0x2ee8] sm:$0xff]  ;;  %v755_v46 = vld [vmem:[%s4527_s25 + $0x2ef0] sm:$0xff] }
  0xad   : > { %752 = vst [vmem:[%s4532_s26 + $0x960] sm:$0xff] %v751_v44  ;;  %754 = vst [vmem:[%s4532_s26 + $0x968] sm:$0xff] %v753_v45  ;;  %v757_v47 = vld [vmem:[%s4527_s25 + $0x2ef8] sm:$0xff]  ;;  %v759_v48 = vld [vmem:[%s4527_s25 + $0x2f00] sm:$0xff] }
  0xae   : > { %756 = vst [vmem:[%s4532_s26 + $0x970] sm:$0xff] %v755_v46  ;;  %v761_v49 = vld [vmem:[%s4527_s25 + $0x2fa8] sm:$0xff]  ;;  %758 = vst [vmem:[%s4532_s26 + $0x978] sm:$0xff] %v757_v47  ;;  %v763_v50 = vld [vmem:[%s4527_s25 + $0x2fb0] sm:$0xff] }
  0xaf   : > { %760 = vst [vmem:[%s4532_s26 + $0x980] sm:$0xff] %v759_v48  ;;  %762 = vst [vmem:[%s4532_s26 + $0x988] sm:$0xff] %v761_v49  ;;  %v765_v51 = vld [vmem:[%s4527_s25 + $0x2fb8] sm:$0xff]  ;;  %v767_v52 = vld [vmem:[%s4527_s25 + $0x2fc0] sm:$0xff] }
  0xb0   : > { %764 = vst [vmem:[%s4532_s26 + $0x990] sm:$0xff] %v763_v50  ;;  %766 = vst [vmem:[%s4532_s26 + $0x998] sm:$0xff] %v765_v51  ;;  %v769_v53 = vld [vmem:[%s4527_s25 + $0x2fc8] sm:$0xff]  ;;  %v771_v54 = vld [vmem:[%s4527_s25 + $0x3070] sm:$0xff] }
  0xb1   : > { %768 = vst [vmem:[%s4532_s26 + $0x9a0] sm:$0xff] %v767_v52  ;;  %v773_v55 = vld [vmem:[%s4527_s25 + $0x3078] sm:$0xff]  ;;  %770 = vst [vmem:[%s4532_s26 + $0x9a8] sm:$0xff] %v769_v53  ;;  %v775_v56 = vld [vmem:[%s4527_s25 + $0x3080] sm:$0xff] }
  0xb2   : > { %772 = vst [vmem:[%s4532_s26 + $0x9b0] sm:$0xff] %v771_v54  ;;  %774 = vst [vmem:[%s4532_s26 + $0x9b8] sm:$0xff] %v773_v55  ;;  %v777_v57 = vld [vmem:[%s4527_s25 + $0x3088] sm:$0xff]  ;;  %v779_v58 = vld [vmem:[%s4527_s25 + $0x3090] sm:$0xff] }
  0xb3   : > { %776 = vst [vmem:[%s4532_s26 + $0x9c0] sm:$0xff] %v775_v56  ;;  %778 = vst [vmem:[%s4532_s26 + $0x9c8] sm:$0xff] %v777_v57  ;;  %v781_v59 = vld [vmem:[%s4527_s25 + $0x3138] sm:$0xff]  ;;  %v783_v60 = vld [vmem:[%s4527_s25 + $0x3140] sm:$0xff] }
  0xb4   : > { %780 = vst [vmem:[%s4532_s26 + $0x9d0] sm:$0xff] %v779_v58  ;;  %v785_v61 = vld [vmem:[%s4527_s25 + $0x3148] sm:$0xff]  ;;  %782 = vst [vmem:[%s4532_s26 + $0x9d8] sm:$0xff] %v781_v59  ;;  %v787_v62 = vld [vmem:[%s4527_s25 + $0x3150] sm:$0xff] }
  0xb5   : > { %784 = vst [vmem:[%s4532_s26 + $0x9e0] sm:$0xff] %v783_v60  ;;  %786 = vst [vmem:[%s4532_s26 + $0x9e8] sm:$0xff] %v785_v61  ;;  %v789_v63 = vld [vmem:[%s4527_s25 + $0x3158] sm:$0xff] }
  0xb6   : > { %788 = vst [vmem:[%s4532_s26 + $0x9f0] sm:$0xff] %v787_v62  ;;  %790 = vst [vmem:[%s4532_s26 + $0x9f8] sm:$0xff] %v789_v63 }
  0xb7 PF: > { %p3515_p8 = scmp.ge.s32.totalorder %s4462_s13, 1  ;;  %p795_p9 = scmp.lt.s32.totalorder %s4462_s13, 6 }
  0xb9   : > { %p796_p10 = pnand %p3515_p8, %p795_p9 }
  0xba   : > { %s802_s27 = sand.u32 (!%p796_p10), 1, %s4446_s9   ;;  %v5177_v0 = vld [vmem:[%s5694_s0 + $0x4] ss:$16 sps:$4 sm:$0xff] (!%p796_p10)   ;;  %v4028_v1 = vld [vmem:[%s5694_s0 + $0xc] ss:$16 sps:$4 sm:$0xff] (!%p796_p10)  }
  0xbb   : > { %799 = sbr.rel (%p796_p10) target bundleno = 743 (0x2e7), region = 47  ;;  %2830 = vmatprep.mubr.bf16.mxu1 (!%p796_p10), %v5177_v0  ;;  %2881 = vmatprep.mubr.bf16.mxu0 (!%p796_p10), %v4028_v1 }
  0xbc   : > { %s3888_s30 = smul.u32 (!%p796_p10), 2560, %s802_s27 }
  0xbd   : > { %s3889_s29 = smul.u32 (!%p796_p10), 240, %s802_s27 }
  0xbe   : > { %s5185_s5 = scalar_lea.vmem (!%p796_p10), [#allocation2], %s3888_s30 }
  0xbf   : > { %v3930_v2 = vld [vmem:[%s5185_s5 + $0x4] ss:$40 sps:$4 sm:$0xff] (!%p796_p10)   ;;  %v3934_v4 = vld [vmem:[%s5185_s5] ss:$40 sps:$4 sm:$0xff] (!%p796_p10)   ;;  %v3936_v6 = vld [vmem:[%s5185_s5 + $0x54] ss:$40 sps:$4 sm:$0xff] (!%p796_p10)  }
  0xc0   : > { %v3932_v3 = vld [vmem:[%s5185_s5 + $0x504] ss:$40 sps:$4 sm:$0xff] (!%p796_p10)   ;;  %2798 = vmatprep.subr.bf16.mxu1 (!%p796_p10), %v3930_v2  ;;  %v3935_v5 = vld [vmem:[%s5185_s5 + $0x500] ss:$40 sps:$4 sm:$0xff] (!%p796_p10)   ;;  %v3938_v7 = vld [vmem:[%s5185_s5 + $0x554] ss:$40 sps:$4 sm:$0xff] (!%p796_p10)  }
  0xc1   : > { %2849 = vmatprep.subr.bf16.mxu0 (!%p796_p10), %v3932_v3  ;;  %2799 = vmatpush1.bf16.msra.mxu1 (!%p796_p10), %v3934_v4  ;;  %v3940_v8 = vld [vmem:[%s5185_s5 + $0x50] ss:$40 sps:$4 sm:$0xff] (!%p796_p10)   ;;  %v3942_v10 = vld [vmem:[%s5185_s5 + $0xa4] ss:$40 sps:$4 sm:$0xff] (!%p796_p10)   ;;  %v3946_v12 = vld [vmem:[%s5185_s5 + $0xa0] ss:$40 sps:$4 sm:$0xff] (!%p796_p10)  }
  0xc2   : > { %2850 = vmatpush1.bf16.msra.mxu0 %v3935_v5  ;;  %2800 = vmatprep.subr.bf16.mxu1 %v3936_v6  ;;  %v3941_v9 = vld [vmem:[%s5185_s5 + $0x550] ss:$40 sps:$4 sm:$0xff]   ;;  %v3944_v11 = vld [vmem:[%s5185_s5 + $0x5a4] ss:$40 sps:$4 sm:$0xff]   ;;  %v3947_v13 = vld [vmem:[%s5185_s5 + $0x5a0] ss:$40 sps:$4 sm:$0xff]  }
  0xc3   : > { %2851 = vmatprep.subr.bf16.mxu0 %v3938_v7  ;;  %v3948_v14 = vld [vmem:[%s5185_s5 + $0xf4] ss:$40 sps:$4 sm:$0xff]   ;;  %v3952_v16 = vld [vmem:[%s5185_s5 + $0xf0] ss:$40 sps:$4 sm:$0xff]   ;;  %v3954_v18 = vld [vmem:[%s5185_s5 + $0x144] ss:$40 sps:$4 sm:$0xff]  }
  0xc4   : > { %v3950_v15 = vld [vmem:[%s5185_s5 + $0x5f4] ss:$40 sps:$4 sm:$0xff]   ;;  %v3953_v17 = vld [vmem:[%s5185_s5 + $0x5f0] ss:$40 sps:$4 sm:$0xff]   ;;  %v3956_v19 = vld [vmem:[%s5185_s5 + $0x644] ss:$40 sps:$4 sm:$0xff]  }
  0xc5   : > { %2801 = vmatpush1.bf16.msra.mxu1 %v3940_v8  ;;  %v3958_v20 = vld [vmem:[%s5185_s5 + $0x140] ss:$40 sps:$4 sm:$0xff]   ;;  %v3960_v22 = vld [vmem:[%s5185_s5 + $0x194] ss:$40 sps:$4 sm:$0xff]   ;;  %v3964_v24 = vld [vmem:[%s5185_s5 + $0x190] ss:$40 sps:$4 sm:$0xff]  }
  0xc6   : > { %2852 = vmatpush1.bf16.msra.mxu0 %v3941_v9  ;;  %2802 = vmatprep.subr.bf16.mxu1 %v3942_v10  ;;  %v3959_v21 = vld [vmem:[%s5185_s5 + $0x640] ss:$40 sps:$4 sm:$0xff]   ;;  %v3962_v23 = vld [vmem:[%s5185_s5 + $0x694] ss:$40 sps:$4 sm:$0xff]   ;;  %v3965_v25 = vld [vmem:[%s5185_s5 + $0x690] ss:$40 sps:$4 sm:$0xff]  }
  0xc7   : > { %2853 = vmatprep.subr.bf16.mxu0 %v3944_v11  ;;  %v3966_v26 = vld [vmem:[%s5185_s5 + $0x1e4] ss:$40 sps:$4 sm:$0xff]   ;;  %v3970_v28 = vld [vmem:[%s5185_s5 + $0x1e0] ss:$40 sps:$4 sm:$0xff]   ;;  %v3972_v30 = vld [vmem:[%s5185_s5 + $0x234] ss:$40 sps:$4 sm:$0xff]  }
  0xc8   : > { %v3968_v27 = vld [vmem:[%s5185_s5 + $0x6e4] ss:$40 sps:$4 sm:$0xff]   ;;  %v3971_v29 = vld [vmem:[%s5185_s5 + $0x6e0] ss:$40 sps:$4 sm:$0xff]   ;;  %v3974_v31 = vld [vmem:[%s5185_s5 + $0x734] ss:$40 sps:$4 sm:$0xff]  }
  0xc9   : > { %2803 = vmatpush1.bf16.msra.mxu1 %v3946_v12  ;;  %v3976_v32 = vld [vmem:[%s5185_s5 + $0x230] ss:$40 sps:$4 sm:$0xff]   ;;  %v3978_v34 = vld [vmem:[%s5185_s5 + $0x284] ss:$40 sps:$4 sm:$0xff]   ;;  %v3982_v36 = vld [vmem:[%s5185_s5 + $0x280] ss:$40 sps:$4 sm:$0xff]  }
  0xca   : > { %2854 = vmatpush1.bf16.msra.mxu0 %v3947_v13  ;;  %2804 = vmatprep.subr.bf16.mxu1 %v3948_v14  ;;  %v3977_v33 = vld [vmem:[%s5185_s5 + $0x730] ss:$40 sps:$4 sm:$0xff]   ;;  %v3980_v35 = vld [vmem:[%s5185_s5 + $0x784] ss:$40 sps:$4 sm:$0xff]   ;;  %v3983_v37 = vld [vmem:[%s5185_s5 + $0x780] ss:$40 sps:$4 sm:$0xff]  }
  0xcb   : > { %2855 = vmatprep.subr.bf16.mxu0 %v3950_v15  ;;  %v3984_v38 = vld [vmem:[%s5185_s5 + $0x2d4] ss:$40 sps:$4 sm:$0xff]   ;;  %v3988_v40 = vld [vmem:[%s5185_s5 + $0x2d0] ss:$40 sps:$4 sm:$0xff]   ;;  %v3990_v42 = vld [vmem:[%s5185_s5 + $0x324] ss:$40 sps:$4 sm:$0xff]  }
  0xcc   : > { %v3986_v39 = vld [vmem:[%s5185_s5 + $0x7d4] ss:$40 sps:$4 sm:$0xff]   ;;  %v3989_v41 = vld [vmem:[%s5185_s5 + $0x7d0] ss:$40 sps:$4 sm:$0xff]   ;;  %v3992_v43 = vld [vmem:[%s5185_s5 + $0x824] ss:$40 sps:$4 sm:$0xff]  }
  0xcd   : > { %2805 = vmatpush1.bf16.msra.mxu1 %v3952_v16  ;;  %v3994_v44 = vld [vmem:[%s5185_s5 + $0x320] ss:$40 sps:$4 sm:$0xff]   ;;  %v3996_v46 = vld [vmem:[%s5185_s5 + $0x374] ss:$40 sps:$4 sm:$0xff]   ;;  %v4000_v48 = vld [vmem:[%s5185_s5 + $0x370] ss:$40 sps:$4 sm:$0xff]  }
  0xce   : > { %2856 = vmatpush1.bf16.msra.mxu0 %v3953_v17  ;;  %2806 = vmatprep.subr.bf16.mxu1 %v3954_v18  ;;  %v3995_v45 = vld [vmem:[%s5185_s5 + $0x820] ss:$40 sps:$4 sm:$0xff]   ;;  %v3998_v47 = vld [vmem:[%s5185_s5 + $0x874] ss:$40 sps:$4 sm:$0xff]   ;;  %v4001_v49 = vld [vmem:[%s5185_s5 + $0x870] ss:$40 sps:$4 sm:$0xff]  }
  0xcf   : > { %2857 = vmatprep.subr.bf16.mxu0 %v3956_v19  ;;  %v4002_v50 = vld [vmem:[%s5185_s5 + $0x3c4] ss:$40 sps:$4 sm:$0xff]   ;;  %v4006_v52 = vld [vmem:[%s5185_s5 + $0x3c0] ss:$40 sps:$4 sm:$0xff]   ;;  %v4008_v54 = vld [vmem:[%s5185_s5 + $0x414] ss:$40 sps:$4 sm:$0xff]  }
  0xd0   : > { %v4004_v51 = vld [vmem:[%s5185_s5 + $0x8c4] ss:$40 sps:$4 sm:$0xff]   ;;  %v4007_v53 = vld [vmem:[%s5185_s5 + $0x8c0] ss:$40 sps:$4 sm:$0xff]   ;;  %v4010_v55 = vld [vmem:[%s5185_s5 + $0x914] ss:$40 sps:$4 sm:$0xff]  }
  0xd1   : > { %2807 = vmatpush1.bf16.msra.mxu1 %v3958_v20  ;;  %v4012_v56 = vld [vmem:[%s5185_s5 + $0x410] ss:$40 sps:$4 sm:$0xff]   ;;  %v4014_v58 = vld [vmem:[%s5185_s5 + $0x464] ss:$40 sps:$4 sm:$0xff]   ;;  %v4018_v60 = vld [vmem:[%s5185_s5 + $0x460] ss:$40 sps:$4 sm:$0xff]  }
  0xd2   : > { %2858 = vmatpush1.bf16.msra.mxu0 %v3959_v21  ;;  %2808 = vmatprep.subr.bf16.mxu1 %v3960_v22  ;;  %v4013_v57 = vld [vmem:[%s5185_s5 + $0x910] ss:$40 sps:$4 sm:$0xff]   ;;  %v4016_v59 = vld [vmem:[%s5185_s5 + $0x964] ss:$40 sps:$4 sm:$0xff]   ;;  %v4019_v61 = vld [vmem:[%s5185_s5 + $0x960] ss:$40 sps:$4 sm:$0xff]  }
  0xd3   : > { %2859 = vmatprep.subr.bf16.mxu0 %v3962_v23  ;;  %v4020_v62 = vld [vmem:[%s5185_s5 + $0x4b4] ss:$40 sps:$4 sm:$0xff]   ;;  %v4024_v1 = vld [vmem:[%s5185_s5 + $0x4b0] ss:$40 sps:$4 sm:$0xff]   ;;  %v842_v7 = vld [vmem:[%s5694_s0 + $0x20] sm:$0xff]  ;;  %s5536_s9 = scalar_lea.vmem [#allocation3], %s3889_s29 }
  0xd4   : > { %v4022_v63 = vld [vmem:[%s5185_s5 + $0x9b4] ss:$40 sps:$4 sm:$0xff]   ;;  %v4025_v2 = vld [vmem:[%s5185_s5 + $0x9b0] ss:$40 sps:$4 sm:$0xff]   ;;  %v843_v8 = vld [vmem:[%s5694_s0 + $0x28] sm:$0xff]  ;;  %v5273_v13 = vcombine.high %v842_v7, %v842_v7  ;;  %v5287_v21 = vcombine.low %v842_v7, %v842_v7  ;;  %s3848_s3 = smul.u32 (%p4514_p6), 80, %s4454_s11 }
  0xd5   : > { %2809 = vmatpush1.bf16.msra.mxu1 %v3964_v24  ;;  %v4034_v3 = vld [vmem:[%s5185_s5 + $0xc] ss:$40 sps:$4 sm:$0xff]   ;;  %v5255_v4 = vld [vmem:[%s5694_s0] ss:$16 sps:$4 sm:$0xff]   ;;  %v5260_v5 = vld [vmem:[%s5694_s0 + $0x8] ss:$16 sps:$4 sm:$0xff]   ;;  %v5275_v14 = vcombine.high %v843_v8, %v843_v8  ;;  %v5289_v22 = vcombine.low %v843_v8, %v843_v8 }
  0xd6   : > { %2860 = vmatpush1.bf16.msra.mxu0 %v3965_v25  ;;  %2810 = vmatprep.subr.bf16.mxu1 %v3966_v26  ;;  %v4037_v6 = vld [vmem:[%s5185_s5 + $0x14] ss:$40 sps:$4 sm:$0xff]   ;;  %v4032_v9 = vld [vmem:[%s5185_s5 + $0x8] ss:$40 sps:$4 sm:$0xff]   ;;  %v4043_v12 = vld [vmem:[%s5185_s5 + $0x64] ss:$40 sps:$4 sm:$0xff]  }
  0xd7   : > { %2861 = vmatprep.subr.bf16.mxu0 %v3968_v27  ;;  %v4035_v10 = vld [vmem:[%s5185_s5 + $0x10] ss:$40 sps:$4 sm:$0xff]   ;;  %v4040_v11 = vld [vmem:[%s5185_s5 + $0x5c] ss:$40 sps:$4 sm:$0xff]   ;;  %v4041_v16 = vld [vmem:[%s5185_s5 + $0x60] ss:$40 sps:$4 sm:$0xff]  }
  0xd8   : > { %v4038_v15 = vld [vmem:[%s5185_s5 + $0x58] ss:$40 sps:$4 sm:$0xff]   ;;  %v4046_v17 = vld [vmem:[%s5185_s5 + $0xac] ss:$40 sps:$4 sm:$0xff]   ;;  %v4044_v19 = vld [vmem:[%s5185_s5 + $0xa8] ss:$40 sps:$4 sm:$0xff]  }
  0xd9   : > { %2811 = vmatpush1.bf16.msra.mxu1 %v3970_v28  ;;  %v4049_v18 = vld [vmem:[%s5185_s5 + $0xb4] ss:$40 sps:$4 sm:$0xff]   ;;  %v4047_v20 = vld [vmem:[%s5185_s5 + $0xb0] ss:$40 sps:$4 sm:$0xff]   ;;  %v4055_v24 = vld [vmem:[%s5185_s5 + $0x104] ss:$40 sps:$4 sm:$0xff]  }
  0xda   : > { %2862 = vmatpush1.bf16.msra.mxu0 %v3971_v29  ;;  %2812 = vmatprep.subr.bf16.mxu1 %v3972_v30  ;;  %v4052_v23 = vld [vmem:[%s5185_s5 + $0xfc] ss:$40 sps:$4 sm:$0xff]   ;;  %v4050_v25 = vld [vmem:[%s5185_s5 + $0xf8] ss:$40 sps:$4 sm:$0xff]   ;;  %v4058_v27 = vld [vmem:[%s5185_s5 + $0x14c] ss:$40 sps:$4 sm:$0xff]  }
  0xdb   : > { %2863 = vmatprep.subr.bf16.mxu0 %v3974_v31  ;;  %v4053_v26 = vld [vmem:[%s5185_s5 + $0x100] ss:$40 sps:$4 sm:$0xff]   ;;  %v4061_v28 = vld [vmem:[%s5185_s5 + $0x154] ss:$40 sps:$4 sm:$0xff]   ;;  %v4059_v30 = vld [vmem:[%s5185_s5 + $0x150] ss:$40 sps:$4 sm:$0xff]  }
  0xdc   : > { %v4056_v29 = vld [vmem:[%s5185_s5 + $0x148] ss:$40 sps:$4 sm:$0xff]   ;;  %v4064_v31 = vld [vmem:[%s5185_s5 + $0x19c] ss:$40 sps:$4 sm:$0xff]  }
  0xdd   : > { %2813 = vmatpush1.bf16.msra.mxu1 %v3976_v32  ;;  %v4067_v32 = vld [vmem:[%s5185_s5 + $0x1a4] ss:$40 sps:$4 sm:$0xff]   ;;  %v4120_v7 = vld [vmem:[%s5185_s5 + $0x468] ss:$40 sps:$4 sm:$0xff]  }
  0xde   : > { %2864 = vmatpush1.bf16.msra.mxu0 %v3977_v33  ;;  %2814 = vmatprep.subr.bf16.mxu1 %v3978_v34  ;;  %v4062_v33 = vld [vmem:[%s5185_s5 + $0x198] ss:$40 sps:$4 sm:$0xff]  }
  0xdf   : > { %2865 = vmatprep.subr.bf16.mxu0 %v3980_v35  ;;  %v4065_v34 = vld [vmem:[%s5185_s5 + $0x1a0] ss:$40 sps:$4 sm:$0xff]   ;;  %v4073_v35 = vld [vmem:[%s5185_s5 + $0x1f4] ss:$40 sps:$4 sm:$0xff]   ;;  %v4123_v8 = vld [vmem:[%s5185_s5 + $0x470] ss:$40 sps:$4 sm:$0xff]  }
  0xe1   : > { %2815 = vmatpush1.bf16.msra.mxu1 %v3982_v36  ;;  %v4068_v36 = vld [vmem:[%s5185_s5 + $0x1e8] ss:$40 sps:$4 sm:$0xff]  }
  0xe2   : > { %2866 = vmatpush1.bf16.msra.mxu0 %v3983_v37  ;;  %2816 = vmatprep.subr.bf16.mxu1 %v3984_v38  ;;  %v4071_v37 = vld [vmem:[%s5185_s5 + $0x1f0] ss:$40 sps:$4 sm:$0xff]   ;;  %v4076_v38 = vld [vmem:[%s5185_s5 + $0x23c] ss:$40 sps:$4 sm:$0xff]  }
  0xe3   : > { %2867 = vmatprep.subr.bf16.mxu0 %v3986_v39  ;;  %v4079_v39 = vld [vmem:[%s5185_s5 + $0x244] ss:$40 sps:$4 sm:$0xff]  }
  0xe5   : > { %2817 = vmatpush1.bf16.msra.mxu1 %v3988_v40  ;;  %v4074_v40 = vld [vmem:[%s5185_s5 + $0x238] ss:$40 sps:$4 sm:$0xff]  }
  0xe6   : > { %2868 = vmatpush1.bf16.msra.mxu0 %v3989_v41  ;;  %2818 = vmatprep.subr.bf16.mxu1 %v3990_v42  ;;  %v4077_v41 = vld [vmem:[%s5185_s5 + $0x240] ss:$40 sps:$4 sm:$0xff]   ;;  %v4082_v42 = vld [vmem:[%s5185_s5 + $0x28c] ss:$40 sps:$4 sm:$0xff]  }
  0xe7   : > { %2869 = vmatprep.subr.bf16.mxu0 %v3992_v43  ;;  %v4085_v43 = vld [vmem:[%s5185_s5 + $0x294] ss:$40 sps:$4 sm:$0xff]  }
  0xe9   : > { %2819 = vmatpush1.bf16.msra.mxu1 %v3994_v44  ;;  %v4080_v44 = vld [vmem:[%s5185_s5 + $0x288] ss:$40 sps:$4 sm:$0xff]  }
  0xea   : > { %2870 = vmatpush1.bf16.msra.mxu0 %v3995_v45  ;;  %2820 = vmatprep.subr.bf16.mxu1 %v3996_v46  ;;  %v4083_v45 = vld [vmem:[%s5185_s5 + $0x290] ss:$40 sps:$4 sm:$0xff]   ;;  %v4088_v46 = vld [vmem:[%s5185_s5 + $0x2dc] ss:$40 sps:$4 sm:$0xff]  }
  0xeb   : > { %2871 = vmatprep.subr.bf16.mxu0 %v3998_v47  ;;  %v4091_v47 = vld [vmem:[%s5185_s5 + $0x2e4] ss:$40 sps:$4 sm:$0xff]  }
  0xed   : > { %2821 = vmatpush1.bf16.msra.mxu1 %v4000_v48  ;;  %v4086_v48 = vld [vmem:[%s5185_s5 + $0x2d8] ss:$40 sps:$4 sm:$0xff]  }
  0xee   : > { %2872 = vmatpush1.bf16.msra.mxu0 %v4001_v49  ;;  %2822 = vmatprep.subr.bf16.mxu1 %v4002_v50  ;;  %v4089_v49 = vld [vmem:[%s5185_s5 + $0x2e0] ss:$40 sps:$4 sm:$0xff]   ;;  %v4094_v50 = vld [vmem:[%s5185_s5 + $0x32c] ss:$40 sps:$4 sm:$0xff]  }
  0xef   : > { %2873 = vmatprep.subr.bf16.mxu0 %v4004_v51  ;;  %v4097_v51 = vld [vmem:[%s5185_s5 + $0x334] ss:$40 sps:$4 sm:$0xff]  }
  0xf1   : > { %2823 = vmatpush1.bf16.msra.mxu1 %v4006_v52  ;;  %v4092_v52 = vld [vmem:[%s5185_s5 + $0x328] ss:$40 sps:$4 sm:$0xff]  }
  0xf2   : > { %2874 = vmatpush1.bf16.msra.mxu0 %v4007_v53  ;;  %2824 = vmatprep.subr.bf16.mxu1 %v4008_v54  ;;  %v4095_v53 = vld [vmem:[%s5185_s5 + $0x330] ss:$40 sps:$4 sm:$0xff]   ;;  %v4100_v54 = vld [vmem:[%s5185_s5 + $0x37c] ss:$40 sps:$4 sm:$0xff]  }
  0xf3   : > { %2875 = vmatprep.subr.bf16.mxu0 %v4010_v55  ;;  %v4103_v55 = vld [vmem:[%s5185_s5 + $0x384] ss:$40 sps:$4 sm:$0xff]  }
  0xf5   : > { %2825 = vmatpush1.bf16.msra.mxu1 %v4012_v56  ;;  %v4098_v56 = vld [vmem:[%s5185_s5 + $0x378] ss:$40 sps:$4 sm:$0xff]  }
  0xf6   : > { %2876 = vmatpush1.bf16.msra.mxu0 %v4013_v57  ;;  %2826 = vmatprep.subr.bf16.mxu1 %v4014_v58  ;;  %v4101_v57 = vld [vmem:[%s5185_s5 + $0x380] ss:$40 sps:$4 sm:$0xff]   ;;  %v4106_v58 = vld [vmem:[%s5185_s5 + $0x3cc] ss:$40 sps:$4 sm:$0xff]  }
  0xf7   : > { %2877 = vmatprep.subr.bf16.mxu0 %v4016_v59  ;;  %v4109_v59 = vld [vmem:[%s5185_s5 + $0x3d4] ss:$40 sps:$4 sm:$0xff]  }
  0xf9   : > { %2827 = vmatpush1.bf16.msra.mxu1 %v4018_v60  ;;  %v4104_v60 = vld [vmem:[%s5185_s5 + $0x3c8] ss:$40 sps:$4 sm:$0xff]  }
  0xfa   : > { %2878 = vmatpush1.bf16.msra.mxu0 %v4019_v61  ;;  %2828 = vmatprep.subr.bf16.mxu1 %v4020_v62  ;;  %v4107_v61 = vld [vmem:[%s5185_s5 + $0x3d0] ss:$40 sps:$4 sm:$0xff]   ;;  %v4112_v62 = vld [vmem:[%s5185_s5 + $0x41c] ss:$40 sps:$4 sm:$0xff]  }
  0xfb   : > { %2879 = vmatprep.subr.bf16.mxu0 %v4022_v63  ;;  %v4115_v63 = vld [vmem:[%s5185_s5 + $0x424] ss:$40 sps:$4 sm:$0xff]  }
  0xfd   : > { %2829 = vmatpush1.bf16.msra.mxu1 %v4024_v1  ;;  %v4110_v1 = vld [vmem:[%s5185_s5 + $0x418] ss:$40 sps:$4 sm:$0xff]  }
  0xfe   : > { %2880 = vmatpush1.bf16.msra.mxu0 %v4025_v2  ;;  %2900 = vmatprep.subr.bf16.mxu1 %v4034_v3  ;;  %v4113_v2 = vld [vmem:[%s5185_s5 + $0x420] ss:$40 sps:$4 sm:$0xff]   ;;  %v4122_v3 = vld [vmem:[%s5185_s5 + $0x46c] ss:$40 sps:$4 sm:$0xff]  }
  0xff   : > { %3002 = vmatprep.subr.bf16.mxu0 %v4037_v6  ;;  %v4125_v6 = vld [vmem:[%s5185_s5 + $0x474] ss:$40 sps:$4 sm:$0xff]  }
 0x100   : > { %2831 = vmatmul.mubr.bf16.vlgmr.msra.gmra.mrb[0].mxu1 %v5255_v4 }
 0x101   : > { %2882 = vmatmul.mubr.bf16.vlgmr.msra.gmra.mrb[0].mxu0 %v5260_v5  ;;  %2901 = vmatpush1.bf16.msra.mxu1 %v4032_v9  ;;  %v4128_v9 = vld [vmem:[%s5185_s5 + $0x4bc] ss:$40 sps:$4 sm:$0xff]  }
 0x102   : > { %3003 = vmatpush1.bf16.msra.mxu0 %v4035_v10  ;;  %2902 = vmatprep.subr.bf16.mxu1 %v4040_v11  ;;  %v4131_v10 = vld [vmem:[%s5185_s5 + $0x4c4] ss:$40 sps:$4 sm:$0xff]   ;;  %v4126_v11 = vld [vmem:[%s5185_s5 + $0x4b8] ss:$40 sps:$4 sm:$0xff]  }
 0x103   : > { %3004 = vmatprep.subr.bf16.mxu0 %v4043_v12  ;;  %2840 = vmatprep.mubr.bf16.mxu1 %v5273_v13  ;;  %v4129_v12 = vld [vmem:[%s5185_s5 + $0x4c0] ss:$40 sps:$4 sm:$0xff]  }
 0x104   : > { %2891 = vmatprep.mubr.bf16.mxu0 %v5275_v14 }
 0x105   : > { %2903 = vmatpush1.bf16.msra.mxu1 %v4038_v15  ;;  %v4134_v15 = vld [vmem:[%s5185_s5 + $0x50c] ss:$40 sps:$4 sm:$0xff]  }
 0x106   : > { %3005 = vmatpush1.bf16.msra.mxu0 %v4041_v16  ;;  %2904 = vmatprep.subr.bf16.mxu1 %v4046_v17  ;;  %v4137_v16 = vld [vmem:[%s5185_s5 + $0x514] ss:$40 sps:$4 sm:$0xff]   ;;  %v4132_v17 = vld [vmem:[%s5185_s5 + $0x508] ss:$40 sps:$4 sm:$0xff]  }
 0x107   : > { %3006 = vmatprep.subr.bf16.mxu0 %v4049_v18  ;;  %v4135_v18 = vld [vmem:[%s5185_s5 + $0x510] ss:$40 sps:$4 sm:$0xff]  }
 0x108   : > { %2841 = vmatmul.mubr.bf16.gmra.mrb[4].mxu1 %v5287_v21 }
 0x109   : > { %2892 = vmatmul.mubr.bf16.gmra.mrb[4].mxu0 %v5289_v22  ;;  %2905 = vmatpush1.bf16.msra.mxu1 %v4044_v19  ;;  %v4140_v19 = vld [vmem:[%s5185_s5 + $0x55c] ss:$40 sps:$4 sm:$0xff]  }
 0x10a   : > { %3007 = vmatpush1.bf16.msra.mxu0 %v4047_v20  ;;  %2906 = vmatprep.subr.bf16.mxu1 %v4052_v23  ;;  %v4143_v20 = vld [vmem:[%s5185_s5 + $0x564] ss:$40 sps:$4 sm:$0xff]   ;;  %v4138_v23 = vld [vmem:[%s5185_s5 + $0x558] ss:$40 sps:$4 sm:$0xff]  }
 0x10b   : > { %3008 = vmatprep.subr.bf16.mxu0 %v4055_v24  ;;  %2932 = vmatprep.mubr.bf16.mxu1 %v5177_v0  ;;  %v4141_v24 = vld [vmem:[%s5185_s5 + $0x560] ss:$40 sps:$4 sm:$0xff]  }
 0x10c   : > { %3034 = vmatprep.mubr.bf16.mxu0 %v5177_v0  ;;  %v4070_v0 = vld [vmem:[%s5185_s5 + $0x1ec] ss:$40 sps:$4 sm:$0xff]  }
 0x10d   : > { %2907 = vmatpush1.bf16.msra.mxu1 %v4050_v25  ;;  %v4146_v25 = vld [vmem:[%s5185_s5 + $0x5ac] ss:$40 sps:$4 sm:$0xff]  }
 0x10e   : > { %3009 = vmatpush1.bf16.msra.mxu0 %v4053_v26  ;;  %2908 = vmatprep.subr.bf16.mxu1 %v4058_v27  ;;  %v4149_v26 = vld [vmem:[%s5185_s5 + $0x5b4] ss:$40 sps:$4 sm:$0xff]   ;;  %v4144_v27 = vld [vmem:[%s5185_s5 + $0x5a8] ss:$40 sps:$4 sm:$0xff]  }
 0x10f   : > { %3010 = vmatprep.subr.bf16.mxu0 %v4061_v28  ;;  %v4147_v28 = vld [vmem:[%s5185_s5 + $0x5b0] ss:$40 sps:$4 sm:$0xff]  }
 0x111   : > { %2909 = vmatpush1.bf16.msra.mxu1 %v4056_v29  ;;  %v4155_v29 = vld [vmem:[%s5185_s5 + $0x604] ss:$40 sps:$4 sm:$0xff]  }
 0x112   : > { %3011 = vmatpush1.bf16.msra.mxu0 %v4059_v30  ;;  %2910 = vmatprep.subr.bf16.mxu1 %v4064_v31  ;;  %v4150_v30 = vld [vmem:[%s5185_s5 + $0x5f8] ss:$40 sps:$4 sm:$0xff]  }
 0x113   : > { %3012 = vmatprep.subr.bf16.mxu0 %v4067_v32  ;;  %v4153_v31 = vld [vmem:[%s5185_s5 + $0x600] ss:$40 sps:$4 sm:$0xff]   ;;  %v4158_v32 = vld [vmem:[%s5185_s5 + $0x64c] ss:$40 sps:$4 sm:$0xff]  }
 0x115   : > { %2911 = vmatpush1.bf16.msra.mxu1 %v4062_v33  ;;  %v4161_v33 = vld [vmem:[%s5185_s5 + $0x654] ss:$40 sps:$4 sm:$0xff]  }
 0x116   : > { %3013 = vmatpush1.bf16.msra.mxu0 %v4065_v34  ;;  %2912 = vmatprep.subr.bf16.mxu1 %v4070_v0  ;;  %v5374_v34 = vld [vmem:[%s5694_s0 + $0xc] ss:$16 sps:$4 sm:$0xff]   ;;  %v4156_v0 = vld [vmem:[%s5185_s5 + $0x648] ss:$40 sps:$4 sm:$0xff]  }
 0x117   : > { %3014 = vmatprep.subr.bf16.mxu0 %v4073_v35  ;;  %v4159_v35 = vld [vmem:[%s5185_s5 + $0x650] ss:$40 sps:$4 sm:$0xff]  }
 0x119   : > { %2913 = vmatpush1.bf16.msra.mxu1 %v4068_v36  ;;  %v4164_v36 = vld [vmem:[%s5185_s5 + $0x69c] ss:$40 sps:$4 sm:$0xff]  }
 0x11a   : > { %3015 = vmatpush1.bf16.msra.mxu0 %v4071_v37  ;;  %2914 = vmatprep.subr.bf16.mxu1 %v4076_v38  ;;  %v4167_v37 = vld [vmem:[%s5185_s5 + $0x6a4] ss:$40 sps:$4 sm:$0xff]   ;;  %v4162_v38 = vld [vmem:[%s5185_s5 + $0x698] ss:$40 sps:$4 sm:$0xff]  }
 0x11b   : > { %3016 = vmatprep.subr.bf16.mxu0 %v4079_v39  ;;  %v4165_v39 = vld [vmem:[%s5185_s5 + $0x6a0] ss:$40 sps:$4 sm:$0xff]  }
 0x11d   : > { %2915 = vmatpush1.bf16.msra.mxu1 %v4074_v40  ;;  %v4170_v40 = vld [vmem:[%s5185_s5 + $0x6ec] ss:$40 sps:$4 sm:$0xff]  }
 0x11e   : > { %3017 = vmatpush1.bf16.msra.mxu0 %v4077_v41  ;;  %2916 = vmatprep.subr.bf16.mxu1 %v4082_v42  ;;  %v4173_v41 = vld [vmem:[%s5185_s5 + $0x6f4] ss:$40 sps:$4 sm:$0xff]   ;;  %v4168_v42 = vld [vmem:[%s5185_s5 + $0x6e8] ss:$40 sps:$4 sm:$0xff]  }
 0x11f   : > { %3018 = vmatprep.subr.bf16.mxu0 %v4085_v43  ;;  %v4171_v43 = vld [vmem:[%s5185_s5 + $0x6f0] ss:$40 sps:$4 sm:$0xff]  }
 0x121   : > { %2917 = vmatpush1.bf16.msra.mxu1 %v4080_v44  ;;  %v4176_v44 = vld [vmem:[%s5185_s5 + $0x73c] ss:$40 sps:$4 sm:$0xff]  }
 0x122   : > { %3019 = vmatpush1.bf16.msra.mxu0 %v4083_v45  ;;  %2918 = vmatprep.subr.bf16.mxu1 %v4088_v46  ;;  %v4179_v45 = vld [vmem:[%s5185_s5 + $0x744] ss:$40 sps:$4 sm:$0xff]   ;;  %v4174_v46 = vld [vmem:[%s5185_s5 + $0x738] ss:$40 sps:$4 sm:$0xff]  }
 0x123   : > { %3020 = vmatprep.subr.bf16.mxu0 %v4091_v47  ;;  %v4177_v47 = vld [vmem:[%s5185_s5 + $0x740] ss:$40 sps:$4 sm:$0xff]  }
 0x125   : > { %2919 = vmatpush1.bf16.msra.mxu1 %v4086_v48  ;;  %v4182_v48 = vld [vmem:[%s5185_s5 + $0x78c] ss:$40 sps:$4 sm:$0xff]  }
 0x126   : > { %3021 = vmatpush1.bf16.msra.mxu0 %v4089_v49  ;;  %2920 = vmatprep.subr.bf16.mxu1 %v4094_v50  ;;  %v4185_v49 = vld [vmem:[%s5185_s5 + $0x794] ss:$40 sps:$4 sm:$0xff]   ;;  %v4180_v50 = vld [vmem:[%s5185_s5 + $0x788] ss:$40 sps:$4 sm:$0xff]  }
 0x127   : > { %3022 = vmatprep.subr.bf16.mxu0 %v4097_v51  ;;  %v4183_v51 = vld [vmem:[%s5185_s5 + $0x790] ss:$40 sps:$4 sm:$0xff]  }
 0x129   : > { %2921 = vmatpush1.bf16.msra.mxu1 %v4092_v52  ;;  %v4188_v52 = vld [vmem:[%s5185_s5 + $0x7dc] ss:$40 sps:$4 sm:$0xff]  }
 0x12a   : > { %3023 = vmatpush1.bf16.msra.mxu0 %v4095_v53  ;;  %2922 = vmatprep.subr.bf16.mxu1 %v4100_v54  ;;  %v4191_v53 = vld [vmem:[%s5185_s5 + $0x7e4] ss:$40 sps:$4 sm:$0xff]   ;;  %v4186_v54 = vld [vmem:[%s5185_s5 + $0x7d8] ss:$40 sps:$4 sm:$0xff]  }
 0x12b   : > { %3024 = vmatprep.subr.bf16.mxu0 %v4103_v55  ;;  %v4189_v55 = vld [vmem:[%s5185_s5 + $0x7e0] ss:$40 sps:$4 sm:$0xff]  }
 0x12d   : > { %2923 = vmatpush1.bf16.msra.mxu1 %v4098_v56  ;;  %v4194_v56 = vld [vmem:[%s5185_s5 + $0x82c] ss:$40 sps:$4 sm:$0xff]  }
 0x12e   : > { %3025 = vmatpush1.bf16.msra.mxu0 %v4101_v57  ;;  %2924 = vmatprep.subr.bf16.mxu1 %v4106_v58  ;;  %v4197_v57 = vld [vmem:[%s5185_s5 + $0x834] ss:$40 sps:$4 sm:$0xff]   ;;  %v4192_v58 = vld [vmem:[%s5185_s5 + $0x828] ss:$40 sps:$4 sm:$0xff]  }
 0x12f   : > { %3026 = vmatprep.subr.bf16.mxu0 %v4109_v59  ;;  %v4195_v59 = vld [vmem:[%s5185_s5 + $0x830] ss:$40 sps:$4 sm:$0xff]  }
 0x131   : > { %2925 = vmatpush1.bf16.msra.mxu1 %v4104_v60  ;;  %v4200_v60 = vld [vmem:[%s5185_s5 + $0x87c] ss:$40 sps:$4 sm:$0xff]  }
 0x132   : > { %3027 = vmatpush1.bf16.msra.mxu0 %v4107_v61  ;;  %2926 = vmatprep.subr.bf16.mxu1 %v4112_v62  ;;  %v4203_v61 = vld [vmem:[%s5185_s5 + $0x884] ss:$40 sps:$4 sm:$0xff]   ;;  %v4198_v62 = vld [vmem:[%s5185_s5 + $0x878] ss:$40 sps:$4 sm:$0xff]  }
 0x133   : > { %3028 = vmatprep.subr.bf16.mxu0 %v4115_v63  ;;  %v4201_v63 = vld [vmem:[%s5185_s5 + $0x880] ss:$40 sps:$4 sm:$0xff]  }
 0x135   : > { %2927 = vmatpush1.bf16.msra.mxu1 %v4110_v1  ;;  %v4206_v1 = vld [vmem:[%s5185_s5 + $0x8cc] ss:$40 sps:$4 sm:$0xff]  }
 0x136   : > { %3029 = vmatpush1.bf16.msra.mxu0 %v4113_v2  ;;  %2928 = vmatprep.subr.bf16.mxu1 %v4122_v3  ;;  %v4209_v2 = vld [vmem:[%s5185_s5 + $0x8d4] ss:$40 sps:$4 sm:$0xff]   ;;  %v4204_v3 = vld [vmem:[%s5185_s5 + $0x8c8] ss:$40 sps:$4 sm:$0xff]  }
 0x137   : > { %3030 = vmatprep.subr.bf16.mxu0 %v4125_v6  ;;  %v4207_v6 = vld [vmem:[%s5185_s5 + $0x8d0] ss:$40 sps:$4 sm:$0xff]  }
 0x139   : > { %2929 = vmatpush1.bf16.msra.mxu1 %v4120_v7  ;;  %v4212_v7 = vld [vmem:[%s5185_s5 + $0x91c] ss:$40 sps:$4 sm:$0xff]  }
 0x13a   : > { %3031 = vmatpush1.bf16.msra.mxu0 %v4123_v8  ;;  %2930 = vmatprep.subr.bf16.mxu1 %v4128_v9  ;;  %v4215_v8 = vld [vmem:[%s5185_s5 + $0x924] ss:$40 sps:$4 sm:$0xff]   ;;  %v4210_v9 = vld [vmem:[%s5185_s5 + $0x918] ss:$40 sps:$4 sm:$0xff]  }
 0x13b   : > { %3032 = vmatprep.subr.bf16.mxu0 %v4131_v10  ;;  %v4213_v10 = vld [vmem:[%s5185_s5 + $0x920] ss:$40 sps:$4 sm:$0xff]  }
 0x13d   : > { %2931 = vmatpush1.bf16.msra.mxu1 %v4126_v11  ;;  %v4218_v11 = vld [vmem:[%s5185_s5 + $0x96c] ss:$40 sps:$4 sm:$0xff]  }
 0x13e   : > { %3033 = vmatpush1.bf16.msra.mxu0 %v4129_v12  ;;  %2951 = vmatprep.subr.bf16.mxu1 %v4134_v15  ;;  %v4221_v12 = vld [vmem:[%s5185_s5 + $0x974] ss:$40 sps:$4 sm:$0xff]   ;;  %v4216_v15 = vld [vmem:[%s5185_s5 + $0x968] ss:$40 sps:$4 sm:$0xff]  }
 0x13f   : > { %3053 = vmatprep.subr.bf16.mxu0 %v4137_v16  ;;  %v4219_v16 = vld [vmem:[%s5185_s5 + $0x970] ss:$40 sps:$4 sm:$0xff]  }
 0x140   : > { %2933 = vmatmul.mubr.bf16.vlgmr.msra.gmra.mrb[8].mxu1 %v5255_v4 }
 0x141   : > { %3035 = vmatmul.mubr.bf16.vlgmr.msra.gmra.mrb[8].mxu0 %v5255_v4  ;;  %2952 = vmatpush1.bf16.msra.mxu1 %v4132_v17  ;;  %v4152_v4 = vld [vmem:[%s5185_s5 + $0x5fc] ss:$40 sps:$4 sm:$0xff]  }
 0x142   : > { %3054 = vmatpush1.bf16.msra.mxu0 %v4135_v18  ;;  %2953 = vmatprep.subr.bf16.mxu1 %v4140_v19  ;;  %v4224_v17 = vld [vmem:[%s5185_s5 + $0x9bc] ss:$40 sps:$4 sm:$0xff]   ;;  %v4222_v19 = vld [vmem:[%s5185_s5 + $0x9b8] ss:$40 sps:$4 sm:$0xff]  }
 0x143   : > { %3055 = vmatprep.subr.bf16.mxu0 %v4143_v20  ;;  %2942 = vmatprep.mubr.bf16.mxu1 %v5273_v13  ;;  %v4227_v18 = vld [vmem:[%s5185_s5 + $0x9c4] ss:$40 sps:$4 sm:$0xff]   ;;  %v4225_v20 = vld [vmem:[%s5185_s5 + $0x9c0] ss:$40 sps:$4 sm:$0xff]  }
 0x144   : > { %3044 = vmatprep.mubr.bf16.mxu0 %v5273_v13 }
 0x145   : > { %2954 = vmatpush1.bf16.msra.mxu1 %v4138_v23  ;;  %v4230_v23 = vld [vmem:[%s5185_s5 + $0x1c] ss:$40 sps:$4 sm:$0xff]  }
 0x146   : > { %3056 = vmatpush1.bf16.msra.mxu0 %v4141_v24  ;;  %2955 = vmatprep.subr.bf16.mxu1 %v4146_v25  ;;  %v4233_v24 = vld [vmem:[%s5185_s5 + $0x24] ss:$40 sps:$4 sm:$0xff]   ;;  %v4228_v25 = vld [vmem:[%s5185_s5 + $0x18] ss:$40 sps:$4 sm:$0xff]  }
 0x147   : > { %3057 = vmatprep.subr.bf16.mxu0 %v4149_v26  ;;  %v4231_v26 = vld [vmem:[%s5185_s5 + $0x20] ss:$40 sps:$4 sm:$0xff]  }
 0x148   : > { %2943 = vmatmul.mubr.bf16.gmra.mrb[12].mxu1 %v5287_v21 }
 0x149   : > { %3045 = vmatmul.mubr.bf16.gmra.mrb[12].mxu0 %v5287_v21  ;;  %2956 = vmatpush1.bf16.msra.mxu1 %v4144_v27  ;;  %v4236_v27 = vld [vmem:[%s5185_s5 + $0x6c] ss:$40 sps:$4 sm:$0xff]  }
 0x14a   : > { %3058 = vmatpush1.bf16.msra.mxu0 %v4147_v28  ;;  %2957 = vmatprep.subr.bf16.mxu1 %v4152_v4  ;;  %v4239_v28 = vld [vmem:[%s5185_s5 + $0x74] ss:$40 sps:$4 sm:$0xff]   ;;  %v4234_v4 = vld [vmem:[%s5185_s5 + $0x68] ss:$40 sps:$4 sm:$0xff]  }
 0x14b   : > { %3059 = vmatprep.subr.bf16.mxu0 %v4155_v29  ;;  %2983 = vmatprep.mubr.bf16.mxu1 %v5374_v34  ;;  %v4237_v29 = vld [vmem:[%s5185_s5 + $0x70] ss:$40 sps:$4 sm:$0xff]  }
 0x14c   : > { %3085 = vmatprep.mubr.bf16.mxu0 %v5374_v34 }
 0x14d   : > { %2958 = vmatpush1.bf16.msra.mxu1 %v4150_v30  ;;  %v4242_v30 = vld [vmem:[%s5185_s5 + $0xbc] ss:$40 sps:$4 sm:$0xff]  }
 0x14e   : > { %3060 = vmatpush1.bf16.msra.mxu0 %v4153_v31  ;;  %2959 = vmatprep.subr.bf16.mxu1 %v4158_v32  ;;  %v4245_v31 = vld [vmem:[%s5185_s5 + $0xc4] ss:$40 sps:$4 sm:$0xff]   ;;  %v4240_v32 = vld [vmem:[%s5185_s5 + $0xb8] ss:$40 sps:$4 sm:$0xff]  }
 0x14f   : > { %3061 = vmatprep.subr.bf16.mxu0 %v4161_v33  ;;  %v4243_v33 = vld [vmem:[%s5185_s5 + $0xc0] ss:$40 sps:$4 sm:$0xff]  }
 0x151   : > { %2960 = vmatpush1.bf16.msra.mxu1 %v4156_v0  ;;  %v4251_v0 = vld [vmem:[%s5185_s5 + $0x114] ss:$40 sps:$4 sm:$0xff]  }
 0x152   : > { %3062 = vmatpush1.bf16.msra.mxu0 %v4159_v35  ;;  %2961 = vmatprep.subr.bf16.mxu1 %v4164_v36  ;;  %v4246_v35 = vld [vmem:[%s5185_s5 + $0x108] ss:$40 sps:$4 sm:$0xff]  }
 0x153   : > { %3063 = vmatprep.subr.bf16.mxu0 %v4167_v37  ;;  %v4249_v36 = vld [vmem:[%s5185_s5 + $0x110] ss:$40 sps:$4 sm:$0xff]   ;;  %v4254_v37 = vld [vmem:[%s5185_s5 + $0x15c] ss:$40 sps:$4 sm:$0xff]  }
 0x155   : > { %2962 = vmatpush1.bf16.msra.mxu1 %v4162_v38  ;;  %v4257_v38 = vld [vmem:[%s5185_s5 + $0x164] ss:$40 sps:$4 sm:$0xff]  }
 0x156   : > { %3064 = vmatpush1.bf16.msra.mxu0 %v4165_v39  ;;  %2963 = vmatprep.subr.bf16.mxu1 %v4170_v40  ;;  %v4421_v39 = vld [vmem:[%s5694_s0 + $0x4] ss:$16 sps:$4 sm:$0xff]   ;;  %v4252_v40 = vld [vmem:[%s5185_s5 + $0x158] ss:$40 sps:$4 sm:$0xff]  }
 0x157   : > { %3065 = vmatprep.subr.bf16.mxu0 %v4173_v41  ;;  %v4255_v41 = vld [vmem:[%s5185_s5 + $0x160] ss:$40 sps:$4 sm:$0xff]  }
 0x159   : > { %2964 = vmatpush1.bf16.msra.mxu1 %v4168_v42  ;;  %v4260_v42 = vld [vmem:[%s5185_s5 + $0x1ac] ss:$40 sps:$4 sm:$0xff]  }
 0x15a   : > { %3066 = vmatpush1.bf16.msra.mxu0 %v4171_v43  ;;  %2965 = vmatprep.subr.bf16.mxu1 %v4176_v44  ;;  %v4263_v43 = vld [vmem:[%s5185_s5 + $0x1b4] ss:$40 sps:$4 sm:$0xff]   ;;  %v4258_v44 = vld [vmem:[%s5185_s5 + $0x1a8] ss:$40 sps:$4 sm:$0xff]  }
 0x15b   : > { %3067 = vmatprep.subr.bf16.mxu0 %v4179_v45  ;;  %v4261_v45 = vld [vmem:[%s5185_s5 + $0x1b0] ss:$40 sps:$4 sm:$0xff]  }
 0x15d   : > { %2966 = vmatpush1.bf16.msra.mxu1 %v4174_v46  ;;  %v4266_v46 = vld [vmem:[%s5185_s5 + $0x1fc] ss:$40 sps:$4 sm:$0xff]  }
 0x15e   : > { %3068 = vmatpush1.bf16.msra.mxu0 %v4177_v47  ;;  %2967 = vmatprep.subr.bf16.mxu1 %v4182_v48  ;;  %v4269_v47 = vld [vmem:[%s5185_s5 + $0x204] ss:$40 sps:$4 sm:$0xff]   ;;  %v4264_v48 = vld [vmem:[%s5185_s5 + $0x1f8] ss:$40 sps:$4 sm:$0xff]  }
 0x15f   : > { %3069 = vmatprep.subr.bf16.mxu0 %v4185_v49  ;;  %v4267_v49 = vld [vmem:[%s5185_s5 + $0x200] ss:$40 sps:$4 sm:$0xff]  }
 0x161   : > { %2968 = vmatpush1.bf16.msra.mxu1 %v4180_v50  ;;  %v4272_v50 = vld [vmem:[%s5185_s5 + $0x24c] ss:$40 sps:$4 sm:$0xff]  }
 0x162   : > { %3070 = vmatpush1.bf16.msra.mxu0 %v4183_v51  ;;  %2969 = vmatprep.subr.bf16.mxu1 %v4188_v52  ;;  %v4275_v51 = vld [vmem:[%s5185_s5 + $0x254] ss:$40 sps:$4 sm:$0xff]   ;;  %v4270_v52 = vld [vmem:[%s5185_s5 + $0x248] ss:$40 sps:$4 sm:$0xff]  }
 0x163   : > { %3071 = vmatprep.subr.bf16.mxu0 %v4191_v53  ;;  %v4273_v53 = vld [vmem:[%s5185_s5 + $0x250] ss:$40 sps:$4 sm:$0xff]  }
 0x165   : > { %2970 = vmatpush1.bf16.msra.mxu1 %v4186_v54  ;;  %v4278_v54 = vld [vmem:[%s5185_s5 + $0x29c] ss:$40 sps:$4 sm:$0xff]  }
 0x166   : > { %3072 = vmatpush1.bf16.msra.mxu0 %v4189_v55  ;;  %2971 = vmatprep.subr.bf16.mxu1 %v4194_v56  ;;  %v4281_v55 = vld [vmem:[%s5185_s5 + $0x2a4] ss:$40 sps:$4 sm:$0xff]   ;;  %v4276_v56 = vld [vmem:[%s5185_s5 + $0x298] ss:$40 sps:$4 sm:$0xff]  }
 0x167   : > { %3073 = vmatprep.subr.bf16.mxu0 %v4197_v57  ;;  %v4279_v57 = vld [vmem:[%s5185_s5 + $0x2a0] ss:$40 sps:$4 sm:$0xff]  }
 0x169   : > { %2972 = vmatpush1.bf16.msra.mxu1 %v4192_v58  ;;  %v4284_v58 = vld [vmem:[%s5185_s5 + $0x2ec] ss:$40 sps:$4 sm:$0xff]  }
 0x16a   : > { %3074 = vmatpush1.bf16.msra.mxu0 %v4195_v59  ;;  %2973 = vmatprep.subr.bf16.mxu1 %v4200_v60  ;;  %v4287_v59 = vld [vmem:[%s5185_s5 + $0x2f4] ss:$40 sps:$4 sm:$0xff]   ;;  %v4282_v60 = vld [vmem:[%s5185_s5 + $0x2e8] ss:$40 sps:$4 sm:$0xff]  }
 0x16b   : > { %3075 = vmatprep.subr.bf16.mxu0 %v4203_v61  ;;  %v4285_v61 = vld [vmem:[%s5185_s5 + $0x2f0] ss:$40 sps:$4 sm:$0xff]  }
 0x16d   : > { %2974 = vmatpush1.bf16.msra.mxu1 %v4198_v62  ;;  %v4290_v62 = vld [vmem:[%s5185_s5 + $0x33c] ss:$40 sps:$4 sm:$0xff]  }
 0x16e   : > { %3076 = vmatpush1.bf16.msra.mxu0 %v4201_v63  ;;  %2975 = vmatprep.subr.bf16.mxu1 %v4206_v1  ;;  %v4293_v63 = vld [vmem:[%s5185_s5 + $0x344] ss:$40 sps:$4 sm:$0xff]   ;;  %v4288_v1 = vld [vmem:[%s5185_s5 + $0x338] ss:$40 sps:$4 sm:$0xff]  }
 0x16f   : > { %3077 = vmatprep.subr.bf16.mxu0 %v4209_v2  ;;  %v4291_v2 = vld [vmem:[%s5185_s5 + $0x340] ss:$40 sps:$4 sm:$0xff]  }
 0x171   : > { %2976 = vmatpush1.bf16.msra.mxu1 %v4204_v3  ;;  %v4296_v3 = vld [vmem:[%s5185_s5 + $0x38c] ss:$40 sps:$4 sm:$0xff]  }
 0x172   : > { %3078 = vmatpush1.bf16.msra.mxu0 %v4207_v6  ;;  %2977 = vmatprep.subr.bf16.mxu1 %v4212_v7  ;;  %v4299_v6 = vld [vmem:[%s5185_s5 + $0x394] ss:$40 sps:$4 sm:$0xff]   ;;  %v4294_v7 = vld [vmem:[%s5185_s5 + $0x388] ss:$40 sps:$4 sm:$0xff]  }
 0x173   : > { %3079 = vmatprep.subr.bf16.mxu0 %v4215_v8  ;;  %v4297_v8 = vld [vmem:[%s5185_s5 + $0x390] ss:$40 sps:$4 sm:$0xff]  }
 0x175   : > { %2978 = vmatpush1.bf16.msra.mxu1 %v4210_v9  ;;  %v4302_v9 = vld [vmem:[%s5185_s5 + $0x3dc] ss:$40 sps:$4 sm:$0xff]  }
 0x176   : > { %3080 = vmatpush1.bf16.msra.mxu0 %v4213_v10  ;;  %2979 = vmatprep.subr.bf16.mxu1 %v4218_v11  ;;  %v4305_v10 = vld [vmem:[%s5185_s5 + $0x3e4] ss:$40 sps:$4 sm:$0xff]   ;;  %v4300_v11 = vld [vmem:[%s5185_s5 + $0x3d8] ss:$40 sps:$4 sm:$0xff]  }
 0x177   : > { %3081 = vmatprep.subr.bf16.mxu0 %v4221_v12  ;;  %v4303_v12 = vld [vmem:[%s5185_s5 + $0x3e0] ss:$40 sps:$4 sm:$0xff]  }
 0x179   : > { %2980 = vmatpush1.bf16.msra.mxu1 %v4216_v15  ;;  %v4308_v15 = vld [vmem:[%s5185_s5 + $0x42c] ss:$40 sps:$4 sm:$0xff]  }
 0x17a   : > { %3082 = vmatpush1.bf16.msra.mxu0 %v4219_v16  ;;  %2981 = vmatprep.subr.bf16.mxu1 %v4224_v17  ;;  %v4311_v16 = vld [vmem:[%s5185_s5 + $0x434] ss:$40 sps:$4 sm:$0xff]   ;;  %v4306_v17 = vld [vmem:[%s5185_s5 + $0x428] ss:$40 sps:$4 sm:$0xff]  }
 0x17b   : > { %3083 = vmatprep.subr.bf16.mxu0 %v4227_v18  ;;  %v4309_v18 = vld [vmem:[%s5185_s5 + $0x430] ss:$40 sps:$4 sm:$0xff]  }
 0x17d   : > { %2982 = vmatpush1.bf16.msra.mxu1 %v4222_v19  ;;  %v4314_v19 = vld [vmem:[%s5185_s5 + $0x47c] ss:$40 sps:$4 sm:$0xff]  }
 0x17e   : > { %3084 = vmatpush1.bf16.msra.mxu0 %v4225_v20  ;;  %3104 = vmatprep.subr.bf16.mxu1 %v4230_v23  ;;  %v4317_v20 = vld [vmem:[%s5185_s5 + $0x484] ss:$40 sps:$4 sm:$0xff]   ;;  %v4312_v23 = vld [vmem:[%s5185_s5 + $0x478] ss:$40 sps:$4 sm:$0xff]  }
 0x17f   : > { %3206 = vmatprep.subr.bf16.mxu0 %v4233_v24  ;;  %v4315_v24 = vld [vmem:[%s5185_s5 + $0x480] ss:$40 sps:$4 sm:$0xff]  }
 0x180   : > { %2984 = vmatmul.mubr.bf16.vlgmr.msra.gmra.mrb[8].mxu1 %v5260_v5 }
 0x181   : > { %3086 = vmatmul.mubr.bf16.vlgmr.msra.gmra.mrb[8].mxu0 %v5260_v5  ;;  %3105 = vmatpush1.bf16.msra.mxu1 %v4228_v25  ;;  %v4248_v5 = vld [vmem:[%s5185_s5 + $0x10c] ss:$40 sps:$4 sm:$0xff]  }
 0x182   : > { %3207 = vmatpush1.bf16.msra.mxu0 %v4231_v26  ;;  %3106 = vmatprep.subr.bf16.mxu1 %v4236_v27  ;;  %v4320_v25 = vld [vmem:[%s5185_s5 + $0x4cc] ss:$40 sps:$4 sm:$0xff]   ;;  %v4318_v27 = vld [vmem:[%s5185_s5 + $0x4c8] ss:$40 sps:$4 sm:$0xff]  }
 0x183   : > { %3208 = vmatprep.subr.bf16.mxu0 %v4239_v28  ;;  %2993 = vmatprep.mubr.bf16.mxu1 %v5275_v14  ;;  %v4323_v26 = vld [vmem:[%s5185_s5 + $0x4d4] ss:$40 sps:$4 sm:$0xff]   ;;  %v4321_v28 = vld [vmem:[%s5185_s5 + $0x4d0] ss:$40 sps:$4 sm:$0xff]  }
 0x184   : > { %3095 = vmatprep.mubr.bf16.mxu0 %v5275_v14 }
 0x185   : > { %3107 = vmatpush1.bf16.msra.mxu1 %v4234_v4  ;;  %v4326_v4 = vld [vmem:[%s5185_s5 + $0x51c] ss:$40 sps:$4 sm:$0xff]  }
 0x186   : > { %3209 = vmatpush1.bf16.msra.mxu0 %v4237_v29  ;;  %3108 = vmatprep.subr.bf16.mxu1 %v4242_v30  ;;  %v4329_v29 = vld [vmem:[%s5185_s5 + $0x524] ss:$40 sps:$4 sm:$0xff]   ;;  %v4324_v30 = vld [vmem:[%s5185_s5 + $0x518] ss:$40 sps:$4 sm:$0xff]  }
 0x187   : > { %3210 = vmatprep.subr.bf16.mxu0 %v4245_v31  ;;  %v4327_v31 = vld [vmem:[%s5185_s5 + $0x520] ss:$40 sps:$4 sm:$0xff]  }
 0x188   : > { %2994 = vmatmul.mubr.bf16.gmra.mrb[12].mxu1 %v5289_v22 }
 0x189   : > { %3096 = vmatmul.mubr.bf16.gmra.mrb[12].mxu0 %v5289_v22  ;;  %3109 = vmatpush1.bf16.msra.mxu1 %v4240_v32  ;;  %v4332_v32 = vld [vmem:[%s5185_s5 + $0x56c] ss:$40 sps:$4 sm:$0xff]  }
 0x18a   : > { %3211 = vmatpush1.bf16.msra.mxu0 %v4243_v33  ;;  %3110 = vmatprep.subr.bf16.mxu1 %v4248_v5  ;;  %v4335_v33 = vld [vmem:[%s5185_s5 + $0x574] ss:$40 sps:$4 sm:$0xff]   ;;  %v4422_v5 = vld [vmem:[%s5694_s0] ss:$16 sps:$4 sm:$0xff]  }
 0x18b   : > { %3212 = vmatprep.subr.bf16.mxu0 %v4251_v0  ;;  %3136 = vmatprep.mubr.bf16.mxu1 %v4421_v39  ;;  %v4330_v0 = vld [vmem:[%s5185_s5 + $0x568] ss:$40 sps:$4 sm:$0xff]  }
 0x18c   : > { %3238 = vmatprep.mubr.bf16.mxu0 %v4421_v39  ;;  %v4339_v39 = vld [vmem:[%s5185_s5 + $0x5c0] ss:$40 sps:$4 sm:$0xff]  }
 0x18d   : > { %3111 = vmatpush1.bf16.msra.mxu1 %v4246_v35  ;;  %v4333_v35 = vld [vmem:[%s5185_s5 + $0x570] ss:$40 sps:$4 sm:$0xff]  }
 0x18e   : > { %3213 = vmatpush1.bf16.msra.mxu0 %v4249_v36  ;;  %3112 = vmatprep.subr.bf16.mxu1 %v4254_v37  ;;  %v4338_v36 = vld [vmem:[%s5185_s5 + $0x5bc] ss:$40 sps:$4 sm:$0xff]  }
 0x18f   : > { %3214 = vmatprep.subr.bf16.mxu0 %v4257_v38  ;;  %v4341_v37 = vld [vmem:[%s5185_s5 + $0x5c4] ss:$40 sps:$4 sm:$0xff]   ;;  %v4336_v38 = vld [vmem:[%s5185_s5 + $0x5b8] ss:$40 sps:$4 sm:$0xff]  }
 0x191   : > { %3113 = vmatpush1.bf16.msra.mxu1 %v4252_v40  ;;  %v4344_v40 = vld [vmem:[%s5185_s5 + $0x60c] ss:$40 sps:$4 sm:$0xff]  }
 0x192   : > { %3215 = vmatpush1.bf16.msra.mxu0 %v4255_v41  ;;  %3114 = vmatprep.subr.bf16.mxu1 %v4260_v42  ;;  %v4347_v41 = vld [vmem:[%s5185_s5 + $0x614] ss:$40 sps:$4 sm:$0xff]   ;;  %v4345_v42 = vld [vmem:[%s5185_s5 + $0x610] ss:$40 sps:$4 sm:$0xff]  }
 0x193   : > { %3216 = vmatprep.subr.bf16.mxu0 %v4263_v43  ;;  %v4350_v43 = vld [vmem:[%s5185_s5 + $0x65c] ss:$40 sps:$4 sm:$0xff]  }
 0x195   : > { %3115 = vmatpush1.bf16.msra.mxu1 %v4258_v44  ;;  %v4353_v44 = vld [vmem:[%s5185_s5 + $0x664] ss:$40 sps:$4 sm:$0xff]  }
 0x196   : > { %3217 = vmatpush1.bf16.msra.mxu0 %v4261_v45  ;;  %3116 = vmatprep.subr.bf16.mxu1 %v4266_v46  ;;  %v4351_v45 = vld [vmem:[%s5185_s5 + $0x660] ss:$40 sps:$4 sm:$0xff]   ;;  %v4356_v46 = vld [vmem:[%s5185_s5 + $0x6ac] ss:$40 sps:$4 sm:$0xff]  }
 0x197   : > { %3218 = vmatprep.subr.bf16.mxu0 %v4269_v47  ;;  %v4359_v47 = vld [vmem:[%s5185_s5 + $0x6b4] ss:$40 sps:$4 sm:$0xff]  }
 0x199   : > { %3117 = vmatpush1.bf16.msra.mxu1 %v4264_v48  ;;  %v4354_v48 = vld [vmem:[%s5185_s5 + $0x6a8] ss:$40 sps:$4 sm:$0xff]  }
 0x19a   : > { %3219 = vmatpush1.bf16.msra.mxu0 %v4267_v49  ;;  %3118 = vmatprep.subr.bf16.mxu1 %v4272_v50  ;;  %v4357_v49 = vld [vmem:[%s5185_s5 + $0x6b0] ss:$40 sps:$4 sm:$0xff]   ;;  %v4365_v50 = vld [vmem:[%s5185_s5 + $0x704] ss:$40 sps:$4 sm:$0xff]  }
 0x19b   : > { %3220 = vmatprep.subr.bf16.mxu0 %v4275_v51 }
 0x19d   : > { %3119 = vmatpush1.bf16.msra.mxu1 %v4270_v52 }
 0x19e   : > { %3221 = vmatpush1.bf16.msra.mxu0 %v4273_v53  ;;  %3120 = vmatprep.subr.bf16.mxu1 %v4278_v54 }
 0x19f   : > { %3222 = vmatprep.subr.bf16.mxu0 %v4281_v55 }
 0x1a1   : > { %3121 = vmatpush1.bf16.msra.mxu1 %v4276_v56 }
 0x1a2   : > { %3223 = vmatpush1.bf16.msra.mxu0 %v4279_v57  ;;  %3122 = vmatprep.subr.bf16.mxu1 %v4284_v58 }
 0x1a3   : > { %3224 = vmatprep.subr.bf16.mxu0 %v4287_v59  ;;  %v4360_v59 = vld [vmem:[%s5185_s5 + $0x6f8] ss:$40 sps:$4 sm:$0xff]  }
 0x1a5   : > { %3123 = vmatpush1.bf16.msra.mxu1 %v4282_v60  ;;  %v4363_v60 = vld [vmem:[%s5185_s5 + $0x700] ss:$40 sps:$4 sm:$0xff]  }
 0x1a6   : > { %3225 = vmatpush1.bf16.msra.mxu0 %v4285_v61  ;;  %3124 = vmatprep.subr.bf16.mxu1 %v4290_v62 }
 0x1a7   : > { %3226 = vmatprep.subr.bf16.mxu0 %v4293_v63 }
 0x1a9   : > { %3125 = vmatpush1.bf16.msra.mxu1 %v4288_v1  ;;  %v4368_v1 = vld [vmem:[%s5185_s5 + $0x74c] ss:$40 sps:$4 sm:$0xff]  }
 0x1aa   : > { %3227 = vmatpush1.bf16.msra.mxu0 %v4291_v2  ;;  %3126 = vmatprep.subr.bf16.mxu1 %v4296_v3  ;;  %v4371_v2 = vld [vmem:[%s5185_s5 + $0x754] ss:$40 sps:$4 sm:$0xff]  }
 0x1ab   : > { %3228 = vmatprep.subr.bf16.mxu0 %v4299_v6  ;;  %v4366_v6 = vld [vmem:[%s5185_s5 + $0x748] ss:$40 sps:$4 sm:$0xff]  }
 0x1ad   : > { %3127 = vmatpush1.bf16.msra.mxu1 %v4294_v7  ;;  %v4369_v7 = vld [vmem:[%s5185_s5 + $0x750] ss:$40 sps:$4 sm:$0xff]  }
 0x1ae   : > { %3229 = vmatpush1.bf16.msra.mxu0 %v4297_v8  ;;  %3128 = vmatprep.subr.bf16.mxu1 %v4302_v9  ;;  %v4374_v8 = vld [vmem:[%s5185_s5 + $0x79c] ss:$40 sps:$4 sm:$0xff]  }
 0x1af   : > { %3230 = vmatprep.subr.bf16.mxu0 %v4305_v10  ;;  %v4377_v9 = vld [vmem:[%s5185_s5 + $0x7a4] ss:$40 sps:$4 sm:$0xff]  }
 0x1b1   : > { %3129 = vmatpush1.bf16.msra.mxu1 %v4300_v11 }
 0x1b2   : > { %3231 = vmatpush1.bf16.msra.mxu0 %v4303_v12  ;;  %3130 = vmatprep.subr.bf16.mxu1 %v4308_v15 }
 0x1b3   : > { %3232 = vmatprep.subr.bf16.mxu0 %v4311_v16 }
 0x1b5   : > { %3131 = vmatpush1.bf16.msra.mxu1 %v4306_v17  ;;  %v4372_v17 = vld [vmem:[%s5185_s5 + $0x798] ss:$40 sps:$4 sm:$0xff]  }
 0x1b6   : > { %3233 = vmatpush1.bf16.msra.mxu0 %v4309_v18  ;;  %3132 = vmatprep.subr.bf16.mxu1 %v4314_v19  ;;  %v4375_v18 = vld [vmem:[%s5185_s5 + $0x7a0] ss:$40 sps:$4 sm:$0xff]  }
 0x1b7   : > { %3234 = vmatprep.subr.bf16.mxu0 %v4317_v20 }
 0x1b9   : > { %3133 = vmatpush1.bf16.msra.mxu1 %v4312_v23 }
 0x1ba   : > { %3235 = vmatpush1.bf16.msra.mxu0 %v4315_v24  ;;  %3134 = vmatprep.subr.bf16.mxu1 %v4320_v25  ;;  %v4380_v24 = vld [vmem:[%s5185_s5 + $0x7ec] ss:$40 sps:$4 sm:$0xff]  }
 0x1bb   : > { %3236 = vmatprep.subr.bf16.mxu0 %v4323_v26  ;;  %v4383_v25 = vld [vmem:[%s5185_s5 + $0x7f4] ss:$40 sps:$4 sm:$0xff]  }
 0x1bd   : > { %3135 = vmatpush1.bf16.msra.mxu1 %v4318_v27 }
 0x1be   : > { %3237 = vmatpush1.bf16.msra.mxu0 %v4321_v28  ;;  %3155 = vmatprep.subr.bf16.mxu1 %v4326_v4  ;;  %v4378_v28 = vld [vmem:[%s5185_s5 + $0x7e8] ss:$40 sps:$4 sm:$0xff]  }
 0x1bf   : > { %3257 = vmatprep.subr.bf16.mxu0 %v4329_v29  ;;  %v4381_v4 = vld [vmem:[%s5185_s5 + $0x7f0] ss:$40 sps:$4 sm:$0xff]   ;;  %v4386_v29 = vld [vmem:[%s5185_s5 + $0x83c] ss:$40 sps:$4 sm:$0xff]  }
 0x1c0   : > { %3137 = vmatmul.mubr.bf16.vlgmr.msra.gmra.mrb[16].mxu1 %v4422_v5 }
 0x1c1   : > { %3239 = vmatmul.mubr.bf16.vlgmr.msra.gmra.mrb[16].mxu0 %v4422_v5  ;;  %3156 = vmatpush1.bf16.msra.mxu1 %v4324_v30  ;;  %v4389_v30 = vld [vmem:[%s5185_s5 + $0x844] ss:$40 sps:$4 sm:$0xff]   ;;  %v4395_v5 = vld [vmem:[%s5185_s5 + $0x894] ss:$40 sps:$4 sm:$0xff]  }
 0x1c2   : > { %3258 = vmatpush1.bf16.msra.mxu0 %v4327_v31  ;;  %3157 = vmatprep.subr.bf16.mxu1 %v4332_v32  ;;  %v4384_v31 = vld [vmem:[%s5185_s5 + $0x838] ss:$40 sps:$4 sm:$0xff]  }
 0x1c3   : > { %3259 = vmatprep.subr.bf16.mxu0 %v4335_v33  ;;  %3146 = vmatprep.mubr.bf16.mxu1 %v5273_v13  ;;  %v4387_v32 = vld [vmem:[%s5185_s5 + $0x840] ss:$40 sps:$4 sm:$0xff]   ;;  %v4392_v33 = vld [vmem:[%s5185_s5 + $0x88c] ss:$40 sps:$4 sm:$0xff]  }
 0x1c4   : > { %3248 = vmatprep.mubr.bf16.mxu0 %v5273_v13  ;;  %v4342_v13 = vld [vmem:[%s5185_s5 + $0x608] ss:$40 sps:$4 sm:$0xff]  }
 0x1c5   : > { %3158 = vmatpush1.bf16.msra.mxu1 %v4330_v0  ;;  %v4390_v0 = vld [vmem:[%s5185_s5 + $0x888] ss:$40 sps:$4 sm:$0xff]  }
 0x1c6   : > { %3260 = vmatpush1.bf16.msra.mxu0 %v4333_v35  ;;  %3159 = vmatprep.subr.bf16.mxu1 %v4338_v36  ;;  %v4393_v35 = vld [vmem:[%s5185_s5 + $0x890] ss:$40 sps:$4 sm:$0xff]   ;;  %v4398_v36 = vld [vmem:[%s5185_s5 + $0x8dc] ss:$40 sps:$4 sm:$0xff]  }
 0x1c7   : > { %3261 = vmatprep.subr.bf16.mxu0 %v4341_v37  ;;  %v4401_v37 = vld [vmem:[%s5185_s5 + $0x8e4] ss:$40 sps:$4 sm:$0xff]  }
 0x1c8   : > { %3147 = vmatmul.mubr.bf16.gmra.mrb[20].mxu1 %v5287_v21 }
 0x1c9   : > { %3249 = vmatmul.mubr.bf16.gmra.mrb[20].mxu0 %v5287_v21  ;;  %3160 = vmatpush1.bf16.msra.mxu1 %v4336_v38  ;;  %v4348_v21 = vld [vmem:[%s5185_s5 + $0x658] ss:$40 sps:$4 sm:$0xff]  }
 0x1ca   : > { %3262 = vmatpush1.bf16.msra.mxu0 %v4339_v39  ;;  %3161 = vmatprep.subr.bf16.mxu1 %v4344_v40  ;;  %v4396_v38 = vld [vmem:[%s5185_s5 + $0x8d8] ss:$40 sps:$4 sm:$0xff]   ;;  %v4404_v40 = vld [vmem:[%s5185_s5 + $0x92c] ss:$40 sps:$4 sm:$0xff]  }
 0x1cb   : > { %3263 = vmatprep.subr.bf16.mxu0 %v4347_v41  ;;  %3187 = vmatprep.mubr.bf16.mxu1 %v5374_v34  ;;  %v4399_v39 = vld [vmem:[%s5185_s5 + $0x8e0] ss:$40 sps:$4 sm:$0xff]   ;;  %v4407_v41 = vld [vmem:[%s5185_s5 + $0x934] ss:$40 sps:$4 sm:$0xff]  }
 0x1cc   : > { %3289 = vmatprep.mubr.bf16.mxu0 %v5374_v34  ;;  %v4362_v34 = vld [vmem:[%s5185_s5 + $0x6fc] ss:$40 sps:$4 sm:$0xff]  }
 0x1cd   : > { %3162 = vmatpush1.bf16.msra.mxu1 %v4342_v13  ;;  %v4402_v13 = vld [vmem:[%s5185_s5 + $0x928] ss:$40 sps:$4 sm:$0xff]  }
 0x1ce   : > { %3264 = vmatpush1.bf16.msra.mxu0 %v4345_v42  ;;  %3163 = vmatprep.subr.bf16.mxu1 %v4350_v43  ;;  %v4405_v42 = vld [vmem:[%s5185_s5 + $0x930] ss:$40 sps:$4 sm:$0xff]   ;;  %v4410_v43 = vld [vmem:[%s5185_s5 + $0x97c] ss:$40 sps:$4 sm:$0xff]  }
 0x1cf   : > { %3265 = vmatprep.subr.bf16.mxu0 %v4353_v44  ;;  %v4413_v44 = vld [vmem:[%s5185_s5 + $0x984] ss:$40 sps:$4 sm:$0xff]  }
 0x1d1   : > { %3164 = vmatpush1.bf16.msra.mxu1 %v4348_v21  ;;  %v4408_v21 = vld [vmem:[%s5185_s5 + $0x978] ss:$40 sps:$4 sm:$0xff]  }
 0x1d2   : > { %3266 = vmatpush1.bf16.msra.mxu0 %v4351_v45  ;;  %3165 = vmatprep.subr.bf16.mxu1 %v4356_v46  ;;  %v4411_v45 = vld [vmem:[%s5185_s5 + $0x980] ss:$40 sps:$4 sm:$0xff]   ;;  %v4416_v46 = vld [vmem:[%s5185_s5 + $0x9cc] ss:$40 sps:$4 sm:$0xff]  }
 0x1d3   : > { %3267 = vmatprep.subr.bf16.mxu0 %v4359_v47  ;;  %v2832_v51 = vpop.f32.mrb[0].mxu1  ;;  %v4419_v47 = vld [vmem:[%s5185_s5 + $0x9d4] ss:$40 sps:$4 sm:$0xff]  }
 0x1d4   : > { %v2883_v52 = vpop.f32.mrb[0].mxu0  ;;  %v2834_v54 = vpop.f32.mrb[1].mxu1 }
 0x1d5   : > { %v2884_v53 = vadd.f32 %v2883_v52, %v2832_v51  ;;  %v2885_v55 = vpop.f32.mrb[1].mxu0  ;;  %v2836_v57 = vpop.f32.mrb[2].mxu1  ;;  %3166 = vmatpush1.bf16.msra.mxu1 %v4354_v48  ;;  %v4414_v48 = vld [vmem:[%s5185_s5 + $0x9c8] ss:$40 sps:$4 sm:$0xff]  }
 0x1d6   : > { %v2886_v56 = vadd.f32 %v2885_v55, %v2834_v54  ;;  %v2887_v58 = vpop.f32.mrb[2].mxu0  ;;  %3268 = vmatpush1.bf16.msra.mxu0 %v4357_v49  ;;  %v2838_v62 = vpop.f32.mrb[3].mxu1  ;;  %3167 = vmatprep.subr.bf16.mxu1 %v4362_v34  ;;  %v4417_v49 = vld [vmem:[%s5185_s5 + $0x9d0] ss:$40 sps:$4 sm:$0xff]   ;;  %s5623_s5 = scalar_lea.vmem (%p4514_p6), %s5696_s2, %s3848_s3 }
 0x1d7   : > { %3308 = vst [vmem:[%s5536_s9] sm:$0xff] %v2884_v53  ;;  %v2888_v61 = vadd.f32 %v2887_v58, %v2836_v57  ;;  %v2889_v63 = vpop.f32.mrb[3].mxu0  ;;  %3269 = vmatprep.subr.bf16.mxu0 %v4365_v50  ;;  %v4423_v34 = vld [vmem:[%s5694_s0 + $0x8] ss:$16 sps:$4 sm:$0xff]  }
 0x1d8   : > { %3309 = vst [vmem:[%s5536_s9 + $0x8] sm:$0xff] %v2886_v56  ;;  %v2890_v3 = vadd.f32 %v2889_v63, %v2838_v62 }
 0x1d9   : > { %3318 = vst [vmem:[%s5536_s9 + $0x50] sm:$0xff] %v2888_v61  ;;  %3168 = vmatpush1.bf16.msra.mxu1 %v4360_v59 }
 0x1da   : > { %3319 = vst [vmem:[%s5536_s9 + $0x58] sm:$0xff] %v2890_v3  ;;  %3270 = vmatpush1.bf16.msra.mxu0 %v4363_v60  ;;  %3169 = vmatprep.subr.bf16.mxu1 %v4368_v1 }
 0x1db   : > { %3271 = vmatprep.subr.bf16.mxu0 %v4371_v2  ;;  %v2842_v10 = vpop.f32.mrb[4].mxu1 }
 0x1dc   : > { %v2893_v11 = vpop.f32.mrb[4].mxu0  ;;  %v2844_v15 = vpop.f32.mrb[5].mxu1 }
 0x1dd   : > { %v2894_v12 = vadd.f32 %v2893_v11, %v2842_v10  ;;  %v2895_v16 = vpop.f32.mrb[5].mxu0  ;;  %3170 = vmatpush1.bf16.msra.mxu1 %v4366_v6  ;;  %v2846_v20 = vpop.f32.mrb[6].mxu1 }
 0x1de   : > { %3272 = vmatpush1.bf16.msra.mxu0 %v4369_v7  ;;  %v2896_v19 = vadd.f32 %v2895_v16, %v2844_v15  ;;  %v2897_v23 = vpop.f32.mrb[6].mxu0  ;;  %3171 = vmatprep.subr.bf16.mxu1 %v4374_v8  ;;  %v2847_v26 = vpop.f32.mrb[7].mxu1 }
 0x1df   : > { %3273 = vmatprep.subr.bf16.mxu0 %v4377_v9  ;;  %3328 = vst [vmem:[%s5536_s9 + $0xa0] sm:$0xff] %v2894_v12  ;;  %v2898_v27 = vpop.f32.mrb[7].mxu0  ;;  %v3363_v23 = vld [vmem:[%s5536_s9] sm:$0xff] (%p4514_p6) }
 0x1e0   : > { %3329 = vst [vmem:[%s5536_s9 + $0xa8] sm:$0xff] %v2896_v19  ;;  %3364 = vst [vmem:[%s5623_s5] sm:$0xff] (%p4514_p6), %v3363_v23 }
 0x1e1   : > { %3172 = vmatpush1.bf16.msra.mxu1 %v4372_v17 }
 0x1e2   : > { %3274 = vmatpush1.bf16.msra.mxu0 %v4375_v18  ;;  %3173 = vmatprep.subr.bf16.mxu1 %v4380_v24  ;;  %v3365_v24 = vld [vmem:[%s5536_s9 + $0x8] sm:$0xff] (%p4514_p6) }
 0x1e3   : > { %3275 = vmatprep.subr.bf16.mxu0 %v4383_v25  ;;  %3366 = vst [vmem:[%s5623_s5 + $0x8] sm:$0xff] (%p4514_p6), %v3365_v24 }
 0x1e5   : > { %3174 = vmatpush1.bf16.msra.mxu1 %v4378_v28 }
 0x1e6   : > { %3276 = vmatpush1.bf16.msra.mxu0 %v4381_v4  ;;  %3175 = vmatprep.subr.bf16.mxu1 %v4386_v29 }
 0x1e7   : > { %3277 = vmatprep.subr.bf16.mxu0 %v4389_v30 }
 0x1e9   : > { %3176 = vmatpush1.bf16.msra.mxu1 %v4384_v31 }
 0x1ea   : > { %3278 = vmatpush1.bf16.msra.mxu0 %v4387_v32  ;;  %3177 = vmatprep.subr.bf16.mxu1 %v4392_v33  ;;  %v3383_v32 = vld [vmem:[%s5536_s9 + $0x50] sm:$0xff] (%p4514_p6)  ;;  %v3385_v33 = vld [vmem:[%s5536_s9 + $0x58] sm:$0xff] (%p4514_p6) }
 0x1eb   : > { %3279 = vmatprep.subr.bf16.mxu0 %v4395_v5  ;;  %3384 = vst [vmem:[%s5623_s5 + $0x190] sm:$0xff] (%p4514_p6), %v3383_v32  ;;  %3386 = vst [vmem:[%s5623_s5 + $0x198] sm:$0xff] (%p4514_p6), %v3385_v33 }
 0x1ed   : > { %3178 = vmatpush1.bf16.msra.mxu1 %v4390_v0 }
 0x1ee   : > { %3280 = vmatpush1.bf16.msra.mxu0 %v4393_v35  ;;  %3179 = vmatprep.subr.bf16.mxu1 %v4398_v36 }
 0x1ef   : > { %3281 = vmatprep.subr.bf16.mxu0 %v4401_v37 }
 0x1f1   : > { %3180 = vmatpush1.bf16.msra.mxu1 %v4396_v38 }
 0x1f2   : > { %3282 = vmatpush1.bf16.msra.mxu0 %v4399_v39  ;;  %3181 = vmatprep.subr.bf16.mxu1 %v4404_v40 }
 0x1f3   : > { %3283 = vmatprep.subr.bf16.mxu0 %v4407_v41  ;;  %v3403_v41 = vld [vmem:[%s5536_s9 + $0xa0] sm:$0xff] (%p4514_p6) }
 0x1f4   : > { %3404 = vst [vmem:[%s5623_s5 + $0x320] sm:$0xff] (%p4514_p6), %v3403_v41 }
 0x1f5   : > { %3182 = vmatpush1.bf16.msra.mxu1 %v4402_v13  ;;  %v3405_v13 = vld [vmem:[%s5536_s9 + $0xa8] sm:$0xff] (%p4514_p6) }
 0x1f6   : > { %3284 = vmatpush1.bf16.msra.mxu0 %v4405_v42  ;;  %3183 = vmatprep.subr.bf16.mxu1 %v4410_v43  ;;  %3406 = vst [vmem:[%s5623_s5 + $0x328] sm:$0xff] (%p4514_p6), %v3405_v13 }
 0x1f7   : > { %3285 = vmatprep.subr.bf16.mxu0 %v4413_v44 }
 0x1f9   : > { %3184 = vmatpush1.bf16.msra.mxu1 %v4408_v21 }
 0x1fa   : > { %3286 = vmatpush1.bf16.msra.mxu0 %v4411_v45  ;;  %3185 = vmatprep.subr.bf16.mxu1 %v4416_v46 }
 0x1fb   : > { %3287 = vmatprep.subr.bf16.mxu0 %v4419_v47 }
 0x1fd   : > { %3186 = vmatpush1.bf16.msra.mxu1 %v4414_v48 }
 0x1fe   : > { %3288 = vmatpush1.bf16.msra.mxu0 %v4417_v49 }
 0x200   : > { %3188 = vmatmul.mubr.bf16.vlgmr.msra.gmra.mrb[16].mxu1 %v4423_v34 }
 0x201   : > { %3290 = vmatmul.mubr.bf16.vlgmr.msra.gmra.mrb[16].mxu0 %v4423_v34  ;;  %3197 = vmatprep.mubr.bf16.mxu1 %v5275_v14 }
 0x202   : > { %3299 = vmatprep.mubr.bf16.mxu0 %v5275_v14 }
 0x208   : > { %3198 = vmatmul.mubr.bf16.gmra.mrb[20].mxu1 %v5289_v22 }
 0x209   : > { %3300 = vmatmul.mubr.bf16.gmra.mrb[20].mxu0 %v5289_v22 }
 0x253   : > { %v2985_v50 = vpop.f32.mrb[8].mxu1 }
 0x254   : > { %v3087_v51 = vpop.f32.mrb[8].mxu0  ;;  %3310 = vst [vmem:[%s5536_s9 + $0x10] sm:$0xff] %v2985_v50  ;;  %v2987_v52 = vpop.f32.mrb[9].mxu1 }
 0x255   : > { %3312 = vst [vmem:[%s5536_s9 + $0x20] sm:$0xff] %v3087_v51  ;;  %v3089_v53 = vpop.f32.mrb[9].mxu0  ;;  %3311 = vst [vmem:[%s5536_s9 + $0x18] sm:$0xff] %v2987_v52  ;;  %v2989_v54 = vpop.f32.mrb[10].mxu1 }
 0x256   : > { %3313 = vst [vmem:[%s5536_s9 + $0x28] sm:$0xff] %v3089_v53  ;;  %v3091_v14 = vpop.f32.mrb[10].mxu0  ;;  %3320 = vst [vmem:[%s5536_s9 + $0x60] sm:$0xff] %v2989_v54  ;;  %v2991_v55 = vpop.f32.mrb[11].mxu1 }
 0x257   : > { %3322 = vst [vmem:[%s5536_s9 + $0x70] sm:$0xff] %v3091_v14  ;;  %v3093_v56 = vpop.f32.mrb[11].mxu0  ;;  %3321 = vst [vmem:[%s5536_s9 + $0x68] sm:$0xff] %v2991_v55 }
 0x258   : > { %3323 = vst [vmem:[%s5536_s9 + $0x78] sm:$0xff] %v3093_v56 }
 0x25b   : > { %v2995_v22 = vpop.f32.mrb[12].mxu1  ;;  %v3367_v25 = vld [vmem:[%s5536_s9 + $0x10] sm:$0xff] (%p4514_p6) }
 0x25c   : > { %v3097_v57 = vpop.f32.mrb[12].mxu0  ;;  %3330 = vst [vmem:[%s5536_s9 + $0xb0] sm:$0xff] %v2995_v22  ;;  %v2997_v58 = vpop.f32.mrb[13].mxu1  ;;  %v3369_v26 = vld [vmem:[%s5536_s9 + $0x18] sm:$0xff] (%p4514_p6)  ;;  %v3371_v27 = vld [vmem:[%s5536_s9 + $0x20] sm:$0xff] (%p4514_p6)  ;;  %3368 = vst [vmem:[%s5623_s5 + $0x10] sm:$0xff] (%p4514_p6), %v3367_v25 }
 0x25d   : > { %3332 = vst [vmem:[%s5536_s9 + $0xc0] sm:$0xff] %v3097_v57  ;;  %v3099_v59 = vpop.f32.mrb[13].mxu0  ;;  %3331 = vst [vmem:[%s5536_s9 + $0xb8] sm:$0xff] %v2997_v58  ;;  %v2999_v60 = vpop.f32.mrb[14].mxu1  ;;  %v3373_v28 = vld [vmem:[%s5536_s9 + $0x28] sm:$0xff] (%p4514_p6)  ;;  %v3387_v5 = vld [vmem:[%s5536_s9 + $0x60] sm:$0xff] (%p4514_p6) }
 0x25e   : > { %3333 = vst [vmem:[%s5536_s9 + $0xc8] sm:$0xff] %v3099_v59  ;;  %v3101_v61 = vpop.f32.mrb[14].mxu0  ;;  %v3000_v62 = vpop.f32.mrb[15].mxu1  ;;  %3370 = vst [vmem:[%s5623_s5 + $0x18] sm:$0xff] (%p4514_p6), %v3369_v26  ;;  %v3389_v0 = vld [vmem:[%s5536_s9 + $0x68] sm:$0xff] (%p4514_p6)  ;;  %v3391_v35 = vld [vmem:[%s5536_s9 + $0x70] sm:$0xff] (%p4514_p6) }
 0x25f   : > { %v3102_v63 = vpop.f32.mrb[15].mxu0  ;;  %3372 = vst [vmem:[%s5623_s5 + $0x20] sm:$0xff] (%p4514_p6), %v3371_v27  ;;  %3374 = vst [vmem:[%s5623_s5 + $0x28] sm:$0xff] (%p4514_p6), %v3373_v28  ;;  %v3393_v36 = vld [vmem:[%s5536_s9 + $0x78] sm:$0xff] (%p4514_p6) }
 0x260   : > { %3388 = vst [vmem:[%s5623_s5 + $0x1a0] sm:$0xff] (%p4514_p6), %v3387_v5  ;;  %3390 = vst [vmem:[%s5623_s5 + $0x1a8] sm:$0xff] (%p4514_p6), %v3389_v0 }
 0x261   : > { %3392 = vst [vmem:[%s5623_s5 + $0x1b0] sm:$0xff] (%p4514_p6), %v3391_v35  ;;  %3394 = vst [vmem:[%s5623_s5 + $0x1b8] sm:$0xff] (%p4514_p6), %v3393_v36 }
 0x263   : > { %v3407_v42 = vld [vmem:[%s5536_s9 + $0xb0] sm:$0xff] (%p4514_p6) }
 0x264   : > { %v3409_v43 = vld [vmem:[%s5536_s9 + $0xb8] sm:$0xff] (%p4514_p6)  ;;  %3408 = vst [vmem:[%s5623_s5 + $0x330] sm:$0xff] (%p4514_p6), %v3407_v42  ;;  %v3411_v44 = vld [vmem:[%s5536_s9 + $0xc0] sm:$0xff] (%p4514_p6) }
 0x265   : > { %3410 = vst [vmem:[%s5623_s5 + $0x338] sm:$0xff] (%p4514_p6), %v3409_v43  ;;  %v3413_v21 = vld [vmem:[%s5536_s9 + $0xc8] sm:$0xff] (%p4514_p6)  ;;  %3412 = vst [vmem:[%s5623_s5 + $0x340] sm:$0xff] (%p4514_p6), %v3411_v44 }
 0x266   : > { %3414 = vst [vmem:[%s5623_s5 + $0x348] sm:$0xff] (%p4514_p6), %v3413_v21 }
 0x2d3   : > { %v3189_v1 = vpop.f32.mrb[16].mxu1 }
 0x2d4   : > { %v3291_v2 = vpop.f32.mrb[16].mxu0  ;;  %3314 = vst [vmem:[%s5536_s9 + $0x30] sm:$0xff] %v3189_v1  ;;  %v3191_v3 = vpop.f32.mrb[17].mxu1 }
 0x2d5   : > { %3316 = vst [vmem:[%s5536_s9 + $0x40] sm:$0xff] %v3291_v2  ;;  %v3293_v6 = vpop.f32.mrb[17].mxu0  ;;  %3315 = vst [vmem:[%s5536_s9 + $0x38] sm:$0xff] %v3191_v3  ;;  %v3193_v7 = vpop.f32.mrb[18].mxu1 }
 0x2d6   : > { %3317 = vst [vmem:[%s5536_s9 + $0x48] sm:$0xff] %v3293_v6  ;;  %v3295_v8 = vpop.f32.mrb[18].mxu0  ;;  %3324 = vst [vmem:[%s5536_s9 + $0x80] sm:$0xff] %v3193_v7  ;;  %v3195_v9 = vpop.f32.mrb[19].mxu1 }
 0x2d7   : > { %3326 = vst [vmem:[%s5536_s9 + $0x90] sm:$0xff] %v3295_v8  ;;  %v3297_v10 = vpop.f32.mrb[19].mxu0  ;;  %3325 = vst [vmem:[%s5536_s9 + $0x88] sm:$0xff] %v3195_v9 }
 0x2d8   : > { %3327 = vst [vmem:[%s5536_s9 + $0x98] sm:$0xff] %v3297_v10 }
 0x2d9   : > { %3344 = sbr.rel (!%p4514_p6) target bundleno = 743 (0x2e7), region = 55 }
 0x2db   : > { %v3199_v11 = vpop.f32.mrb[20].mxu1  ;;  %v3375_v4 = vld [vmem:[%s5536_s9 + $0x30] sm:$0xff] (%p4514_p6) }
 0x2dc   : > { %v3301_v12 = vpop.f32.mrb[20].mxu0  ;;  %3334 = vst [vmem:[%s5536_s9 + $0xd0] sm:$0xff] %v3199_v11  ;;  %v3201_v15 = vpop.f32.mrb[21].mxu1  ;;  %v3377_v29 = vld [vmem:[%s5536_s9 + $0x38] sm:$0xff] (%p4514_p6)  ;;  %v3379_v30 = vld [vmem:[%s5536_s9 + $0x40] sm:$0xff] (%p4514_p6)  ;;  %3376 = vst [vmem:[%s5623_s5 + $0x30] sm:$0xff] (%p4514_p6), %v3375_v4 }
 0x2dd   : > { %3336 = vst [vmem:[%s5536_s9 + $0xe0] sm:$0xff] %v3301_v12  ;;  %v3303_v16 = vpop.f32.mrb[21].mxu0  ;;  %3335 = vst [vmem:[%s5536_s9 + $0xd8] sm:$0xff] %v3201_v15  ;;  %v3203_v17 = vpop.f32.mrb[22].mxu1  ;;  %v3381_v31 = vld [vmem:[%s5536_s9 + $0x48] sm:$0xff] (%p4514_p6)  ;;  %v3395_v37 = vld [vmem:[%s5536_s9 + $0x80] sm:$0xff] (%p4514_p6) }
 0x2de   : > { %3337 = vst [vmem:[%s5536_s9 + $0xe8] sm:$0xff] %v3303_v16  ;;  %v3305_v18 = vpop.f32.mrb[22].mxu0  ;;  %v3204_v19 = vpop.f32.mrb[23].mxu1  ;;  %3378 = vst [vmem:[%s5623_s5 + $0x38] sm:$0xff] (%p4514_p6), %v3377_v29  ;;  %v3397_v38 = vld [vmem:[%s5536_s9 + $0x88] sm:$0xff] (%p4514_p6)  ;;  %v3399_v39 = vld [vmem:[%s5536_s9 + $0x90] sm:$0xff] (%p4514_p6) }
 0x2df   : > { %v3306_v20 = vpop.f32.mrb[23].mxu0  ;;  %3380 = vst [vmem:[%s5623_s5 + $0x40] sm:$0xff] (%p4514_p6), %v3379_v30  ;;  %3382 = vst [vmem:[%s5623_s5 + $0x48] sm:$0xff] (%p4514_p6), %v3381_v31  ;;  %v3401_v40 = vld [vmem:[%s5536_s9 + $0x98] sm:$0xff] (%p4514_p6) }
 0x2e0   : > { %3396 = vst [vmem:[%s5623_s5 + $0x1c0] sm:$0xff] %v3395_v37  ;;  %3398 = vst [vmem:[%s5623_s5 + $0x1c8] sm:$0xff] %v3397_v38 }
 0x2e1   : > { %3400 = vst [vmem:[%s5623_s5 + $0x1d0] sm:$0xff] %v3399_v39  ;;  %3402 = vst [vmem:[%s5623_s5 + $0x1d8] sm:$0xff] %v3401_v40 }
 0x2e3   : > { %v3415_v45 = vld [vmem:[%s5536_s9 + $0xd0] sm:$0xff] }
 0x2e4   : > { %3416 = vst [vmem:[%s5623_s5 + $0x350] sm:$0xff] %v3415_v45  ;;  %v3417_v46 = vld [vmem:[%s5536_s9 + $0xd8] sm:$0xff]  ;;  %v3419_v47 = vld [vmem:[%s5536_s9 + $0xe0] sm:$0xff] }
 0x2e5   : > { %v3421_v48 = vld [vmem:[%s5536_s9 + $0xe8] sm:$0xff]  ;;  %3418 = vst [vmem:[%s5623_s5 + $0x358] sm:$0xff] %v3417_v46  ;;  %3420 = vst [vmem:[%s5623_s5 + $0x360] sm:$0xff] %v3419_v47 }
 0x2e6   : > { %3422 = vst [vmem:[%s5623_s5 + $0x368] sm:$0xff] %v3421_v48 }
 0x2e7 PF: > { %s12_s13 = sadd.s32 1, %s4462_s13   ;;  %s5698_s9 = smov %s4450_s10 }
 0x2e8   : > { %p9_p11 = scmp.ge.s32.totalorder %s12_s13, 7   ;;  %s5699_s10 = smov %s4519_s19 }
 0x2e9   : > { %s5700_s11 = smov %s4458_s12  ;;  %s5701_s12 = smov %s5703_s14 }
 0x2ea   :  { %11 = sbr.rel (!%p9_p11) target bundleno = 3 (0x3), region = 112 }

// kernel: generator_forward.7
= control target key start
LH: loop header
LB: loop body
LE: loop exit
PB: predicated region body
PF: predicated region fallthrough
CT: control target
= control target key end

     0   :  { %7 = vsyncpa [#allocation3], 0  ;;  %s9128_s0 = inlined_call_operand.vmem [shape: bf16[8,1024], index: 0, kind: input, shape index: {}]   ;;  %s9129_s1 = inlined_call_operand.hbm [shape: bf16[1024,4608], index: 1, kind: input, shape index: {}]   ;;  %s9130_s2 = inlined_call_operand.vmem [shape: f32[8,4608], index: 2, kind: output, shape index: {}]  }
   0x1   :  { %9 = vsyncpa [#allocation3 + $0x1], 0  ;;  %s8131_s9 = smov 0   ;;  %s8133_s10 = smov 0  }
   0x2   :  { %s8135_s11 = smov 0   ;;  %s8137_s12 = smov 0  }
   0x3   :  { %s8139_s13 = smov 0   ;;  %s8141_s14 = smov 0  }
   0x4 LB: > { %s5951_s15 = sadd.s32 4294967295, %s8110_s14   ;;  %s24_s16 = sadd.s32 1, %s8106_s13  ;;  %s8110_s14 = sphi %s8141_s14, %s15_s14   ;;  %s8106_s13 = sphi %s8139_s13, %s9138_s13   ;;  %s8102_s12 = sphi %s8137_s12, %s9137_s12   ;;  %s8098_s11 = sphi %s8135_s11, %s9136_s11   ;;  %s8094_s10 = sphi %s8133_s10, %s9135_s10   ;;  %s8090_s9 = sphi %s8131_s9, %s9134_s9  }
   0x5   : > { %p25_p0 = scmp.ge.s32.totalorder %s24_s16, 3  ;;  %s60_s17 = sadd.s32 1, %s8098_s11 }
   0x6   : > { %p67_p1 = scmp.ne.s32.totalorder %s8098_s11, %s8094_s10  ;;  %p68_p2 = scmp.eq.s32.totalorder %s8110_s14, 0 }
   0x7   : > { %s9140_s16 = smov (%p25_p0, %s24_s16), 0  ;;  %p73_p4 = scmp.ne.s32.totalorder %s8094_s10, %s8090_s9 }
   0x8   : > { %p69_p3 = por %p68_p2, %p67_p1  ;;  %s57_s18 = ssub.s32 %s8106_s13, %s9140_s16 }
   0x9   : > { %p74_p5 = scmp.eq.s32.totalorder %s5951_s15, 0  ;;  %p58_p6 = scmp.eq.s32.totalorder %s57_s18, 0 }
   0xa   : > { %p6818_p8 = scmp.lt.s32.totalorder %s8110_s14, 3  ;;  %s133_s21 = sand.u32 1, %s8098_s11  }
   0xb   : > { %p8170_p7 = por %p74_p5, %p73_p4  ;;  %s6737_s22 = smul.u32 768, %s8106_s13 }
   0xc   : > { %s8176_s20 = scalar_select %p58_p6, %s8098_s11, %s60_s17  }
   0xd   : > { %s6810_s23 = smul.u32 6144, %s133_s21  ;;  %s8183_s26 = scalar_lea.hbm %s9129_s1, %s6737_s22 }
   0xe   : > { %p8185_p9 = pnand %p6818_p8, %p69_p3  ;;  %s8192_s30 = scalar_lea.sflag [#allocation3], %s133_s21 }
   0xf   : > { %s137_s28 = scalar_lea.vmem [#allocation2], %s6810_s23  ;;  %s8030_s3 = scalar_lea.hbm %s8183_s26, 98304 }
  0x10   : > { %s144_s29 = sshll.u32 %s137_s28, 4  ;;  %p8031_p11 = scmp.ne.s32.totalorder %s8183_s26, %s8030_s3  ;;  %s8189_s29 = int_to_ptr.vmem [resolvable:$true] %s144_s29 }
  0x11   : > { %p8032_p12 = pneg %p8185_p9  ;;  %s8035_s6 = scalar_lea.hbm %s9129_s1, 294912 }
  0x12   : > { %p8036_p1 = scmp.lt.u32.totalorder %s8183_s26, %s9129_s1  ;;  %p8037_p2 = scmp.lt.u32.totalorder %s8035_s6, %s8030_s3 }
  0x13   : > { %p8033_p13 = pnand %p8032_p12, %p8031_p11  ;;  %p8039_p4 = scmp.lt.u32.totalorder %s8030_s3, %s8183_s26 }
  0x14   : > { %p8038_p3 = por %p8037_p2, %p8036_p1 }
  0x15   : > { %p8034_p0 = pneg %p8033_p13 }
  0x16   : > { %p8040_p5 = por %p8039_p4, %p8038_p3 }
  0x18   : > { %p8041_p6 = pnand %p8040_p5, %p8034_p0 }
  0x1a   : > { %8044 = shalt.err (!%p8041_p6)
}
  0x1b   : > { %s8045_s9 = scalar_lea.vmem %s8189_s29, 98304  ;;  %s8112_s15 = smov [#allocation2]  }
  0x1c   : > { %p8046_p8 = scmp.ne.s32.totalorder %s8189_s29, %s8045_s9  ;;  %s8050_s17 = sshll.u32 %s8112_s15, 4  ;;  %s8051_s17 = int_to_ptr.vmem [resolvable:$false] %s8050_s17 }
  0x1d   : > { %s8052_s18 = scalar_lea.vmem %s8051_s17, 196608  ;;  %p8053_p10 = scmp.lt.s32.totalorder %s8189_s29, %s8051_s17 }
  0x1e   : > { %p8048_p11 = pnand %p8046_p8, %p8032_p12  ;;  %p8054_p1 = scmp.lt.s32.totalorder %s8052_s18, %s8045_s9 }
  0x20   : > { %p8049_p13 = pneg %p8048_p11  ;;  %p8055_p2 = por %p8054_p1, %p8053_p10 }
  0x22   : > { %p8056_p3 = pnand %p8055_p2, %p8049_p13 }
  0x24   : > { %8059 = shalt.err (!%p8056_p3)
}
  0x25   : > { %s8113_s21 = smov 2304   ;;  %s8114_s22 = smov 768  }
  0x26   : > { %s8115_s23 = smov 48   ;;  %p152_p12 = scmp.lt.s32.totalorder %s8110_s14, 4 }
  0x27   : > { %6817 = dma.hbm_to_vmem [thread:$0]  (!%p8185_p9), %s8183_s26, 98304, %s8189_s29, %s8192_s30, %s8113_s21, %s8114_s22, %s8115_s23  }
  0x28   : > { %p9133_p0 = scmp.ge.s32.totalorder %s8110_s14, 1 }
  0x2a   : > { %p153_p4 = pnand %p9133_p0, %p152_p12 }
  0x2b   : > { %s158_s24 = sand.u32 (!%p153_p4), 1, %s8094_s10  }
  0x2c   : > { %156 = sbr.rel (%p153_p4) target bundleno = 1036 (0x40c), region = 28  ;;  %s159_s28 = scalar_lea.sflag (!%p153_p4), [#allocation3], %s158_s24 }
  0x2d   : > { %s6811_s25 = smul.u32 (!%p153_p4), 6144, %s158_s24 }
  0x2f   : > { %s8224_s3 = scalar_lea.vmem (!%p153_p4), [#allocation2], %s6811_s25 }
  0x33   : > { %8085 = dma.done.wait (%p8170_p7), %s159_s28, 98304  }
  0x34   : > { %8087 = vsyncadd (%p8170_p7), %s159_s28, 4294868992  ;;  %v6870_v0 = vld [vmem:[%s8224_s3 + $0x4] ss:$48 sps:$4 sm:$0xff]   ;;  %v6872_v1 = vld [vmem:[%s8224_s3 + $0xc] ss:$48 sps:$4 sm:$0xff]   ;;  %s198_s7 = smul.u32 12, %s8102_s12 }
  0x35   : > { %4848 = vmatprep.subr.bf16.mxu0 %v6870_v0  ;;  %v6874_v2 = vld [vmem:[%s8224_s3] ss:$48 sps:$4 sm:$0xff]   ;;  %v6875_v3 = vld [vmem:[%s8224_s3 + $0x8] ss:$48 sps:$4 sm:$0xff]   ;;  %5012 = vmatprep.subr.bf16.mxu1 %v6872_v1  ;;  %v6876_v4 = vld [vmem:[%s8224_s3 + $0x64] ss:$48 sps:$4 sm:$0xff]  }
  0x36   : > { %4849 = vmatpush1.bf16.msra.mxu0 %v6874_v2  ;;  %5013 = vmatpush1.bf16.msra.mxu1 %v6875_v3  ;;  %v6878_v5 = vld [vmem:[%s8224_s3 + $0x6c] ss:$48 sps:$4 sm:$0xff]   ;;  %v6880_v6 = vld [vmem:[%s8224_s3 + $0x60] ss:$48 sps:$4 sm:$0xff]   ;;  %v6881_v7 = vld [vmem:[%s8224_s3 + $0x68] ss:$48 sps:$4 sm:$0xff]  }
  0x37   : > { %4850 = vmatprep.subr.bf16.mxu0 %v6876_v4  ;;  %5014 = vmatprep.subr.bf16.mxu1 %v6878_v5  ;;  %v6882_v8 = vld [vmem:[%s8224_s3 + $0xc4] ss:$48 sps:$4 sm:$0xff]   ;;  %v6884_v9 = vld [vmem:[%s8224_s3 + $0xcc] ss:$48 sps:$4 sm:$0xff]   ;;  %v6886_v10 = vld [vmem:[%s8224_s3 + $0xc0] ss:$48 sps:$4 sm:$0xff]  }
  0x38   : > { %v6887_v11 = vld [vmem:[%s8224_s3 + $0xc8] ss:$48 sps:$4 sm:$0xff]   ;;  %v6888_v12 = vld [vmem:[%s8224_s3 + $0x124] ss:$48 sps:$4 sm:$0xff]   ;;  %v6890_v13 = vld [vmem:[%s8224_s3 + $0x12c] ss:$48 sps:$4 sm:$0xff]  }
  0x39   : > { %v6892_v14 = vld [vmem:[%s8224_s3 + $0x120] ss:$48 sps:$4 sm:$0xff]   ;;  %v6893_v15 = vld [vmem:[%s8224_s3 + $0x128] ss:$48 sps:$4 sm:$0xff]   ;;  %v6894_v16 = vld [vmem:[%s8224_s3 + $0x184] ss:$48 sps:$4 sm:$0xff]  }
  0x3a   : > { %4851 = vmatpush1.bf16.msra.mxu0 %v6880_v6  ;;  %5015 = vmatpush1.bf16.msra.mxu1 %v6881_v7  ;;  %v6896_v17 = vld [vmem:[%s8224_s3 + $0x18c] ss:$48 sps:$4 sm:$0xff]   ;;  %v6898_v18 = vld [vmem:[%s8224_s3 + $0x180] ss:$48 sps:$4 sm:$0xff]   ;;  %v6899_v19 = vld [vmem:[%s8224_s3 + $0x188] ss:$48 sps:$4 sm:$0xff]  }
  0x3b   : > { %4852 = vmatprep.subr.bf16.mxu0 %v6882_v8  ;;  %5016 = vmatprep.subr.bf16.mxu1 %v6884_v9  ;;  %v6900_v20 = vld [vmem:[%s8224_s3 + $0x1e4] ss:$48 sps:$4 sm:$0xff]   ;;  %v6902_v21 = vld [vmem:[%s8224_s3 + $0x1ec] ss:$48 sps:$4 sm:$0xff]   ;;  %v6904_v22 = vld [vmem:[%s8224_s3 + $0x1e0] ss:$48 sps:$4 sm:$0xff]  }
  0x3c   : > { %v6905_v23 = vld [vmem:[%s8224_s3 + $0x1e8] ss:$48 sps:$4 sm:$0xff]   ;;  %v6906_v24 = vld [vmem:[%s8224_s3 + $0x244] ss:$48 sps:$4 sm:$0xff]   ;;  %v6908_v25 = vld [vmem:[%s8224_s3 + $0x24c] ss:$48 sps:$4 sm:$0xff]  }
  0x3d   : > { %v6910_v26 = vld [vmem:[%s8224_s3 + $0x240] ss:$48 sps:$4 sm:$0xff]   ;;  %v6911_v27 = vld [vmem:[%s8224_s3 + $0x248] ss:$48 sps:$4 sm:$0xff]   ;;  %v6912_v28 = vld [vmem:[%s8224_s3 + $0x2a4] ss:$48 sps:$4 sm:$0xff]  }
  0x3e   : > { %4853 = vmatpush1.bf16.msra.mxu0 %v6886_v10  ;;  %5017 = vmatpush1.bf16.msra.mxu1 %v6887_v11  ;;  %v6914_v29 = vld [vmem:[%s8224_s3 + $0x2ac] ss:$48 sps:$4 sm:$0xff]   ;;  %v6916_v30 = vld [vmem:[%s8224_s3 + $0x2a0] ss:$48 sps:$4 sm:$0xff]   ;;  %v6917_v31 = vld [vmem:[%s8224_s3 + $0x2a8] ss:$48 sps:$4 sm:$0xff]  }
  0x3f   : > { %4854 = vmatprep.subr.bf16.mxu0 %v6888_v12  ;;  %5018 = vmatprep.subr.bf16.mxu1 %v6890_v13  ;;  %v6918_v32 = vld [vmem:[%s8224_s3 + $0x304] ss:$48 sps:$4 sm:$0xff]   ;;  %v6920_v33 = vld [vmem:[%s8224_s3 + $0x30c] ss:$48 sps:$4 sm:$0xff]   ;;  %v6922_v34 = vld [vmem:[%s8224_s3 + $0x300] ss:$48 sps:$4 sm:$0xff]  }
  0x40   : > { %v6923_v35 = vld [vmem:[%s8224_s3 + $0x308] ss:$48 sps:$4 sm:$0xff]   ;;  %v6924_v36 = vld [vmem:[%s8224_s3 + $0x364] ss:$48 sps:$4 sm:$0xff]   ;;  %v6926_v37 = vld [vmem:[%s8224_s3 + $0x36c] ss:$48 sps:$4 sm:$0xff]  }
  0x41   : > { %v6928_v38 = vld [vmem:[%s8224_s3 + $0x360] ss:$48 sps:$4 sm:$0xff]   ;;  %v6929_v39 = vld [vmem:[%s8224_s3 + $0x368] ss:$48 sps:$4 sm:$0xff]   ;;  %v6930_v40 = vld [vmem:[%s8224_s3 + $0x3c4] ss:$48 sps:$4 sm:$0xff]  }
  0x42   : > { %4855 = vmatpush1.bf16.msra.mxu0 %v6892_v14  ;;  %5019 = vmatpush1.bf16.msra.mxu1 %v6893_v15  ;;  %v6932_v41 = vld [vmem:[%s8224_s3 + $0x3cc] ss:$48 sps:$4 sm:$0xff]   ;;  %v6934_v42 = vld [vmem:[%s8224_s3 + $0x3c0] ss:$48 sps:$4 sm:$0xff]   ;;  %v6935_v43 = vld [vmem:[%s8224_s3 + $0x3c8] ss:$48 sps:$4 sm:$0xff]  }
  0x43   : > { %4856 = vmatprep.subr.bf16.mxu0 %v6894_v16  ;;  %5020 = vmatprep.subr.bf16.mxu1 %v6896_v17  ;;  %v6936_v44 = vld [vmem:[%s8224_s3 + $0x424] ss:$48 sps:$4 sm:$0xff]   ;;  %v6938_v45 = vld [vmem:[%s8224_s3 + $0x42c] ss:$48 sps:$4 sm:$0xff]   ;;  %v6940_v47 = vld [vmem:[%s8224_s3 + $0x420] ss:$48 sps:$4 sm:$0xff]  }
  0x44   : > { %v208_v46 = vld [vmem:[%s9128_s0] sm:$0xff]  ;;  %v6941_v49 = vld [vmem:[%s8224_s3 + $0x428] ss:$48 sps:$4 sm:$0xff]   ;;  %v6944_v51 = vld [vmem:[%s8224_s3 + $0x48c] ss:$48 sps:$4 sm:$0xff]   ;;  %p201_p7 = scmp.lt.s32.totalorder %s198_s7, 35 }
  0x45   : > { %v8280_v48 = vcombine.high %v208_v46, %v208_v46  ;;  %v6942_v50 = vld [vmem:[%s8224_s3 + $0x484] ss:$48 sps:$4 sm:$0xff]   ;;  %v6946_v52 = vld [vmem:[%s8224_s3 + $0x480] ss:$48 sps:$4 sm:$0xff]   ;;  %v6947_v53 = vld [vmem:[%s8224_s3 + $0x488] ss:$48 sps:$4 sm:$0xff]   ;;  %v8304_v5 = vcombine.low %v208_v46, %v208_v46 }
  0x46   : > { %4857 = vmatpush1.bf16.msra.mxu0 %v6898_v18  ;;  %5021 = vmatpush1.bf16.msra.mxu1 %v6899_v19  ;;  %v6948_v54 = vld [vmem:[%s8224_s3 + $0x4e4] ss:$48 sps:$4 sm:$0xff]   ;;  %v6950_v55 = vld [vmem:[%s8224_s3 + $0x4ec] ss:$48 sps:$4 sm:$0xff]   ;;  %v6952_v56 = vld [vmem:[%s8224_s3 + $0x4e0] ss:$48 sps:$4 sm:$0xff]  }
  0x47   : > { %4858 = vmatprep.subr.bf16.mxu0 %v6900_v20  ;;  %5022 = vmatprep.subr.bf16.mxu1 %v6902_v21  ;;  %v6953_v57 = vld [vmem:[%s8224_s3 + $0x4e8] ss:$48 sps:$4 sm:$0xff]   ;;  %v6954_v58 = vld [vmem:[%s8224_s3 + $0x544] ss:$48 sps:$4 sm:$0xff]   ;;  %v6956_v59 = vld [vmem:[%s8224_s3 + $0x54c] ss:$48 sps:$4 sm:$0xff]  }
  0x48   : > { %4880 = vmatprep.mubr.bf16.mxu0 %v8280_v48  ;;  %5044 = vmatprep.mubr.bf16.mxu1 %v8280_v48  ;;  %v6958_v60 = vld [vmem:[%s8224_s3 + $0x540] ss:$48 sps:$4 sm:$0xff]   ;;  %v6959_v61 = vld [vmem:[%s8224_s3 + $0x548] ss:$48 sps:$4 sm:$0xff]   ;;  %v6960_v62 = vld [vmem:[%s8224_s3 + $0x5a4] ss:$48 sps:$4 sm:$0xff]  }
  0x49   : > { %v6962_v63 = vld [vmem:[%s8224_s3 + $0x5ac] ss:$48 sps:$4 sm:$0xff]   ;;  %v6964_v0 = vld [vmem:[%s8224_s3 + $0x5a0] ss:$48 sps:$4 sm:$0xff]   ;;  %v6965_v1 = vld [vmem:[%s8224_s3 + $0x5a8] ss:$48 sps:$4 sm:$0xff]  }
  0x4a   : > { %4859 = vmatpush1.bf16.msra.mxu0 %v6904_v22  ;;  %5023 = vmatpush1.bf16.msra.mxu1 %v6905_v23  ;;  %v6969_v2 = vld [vmem:[%s8224_s3 + $0x604] ss:$48 sps:$4 sm:$0xff]   ;;  %v6972_v3 = vld [vmem:[%s8224_s3 + $0x60c] ss:$48 sps:$4 sm:$0xff]   ;;  %v6967_v4 = vld [vmem:[%s8224_s3 + $0x600] ss:$48 sps:$4 sm:$0xff]  }
  0x4b   : > { %4860 = vmatprep.subr.bf16.mxu0 %v6906_v24  ;;  %5024 = vmatprep.subr.bf16.mxu1 %v6908_v25  ;;  %v6970_v6 = vld [vmem:[%s8224_s3 + $0x608] ss:$48 sps:$4 sm:$0xff]   ;;  %v6976_v7 = vld [vmem:[%s8224_s3 + $0x664] ss:$48 sps:$4 sm:$0xff]   ;;  %v6979_v8 = vld [vmem:[%s8224_s3 + $0x66c] ss:$48 sps:$4 sm:$0xff]  }
  0x4c   : > { %v6974_v9 = vld [vmem:[%s8224_s3 + $0x660] ss:$48 sps:$4 sm:$0xff]   ;;  %v6977_v10 = vld [vmem:[%s8224_s3 + $0x668] ss:$48 sps:$4 sm:$0xff]   ;;  %v6982_v11 = vld [vmem:[%s8224_s3 + $0x6c4] ss:$48 sps:$4 sm:$0xff]  }
  0x4d   : > { %v6985_v12 = vld [vmem:[%s8224_s3 + $0x6cc] ss:$48 sps:$4 sm:$0xff]   ;;  %v6980_v13 = vld [vmem:[%s8224_s3 + $0x6c0] ss:$48 sps:$4 sm:$0xff]   ;;  %v6983_v14 = vld [vmem:[%s8224_s3 + $0x6c8] ss:$48 sps:$4 sm:$0xff]  }
  0x4e   : > { %4861 = vmatpush1.bf16.msra.mxu0 %v6910_v26  ;;  %5025 = vmatpush1.bf16.msra.mxu1 %v6911_v27  ;;  %v6988_v15 = vld [vmem:[%s8224_s3 + $0x724] ss:$48 sps:$4 sm:$0xff]   ;;  %v6991_v16 = vld [vmem:[%s8224_s3 + $0x72c] ss:$48 sps:$4 sm:$0xff]   ;;  %v6986_v17 = vld [vmem:[%s8224_s3 + $0x720] ss:$48 sps:$4 sm:$0xff]  }
  0x4f   : > { %4862 = vmatprep.subr.bf16.mxu0 %v6912_v28  ;;  %5026 = vmatprep.subr.bf16.mxu1 %v6914_v29  ;;  %v6989_v18 = vld [vmem:[%s8224_s3 + $0x728] ss:$48 sps:$4 sm:$0xff]   ;;  %v6994_v19 = vld [vmem:[%s8224_s3 + $0x784] ss:$48 sps:$4 sm:$0xff]   ;;  %v6997_v20 = vld [vmem:[%s8224_s3 + $0x78c] ss:$48 sps:$4 sm:$0xff]  }
  0x50   : > { %v6992_v21 = vld [vmem:[%s8224_s3 + $0x780] ss:$48 sps:$4 sm:$0xff]   ;;  %v6995_v22 = vld [vmem:[%s8224_s3 + $0x788] ss:$48 sps:$4 sm:$0xff]   ;;  %v7000_v23 = vld [vmem:[%s8224_s3 + $0x7e4] ss:$48 sps:$4 sm:$0xff]  }
  0x51   : > { %v7003_v24 = vld [vmem:[%s8224_s3 + $0x7ec] ss:$48 sps:$4 sm:$0xff]   ;;  %v6998_v25 = vld [vmem:[%s8224_s3 + $0x7e0] ss:$48 sps:$4 sm:$0xff]   ;;  %v7001_v26 = vld [vmem:[%s8224_s3 + $0x7e8] ss:$48 sps:$4 sm:$0xff]  }
  0x52   : > { %4863 = vmatpush1.bf16.msra.mxu0 %v6916_v30  ;;  %5027 = vmatpush1.bf16.msra.mxu1 %v6917_v31  ;;  %v7006_v27 = vld [vmem:[%s8224_s3 + $0x844] ss:$48 sps:$4 sm:$0xff]   ;;  %v7009_v28 = vld [vmem:[%s8224_s3 + $0x84c] ss:$48 sps:$4 sm:$0xff]   ;;  %v7004_v31 = vld [vmem:[%s8224_s3 + $0x840] ss:$48 sps:$4 sm:$0xff]  }
  0x53   : > { %4864 = vmatprep.subr.bf16.mxu0 %v6918_v32  ;;  %5028 = vmatprep.subr.bf16.mxu1 %v6920_v33  ;;  %v8334_v29 = vld [vmem:[%s9128_s0 + $0x8] sm:$0xff]  ;;  %v7012_v33 = vld [vmem:[%s8224_s3 + $0x8a4] ss:$48 sps:$4 sm:$0xff]   ;;  %s9142_s7 = smov (!%p201_p7, %s198_s7), 35 }
  0x54   : > { %v8338_v30 = vcombine.high %v8334_v29, %v8334_v29  ;;  %v7007_v32 = vld [vmem:[%s8224_s3 + $0x848] ss:$48 sps:$4 sm:$0xff]   ;;  %v7033_v46 = vld [vmem:[%s8224_s3 + $0x9cc] ss:$48 sps:$4 sm:$0xff]   ;;  %s5958_s12 = sshll.u32 %s9142_s7, 3 }
  0x55   : > { %s8780_s15 = scalar_lea.vmem %s9130_s2, %s5958_s12 }
  0x56   : > { %4865 = vmatpush1.bf16.msra.mxu0 %v6922_v34  ;;  %5029 = vmatpush1.bf16.msra.mxu1 %v6923_v35  ;;  %v7015_v34 = vld [vmem:[%s8224_s3 + $0x8ac] ss:$48 sps:$4 sm:$0xff]   ;;  %v7010_v35 = vld [vmem:[%s8224_s3 + $0x8a0] ss:$48 sps:$4 sm:$0xff]  }
  0x57   : > { %4866 = vmatprep.subr.bf16.mxu0 %v6924_v36  ;;  %5030 = vmatprep.subr.bf16.mxu1 %v6926_v37  ;;  %v7013_v36 = vld [vmem:[%s8224_s3 + $0x8a8] ss:$48 sps:$4 sm:$0xff]   ;;  %v7018_v37 = vld [vmem:[%s8224_s3 + $0x904] ss:$48 sps:$4 sm:$0xff]  }
  0x5a   : > { %4867 = vmatpush1.bf16.msra.mxu0 %v6928_v38  ;;  %5031 = vmatpush1.bf16.msra.mxu1 %v6929_v39  ;;  %v7021_v38 = vld [vmem:[%s8224_s3 + $0x90c] ss:$48 sps:$4 sm:$0xff]   ;;  %v7016_v39 = vld [vmem:[%s8224_s3 + $0x900] ss:$48 sps:$4 sm:$0xff]  }
  0x5b   : > { %4868 = vmatprep.subr.bf16.mxu0 %v6930_v40  ;;  %5032 = vmatprep.subr.bf16.mxu1 %v6932_v41  ;;  %v7019_v40 = vld [vmem:[%s8224_s3 + $0x908] ss:$48 sps:$4 sm:$0xff]   ;;  %v7024_v41 = vld [vmem:[%s8224_s3 + $0x964] ss:$48 sps:$4 sm:$0xff]  }
  0x5e   : > { %4869 = vmatpush1.bf16.msra.mxu0 %v6934_v42  ;;  %5033 = vmatpush1.bf16.msra.mxu1 %v6935_v43  ;;  %v7027_v42 = vld [vmem:[%s8224_s3 + $0x96c] ss:$48 sps:$4 sm:$0xff]   ;;  %v7022_v43 = vld [vmem:[%s8224_s3 + $0x960] ss:$48 sps:$4 sm:$0xff]  }
  0x5f   : > { %4870 = vmatprep.subr.bf16.mxu0 %v6936_v44  ;;  %5034 = vmatprep.subr.bf16.mxu1 %v6938_v45  ;;  %v7025_v44 = vld [vmem:[%s8224_s3 + $0x968] ss:$48 sps:$4 sm:$0xff]   ;;  %v7030_v45 = vld [vmem:[%s8224_s3 + $0x9c4] ss:$48 sps:$4 sm:$0xff]  }
  0x62   : > { %4871 = vmatpush1.bf16.msra.mxu0 %v6940_v47  ;;  %5035 = vmatpush1.bf16.msra.mxu1 %v6941_v49  ;;  %v7028_v47 = vld [vmem:[%s8224_s3 + $0x9c0] ss:$48 sps:$4 sm:$0xff]   ;;  %v7031_v49 = vld [vmem:[%s8224_s3 + $0x9c8] ss:$48 sps:$4 sm:$0xff]  }
  0x63   : > { %4872 = vmatprep.subr.bf16.mxu0 %v6942_v50  ;;  %5036 = vmatprep.subr.bf16.mxu1 %v6944_v51  ;;  %v7036_v50 = vld [vmem:[%s8224_s3 + $0xa24] ss:$48 sps:$4 sm:$0xff]   ;;  %v7039_v51 = vld [vmem:[%s8224_s3 + $0xa2c] ss:$48 sps:$4 sm:$0xff]  }
  0x66   : > { %4873 = vmatpush1.bf16.msra.mxu0 %v6946_v52  ;;  %5037 = vmatpush1.bf16.msra.mxu1 %v6947_v53  ;;  %v7034_v52 = vld [vmem:[%s8224_s3 + $0xa20] ss:$48 sps:$4 sm:$0xff]   ;;  %v7037_v53 = vld [vmem:[%s8224_s3 + $0xa28] ss:$48 sps:$4 sm:$0xff]  }
  0x67   : > { %4874 = vmatprep.subr.bf16.mxu0 %v6948_v54  ;;  %5038 = vmatprep.subr.bf16.mxu1 %v6950_v55  ;;  %v7042_v54 = vld [vmem:[%s8224_s3 + $0xa84] ss:$48 sps:$4 sm:$0xff]   ;;  %v7045_v55 = vld [vmem:[%s8224_s3 + $0xa8c] ss:$48 sps:$4 sm:$0xff]  }
  0x6a   : > { %4875 = vmatpush1.bf16.msra.mxu0 %v6952_v56  ;;  %5039 = vmatpush1.bf16.msra.mxu1 %v6953_v57  ;;  %v7040_v56 = vld [vmem:[%s8224_s3 + $0xa80] ss:$48 sps:$4 sm:$0xff]   ;;  %v7043_v57 = vld [vmem:[%s8224_s3 + $0xa88] ss:$48 sps:$4 sm:$0xff]  }
  0x6b   : > { %4876 = vmatprep.subr.bf16.mxu0 %v6954_v58  ;;  %5040 = vmatprep.subr.bf16.mxu1 %v6956_v59  ;;  %v7048_v58 = vld [vmem:[%s8224_s3 + $0xae4] ss:$48 sps:$4 sm:$0xff]   ;;  %v7051_v59 = vld [vmem:[%s8224_s3 + $0xaec] ss:$48 sps:$4 sm:$0xff]  }
  0x6e   : > { %4877 = vmatpush1.bf16.msra.mxu0 %v6958_v60  ;;  %5041 = vmatpush1.bf16.msra.mxu1 %v6959_v61  ;;  %v7046_v60 = vld [vmem:[%s8224_s3 + $0xae0] ss:$48 sps:$4 sm:$0xff]   ;;  %v7049_v61 = vld [vmem:[%s8224_s3 + $0xae8] ss:$48 sps:$4 sm:$0xff]  }
  0x6f   : > { %4878 = vmatprep.subr.bf16.mxu0 %v6960_v62  ;;  %5042 = vmatprep.subr.bf16.mxu1 %v6962_v63  ;;  %v7054_v62 = vld [vmem:[%s8224_s3 + $0xb44] ss:$48 sps:$4 sm:$0xff]   ;;  %v7057_v63 = vld [vmem:[%s8224_s3 + $0xb4c] ss:$48 sps:$4 sm:$0xff]  }
  0x72   : > { %4879 = vmatpush1.bf16.msra.mxu0 %v6964_v0  ;;  %5043 = vmatpush1.bf16.msra.mxu1 %v6965_v1  ;;  %v7052_v0 = vld [vmem:[%s8224_s3 + $0xb40] ss:$48 sps:$4 sm:$0xff]   ;;  %v7055_v1 = vld [vmem:[%s8224_s3 + $0xb48] ss:$48 sps:$4 sm:$0xff]  }
  0x73   : > { %4889 = vmatprep.subr.bf16.mxu0 %v6969_v2  ;;  %5053 = vmatprep.subr.bf16.mxu1 %v6972_v3  ;;  %v7060_v2 = vld [vmem:[%s8224_s3 + $0xba4] ss:$48 sps:$4 sm:$0xff]   ;;  %v7063_v3 = vld [vmem:[%s8224_s3 + $0xbac] ss:$48 sps:$4 sm:$0xff]  }
  0x75   : > { %4881 = vmatmul.mubr.bf16.vlgmr.msra.gmra.mrb[0].mxu0 %v8304_v5  ;;  %5045 = vmatmul.mubr.bf16.vlgmr.msra.gmra.mrb[0].mxu1 %v8304_v5 }
  0x76   : > { %4890 = vmatpush1.bf16.msra.mxu0 %v6967_v4  ;;  %5054 = vmatpush1.bf16.msra.mxu1 %v6970_v6  ;;  %v7058_v4 = vld [vmem:[%s8224_s3 + $0xba0] ss:$48 sps:$4 sm:$0xff]   ;;  %v7061_v6 = vld [vmem:[%s8224_s3 + $0xba8] ss:$48 sps:$4 sm:$0xff]  }
  0x77   : > { %4891 = vmatprep.subr.bf16.mxu0 %v6976_v7  ;;  %5055 = vmatprep.subr.bf16.mxu1 %v6979_v8  ;;  %v7067_v7 = vld [vmem:[%s8224_s3 + $0xc04] ss:$48 sps:$4 sm:$0xff]   ;;  %v7070_v8 = vld [vmem:[%s8224_s3 + $0xc0c] ss:$48 sps:$4 sm:$0xff]  }
  0x78   : > { %4921 = vmatprep.mubr.bf16.mxu0 %v8338_v30  ;;  %5085 = vmatprep.mubr.bf16.mxu1 %v8338_v30 }
  0x7a   : > { %4892 = vmatpush1.bf16.msra.mxu0 %v6974_v9  ;;  %5056 = vmatpush1.bf16.msra.mxu1 %v6977_v10  ;;  %v7065_v9 = vld [vmem:[%s8224_s3 + $0xc00] ss:$48 sps:$4 sm:$0xff]   ;;  %v8385_v10 = vcombine.low %v8334_v29, %v8334_v29  ;;  %v7093_v29 = vld [vmem:[%s8224_s3 + $0xd88] ss:$48 sps:$4 sm:$0xff]  }
  0x7b   : > { %4893 = vmatprep.subr.bf16.mxu0 %v6982_v11  ;;  %5057 = vmatprep.subr.bf16.mxu1 %v6985_v12  ;;  %v7068_v11 = vld [vmem:[%s8224_s3 + $0xc08] ss:$48 sps:$4 sm:$0xff]   ;;  %v7074_v12 = vld [vmem:[%s8224_s3 + $0xc64] ss:$48 sps:$4 sm:$0xff]  }
  0x7e   : > { %4894 = vmatpush1.bf16.msra.mxu0 %v6980_v13  ;;  %5058 = vmatpush1.bf16.msra.mxu1 %v6983_v14  ;;  %v8392_v13 = vld [vmem:[%s9128_s0 + $0x10] sm:$0xff]  ;;  %v7077_v14 = vld [vmem:[%s8224_s3 + $0xc6c] ss:$48 sps:$4 sm:$0xff]  }
  0x7f   : > { %4895 = vmatprep.subr.bf16.mxu0 %v6988_v15  ;;  %5059 = vmatprep.subr.bf16.mxu1 %v6991_v16  ;;  %v8397_v15 = vcombine.high %v8392_v13, %v8392_v13  ;;  %v7072_v16 = vld [vmem:[%s8224_s3 + $0xc60] ss:$48 sps:$4 sm:$0xff]  }
  0x82   : > { %4896 = vmatpush1.bf16.msra.mxu0 %v6986_v17  ;;  %5060 = vmatpush1.bf16.msra.mxu1 %v6989_v18  ;;  %v7075_v17 = vld [vmem:[%s8224_s3 + $0xc68] ss:$48 sps:$4 sm:$0xff]   ;;  %v7080_v18 = vld [vmem:[%s8224_s3 + $0xcc4] ss:$48 sps:$4 sm:$0xff]  }
  0x83   : > { %4897 = vmatprep.subr.bf16.mxu0 %v6994_v19  ;;  %5061 = vmatprep.subr.bf16.mxu1 %v6997_v20  ;;  %v7083_v19 = vld [vmem:[%s8224_s3 + $0xccc] ss:$48 sps:$4 sm:$0xff]   ;;  %v7078_v20 = vld [vmem:[%s8224_s3 + $0xcc0] ss:$48 sps:$4 sm:$0xff]  }
  0x86   : > { %4898 = vmatpush1.bf16.msra.mxu0 %v6992_v21  ;;  %5062 = vmatpush1.bf16.msra.mxu1 %v6995_v22  ;;  %v7081_v21 = vld [vmem:[%s8224_s3 + $0xcc8] ss:$48 sps:$4 sm:$0xff]   ;;  %v7086_v22 = vld [vmem:[%s8224_s3 + $0xd24] ss:$48 sps:$4 sm:$0xff]  }
  0x87   : > { %4899 = vmatprep.subr.bf16.mxu0 %v7000_v23  ;;  %5063 = vmatprep.subr.bf16.mxu1 %v7003_v24  ;;  %v7089_v23 = vld [vmem:[%s8224_s3 + $0xd2c] ss:$48 sps:$4 sm:$0xff]   ;;  %v7084_v24 = vld [vmem:[%s8224_s3 + $0xd20] ss:$48 sps:$4 sm:$0xff]  }
  0x8a   : > { %4900 = vmatpush1.bf16.msra.mxu0 %v6998_v25  ;;  %5064 = vmatpush1.bf16.msra.mxu1 %v7001_v26  ;;  %v7087_v25 = vld [vmem:[%s8224_s3 + $0xd28] ss:$48 sps:$4 sm:$0xff]   ;;  %v7092_v26 = vld [vmem:[%s8224_s3 + $0xd84] ss:$48 sps:$4 sm:$0xff]  }
  0x8b   : > { %4901 = vmatprep.subr.bf16.mxu0 %v7006_v27  ;;  %5065 = vmatprep.subr.bf16.mxu1 %v7009_v28  ;;  %v7095_v27 = vld [vmem:[%s8224_s3 + $0xd8c] ss:$48 sps:$4 sm:$0xff]   ;;  %v7090_v28 = vld [vmem:[%s8224_s3 + $0xd80] ss:$48 sps:$4 sm:$0xff]  }
  0x8e   : > { %4902 = vmatpush1.bf16.msra.mxu0 %v7004_v31  ;;  %5066 = vmatpush1.bf16.msra.mxu1 %v7007_v32  ;;  %v7098_v31 = vld [vmem:[%s8224_s3 + $0xde4] ss:$48 sps:$4 sm:$0xff]   ;;  %v7101_v32 = vld [vmem:[%s8224_s3 + $0xdec] ss:$48 sps:$4 sm:$0xff]  }
  0x8f   : > { %4903 = vmatprep.subr.bf16.mxu0 %v7012_v33  ;;  %5067 = vmatprep.subr.bf16.mxu1 %v7015_v34  ;;  %v7096_v33 = vld [vmem:[%s8224_s3 + $0xde0] ss:$48 sps:$4 sm:$0xff]   ;;  %v7099_v34 = vld [vmem:[%s8224_s3 + $0xde8] ss:$48 sps:$4 sm:$0xff]  }
  0x92   : > { %4904 = vmatpush1.bf16.msra.mxu0 %v7010_v35  ;;  %5068 = vmatpush1.bf16.msra.mxu1 %v7013_v36  ;;  %v7104_v35 = vld [vmem:[%s8224_s3 + $0xe44] ss:$48 sps:$4 sm:$0xff]   ;;  %v7107_v36 = vld [vmem:[%s8224_s3 + $0xe4c] ss:$48 sps:$4 sm:$0xff]  }
  0x93   : > { %4905 = vmatprep.subr.bf16.mxu0 %v7018_v37  ;;  %5069 = vmatprep.subr.bf16.mxu1 %v7021_v38  ;;  %v7102_v37 = vld [vmem:[%s8224_s3 + $0xe40] ss:$48 sps:$4 sm:$0xff]   ;;  %v7105_v38 = vld [vmem:[%s8224_s3 + $0xe48] ss:$48 sps:$4 sm:$0xff]  }
  0x96   : > { %4906 = vmatpush1.bf16.msra.mxu0 %v7016_v39  ;;  %5070 = vmatpush1.bf16.msra.mxu1 %v7019_v40  ;;  %v7110_v39 = vld [vmem:[%s8224_s3 + $0xea4] ss:$48 sps:$4 sm:$0xff]   ;;  %v7113_v40 = vld [vmem:[%s8224_s3 + $0xeac] ss:$48 sps:$4 sm:$0xff]  }
  0x97   : > { %4907 = vmatprep.subr.bf16.mxu0 %v7024_v41  ;;  %5071 = vmatprep.subr.bf16.mxu1 %v7027_v42  ;;  %v7108_v41 = vld [vmem:[%s8224_s3 + $0xea0] ss:$48 sps:$4 sm:$0xff]   ;;  %v7111_v42 = vld [vmem:[%s8224_s3 + $0xea8] ss:$48 sps:$4 sm:$0xff]  }
  0x9a   : > { %4908 = vmatpush1.bf16.msra.mxu0 %v7022_v43  ;;  %5072 = vmatpush1.bf16.msra.mxu1 %v7025_v44  ;;  %v7116_v43 = vld [vmem:[%s8224_s3 + $0xf04] ss:$48 sps:$4 sm:$0xff]   ;;  %v7119_v44 = vld [vmem:[%s8224_s3 + $0xf0c] ss:$48 sps:$4 sm:$0xff]  }
  0x9b   : > { %4909 = vmatprep.subr.bf16.mxu0 %v7030_v45  ;;  %5073 = vmatprep.subr.bf16.mxu1 %v7033_v46  ;;  %v7114_v45 = vld [vmem:[%s8224_s3 + $0xf00] ss:$48 sps:$4 sm:$0xff]   ;;  %v7117_v46 = vld [vmem:[%s8224_s3 + $0xf08] ss:$48 sps:$4 sm:$0xff]  }
  0x9e   : > { %4910 = vmatpush1.bf16.msra.mxu0 %v7028_v47  ;;  %5074 = vmatpush1.bf16.msra.mxu1 %v7031_v49  ;;  %v7122_v47 = vld [vmem:[%s8224_s3 + $0xf64] ss:$48 sps:$4 sm:$0xff]   ;;  %v7125_v49 = vld [vmem:[%s8224_s3 + $0xf6c] ss:$48 sps:$4 sm:$0xff]  }
  0x9f   : > { %4911 = vmatprep.subr.bf16.mxu0 %v7036_v50  ;;  %5075 = vmatprep.subr.bf16.mxu1 %v7039_v51  ;;  %v7120_v50 = vld [vmem:[%s8224_s3 + $0xf60] ss:$48 sps:$4 sm:$0xff]   ;;  %v7123_v51 = vld [vmem:[%s8224_s3 + $0xf68] ss:$48 sps:$4 sm:$0xff]  }
  0xa2   : > { %4912 = vmatpush1.bf16.msra.mxu0 %v7034_v52  ;;  %5076 = vmatpush1.bf16.msra.mxu1 %v7037_v53  ;;  %v7128_v52 = vld [vmem:[%s8224_s3 + $0xfc4] ss:$48 sps:$4 sm:$0xff]   ;;  %v7131_v53 = vld [vmem:[%s8224_s3 + $0xfcc] ss:$48 sps:$4 sm:$0xff]  }
  0xa3   : > { %4913 = vmatprep.subr.bf16.mxu0 %v7042_v54  ;;  %5077 = vmatprep.subr.bf16.mxu1 %v7045_v55  ;;  %v7126_v54 = vld [vmem:[%s8224_s3 + $0xfc0] ss:$48 sps:$4 sm:$0xff]   ;;  %v7129_v55 = vld [vmem:[%s8224_s3 + $0xfc8] ss:$48 sps:$4 sm:$0xff]  }
  0xa6   : > { %4914 = vmatpush1.bf16.msra.mxu0 %v7040_v56  ;;  %5078 = vmatpush1.bf16.msra.mxu1 %v7043_v57  ;;  %v7134_v56 = vld [vmem:[%s8224_s3 + $0x1024] ss:$48 sps:$4 sm:$0xff]   ;;  %v7137_v57 = vld [vmem:[%s8224_s3 + $0x102c] ss:$48 sps:$4 sm:$0xff]  }
  0xa7   : > { %4915 = vmatprep.subr.bf16.mxu0 %v7048_v58  ;;  %5079 = vmatprep.subr.bf16.mxu1 %v7051_v59  ;;  %v7132_v58 = vld [vmem:[%s8224_s3 + $0x1020] ss:$48 sps:$4 sm:$0xff]   ;;  %v7135_v59 = vld [vmem:[%s8224_s3 + $0x1028] ss:$48 sps:$4 sm:$0xff]  }
  0xaa   : > { %4916 = vmatpush1.bf16.msra.mxu0 %v7046_v60  ;;  %5080 = vmatpush1.bf16.msra.mxu1 %v7049_v61  ;;  %v7140_v60 = vld [vmem:[%s8224_s3 + $0x1084] ss:$48 sps:$4 sm:$0xff]   ;;  %v7143_v61 = vld [vmem:[%s8224_s3 + $0x108c] ss:$48 sps:$4 sm:$0xff]  }
  0xab   : > { %4917 = vmatprep.subr.bf16.mxu0 %v7054_v62  ;;  %5081 = vmatprep.subr.bf16.mxu1 %v7057_v63  ;;  %v7138_v62 = vld [vmem:[%s8224_s3 + $0x1080] ss:$48 sps:$4 sm:$0xff]   ;;  %v7141_v63 = vld [vmem:[%s8224_s3 + $0x1088] ss:$48 sps:$4 sm:$0xff]  }
  0xae   : > { %4918 = vmatpush1.bf16.msra.mxu0 %v7052_v0  ;;  %5082 = vmatpush1.bf16.msra.mxu1 %v7055_v1  ;;  %v7146_v0 = vld [vmem:[%s8224_s3 + $0x10e4] ss:$48 sps:$4 sm:$0xff]   ;;  %v7149_v1 = vld [vmem:[%s8224_s3 + $0x10ec] ss:$48 sps:$4 sm:$0xff]  }
  0xaf   : > { %4919 = vmatprep.subr.bf16.mxu0 %v7060_v2  ;;  %5083 = vmatprep.subr.bf16.mxu1 %v7063_v3  ;;  %v7144_v2 = vld [vmem:[%s8224_s3 + $0x10e0] ss:$48 sps:$4 sm:$0xff]   ;;  %v7147_v3 = vld [vmem:[%s8224_s3 + $0x10e8] ss:$48 sps:$4 sm:$0xff]  }
  0xb2   : > { %4920 = vmatpush1.bf16.msra.mxu0 %v7058_v4  ;;  %5084 = vmatpush1.bf16.msra.mxu1 %v7061_v6  ;;  %v7152_v4 = vld [vmem:[%s8224_s3 + $0x1144] ss:$48 sps:$4 sm:$0xff]   ;;  %v7155_v6 = vld [vmem:[%s8224_s3 + $0x114c] ss:$48 sps:$4 sm:$0xff]  }
  0xb3   : > { %4930 = vmatprep.subr.bf16.mxu0 %v7067_v7  ;;  %5094 = vmatprep.subr.bf16.mxu1 %v7070_v8  ;;  %v7150_v7 = vld [vmem:[%s8224_s3 + $0x1140] ss:$48 sps:$4 sm:$0xff]   ;;  %v7153_v8 = vld [vmem:[%s8224_s3 + $0x1148] ss:$48 sps:$4 sm:$0xff]  }
  0xb5   : > { %4922 = vmatmul.mubr.bf16.vlgmr.msra.gmra.mrb[0].mxu0 %v8385_v10  ;;  %5086 = vmatmul.mubr.bf16.vlgmr.msra.gmra.mrb[0].mxu1 %v8385_v10 }
  0xb6   : > { %4931 = vmatpush1.bf16.msra.mxu0 %v7065_v9  ;;  %5095 = vmatpush1.bf16.msra.mxu1 %v7068_v11  ;;  %v7158_v9 = vld [vmem:[%s8224_s3 + $0x11a4] ss:$48 sps:$4 sm:$0xff]   ;;  %v7161_v11 = vld [vmem:[%s8224_s3 + $0x11ac] ss:$48 sps:$4 sm:$0xff]  }
  0xb7   : > { %4932 = vmatprep.subr.bf16.mxu0 %v7074_v12  ;;  %5096 = vmatprep.subr.bf16.mxu1 %v7077_v14  ;;  %v7156_v12 = vld [vmem:[%s8224_s3 + $0x11a0] ss:$48 sps:$4 sm:$0xff]   ;;  %v7159_v14 = vld [vmem:[%s8224_s3 + $0x11a8] ss:$48 sps:$4 sm:$0xff]  }
  0xb8   : > { %4962 = vmatprep.mubr.bf16.mxu0 %v8397_v15  ;;  %5126 = vmatprep.mubr.bf16.mxu1 %v8397_v15 }
  0xba   : > { %4933 = vmatpush1.bf16.msra.mxu0 %v7072_v16  ;;  %5097 = vmatpush1.bf16.msra.mxu1 %v7075_v17  ;;  %v7165_v16 = vld [vmem:[%s8224_s3 + $0x1204] ss:$48 sps:$4 sm:$0xff]   ;;  %v7168_v17 = vld [vmem:[%s8224_s3 + $0x120c] ss:$48 sps:$4 sm:$0xff]  }
  0xbb   : > { %4934 = vmatprep.subr.bf16.mxu0 %v7080_v18  ;;  %5098 = vmatprep.subr.bf16.mxu1 %v7083_v19  ;;  %v7163_v18 = vld [vmem:[%s8224_s3 + $0x1200] ss:$48 sps:$4 sm:$0xff]   ;;  %v7166_v19 = vld [vmem:[%s8224_s3 + $0x1208] ss:$48 sps:$4 sm:$0xff]  }
  0xbe   : > { %4935 = vmatpush1.bf16.msra.mxu0 %v7078_v20  ;;  %5099 = vmatpush1.bf16.msra.mxu1 %v7081_v21  ;;  %v8467_v20 = vcombine.low %v8392_v13, %v8392_v13  ;;  %v8472_v21 = vld [vmem:[%s9128_s0 + $0x18] sm:$0xff]  ;;  %v7170_v13 = vld [vmem:[%s8224_s3 + $0x1260] ss:$48 sps:$4 sm:$0xff]  }
  0xbf   : > { %4936 = vmatprep.subr.bf16.mxu0 %v7086_v22  ;;  %5100 = vmatprep.subr.bf16.mxu1 %v7089_v23  ;;  %v7172_v22 = vld [vmem:[%s8224_s3 + $0x1264] ss:$48 sps:$4 sm:$0xff]   ;;  %v7175_v23 = vld [vmem:[%s8224_s3 + $0x126c] ss:$48 sps:$4 sm:$0xff]  }
  0xc2   : > { %4937 = vmatpush1.bf16.msra.mxu0 %v7084_v24  ;;  %5101 = vmatpush1.bf16.msra.mxu1 %v7087_v25  ;;  %v8478_v24 = vcombine.high %v8472_v21, %v8472_v21  ;;  %v7173_v25 = vld [vmem:[%s8224_s3 + $0x1268] ss:$48 sps:$4 sm:$0xff]  }
  0xc3   : > { %4938 = vmatprep.subr.bf16.mxu0 %v7092_v26  ;;  %5102 = vmatprep.subr.bf16.mxu1 %v7095_v27  ;;  %v7178_v26 = vld [vmem:[%s8224_s3 + $0x12c4] ss:$48 sps:$4 sm:$0xff]   ;;  %v7181_v27 = vld [vmem:[%s8224_s3 + $0x12cc] ss:$48 sps:$4 sm:$0xff]  }
  0xc6   : > { %4939 = vmatpush1.bf16.msra.mxu0 %v7090_v28  ;;  %5103 = vmatpush1.bf16.msra.mxu1 %v7093_v29  ;;  %v7176_v28 = vld [vmem:[%s8224_s3 + $0x12c0] ss:$48 sps:$4 sm:$0xff]   ;;  %v7179_v29 = vld [vmem:[%s8224_s3 + $0x12c8] ss:$48 sps:$4 sm:$0xff]  }
  0xc7   : > { %4940 = vmatprep.subr.bf16.mxu0 %v7098_v31  ;;  %5104 = vmatprep.subr.bf16.mxu1 %v7101_v32  ;;  %v7184_v31 = vld [vmem:[%s8224_s3 + $0x1324] ss:$48 sps:$4 sm:$0xff]   ;;  %v7187_v32 = vld [vmem:[%s8224_s3 + $0x132c] ss:$48 sps:$4 sm:$0xff]  }
  0xca   : > { %4941 = vmatpush1.bf16.msra.mxu0 %v7096_v33  ;;  %5105 = vmatpush1.bf16.msra.mxu1 %v7099_v34  ;;  %v7182_v33 = vld [vmem:[%s8224_s3 + $0x1320] ss:$48 sps:$4 sm:$0xff]   ;;  %v7185_v34 = vld [vmem:[%s8224_s3 + $0x1328] ss:$48 sps:$4 sm:$0xff]  }
  0xcb   : > { %4942 = vmatprep.subr.bf16.mxu0 %v7104_v35  ;;  %5106 = vmatprep.subr.bf16.mxu1 %v7107_v36  ;;  %v7190_v35 = vld [vmem:[%s8224_s3 + $0x1384] ss:$48 sps:$4 sm:$0xff]   ;;  %v7193_v36 = vld [vmem:[%s8224_s3 + $0x138c] ss:$48 sps:$4 sm:$0xff]  }
  0xce   : > { %4943 = vmatpush1.bf16.msra.mxu0 %v7102_v37  ;;  %5107 = vmatpush1.bf16.msra.mxu1 %v7105_v38  ;;  %v7188_v37 = vld [vmem:[%s8224_s3 + $0x1380] ss:$48 sps:$4 sm:$0xff]   ;;  %v7191_v38 = vld [vmem:[%s8224_s3 + $0x1388] ss:$48 sps:$4 sm:$0xff]  }
  0xcf   : > { %4944 = vmatprep.subr.bf16.mxu0 %v7110_v39  ;;  %5108 = vmatprep.subr.bf16.mxu1 %v7113_v40  ;;  %v7196_v39 = vld [vmem:[%s8224_s3 + $0x13e4] ss:$48 sps:$4 sm:$0xff]   ;;  %v7199_v40 = vld [vmem:[%s8224_s3 + $0x13ec] ss:$48 sps:$4 sm:$0xff]  }
  0xd2   : > { %4945 = vmatpush1.bf16.msra.mxu0 %v7108_v41  ;;  %5109 = vmatpush1.bf16.msra.mxu1 %v7111_v42  ;;  %v7194_v41 = vld [vmem:[%s8224_s3 + $0x13e0] ss:$48 sps:$4 sm:$0xff]   ;;  %v7197_v42 = vld [vmem:[%s8224_s3 + $0x13e8] ss:$48 sps:$4 sm:$0xff]  }
  0xd3   : > { %4946 = vmatprep.subr.bf16.mxu0 %v7116_v43  ;;  %5110 = vmatprep.subr.bf16.mxu1 %v7119_v44  ;;  %v7202_v43 = vld [vmem:[%s8224_s3 + $0x1444] ss:$48 sps:$4 sm:$0xff]   ;;  %v7205_v44 = vld [vmem:[%s8224_s3 + $0x144c] ss:$48 sps:$4 sm:$0xff]  }
  0xd6   : > { %4947 = vmatpush1.bf16.msra.mxu0 %v7114_v45  ;;  %5111 = vmatpush1.bf16.msra.mxu1 %v7117_v46  ;;  %v7200_v45 = vld [vmem:[%s8224_s3 + $0x1440] ss:$48 sps:$4 sm:$0xff]   ;;  %v7203_v46 = vld [vmem:[%s8224_s3 + $0x1448] ss:$48 sps:$4 sm:$0xff]  }
  0xd7   : > { %4948 = vmatprep.subr.bf16.mxu0 %v7122_v47  ;;  %5112 = vmatprep.subr.bf16.mxu1 %v7125_v49  ;;  %v7208_v47 = vld [vmem:[%s8224_s3 + $0x14a4] ss:$48 sps:$4 sm:$0xff]   ;;  %v7211_v49 = vld [vmem:[%s8224_s3 + $0x14ac] ss:$48 sps:$4 sm:$0xff]  }
  0xda   : > { %4949 = vmatpush1.bf16.msra.mxu0 %v7120_v50  ;;  %5113 = vmatpush1.bf16.msra.mxu1 %v7123_v51  ;;  %v7206_v50 = vld [vmem:[%s8224_s3 + $0x14a0] ss:$48 sps:$4 sm:$0xff]   ;;  %v7209_v51 = vld [vmem:[%s8224_s3 + $0x14a8] ss:$48 sps:$4 sm:$0xff]  }
  0xdb   : > { %4950 = vmatprep.subr.bf16.mxu0 %v7128_v52  ;;  %5114 = vmatprep.subr.bf16.mxu1 %v7131_v53  ;;  %v7214_v52 = vld [vmem:[%s8224_s3 + $0x1504] ss:$48 sps:$4 sm:$0xff]   ;;  %v7217_v53 = vld [vmem:[%s8224_s3 + $0x150c] ss:$48 sps:$4 sm:$0xff]  }
  0xde   : > { %4951 = vmatpush1.bf16.msra.mxu0 %v7126_v54  ;;  %5115 = vmatpush1.bf16.msra.mxu1 %v7129_v55  ;;  %v7212_v54 = vld [vmem:[%s8224_s3 + $0x1500] ss:$48 sps:$4 sm:$0xff]   ;;  %v7215_v55 = vld [vmem:[%s8224_s3 + $0x1508] ss:$48 sps:$4 sm:$0xff]  }
  0xdf   : > { %4952 = vmatprep.subr.bf16.mxu0 %v7134_v56  ;;  %5116 = vmatprep.subr.bf16.mxu1 %v7137_v57  ;;  %v7220_v56 = vld [vmem:[%s8224_s3 + $0x1564] ss:$48 sps:$4 sm:$0xff]   ;;  %v7223_v57 = vld [vmem:[%s8224_s3 + $0x156c] ss:$48 sps:$4 sm:$0xff]  }
  0xe2   : > { %4953 = vmatpush1.bf16.msra.mxu0 %v7132_v58  ;;  %5117 = vmatpush1.bf16.msra.mxu1 %v7135_v59  ;;  %v7218_v58 = vld [vmem:[%s8224_s3 + $0x1560] ss:$48 sps:$4 sm:$0xff]   ;;  %v7221_v59 = vld [vmem:[%s8224_s3 + $0x1568] ss:$48 sps:$4 sm:$0xff]  }
  0xe3   : > { %4954 = vmatprep.subr.bf16.mxu0 %v7140_v60  ;;  %5118 = vmatprep.subr.bf16.mxu1 %v7143_v61  ;;  %v7226_v60 = vld [vmem:[%s8224_s3 + $0x15c4] ss:$48 sps:$4 sm:$0xff]   ;;  %v7229_v61 = vld [vmem:[%s8224_s3 + $0x15cc] ss:$48 sps:$4 sm:$0xff]  }
  0xe6   : > { %4955 = vmatpush1.bf16.msra.mxu0 %v7138_v62  ;;  %5119 = vmatpush1.bf16.msra.mxu1 %v7141_v63  ;;  %v7224_v62 = vld [vmem:[%s8224_s3 + $0x15c0] ss:$48 sps:$4 sm:$0xff]   ;;  %v7227_v63 = vld [vmem:[%s8224_s3 + $0x15c8] ss:$48 sps:$4 sm:$0xff]  }
  0xe7   : > { %4956 = vmatprep.subr.bf16.mxu0 %v7146_v0  ;;  %5120 = vmatprep.subr.bf16.mxu1 %v7149_v1  ;;  %v7232_v0 = vld [vmem:[%s8224_s3 + $0x1624] ss:$48 sps:$4 sm:$0xff]   ;;  %v7235_v1 = vld [vmem:[%s8224_s3 + $0x162c] ss:$48 sps:$4 sm:$0xff]  }
  0xea   : > { %4957 = vmatpush1.bf16.msra.mxu0 %v7144_v2  ;;  %5121 = vmatpush1.bf16.msra.mxu1 %v7147_v3  ;;  %v7230_v2 = vld [vmem:[%s8224_s3 + $0x1620] ss:$48 sps:$4 sm:$0xff]   ;;  %v7233_v3 = vld [vmem:[%s8224_s3 + $0x1628] ss:$48 sps:$4 sm:$0xff]  }
  0xeb   : > { %4958 = vmatprep.subr.bf16.mxu0 %v7152_v4  ;;  %5122 = vmatprep.subr.bf16.mxu1 %v7155_v6  ;;  %v7238_v4 = vld [vmem:[%s8224_s3 + $0x1684] ss:$48 sps:$4 sm:$0xff]   ;;  %v7241_v6 = vld [vmem:[%s8224_s3 + $0x168c] ss:$48 sps:$4 sm:$0xff]  }
  0xee   : > { %4959 = vmatpush1.bf16.msra.mxu0 %v7150_v7  ;;  %5123 = vmatpush1.bf16.msra.mxu1 %v7153_v8  ;;  %v7236_v7 = vld [vmem:[%s8224_s3 + $0x1680] ss:$48 sps:$4 sm:$0xff]   ;;  %v7239_v8 = vld [vmem:[%s8224_s3 + $0x1688] ss:$48 sps:$4 sm:$0xff]  }
  0xef   : > { %4960 = vmatprep.subr.bf16.mxu0 %v7158_v9  ;;  %5124 = vmatprep.subr.bf16.mxu1 %v7161_v11  ;;  %v7244_v9 = vld [vmem:[%s8224_s3 + $0x16e4] ss:$48 sps:$4 sm:$0xff]   ;;  %v7247_v11 = vld [vmem:[%s8224_s3 + $0x16ec] ss:$48 sps:$4 sm:$0xff]  }
  0xf2   : > { %4961 = vmatpush1.bf16.msra.mxu0 %v7156_v12  ;;  %5125 = vmatpush1.bf16.msra.mxu1 %v7159_v14  ;;  %v7242_v12 = vld [vmem:[%s8224_s3 + $0x16e0] ss:$48 sps:$4 sm:$0xff]   ;;  %v7245_v14 = vld [vmem:[%s8224_s3 + $0x16e8] ss:$48 sps:$4 sm:$0xff]  }
  0xf3   : > { %4971 = vmatprep.subr.bf16.mxu0 %v7165_v16  ;;  %5135 = vmatprep.subr.bf16.mxu1 %v7168_v17  ;;  %v7250_v16 = vld [vmem:[%s8224_s3 + $0x1744] ss:$48 sps:$4 sm:$0xff]   ;;  %v7253_v17 = vld [vmem:[%s8224_s3 + $0x174c] ss:$48 sps:$4 sm:$0xff]  }
  0xf5   : > { %4963 = vmatmul.mubr.bf16.vlgmr.msra.gmra.mrb[0].mxu0 %v8467_v20  ;;  %5127 = vmatmul.mubr.bf16.vlgmr.msra.gmra.mrb[0].mxu1 %v8467_v20 }
  0xf6   : > { %4972 = vmatpush1.bf16.msra.mxu0 %v7163_v18  ;;  %5136 = vmatpush1.bf16.msra.mxu1 %v7166_v19  ;;  %v7248_v18 = vld [vmem:[%s8224_s3 + $0x1740] ss:$48 sps:$4 sm:$0xff]   ;;  %v7251_v19 = vld [vmem:[%s8224_s3 + $0x1748] ss:$48 sps:$4 sm:$0xff]  }
  0xf7   : > { %4973 = vmatprep.subr.bf16.mxu0 %v7172_v22  ;;  %5137 = vmatprep.subr.bf16.mxu1 %v7175_v23  ;;  %v7256_v22 = vld [vmem:[%s8224_s3 + $0x17a4] ss:$48 sps:$4 sm:$0xff]   ;;  %v7259_v23 = vld [vmem:[%s8224_s3 + $0x17ac] ss:$48 sps:$4 sm:$0xff]  }
  0xf8   : > { %5003 = vmatprep.mubr.bf16.mxu0 %v8478_v24  ;;  %5167 = vmatprep.mubr.bf16.mxu1 %v8478_v24 }
  0xfa   : > { %4974 = vmatpush1.bf16.msra.mxu0 %v7170_v13  ;;  %5138 = vmatpush1.bf16.msra.mxu1 %v7173_v25  ;;  %v7254_v13 = vld [vmem:[%s8224_s3 + $0x17a0] ss:$48 sps:$4 sm:$0xff]   ;;  %v7257_v25 = vld [vmem:[%s8224_s3 + $0x17a8] ss:$48 sps:$4 sm:$0xff]  }
  0xfb   : > { %4975 = vmatprep.subr.bf16.mxu0 %v7178_v26  ;;  %5139 = vmatprep.subr.bf16.mxu1 %v7181_v27  ;;  %v7264_v26 = vld [vmem:[%s8224_s3 + $0x14] ss:$48 sps:$4 sm:$0xff]   ;;  %v7267_v27 = vld [vmem:[%s8224_s3 + $0x1c] ss:$48 sps:$4 sm:$0xff]  }
  0xfe   : > { %4976 = vmatpush1.bf16.msra.mxu0 %v7176_v28  ;;  %5140 = vmatpush1.bf16.msra.mxu1 %v7179_v29  ;;  %v8546_v28 = vcombine.low %v8472_v21, %v8472_v21  ;;  %v7262_v29 = vld [vmem:[%s8224_s3 + $0x10] ss:$48 sps:$4 sm:$0xff]   ;;  %v7276_v21 = vld [vmem:[%s8224_s3 + $0xd4] ss:$48 sps:$4 sm:$0xff]  }
  0xff   : > { %4977 = vmatprep.subr.bf16.mxu0 %v7184_v31  ;;  %5141 = vmatprep.subr.bf16.mxu1 %v7187_v32  ;;  %v7265_v31 = vld [vmem:[%s8224_s3 + $0x18] ss:$48 sps:$4 sm:$0xff]   ;;  %v7270_v32 = vld [vmem:[%s8224_s3 + $0x74] ss:$48 sps:$4 sm:$0xff]  }
 0x102   : > { %4978 = vmatpush1.bf16.msra.mxu0 %v7182_v33  ;;  %5142 = vmatpush1.bf16.msra.mxu1 %v7185_v34  ;;  %v7273_v33 = vld [vmem:[%s8224_s3 + $0x7c] ss:$48 sps:$4 sm:$0xff]   ;;  %v7268_v34 = vld [vmem:[%s8224_s3 + $0x70] ss:$48 sps:$4 sm:$0xff]  }
 0x103   : > { %4979 = vmatprep.subr.bf16.mxu0 %v7190_v35  ;;  %5143 = vmatprep.subr.bf16.mxu1 %v7193_v36  ;;  %v7271_v35 = vld [vmem:[%s8224_s3 + $0x78] ss:$48 sps:$4 sm:$0xff]   ;;  %v7279_v36 = vld [vmem:[%s8224_s3 + $0xdc] ss:$48 sps:$4 sm:$0xff]  }
 0x106   : > { %4980 = vmatpush1.bf16.msra.mxu0 %v7188_v37  ;;  %5144 = vmatpush1.bf16.msra.mxu1 %v7191_v38  ;;  %v7274_v37 = vld [vmem:[%s8224_s3 + $0xd0] ss:$48 sps:$4 sm:$0xff]   ;;  %v7277_v38 = vld [vmem:[%s8224_s3 + $0xd8] ss:$48 sps:$4 sm:$0xff]  }
 0x107   : > { %4981 = vmatprep.subr.bf16.mxu0 %v7196_v39  ;;  %5145 = vmatprep.subr.bf16.mxu1 %v7199_v40  ;;  %v7282_v39 = vld [vmem:[%s8224_s3 + $0x134] ss:$48 sps:$4 sm:$0xff]   ;;  %v7285_v40 = vld [vmem:[%s8224_s3 + $0x13c] ss:$48 sps:$4 sm:$0xff]  }
 0x10a   : > { %4982 = vmatpush1.bf16.msra.mxu0 %v7194_v41  ;;  %5146 = vmatpush1.bf16.msra.mxu1 %v7197_v42  ;;  %v7280_v41 = vld [vmem:[%s8224_s3 + $0x130] ss:$48 sps:$4 sm:$0xff]   ;;  %v7283_v42 = vld [vmem:[%s8224_s3 + $0x138] ss:$48 sps:$4 sm:$0xff]  }
 0x10b   : > { %4983 = vmatprep.subr.bf16.mxu0 %v7202_v43  ;;  %5147 = vmatprep.subr.bf16.mxu1 %v7205_v44  ;;  %v7288_v43 = vld [vmem:[%s8224_s3 + $0x194] ss:$48 sps:$4 sm:$0xff]   ;;  %v7291_v44 = vld [vmem:[%s8224_s3 + $0x19c] ss:$48 sps:$4 sm:$0xff]  }
 0x10e   : > { %4984 = vmatpush1.bf16.msra.mxu0 %v7200_v45  ;;  %5148 = vmatpush1.bf16.msra.mxu1 %v7203_v46  ;;  %v7286_v45 = vld [vmem:[%s8224_s3 + $0x190] ss:$48 sps:$4 sm:$0xff]   ;;  %v7289_v46 = vld [vmem:[%s8224_s3 + $0x198] ss:$48 sps:$4 sm:$0xff]  }
 0x10f   : > { %4985 = vmatprep.subr.bf16.mxu0 %v7208_v47  ;;  %5149 = vmatprep.subr.bf16.mxu1 %v7211_v49  ;;  %v7294_v47 = vld [vmem:[%s8224_s3 + $0x1f4] ss:$48 sps:$4 sm:$0xff]   ;;  %v7297_v49 = vld [vmem:[%s8224_s3 + $0x1fc] ss:$48 sps:$4 sm:$0xff]  }
 0x112   : > { %4986 = vmatpush1.bf16.msra.mxu0 %v7206_v50  ;;  %5150 = vmatpush1.bf16.msra.mxu1 %v7209_v51  ;;  %v7292_v50 = vld [vmem:[%s8224_s3 + $0x1f0] ss:$48 sps:$4 sm:$0xff]   ;;  %v7295_v51 = vld [vmem:[%s8224_s3 + $0x1f8] ss:$48 sps:$4 sm:$0xff]  }
 0x113   : > { %4987 = vmatprep.subr.bf16.mxu0 %v7214_v52  ;;  %5151 = vmatprep.subr.bf16.mxu1 %v7217_v53  ;;  %v7300_v52 = vld [vmem:[%s8224_s3 + $0x254] ss:$48 sps:$4 sm:$0xff]   ;;  %v7303_v53 = vld [vmem:[%s8224_s3 + $0x25c] ss:$48 sps:$4 sm:$0xff]  }
 0x116   : > { %4988 = vmatpush1.bf16.msra.mxu0 %v7212_v54  ;;  %5152 = vmatpush1.bf16.msra.mxu1 %v7215_v55  ;;  %v7298_v54 = vld [vmem:[%s8224_s3 + $0x250] ss:$48 sps:$4 sm:$0xff]   ;;  %v7301_v55 = vld [vmem:[%s8224_s3 + $0x258] ss:$48 sps:$4 sm:$0xff]  }
 0x117   : > { %4989 = vmatprep.subr.bf16.mxu0 %v7220_v56  ;;  %5153 = vmatprep.subr.bf16.mxu1 %v7223_v57  ;;  %v7306_v56 = vld [vmem:[%s8224_s3 + $0x2b4] ss:$48 sps:$4 sm:$0xff]   ;;  %v7309_v57 = vld [vmem:[%s8224_s3 + $0x2bc] ss:$48 sps:$4 sm:$0xff]  }
 0x11a   : > { %4990 = vmatpush1.bf16.msra.mxu0 %v7218_v58  ;;  %5154 = vmatpush1.bf16.msra.mxu1 %v7221_v59  ;;  %v7304_v58 = vld [vmem:[%s8224_s3 + $0x2b0] ss:$48 sps:$4 sm:$0xff]   ;;  %v7307_v59 = vld [vmem:[%s8224_s3 + $0x2b8] ss:$48 sps:$4 sm:$0xff]  }
 0x11b   : > { %4991 = vmatprep.subr.bf16.mxu0 %v7226_v60  ;;  %5155 = vmatprep.subr.bf16.mxu1 %v7229_v61  ;;  %v7312_v60 = vld [vmem:[%s8224_s3 + $0x314] ss:$48 sps:$4 sm:$0xff]   ;;  %v7315_v61 = vld [vmem:[%s8224_s3 + $0x31c] ss:$48 sps:$4 sm:$0xff]  }
 0x11e   : > { %4992 = vmatpush1.bf16.msra.mxu0 %v7224_v62  ;;  %5156 = vmatpush1.bf16.msra.mxu1 %v7227_v63  ;;  %v7310_v62 = vld [vmem:[%s8224_s3 + $0x310] ss:$48 sps:$4 sm:$0xff]   ;;  %v7313_v63 = vld [vmem:[%s8224_s3 + $0x318] ss:$48 sps:$4 sm:$0xff]  }
 0x11f   : > { %4993 = vmatprep.subr.bf16.mxu0 %v7232_v0  ;;  %5157 = vmatprep.subr.bf16.mxu1 %v7235_v1  ;;  %v7318_v0 = vld [vmem:[%s8224_s3 + $0x374] ss:$48 sps:$4 sm:$0xff]   ;;  %v7321_v1 = vld [vmem:[%s8224_s3 + $0x37c] ss:$48 sps:$4 sm:$0xff]  }
 0x122   : > { %4994 = vmatpush1.bf16.msra.mxu0 %v7230_v2  ;;  %5158 = vmatpush1.bf16.msra.mxu1 %v7233_v3  ;;  %v7316_v2 = vld [vmem:[%s8224_s3 + $0x370] ss:$48 sps:$4 sm:$0xff]   ;;  %v7319_v3 = vld [vmem:[%s8224_s3 + $0x378] ss:$48 sps:$4 sm:$0xff]  }
 0x123   : > { %4995 = vmatprep.subr.bf16.mxu0 %v7238_v4  ;;  %5159 = vmatprep.subr.bf16.mxu1 %v7241_v6  ;;  %v7324_v4 = vld [vmem:[%s8224_s3 + $0x3d4] ss:$48 sps:$4 sm:$0xff]   ;;  %v7327_v6 = vld [vmem:[%s8224_s3 + $0x3dc] ss:$48 sps:$4 sm:$0xff]  }
 0x126   : > { %4996 = vmatpush1.bf16.msra.mxu0 %v7236_v7  ;;  %5160 = vmatpush1.bf16.msra.mxu1 %v7239_v8  ;;  %v7322_v7 = vld [vmem:[%s8224_s3 + $0x3d0] ss:$48 sps:$4 sm:$0xff]   ;;  %v7325_v8 = vld [vmem:[%s8224_s3 + $0x3d8] ss:$48 sps:$4 sm:$0xff]  }
 0x127   : > { %4997 = vmatprep.subr.bf16.mxu0 %v7244_v9  ;;  %5161 = vmatprep.subr.bf16.mxu1 %v7247_v11  ;;  %v7330_v9 = vld [vmem:[%s8224_s3 + $0x434] ss:$48 sps:$4 sm:$0xff]   ;;  %v7333_v11 = vld [vmem:[%s8224_s3 + $0x43c] ss:$48 sps:$4 sm:$0xff]  }
 0x12a   : > { %4998 = vmatpush1.bf16.msra.mxu0 %v7242_v12  ;;  %5162 = vmatpush1.bf16.msra.mxu1 %v7245_v14  ;;  %v7328_v12 = vld [vmem:[%s8224_s3 + $0x430] ss:$48 sps:$4 sm:$0xff]   ;;  %v7331_v14 = vld [vmem:[%s8224_s3 + $0x438] ss:$48 sps:$4 sm:$0xff]  }
 0x12b   : > { %4999 = vmatprep.subr.bf16.mxu0 %v7250_v16  ;;  %5163 = vmatprep.subr.bf16.mxu1 %v7253_v17  ;;  %v7336_v16 = vld [vmem:[%s8224_s3 + $0x494] ss:$48 sps:$4 sm:$0xff]   ;;  %v7339_v17 = vld [vmem:[%s8224_s3 + $0x49c] ss:$48 sps:$4 sm:$0xff]  }
 0x12e   : > { %5000 = vmatpush1.bf16.msra.mxu0 %v7248_v18  ;;  %5164 = vmatpush1.bf16.msra.mxu1 %v7251_v19  ;;  %v7334_v18 = vld [vmem:[%s8224_s3 + $0x490] ss:$48 sps:$4 sm:$0xff]   ;;  %v7337_v19 = vld [vmem:[%s8224_s3 + $0x498] ss:$48 sps:$4 sm:$0xff]  }
 0x12f   : > { %5001 = vmatprep.subr.bf16.mxu0 %v7256_v22  ;;  %5165 = vmatprep.subr.bf16.mxu1 %v7259_v23  ;;  %v7342_v22 = vld [vmem:[%s8224_s3 + $0x4f4] ss:$48 sps:$4 sm:$0xff]   ;;  %v7345_v23 = vld [vmem:[%s8224_s3 + $0x4fc] ss:$48 sps:$4 sm:$0xff]  }
 0x132   : > { %5002 = vmatpush1.bf16.msra.mxu0 %v7254_v13  ;;  %5166 = vmatpush1.bf16.msra.mxu1 %v7257_v25  ;;  %v7340_v13 = vld [vmem:[%s8224_s3 + $0x4f0] ss:$48 sps:$4 sm:$0xff]   ;;  %v7343_v25 = vld [vmem:[%s8224_s3 + $0x4f8] ss:$48 sps:$4 sm:$0xff]  }
 0x133   : > { %5176 = vmatprep.subr.bf16.mxu0 %v7264_v26  ;;  %5340 = vmatprep.subr.bf16.mxu1 %v7267_v27  ;;  %v7348_v26 = vld [vmem:[%s8224_s3 + $0x554] ss:$48 sps:$4 sm:$0xff]   ;;  %v7351_v27 = vld [vmem:[%s8224_s3 + $0x55c] ss:$48 sps:$4 sm:$0xff]  }
 0x135   : > { %5004 = vmatmul.mubr.bf16.vlgmr.msra.gmra.mrb[0].mxu0 %v8546_v28  ;;  %5168 = vmatmul.mubr.bf16.vlgmr.msra.gmra.mrb[0].mxu1 %v8546_v28 }
 0x136   : > { %5177 = vmatpush1.bf16.msra.mxu0 %v7262_v29  ;;  %5341 = vmatpush1.bf16.msra.mxu1 %v7265_v31  ;;  %v7346_v29 = vld [vmem:[%s8224_s3 + $0x550] ss:$48 sps:$4 sm:$0xff]   ;;  %v7349_v31 = vld [vmem:[%s8224_s3 + $0x558] ss:$48 sps:$4 sm:$0xff]  }
 0x137   : > { %5178 = vmatprep.subr.bf16.mxu0 %v7270_v32  ;;  %5342 = vmatprep.subr.bf16.mxu1 %v7273_v33  ;;  %v7354_v32 = vld [vmem:[%s8224_s3 + $0x5b4] ss:$48 sps:$4 sm:$0xff]   ;;  %v7357_v33 = vld [vmem:[%s8224_s3 + $0x5bc] ss:$48 sps:$4 sm:$0xff]  }
 0x138   : > { %5208 = vmatprep.mubr.bf16.mxu0 %v8280_v48  ;;  %5372 = vmatprep.mubr.bf16.mxu1 %v8280_v48 }
 0x13a   : > { %5179 = vmatpush1.bf16.msra.mxu0 %v7268_v34  ;;  %5343 = vmatpush1.bf16.msra.mxu1 %v7271_v35  ;;  %v7352_v34 = vld [vmem:[%s8224_s3 + $0x5b0] ss:$48 sps:$4 sm:$0xff]   ;;  %v7355_v35 = vld [vmem:[%s8224_s3 + $0x5b8] ss:$48 sps:$4 sm:$0xff]  }
 0x13b   : > { %5180 = vmatprep.subr.bf16.mxu0 %v7276_v21  ;;  %5344 = vmatprep.subr.bf16.mxu1 %v7279_v36  ;;  %v7360_v21 = vld [vmem:[%s8224_s3 + $0x614] ss:$48 sps:$4 sm:$0xff]   ;;  %v7363_v36 = vld [vmem:[%s8224_s3 + $0x61c] ss:$48 sps:$4 sm:$0xff]  }
 0x13e   : > { %5181 = vmatpush1.bf16.msra.mxu0 %v7274_v37  ;;  %5345 = vmatpush1.bf16.msra.mxu1 %v7277_v38  ;;  %v7358_v37 = vld [vmem:[%s8224_s3 + $0x610] ss:$48 sps:$4 sm:$0xff]   ;;  %v7361_v38 = vld [vmem:[%s8224_s3 + $0x618] ss:$48 sps:$4 sm:$0xff]  }
 0x13f   : > { %5182 = vmatprep.subr.bf16.mxu0 %v7282_v39  ;;  %5346 = vmatprep.subr.bf16.mxu1 %v7285_v40  ;;  %v7366_v39 = vld [vmem:[%s8224_s3 + $0x674] ss:$48 sps:$4 sm:$0xff]   ;;  %v7369_v40 = vld [vmem:[%s8224_s3 + $0x67c] ss:$48 sps:$4 sm:$0xff]  }
 0x142   : > { %5183 = vmatpush1.bf16.msra.mxu0 %v7280_v41  ;;  %5347 = vmatpush1.bf16.msra.mxu1 %v7283_v42  ;;  %v7364_v41 = vld [vmem:[%s8224_s3 + $0x670] ss:$48 sps:$4 sm:$0xff]   ;;  %v7367_v42 = vld [vmem:[%s8224_s3 + $0x678] ss:$48 sps:$4 sm:$0xff]  }
 0x143   : > { %5184 = vmatprep.subr.bf16.mxu0 %v7288_v43  ;;  %5348 = vmatprep.subr.bf16.mxu1 %v7291_v44  ;;  %v7372_v43 = vld [vmem:[%s8224_s3 + $0x6d4] ss:$48 sps:$4 sm:$0xff]   ;;  %v7375_v44 = vld [vmem:[%s8224_s3 + $0x6dc] ss:$48 sps:$4 sm:$0xff]  }
 0x146   : > { %5185 = vmatpush1.bf16.msra.mxu0 %v7286_v45  ;;  %5349 = vmatpush1.bf16.msra.mxu1 %v7289_v46  ;;  %v7370_v45 = vld [vmem:[%s8224_s3 + $0x6d0] ss:$48 sps:$4 sm:$0xff]   ;;  %v7373_v46 = vld [vmem:[%s8224_s3 + $0x6d8] ss:$48 sps:$4 sm:$0xff]  }
 0x147   : > { %5186 = vmatprep.subr.bf16.mxu0 %v7294_v47  ;;  %5350 = vmatprep.subr.bf16.mxu1 %v7297_v49  ;;  %v7378_v47 = vld [vmem:[%s8224_s3 + $0x734] ss:$48 sps:$4 sm:$0xff]   ;;  %v7381_v49 = vld [vmem:[%s8224_s3 + $0x73c] ss:$48 sps:$4 sm:$0xff]  }
 0x14a   : > { %5187 = vmatpush1.bf16.msra.mxu0 %v7292_v50  ;;  %5351 = vmatpush1.bf16.msra.mxu1 %v7295_v51  ;;  %v7376_v50 = vld [vmem:[%s8224_s3 + $0x730] ss:$48 sps:$4 sm:$0xff]   ;;  %v7379_v51 = vld [vmem:[%s8224_s3 + $0x738] ss:$48 sps:$4 sm:$0xff]  }
 0x14b   : > { %5188 = vmatprep.subr.bf16.mxu0 %v7300_v52  ;;  %5352 = vmatprep.subr.bf16.mxu1 %v7303_v53  ;;  %v7384_v52 = vld [vmem:[%s8224_s3 + $0x794] ss:$48 sps:$4 sm:$0xff]   ;;  %v7387_v53 = vld [vmem:[%s8224_s3 + $0x79c] ss:$48 sps:$4 sm:$0xff]  }
 0x14e   : > { %5189 = vmatpush1.bf16.msra.mxu0 %v7298_v54  ;;  %5353 = vmatpush1.bf16.msra.mxu1 %v7301_v55  ;;  %v7382_v54 = vld [vmem:[%s8224_s3 + $0x790] ss:$48 sps:$4 sm:$0xff]   ;;  %v7385_v55 = vld [vmem:[%s8224_s3 + $0x798] ss:$48 sps:$4 sm:$0xff]  }
 0x14f   : > { %5190 = vmatprep.subr.bf16.mxu0 %v7306_v56  ;;  %5354 = vmatprep.subr.bf16.mxu1 %v7309_v57  ;;  %v7390_v56 = vld [vmem:[%s8224_s3 + $0x7f4] ss:$48 sps:$4 sm:$0xff]   ;;  %v7393_v57 = vld [vmem:[%s8224_s3 + $0x7fc] ss:$48 sps:$4 sm:$0xff]  }
 0x152   : > { %5191 = vmatpush1.bf16.msra.mxu0 %v7304_v58  ;;  %5355 = vmatpush1.bf16.msra.mxu1 %v7307_v59  ;;  %v7388_v58 = vld [vmem:[%s8224_s3 + $0x7f0] ss:$48 sps:$4 sm:$0xff]   ;;  %v7391_v59 = vld [vmem:[%s8224_s3 + $0x7f8] ss:$48 sps:$4 sm:$0xff]  }
 0x153   : > { %5192 = vmatprep.subr.bf16.mxu0 %v7312_v60  ;;  %5356 = vmatprep.subr.bf16.mxu1 %v7315_v61  ;;  %v7396_v60 = vld [vmem:[%s8224_s3 + $0x854] ss:$48 sps:$4 sm:$0xff]   ;;  %v7399_v61 = vld [vmem:[%s8224_s3 + $0x85c] ss:$48 sps:$4 sm:$0xff]  }
 0x156   : > { %5193 = vmatpush1.bf16.msra.mxu0 %v7310_v62  ;;  %5357 = vmatpush1.bf16.msra.mxu1 %v7313_v63  ;;  %v7394_v62 = vld [vmem:[%s8224_s3 + $0x850] ss:$48 sps:$4 sm:$0xff]   ;;  %v7397_v63 = vld [vmem:[%s8224_s3 + $0x858] ss:$48 sps:$4 sm:$0xff]  }
 0x157   : > { %5194 = vmatprep.subr.bf16.mxu0 %v7318_v0  ;;  %5358 = vmatprep.subr.bf16.mxu1 %v7321_v1  ;;  %v7402_v0 = vld [vmem:[%s8224_s3 + $0x8b4] ss:$48 sps:$4 sm:$0xff]   ;;  %v7405_v1 = vld [vmem:[%s8224_s3 + $0x8bc] ss:$48 sps:$4 sm:$0xff]  }
 0x15a   : > { %5195 = vmatpush1.bf16.msra.mxu0 %v7316_v2  ;;  %5359 = vmatpush1.bf16.msra.mxu1 %v7319_v3  ;;  %v7400_v2 = vld [vmem:[%s8224_s3 + $0x8b0] ss:$48 sps:$4 sm:$0xff]   ;;  %v7403_v3 = vld [vmem:[%s8224_s3 + $0x8b8] ss:$48 sps:$4 sm:$0xff]  }
 0x15b   : > { %5196 = vmatprep.subr.bf16.mxu0 %v7324_v4  ;;  %5360 = vmatprep.subr.bf16.mxu1 %v7327_v6  ;;  %v7408_v4 = vld [vmem:[%s8224_s3 + $0x914] ss:$48 sps:$4 sm:$0xff]   ;;  %v7411_v6 = vld [vmem:[%s8224_s3 + $0x91c] ss:$48 sps:$4 sm:$0xff]  }
 0x15e   : > { %5197 = vmatpush1.bf16.msra.mxu0 %v7322_v7  ;;  %5361 = vmatpush1.bf16.msra.mxu1 %v7325_v8  ;;  %v7406_v7 = vld [vmem:[%s8224_s3 + $0x910] ss:$48 sps:$4 sm:$0xff]   ;;  %v7409_v8 = vld [vmem:[%s8224_s3 + $0x918] ss:$48 sps:$4 sm:$0xff]  }
 0x15f   : > { %5198 = vmatprep.subr.bf16.mxu0 %v7330_v9  ;;  %5362 = vmatprep.subr.bf16.mxu1 %v7333_v11  ;;  %v7414_v9 = vld [vmem:[%s8224_s3 + $0x974] ss:$48 sps:$4 sm:$0xff]   ;;  %v7417_v11 = vld [vmem:[%s8224_s3 + $0x97c] ss:$48 sps:$4 sm:$0xff]  }
 0x162   : > { %5199 = vmatpush1.bf16.msra.mxu0 %v7328_v12  ;;  %5363 = vmatpush1.bf16.msra.mxu1 %v7331_v14  ;;  %v7412_v12 = vld [vmem:[%s8224_s3 + $0x970] ss:$48 sps:$4 sm:$0xff]   ;;  %v7415_v14 = vld [vmem:[%s8224_s3 + $0x978] ss:$48 sps:$4 sm:$0xff]  }
 0x163   : > { %5200 = vmatprep.subr.bf16.mxu0 %v7336_v16  ;;  %5364 = vmatprep.subr.bf16.mxu1 %v7339_v17  ;;  %v7420_v16 = vld [vmem:[%s8224_s3 + $0x9d4] ss:$48 sps:$4 sm:$0xff]   ;;  %v7423_v17 = vld [vmem:[%s8224_s3 + $0x9dc] ss:$48 sps:$4 sm:$0xff]  }
 0x166   : > { %5201 = vmatpush1.bf16.msra.mxu0 %v7334_v18  ;;  %5365 = vmatpush1.bf16.msra.mxu1 %v7337_v19  ;;  %v7418_v18 = vld [vmem:[%s8224_s3 + $0x9d0] ss:$48 sps:$4 sm:$0xff]   ;;  %v7421_v19 = vld [vmem:[%s8224_s3 + $0x9d8] ss:$48 sps:$4 sm:$0xff]  }
 0x167   : > { %5202 = vmatprep.subr.bf16.mxu0 %v7342_v22  ;;  %5366 = vmatprep.subr.bf16.mxu1 %v7345_v23  ;;  %v7426_v22 = vld [vmem:[%s8224_s3 + $0xa34] ss:$48 sps:$4 sm:$0xff]   ;;  %v7429_v23 = vld [vmem:[%s8224_s3 + $0xa3c] ss:$48 sps:$4 sm:$0xff]  }
 0x16a   : > { %5203 = vmatpush1.bf16.msra.mxu0 %v7340_v13  ;;  %5367 = vmatpush1.bf16.msra.mxu1 %v7343_v25  ;;  %v7424_v13 = vld [vmem:[%s8224_s3 + $0xa30] ss:$48 sps:$4 sm:$0xff]   ;;  %v7427_v25 = vld [vmem:[%s8224_s3 + $0xa38] ss:$48 sps:$4 sm:$0xff]  }
 0x16b   : > { %5204 = vmatprep.subr.bf16.mxu0 %v7348_v26  ;;  %5368 = vmatprep.subr.bf16.mxu1 %v7351_v27  ;;  %v7432_v26 = vld [vmem:[%s8224_s3 + $0xa94] ss:$48 sps:$4 sm:$0xff]   ;;  %v7435_v27 = vld [vmem:[%s8224_s3 + $0xa9c] ss:$48 sps:$4 sm:$0xff]  }
 0x16e   : > { %5205 = vmatpush1.bf16.msra.mxu0 %v7346_v29  ;;  %5369 = vmatpush1.bf16.msra.mxu1 %v7349_v31  ;;  %v7430_v29 = vld [vmem:[%s8224_s3 + $0xa90] ss:$48 sps:$4 sm:$0xff]   ;;  %v7433_v31 = vld [vmem:[%s8224_s3 + $0xa98] ss:$48 sps:$4 sm:$0xff]  }
 0x16f   : > { %5206 = vmatprep.subr.bf16.mxu0 %v7354_v32  ;;  %5370 = vmatprep.subr.bf16.mxu1 %v7357_v33  ;;  %v7438_v32 = vld [vmem:[%s8224_s3 + $0xaf4] ss:$48 sps:$4 sm:$0xff]   ;;  %v7441_v33 = vld [vmem:[%s8224_s3 + $0xafc] ss:$48 sps:$4 sm:$0xff]  }
 0x172   : > { %5207 = vmatpush1.bf16.msra.mxu0 %v7352_v34  ;;  %5371 = vmatpush1.bf16.msra.mxu1 %v7355_v35  ;;  %v7436_v34 = vld [vmem:[%s8224_s3 + $0xaf0] ss:$48 sps:$4 sm:$0xff]   ;;  %v7439_v35 = vld [vmem:[%s8224_s3 + $0xaf8] ss:$48 sps:$4 sm:$0xff]  }
 0x173   : > { %5217 = vmatprep.subr.bf16.mxu0 %v7360_v21  ;;  %5381 = vmatprep.subr.bf16.mxu1 %v7363_v36  ;;  %v7444_v21 = vld [vmem:[%s8224_s3 + $0xb54] ss:$48 sps:$4 sm:$0xff]   ;;  %v7447_v36 = vld [vmem:[%s8224_s3 + $0xb5c] ss:$48 sps:$4 sm:$0xff]  }
 0x175   : > { %5209 = vmatmul.mubr.bf16.vlgmr.msra.gmra.mrb[4].mxu0 %v8304_v5  ;;  %5373 = vmatmul.mubr.bf16.vlgmr.msra.gmra.mrb[4].mxu1 %v8304_v5 }
 0x176   : > { %5218 = vmatpush1.bf16.msra.mxu0 %v7358_v37  ;;  %5382 = vmatpush1.bf16.msra.mxu1 %v7361_v38  ;;  %v7442_v37 = vld [vmem:[%s8224_s3 + $0xb50] ss:$48 sps:$4 sm:$0xff]   ;;  %v7445_v38 = vld [vmem:[%s8224_s3 + $0xb58] ss:$48 sps:$4 sm:$0xff]  }
 0x177   : > { %5219 = vmatprep.subr.bf16.mxu0 %v7366_v39  ;;  %5383 = vmatprep.subr.bf16.mxu1 %v7369_v40  ;;  %v7450_v39 = vld [vmem:[%s8224_s3 + $0xbb4] ss:$48 sps:$4 sm:$0xff]   ;;  %v7453_v40 = vld [vmem:[%s8224_s3 + $0xbbc] ss:$48 sps:$4 sm:$0xff]  }
 0x178   : > { %5249 = vmatprep.mubr.bf16.mxu0 %v8338_v30  ;;  %5413 = vmatprep.mubr.bf16.mxu1 %v8338_v30 }
 0x17a   : > { %5220 = vmatpush1.bf16.msra.mxu0 %v7364_v41  ;;  %5384 = vmatpush1.bf16.msra.mxu1 %v7367_v42  ;;  %v7448_v41 = vld [vmem:[%s8224_s3 + $0xbb0] ss:$48 sps:$4 sm:$0xff]   ;;  %v7451_v42 = vld [vmem:[%s8224_s3 + $0xbb8] ss:$48 sps:$4 sm:$0xff]  }
 0x17b   : > { %5221 = vmatprep.subr.bf16.mxu0 %v7372_v43  ;;  %5385 = vmatprep.subr.bf16.mxu1 %v7375_v44  ;;  %v7456_v43 = vld [vmem:[%s8224_s3 + $0xc14] ss:$48 sps:$4 sm:$0xff]   ;;  %v7459_v44 = vld [vmem:[%s8224_s3 + $0xc1c] ss:$48 sps:$4 sm:$0xff]  }
 0x17e   : > { %5222 = vmatpush1.bf16.msra.mxu0 %v7370_v45  ;;  %5386 = vmatpush1.bf16.msra.mxu1 %v7373_v46  ;;  %v7454_v45 = vld [vmem:[%s8224_s3 + $0xc10] ss:$48 sps:$4 sm:$0xff]   ;;  %v7457_v46 = vld [vmem:[%s8224_s3 + $0xc18] ss:$48 sps:$4 sm:$0xff]  }
 0x17f   : > { %5223 = vmatprep.subr.bf16.mxu0 %v7378_v47  ;;  %5387 = vmatprep.subr.bf16.mxu1 %v7381_v49  ;;  %v7462_v47 = vld [vmem:[%s8224_s3 + $0xc74] ss:$48 sps:$4 sm:$0xff]   ;;  %v7465_v49 = vld [vmem:[%s8224_s3 + $0xc7c] ss:$48 sps:$4 sm:$0xff]  }
 0x182   : > { %5224 = vmatpush1.bf16.msra.mxu0 %v7376_v50  ;;  %5388 = vmatpush1.bf16.msra.mxu1 %v7379_v51  ;;  %v7460_v50 = vld [vmem:[%s8224_s3 + $0xc70] ss:$48 sps:$4 sm:$0xff]   ;;  %v7463_v51 = vld [vmem:[%s8224_s3 + $0xc78] ss:$48 sps:$4 sm:$0xff]  }
 0x183   : > { %5225 = vmatprep.subr.bf16.mxu0 %v7384_v52  ;;  %5389 = vmatprep.subr.bf16.mxu1 %v7387_v53  ;;  %v7468_v52 = vld [vmem:[%s8224_s3 + $0xcd4] ss:$48 sps:$4 sm:$0xff]   ;;  %v7471_v53 = vld [vmem:[%s8224_s3 + $0xcdc] ss:$48 sps:$4 sm:$0xff]  }
 0x186   : > { %5226 = vmatpush1.bf16.msra.mxu0 %v7382_v54  ;;  %5390 = vmatpush1.bf16.msra.mxu1 %v7385_v55  ;;  %v7466_v54 = vld [vmem:[%s8224_s3 + $0xcd0] ss:$48 sps:$4 sm:$0xff]   ;;  %v7469_v55 = vld [vmem:[%s8224_s3 + $0xcd8] ss:$48 sps:$4 sm:$0xff]  }
 0x187   : > { %5227 = vmatprep.subr.bf16.mxu0 %v7390_v56  ;;  %5391 = vmatprep.subr.bf16.mxu1 %v7393_v57  ;;  %v7474_v56 = vld [vmem:[%s8224_s3 + $0xd34] ss:$48 sps:$4 sm:$0xff]   ;;  %v7477_v57 = vld [vmem:[%s8224_s3 + $0xd3c] ss:$48 sps:$4 sm:$0xff]  }
 0x18a   : > { %5228 = vmatpush1.bf16.msra.mxu0 %v7388_v58  ;;  %5392 = vmatpush1.bf16.msra.mxu1 %v7391_v59  ;;  %v7472_v58 = vld [vmem:[%s8224_s3 + $0xd30] ss:$48 sps:$4 sm:$0xff]   ;;  %v7475_v59 = vld [vmem:[%s8224_s3 + $0xd38] ss:$48 sps:$4 sm:$0xff]  }
 0x18b   : > { %5229 = vmatprep.subr.bf16.mxu0 %v7396_v60  ;;  %5393 = vmatprep.subr.bf16.mxu1 %v7399_v61  ;;  %v7480_v60 = vld [vmem:[%s8224_s3 + $0xd94] ss:$48 sps:$4 sm:$0xff]   ;;  %v7483_v61 = vld [vmem:[%s8224_s3 + $0xd9c] ss:$48 sps:$4 sm:$0xff]  }
 0x18e   : > { %5230 = vmatpush1.bf16.msra.mxu0 %v7394_v62  ;;  %5394 = vmatpush1.bf16.msra.mxu1 %v7397_v63  ;;  %v7478_v62 = vld [vmem:[%s8224_s3 + $0xd90] ss:$48 sps:$4 sm:$0xff]   ;;  %v7481_v63 = vld [vmem:[%s8224_s3 + $0xd98] ss:$48 sps:$4 sm:$0xff]  }
 0x18f   : > { %5231 = vmatprep.subr.bf16.mxu0 %v7402_v0  ;;  %5395 = vmatprep.subr.bf16.mxu1 %v7405_v1  ;;  %v7486_v0 = vld [vmem:[%s8224_s3 + $0xdf4] ss:$48 sps:$4 sm:$0xff]   ;;  %v7489_v1 = vld [vmem:[%s8224_s3 + $0xdfc] ss:$48 sps:$4 sm:$0xff]  }
 0x192   : > { %5232 = vmatpush1.bf16.msra.mxu0 %v7400_v2  ;;  %5396 = vmatpush1.bf16.msra.mxu1 %v7403_v3  ;;  %v7484_v2 = vld [vmem:[%s8224_s3 + $0xdf0] ss:$48 sps:$4 sm:$0xff]   ;;  %v7487_v3 = vld [vmem:[%s8224_s3 + $0xdf8] ss:$48 sps:$4 sm:$0xff]  }
 0x193   : > { %5233 = vmatprep.subr.bf16.mxu0 %v7408_v4  ;;  %5397 = vmatprep.subr.bf16.mxu1 %v7411_v6  ;;  %v7492_v4 = vld [vmem:[%s8224_s3 + $0xe54] ss:$48 sps:$4 sm:$0xff]   ;;  %v7495_v6 = vld [vmem:[%s8224_s3 + $0xe5c] ss:$48 sps:$4 sm:$0xff]  }
 0x196   : > { %5234 = vmatpush1.bf16.msra.mxu0 %v7406_v7  ;;  %5398 = vmatpush1.bf16.msra.mxu1 %v7409_v8  ;;  %v7490_v7 = vld [vmem:[%s8224_s3 + $0xe50] ss:$48 sps:$4 sm:$0xff]   ;;  %v7493_v8 = vld [vmem:[%s8224_s3 + $0xe58] ss:$48 sps:$4 sm:$0xff]  }
 0x197   : > { %5235 = vmatprep.subr.bf16.mxu0 %v7414_v9  ;;  %5399 = vmatprep.subr.bf16.mxu1 %v7417_v11  ;;  %v7498_v9 = vld [vmem:[%s8224_s3 + $0xeb4] ss:$48 sps:$4 sm:$0xff]   ;;  %v7501_v11 = vld [vmem:[%s8224_s3 + $0xebc] ss:$48 sps:$4 sm:$0xff]  }
 0x19a   : > { %5236 = vmatpush1.bf16.msra.mxu0 %v7412_v12  ;;  %5400 = vmatpush1.bf16.msra.mxu1 %v7415_v14  ;;  %v7496_v12 = vld [vmem:[%s8224_s3 + $0xeb0] ss:$48 sps:$4 sm:$0xff]   ;;  %v7499_v14 = vld [vmem:[%s8224_s3 + $0xeb8] ss:$48 sps:$4 sm:$0xff]  }
 0x19b   : > { %5237 = vmatprep.subr.bf16.mxu0 %v7420_v16  ;;  %5401 = vmatprep.subr.bf16.mxu1 %v7423_v17  ;;  %v7504_v16 = vld [vmem:[%s8224_s3 + $0xf14] ss:$48 sps:$4 sm:$0xff]   ;;  %v7507_v17 = vld [vmem:[%s8224_s3 + $0xf1c] ss:$48 sps:$4 sm:$0xff]  }
 0x19e   : > { %5238 = vmatpush1.bf16.msra.mxu0 %v7418_v18  ;;  %5402 = vmatpush1.bf16.msra.mxu1 %v7421_v19  ;;  %v7502_v18 = vld [vmem:[%s8224_s3 + $0xf10] ss:$48 sps:$4 sm:$0xff]   ;;  %v7505_v19 = vld [vmem:[%s8224_s3 + $0xf18] ss:$48 sps:$4 sm:$0xff]  }
 0x19f   : > { %5239 = vmatprep.subr.bf16.mxu0 %v7426_v22  ;;  %5403 = vmatprep.subr.bf16.mxu1 %v7429_v23  ;;  %v7510_v22 = vld [vmem:[%s8224_s3 + $0xf74] ss:$48 sps:$4 sm:$0xff]   ;;  %v7513_v23 = vld [vmem:[%s8224_s3 + $0xf7c] ss:$48 sps:$4 sm:$0xff]  }
 0x1a2   : > { %5240 = vmatpush1.bf16.msra.mxu0 %v7424_v13  ;;  %5404 = vmatpush1.bf16.msra.mxu1 %v7427_v25  ;;  %v7508_v13 = vld [vmem:[%s8224_s3 + $0xf70] ss:$48 sps:$4 sm:$0xff]   ;;  %v7511_v25 = vld [vmem:[%s8224_s3 + $0xf78] ss:$48 sps:$4 sm:$0xff]  }
 0x1a3   : > { %5241 = vmatprep.subr.bf16.mxu0 %v7432_v26  ;;  %5405 = vmatprep.subr.bf16.mxu1 %v7435_v27  ;;  %v7516_v26 = vld [vmem:[%s8224_s3 + $0xfd4] ss:$48 sps:$4 sm:$0xff]   ;;  %v7519_v27 = vld [vmem:[%s8224_s3 + $0xfdc] ss:$48 sps:$4 sm:$0xff]  }
 0x1a6   : > { %5242 = vmatpush1.bf16.msra.mxu0 %v7430_v29  ;;  %5406 = vmatpush1.bf16.msra.mxu1 %v7433_v31  ;;  %v7514_v29 = vld [vmem:[%s8224_s3 + $0xfd0] ss:$48 sps:$4 sm:$0xff]   ;;  %v7517_v31 = vld [vmem:[%s8224_s3 + $0xfd8] ss:$48 sps:$4 sm:$0xff]  }
 0x1a7   : > { %5243 = vmatprep.subr.bf16.mxu0 %v7438_v32  ;;  %5407 = vmatprep.subr.bf16.mxu1 %v7441_v33  ;;  %v7522_v32 = vld [vmem:[%s8224_s3 + $0x1034] ss:$48 sps:$4 sm:$0xff]   ;;  %v7525_v33 = vld [vmem:[%s8224_s3 + $0x103c] ss:$48 sps:$4 sm:$0xff]  }
 0x1aa   : > { %5244 = vmatpush1.bf16.msra.mxu0 %v7436_v34  ;;  %5408 = vmatpush1.bf16.msra.mxu1 %v7439_v35  ;;  %v7520_v34 = vld [vmem:[%s8224_s3 + $0x1030] ss:$48 sps:$4 sm:$0xff]   ;;  %v7523_v35 = vld [vmem:[%s8224_s3 + $0x1038] ss:$48 sps:$4 sm:$0xff]  }
 0x1ab   : > { %5245 = vmatprep.subr.bf16.mxu0 %v7444_v21  ;;  %5409 = vmatprep.subr.bf16.mxu1 %v7447_v36  ;;  %v7528_v21 = vld [vmem:[%s8224_s3 + $0x1094] ss:$48 sps:$4 sm:$0xff]   ;;  %v7531_v36 = vld [vmem:[%s8224_s3 + $0x109c] ss:$48 sps:$4 sm:$0xff]  }
 0x1ae   : > { %5246 = vmatpush1.bf16.msra.mxu0 %v7442_v37  ;;  %5410 = vmatpush1.bf16.msra.mxu1 %v7445_v38  ;;  %v7526_v37 = vld [vmem:[%s8224_s3 + $0x1090] ss:$48 sps:$4 sm:$0xff]   ;;  %v7529_v38 = vld [vmem:[%s8224_s3 + $0x1098] ss:$48 sps:$4 sm:$0xff]  }
 0x1af   : > { %5247 = vmatprep.subr.bf16.mxu0 %v7450_v39  ;;  %5411 = vmatprep.subr.bf16.mxu1 %v7453_v40  ;;  %v7534_v39 = vld [vmem:[%s8224_s3 + $0x10f4] ss:$48 sps:$4 sm:$0xff]   ;;  %v7537_v40 = vld [vmem:[%s8224_s3 + $0x10fc] ss:$48 sps:$4 sm:$0xff]  }
 0x1b2   : > { %5248 = vmatpush1.bf16.msra.mxu0 %v7448_v41  ;;  %5412 = vmatpush1.bf16.msra.mxu1 %v7451_v42  ;;  %v7532_v41 = vld [vmem:[%s8224_s3 + $0x10f0] ss:$48 sps:$4 sm:$0xff]   ;;  %v7535_v42 = vld [vmem:[%s8224_s3 + $0x10f8] ss:$48 sps:$4 sm:$0xff]  }
 0x1b3   : > { %5258 = vmatprep.subr.bf16.mxu0 %v7456_v43  ;;  %5422 = vmatprep.subr.bf16.mxu1 %v7459_v44  ;;  %v7540_v43 = vld [vmem:[%s8224_s3 + $0x1154] ss:$48 sps:$4 sm:$0xff]   ;;  %v7543_v44 = vld [vmem:[%s8224_s3 + $0x115c] ss:$48 sps:$4 sm:$0xff]  }
 0x1b5   : > { %5250 = vmatmul.mubr.bf16.vlgmr.msra.gmra.mrb[4].mxu0 %v8385_v10  ;;  %5414 = vmatmul.mubr.bf16.vlgmr.msra.gmra.mrb[4].mxu1 %v8385_v10 }
 0x1b6   : > { %5259 = vmatpush1.bf16.msra.mxu0 %v7454_v45  ;;  %5423 = vmatpush1.bf16.msra.mxu1 %v7457_v46  ;;  %v7538_v45 = vld [vmem:[%s8224_s3 + $0x1150] ss:$48 sps:$4 sm:$0xff]   ;;  %v7541_v46 = vld [vmem:[%s8224_s3 + $0x1158] ss:$48 sps:$4 sm:$0xff]  }
 0x1b7   : > { %5260 = vmatprep.subr.bf16.mxu0 %v7462_v47  ;;  %5424 = vmatprep.subr.bf16.mxu1 %v7465_v49  ;;  %v7546_v47 = vld [vmem:[%s8224_s3 + $0x11b4] ss:$48 sps:$4 sm:$0xff]   ;;  %v7549_v49 = vld [vmem:[%s8224_s3 + $0x11bc] ss:$48 sps:$4 sm:$0xff]  }
 0x1b8   : > { %5290 = vmatprep.mubr.bf16.mxu0 %v8397_v15  ;;  %5454 = vmatprep.mubr.bf16.mxu1 %v8397_v15 }
 0x1ba   : > { %5261 = vmatpush1.bf16.msra.mxu0 %v7460_v50  ;;  %5425 = vmatpush1.bf16.msra.mxu1 %v7463_v51  ;;  %v7544_v50 = vld [vmem:[%s8224_s3 + $0x11b0] ss:$48 sps:$4 sm:$0xff]   ;;  %v7547_v51 = vld [vmem:[%s8224_s3 + $0x11b8] ss:$48 sps:$4 sm:$0xff]  }
 0x1bb   : > { %5262 = vmatprep.subr.bf16.mxu0 %v7468_v52  ;;  %5426 = vmatprep.subr.bf16.mxu1 %v7471_v53  ;;  %v7552_v52 = vld [vmem:[%s8224_s3 + $0x1214] ss:$48 sps:$4 sm:$0xff]   ;;  %v7555_v53 = vld [vmem:[%s8224_s3 + $0x121c] ss:$48 sps:$4 sm:$0xff]  }
 0x1be   : > { %5263 = vmatpush1.bf16.msra.mxu0 %v7466_v54  ;;  %5427 = vmatpush1.bf16.msra.mxu1 %v7469_v55  ;;  %v7550_v54 = vld [vmem:[%s8224_s3 + $0x1210] ss:$48 sps:$4 sm:$0xff]   ;;  %v7553_v55 = vld [vmem:[%s8224_s3 + $0x1218] ss:$48 sps:$4 sm:$0xff]  }
 0x1bf   : > { %5264 = vmatprep.subr.bf16.mxu0 %v7474_v56  ;;  %5428 = vmatprep.subr.bf16.mxu1 %v7477_v57  ;;  %v7558_v56 = vld [vmem:[%s8224_s3 + $0x1274] ss:$48 sps:$4 sm:$0xff]   ;;  %v7561_v57 = vld [vmem:[%s8224_s3 + $0x127c] ss:$48 sps:$4 sm:$0xff]  }
 0x1c2   : > { %5265 = vmatpush1.bf16.msra.mxu0 %v7472_v58  ;;  %5429 = vmatpush1.bf16.msra.mxu1 %v7475_v59  ;;  %v7556_v58 = vld [vmem:[%s8224_s3 + $0x1270] ss:$48 sps:$4 sm:$0xff]   ;;  %v7559_v59 = vld [vmem:[%s8224_s3 + $0x1278] ss:$48 sps:$4 sm:$0xff]  }
 0x1c3   : > { %5266 = vmatprep.subr.bf16.mxu0 %v7480_v60  ;;  %5430 = vmatprep.subr.bf16.mxu1 %v7483_v61  ;;  %v7564_v60 = vld [vmem:[%s8224_s3 + $0x12d4] ss:$48 sps:$4 sm:$0xff]   ;;  %v7567_v61 = vld [vmem:[%s8224_s3 + $0x12dc] ss:$48 sps:$4 sm:$0xff]  }
 0x1c6   : > { %5267 = vmatpush1.bf16.msra.mxu0 %v7478_v62  ;;  %5431 = vmatpush1.bf16.msra.mxu1 %v7481_v63  ;;  %v7562_v62 = vld [vmem:[%s8224_s3 + $0x12d0] ss:$48 sps:$4 sm:$0xff]   ;;  %v7565_v63 = vld [vmem:[%s8224_s3 + $0x12d8] ss:$48 sps:$4 sm:$0xff]  }
 0x1c7   : > { %5268 = vmatprep.subr.bf16.mxu0 %v7486_v0  ;;  %5432 = vmatprep.subr.bf16.mxu1 %v7489_v1  ;;  %v7570_v0 = vld [vmem:[%s8224_s3 + $0x1334] ss:$48 sps:$4 sm:$0xff]   ;;  %v7573_v1 = vld [vmem:[%s8224_s3 + $0x133c] ss:$48 sps:$4 sm:$0xff]  }
 0x1ca   : > { %5269 = vmatpush1.bf16.msra.mxu0 %v7484_v2  ;;  %5433 = vmatpush1.bf16.msra.mxu1 %v7487_v3  ;;  %v7568_v2 = vld [vmem:[%s8224_s3 + $0x1330] ss:$48 sps:$4 sm:$0xff]   ;;  %v7571_v3 = vld [vmem:[%s8224_s3 + $0x1338] ss:$48 sps:$4 sm:$0xff]  }
 0x1cb   : > { %5270 = vmatprep.subr.bf16.mxu0 %v7492_v4  ;;  %5434 = vmatprep.subr.bf16.mxu1 %v7495_v6  ;;  %v7576_v4 = vld [vmem:[%s8224_s3 + $0x1394] ss:$48 sps:$4 sm:$0xff]   ;;  %v7579_v6 = vld [vmem:[%s8224_s3 + $0x139c] ss:$48 sps:$4 sm:$0xff]  }
 0x1ce   : > { %5271 = vmatpush1.bf16.msra.mxu0 %v7490_v7  ;;  %5435 = vmatpush1.bf16.msra.mxu1 %v7493_v8  ;;  %v7574_v7 = vld [vmem:[%s8224_s3 + $0x1390] ss:$48 sps:$4 sm:$0xff]   ;;  %v7577_v8 = vld [vmem:[%s8224_s3 + $0x1398] ss:$48 sps:$4 sm:$0xff]  }
 0x1cf   : > { %5272 = vmatprep.subr.bf16.mxu0 %v7498_v9  ;;  %5436 = vmatprep.subr.bf16.mxu1 %v7501_v11  ;;  %v7582_v9 = vld [vmem:[%s8224_s3 + $0x13f4] ss:$48 sps:$4 sm:$0xff]   ;;  %v7585_v11 = vld [vmem:[%s8224_s3 + $0x13fc] ss:$48 sps:$4 sm:$0xff]  }
 0x1d2   : > { %5273 = vmatpush1.bf16.msra.mxu0 %v7496_v12  ;;  %5437 = vmatpush1.bf16.msra.mxu1 %v7499_v14  ;;  %v7580_v12 = vld [vmem:[%s8224_s3 + $0x13f0] ss:$48 sps:$4 sm:$0xff]   ;;  %v7583_v14 = vld [vmem:[%s8224_s3 + $0x13f8] ss:$48 sps:$4 sm:$0xff]  }
 0x1d3   : > { %5274 = vmatprep.subr.bf16.mxu0 %v7504_v16  ;;  %5438 = vmatprep.subr.bf16.mxu1 %v7507_v17  ;;  %v7588_v16 = vld [vmem:[%s8224_s3 + $0x1454] ss:$48 sps:$4 sm:$0xff]   ;;  %v7591_v17 = vld [vmem:[%s8224_s3 + $0x145c] ss:$48 sps:$4 sm:$0xff]  }
 0x1d6   : > { %5275 = vmatpush1.bf16.msra.mxu0 %v7502_v18  ;;  %5439 = vmatpush1.bf16.msra.mxu1 %v7505_v19 }
 0x1d7   : > { %5276 = vmatprep.subr.bf16.mxu0 %v7510_v22  ;;  %5440 = vmatprep.subr.bf16.mxu1 %v7513_v23 }
 0x1da   : > { %5277 = vmatpush1.bf16.msra.mxu0 %v7508_v13  ;;  %5441 = vmatpush1.bf16.msra.mxu1 %v7511_v25 }
 0x1db   : > { %5278 = vmatprep.subr.bf16.mxu0 %v7516_v26  ;;  %5442 = vmatprep.subr.bf16.mxu1 %v7519_v27  ;;  %v7586_v26 = vld [vmem:[%s8224_s3 + $0x1450] ss:$48 sps:$4 sm:$0xff]   ;;  %v7589_v27 = vld [vmem:[%s8224_s3 + $0x1458] ss:$48 sps:$4 sm:$0xff]  }
 0x1de   : > { %5279 = vmatpush1.bf16.msra.mxu0 %v7514_v29  ;;  %5443 = vmatpush1.bf16.msra.mxu1 %v7517_v31 }
 0x1df   : > { %5280 = vmatprep.subr.bf16.mxu0 %v7522_v32  ;;  %5444 = vmatprep.subr.bf16.mxu1 %v7525_v33  ;;  %v7594_v32 = vld [vmem:[%s8224_s3 + $0x14b4] ss:$48 sps:$4 sm:$0xff]   ;;  %v7597_v33 = vld [vmem:[%s8224_s3 + $0x14bc] ss:$48 sps:$4 sm:$0xff]  }
 0x1e2   : > { %5281 = vmatpush1.bf16.msra.mxu0 %v7520_v34  ;;  %5445 = vmatpush1.bf16.msra.mxu1 %v7523_v35  ;;  %v7592_v34 = vld [vmem:[%s8224_s3 + $0x14b0] ss:$48 sps:$4 sm:$0xff]   ;;  %v7595_v35 = vld [vmem:[%s8224_s3 + $0x14b8] ss:$48 sps:$4 sm:$0xff]  }
 0x1e3   : > { %5282 = vmatprep.subr.bf16.mxu0 %v7528_v21  ;;  %5446 = vmatprep.subr.bf16.mxu1 %v7531_v36  ;;  %v7600_v21 = vld [vmem:[%s8224_s3 + $0x1514] ss:$48 sps:$4 sm:$0xff]   ;;  %v7603_v36 = vld [vmem:[%s8224_s3 + $0x151c] ss:$48 sps:$4 sm:$0xff]  }
 0x1e6   : > { %5283 = vmatpush1.bf16.msra.mxu0 %v7526_v37  ;;  %5447 = vmatpush1.bf16.msra.mxu1 %v7529_v38  ;;  %v7598_v37 = vld [vmem:[%s8224_s3 + $0x1510] ss:$48 sps:$4 sm:$0xff]   ;;  %v7601_v38 = vld [vmem:[%s8224_s3 + $0x1518] ss:$48 sps:$4 sm:$0xff]  }
 0x1e7   : > { %5284 = vmatprep.subr.bf16.mxu0 %v7534_v39  ;;  %5448 = vmatprep.subr.bf16.mxu1 %v7537_v40  ;;  %v7606_v39 = vld [vmem:[%s8224_s3 + $0x1574] ss:$48 sps:$4 sm:$0xff]   ;;  %v7609_v40 = vld [vmem:[%s8224_s3 + $0x157c] ss:$48 sps:$4 sm:$0xff]  }
 0x1ea   : > { %5285 = vmatpush1.bf16.msra.mxu0 %v7532_v41  ;;  %5449 = vmatpush1.bf16.msra.mxu1 %v7535_v42  ;;  %v7604_v41 = vld [vmem:[%s8224_s3 + $0x1570] ss:$48 sps:$4 sm:$0xff]   ;;  %v7607_v42 = vld [vmem:[%s8224_s3 + $0x1578] ss:$48 sps:$4 sm:$0xff]  }
 0x1eb   : > { %5286 = vmatprep.subr.bf16.mxu0 %v7540_v43  ;;  %5450 = vmatprep.subr.bf16.mxu1 %v7543_v44  ;;  %v7612_v43 = vld [vmem:[%s8224_s3 + $0x15d4] ss:$48 sps:$4 sm:$0xff]   ;;  %v7615_v44 = vld [vmem:[%s8224_s3 + $0x15dc] ss:$48 sps:$4 sm:$0xff]  }
 0x1ee   : > { %5287 = vmatpush1.bf16.msra.mxu0 %v7538_v45  ;;  %5451 = vmatpush1.bf16.msra.mxu1 %v7541_v46  ;;  %v7610_v45 = vld [vmem:[%s8224_s3 + $0x15d0] ss:$48 sps:$4 sm:$0xff]   ;;  %v7613_v46 = vld [vmem:[%s8224_s3 + $0x15d8] ss:$48 sps:$4 sm:$0xff]  }
 0x1ef   : > { %5288 = vmatprep.subr.bf16.mxu0 %v7546_v47  ;;  %5452 = vmatprep.subr.bf16.mxu1 %v7549_v49  ;;  %v7618_v47 = vld [vmem:[%s8224_s3 + $0x1634] ss:$48 sps:$4 sm:$0xff]   ;;  %v7621_v49 = vld [vmem:[%s8224_s3 + $0x163c] ss:$48 sps:$4 sm:$0xff]  }
 0x1f2   : > { %5289 = vmatpush1.bf16.msra.mxu0 %v7544_v50  ;;  %5453 = vmatpush1.bf16.msra.mxu1 %v7547_v51  ;;  %v7616_v50 = vld [vmem:[%s8224_s3 + $0x1630] ss:$48 sps:$4 sm:$0xff]   ;;  %v7619_v51 = vld [vmem:[%s8224_s3 + $0x1638] ss:$48 sps:$4 sm:$0xff]  }
 0x1f3   : > { %5299 = vmatprep.subr.bf16.mxu0 %v7552_v52  ;;  %5463 = vmatprep.subr.bf16.mxu1 %v7555_v53  ;;  %v7624_v52 = vld [vmem:[%s8224_s3 + $0x1694] ss:$48 sps:$4 sm:$0xff]   ;;  %v7627_v53 = vld [vmem:[%s8224_s3 + $0x169c] ss:$48 sps:$4 sm:$0xff]  }
 0x1f5   : > { %5291 = vmatmul.mubr.bf16.vlgmr.msra.gmra.mrb[4].mxu0 %v8467_v20  ;;  %5455 = vmatmul.mubr.bf16.vlgmr.msra.gmra.mrb[4].mxu1 %v8467_v20 }
 0x1f6   : > { %5300 = vmatpush1.bf16.msra.mxu0 %v7550_v54  ;;  %5464 = vmatpush1.bf16.msra.mxu1 %v7553_v55  ;;  %v7622_v54 = vld [vmem:[%s8224_s3 + $0x1690] ss:$48 sps:$4 sm:$0xff]   ;;  %v7625_v55 = vld [vmem:[%s8224_s3 + $0x1698] ss:$48 sps:$4 sm:$0xff]  }
 0x1f7   : > { %5301 = vmatprep.subr.bf16.mxu0 %v7558_v56  ;;  %5465 = vmatprep.subr.bf16.mxu1 %v7561_v57  ;;  %v7630_v56 = vld [vmem:[%s8224_s3 + $0x16f4] ss:$48 sps:$4 sm:$0xff]   ;;  %v7633_v57 = vld [vmem:[%s8224_s3 + $0x16fc] ss:$48 sps:$4 sm:$0xff]  }
 0x1f8   : > { %5331 = vmatprep.mubr.bf16.mxu0 %v8478_v24  ;;  %5495 = vmatprep.mubr.bf16.mxu1 %v8478_v24 }
 0x1fa   : > { %5302 = vmatpush1.bf16.msra.mxu0 %v7556_v58  ;;  %5466 = vmatpush1.bf16.msra.mxu1 %v7559_v59  ;;  %v7628_v58 = vld [vmem:[%s8224_s3 + $0x16f0] ss:$48 sps:$4 sm:$0xff]   ;;  %v7631_v59 = vld [vmem:[%s8224_s3 + $0x16f8] ss:$48 sps:$4 sm:$0xff]  }
 0x1fb   : > { %5303 = vmatprep.subr.bf16.mxu0 %v7564_v60  ;;  %5467 = vmatprep.subr.bf16.mxu1 %v7567_v61  ;;  %v7636_v60 = vld [vmem:[%s8224_s3 + $0x1754] ss:$48 sps:$4 sm:$0xff]   ;;  %v7639_v61 = vld [vmem:[%s8224_s3 + $0x175c] ss:$48 sps:$4 sm:$0xff]  }
 0x1fe   : > { %5304 = vmatpush1.bf16.msra.mxu0 %v7562_v62  ;;  %5468 = vmatpush1.bf16.msra.mxu1 %v7565_v63  ;;  %v7634_v62 = vld [vmem:[%s8224_s3 + $0x1750] ss:$48 sps:$4 sm:$0xff]   ;;  %v7637_v63 = vld [vmem:[%s8224_s3 + $0x1758] ss:$48 sps:$4 sm:$0xff]  }
 0x1ff   : > { %5305 = vmatprep.subr.bf16.mxu0 %v7570_v0  ;;  %5469 = vmatprep.subr.bf16.mxu1 %v7573_v1  ;;  %v7642_v0 = vld [vmem:[%s8224_s3 + $0x17b4] ss:$48 sps:$4 sm:$0xff]   ;;  %v7645_v1 = vld [vmem:[%s8224_s3 + $0x17bc] ss:$48 sps:$4 sm:$0xff]  }
 0x202   : > { %5306 = vmatpush1.bf16.msra.mxu0 %v7568_v2  ;;  %5470 = vmatpush1.bf16.msra.mxu1 %v7571_v3  ;;  %v7640_v2 = vld [vmem:[%s8224_s3 + $0x17b0] ss:$48 sps:$4 sm:$0xff]   ;;  %v7643_v3 = vld [vmem:[%s8224_s3 + $0x17b8] ss:$48 sps:$4 sm:$0xff]  }
 0x203   : > { %5307 = vmatprep.subr.bf16.mxu0 %v7576_v4  ;;  %5471 = vmatprep.subr.bf16.mxu1 %v7579_v6  ;;  %v7648_v4 = vld [vmem:[%s8224_s3 + $0x24] ss:$48 sps:$4 sm:$0xff]   ;;  %v7651_v6 = vld [vmem:[%s8224_s3 + $0x2c] ss:$48 sps:$4 sm:$0xff]  }
 0x206   : > { %5308 = vmatpush1.bf16.msra.mxu0 %v7574_v7  ;;  %5472 = vmatpush1.bf16.msra.mxu1 %v7577_v8  ;;  %v7646_v7 = vld [vmem:[%s8224_s3 + $0x20] ss:$48 sps:$4 sm:$0xff]   ;;  %v7649_v8 = vld [vmem:[%s8224_s3 + $0x28] ss:$48 sps:$4 sm:$0xff]  }
 0x207   : > { %5309 = vmatprep.subr.bf16.mxu0 %v7582_v9  ;;  %5473 = vmatprep.subr.bf16.mxu1 %v7585_v11  ;;  %v7654_v9 = vld [vmem:[%s8224_s3 + $0x84] ss:$48 sps:$4 sm:$0xff]   ;;  %v7657_v11 = vld [vmem:[%s8224_s3 + $0x8c] ss:$48 sps:$4 sm:$0xff]  }
 0x208   : > { %v5005_v18 = vpop.f32.mrb[0].mxu0  ;;  %v5169_v19 = vpop.f32.mrb[0].mxu1 }
 0x209   : > { %5832 = vst [vmem:[%s8780_s15] sm:$0xff] %v5005_v18  ;;  %5834 = vst [vmem:[%s8780_s15 + $0x10] sm:$0xff] %v5169_v19  ;;  %v5007_v22 = vpop.f32.mrb[1].mxu0  ;;  %v5171_v23 = vpop.f32.mrb[1].mxu1  ;;  %v7658_v18 = vld [vmem:[%s8224_s3 + $0xe0] ss:$48 sps:$4 sm:$0xff]  }
 0x20a   : > { %5833 = vst [vmem:[%s8780_s15 + $0x8] sm:$0xff] %v5007_v22  ;;  %5835 = vst [vmem:[%s8780_s15 + $0x18] sm:$0xff] %v5171_v23  ;;  %v5009_v13 = vpop.f32.mrb[2].mxu0  ;;  %v5173_v25 = vpop.f32.mrb[2].mxu1  ;;  %5310 = vmatpush1.bf16.msra.mxu0 %v7580_v12  ;;  %5474 = vmatpush1.bf16.msra.mxu1 %v7583_v14  ;;  %v7652_v12 = vld [vmem:[%s8224_s3 + $0x80] ss:$48 sps:$4 sm:$0xff]  }
 0x20b   : > { %v5010_v29 = vpop.f32.mrb[3].mxu0  ;;  %v5174_v31 = vpop.f32.mrb[3].mxu1  ;;  %5311 = vmatprep.subr.bf16.mxu0 %v7588_v16  ;;  %5475 = vmatprep.subr.bf16.mxu1 %v7591_v17  ;;  %v7655_v14 = vld [vmem:[%s8224_s3 + $0x88] ss:$48 sps:$4 sm:$0xff]   ;;  %v7660_v16 = vld [vmem:[%s8224_s3 + $0xe4] ss:$48 sps:$4 sm:$0xff]  }
 0x20c   : > { %v7663_v17 = vld [vmem:[%s8224_s3 + $0xec] ss:$48 sps:$4 sm:$0xff]   ;;  %v7661_v19 = vld [vmem:[%s8224_s3 + $0xe8] ss:$48 sps:$4 sm:$0xff]   ;;  %v7666_v22 = vld [vmem:[%s8224_s3 + $0x144] ss:$48 sps:$4 sm:$0xff]  }
 0x20d   : > { %v7669_v23 = vld [vmem:[%s8224_s3 + $0x14c] ss:$48 sps:$4 sm:$0xff]   ;;  %v7664_v13 = vld [vmem:[%s8224_s3 + $0x140] ss:$48 sps:$4 sm:$0xff]   ;;  %v7667_v25 = vld [vmem:[%s8224_s3 + $0x148] ss:$48 sps:$4 sm:$0xff]  }
 0x20e   : > { %5312 = vmatpush1.bf16.msra.mxu0 %v7586_v26  ;;  %5476 = vmatpush1.bf16.msra.mxu1 %v7589_v27  ;;  %v7675_v26 = vld [vmem:[%s8224_s3 + $0x1ac] ss:$48 sps:$4 sm:$0xff]   ;;  %v7670_v27 = vld [vmem:[%s8224_s3 + $0x1a0] ss:$48 sps:$4 sm:$0xff]   ;;  %v7673_v29 = vld [vmem:[%s8224_s3 + $0x1a8] ss:$48 sps:$4 sm:$0xff]  }
 0x20f   : > { %5313 = vmatprep.subr.bf16.mxu0 %v7594_v32  ;;  %5477 = vmatprep.subr.bf16.mxu1 %v7597_v33  ;;  %v7678_v31 = vld [vmem:[%s8224_s3 + $0x204] ss:$48 sps:$4 sm:$0xff]   ;;  %v7681_v32 = vld [vmem:[%s8224_s3 + $0x20c] ss:$48 sps:$4 sm:$0xff]   ;;  %v7676_v33 = vld [vmem:[%s8224_s3 + $0x200] ss:$48 sps:$4 sm:$0xff]  }
 0x212   : > { %5314 = vmatpush1.bf16.msra.mxu0 %v7592_v34  ;;  %5478 = vmatpush1.bf16.msra.mxu1 %v7595_v35  ;;  %v7679_v34 = vld [vmem:[%s8224_s3 + $0x208] ss:$48 sps:$4 sm:$0xff]   ;;  %v7684_v35 = vld [vmem:[%s8224_s3 + $0x264] ss:$48 sps:$4 sm:$0xff]  }
 0x213   : > { %5315 = vmatprep.subr.bf16.mxu0 %v7600_v21  ;;  %5479 = vmatprep.subr.bf16.mxu1 %v7603_v36  ;;  %v7687_v21 = vld [vmem:[%s8224_s3 + $0x26c] ss:$48 sps:$4 sm:$0xff]   ;;  %v7682_v36 = vld [vmem:[%s8224_s3 + $0x260] ss:$48 sps:$4 sm:$0xff]  }
 0x216   : > { %5316 = vmatpush1.bf16.msra.mxu0 %v7598_v37  ;;  %5480 = vmatpush1.bf16.msra.mxu1 %v7601_v38  ;;  %v7685_v37 = vld [vmem:[%s8224_s3 + $0x268] ss:$48 sps:$4 sm:$0xff]   ;;  %v7690_v38 = vld [vmem:[%s8224_s3 + $0x2c4] ss:$48 sps:$4 sm:$0xff]  }
 0x217   : > { %5317 = vmatprep.subr.bf16.mxu0 %v7606_v39  ;;  %5481 = vmatprep.subr.bf16.mxu1 %v7609_v40  ;;  %v7693_v39 = vld [vmem:[%s8224_s3 + $0x2cc] ss:$48 sps:$4 sm:$0xff]   ;;  %v7688_v40 = vld [vmem:[%s8224_s3 + $0x2c0] ss:$48 sps:$4 sm:$0xff]  }
 0x21a   : > { %5318 = vmatpush1.bf16.msra.mxu0 %v7604_v41  ;;  %5482 = vmatpush1.bf16.msra.mxu1 %v7607_v42  ;;  %v7691_v41 = vld [vmem:[%s8224_s3 + $0x2c8] ss:$48 sps:$4 sm:$0xff]   ;;  %v7696_v42 = vld [vmem:[%s8224_s3 + $0x324] ss:$48 sps:$4 sm:$0xff]  }
 0x21b   : > { %5319 = vmatprep.subr.bf16.mxu0 %v7612_v43  ;;  %5483 = vmatprep.subr.bf16.mxu1 %v7615_v44  ;;  %v7699_v43 = vld [vmem:[%s8224_s3 + $0x32c] ss:$48 sps:$4 sm:$0xff]   ;;  %v7694_v44 = vld [vmem:[%s8224_s3 + $0x320] ss:$48 sps:$4 sm:$0xff]  }
 0x21e   : > { %5320 = vmatpush1.bf16.msra.mxu0 %v7610_v45  ;;  %5484 = vmatpush1.bf16.msra.mxu1 %v7613_v46  ;;  %v7697_v45 = vld [vmem:[%s8224_s3 + $0x328] ss:$48 sps:$4 sm:$0xff]   ;;  %v7702_v46 = vld [vmem:[%s8224_s3 + $0x384] ss:$48 sps:$4 sm:$0xff]  }
 0x21f   : > { %5321 = vmatprep.subr.bf16.mxu0 %v7618_v47  ;;  %5485 = vmatprep.subr.bf16.mxu1 %v7621_v49  ;;  %v7705_v47 = vld [vmem:[%s8224_s3 + $0x38c] ss:$48 sps:$4 sm:$0xff]   ;;  %v7700_v49 = vld [vmem:[%s8224_s3 + $0x380] ss:$48 sps:$4 sm:$0xff]  }
 0x222   : > { %5322 = vmatpush1.bf16.msra.mxu0 %v7616_v50  ;;  %5486 = vmatpush1.bf16.msra.mxu1 %v7619_v51  ;;  %v7703_v50 = vld [vmem:[%s8224_s3 + $0x388] ss:$48 sps:$4 sm:$0xff]   ;;  %v7708_v51 = vld [vmem:[%s8224_s3 + $0x3e4] ss:$48 sps:$4 sm:$0xff]  }
 0x223   : > { %5323 = vmatprep.subr.bf16.mxu0 %v7624_v52  ;;  %5487 = vmatprep.subr.bf16.mxu1 %v7627_v53  ;;  %v7711_v52 = vld [vmem:[%s8224_s3 + $0x3ec] ss:$48 sps:$4 sm:$0xff]   ;;  %v7706_v53 = vld [vmem:[%s8224_s3 + $0x3e0] ss:$48 sps:$4 sm:$0xff]  }
 0x226   : > { %5324 = vmatpush1.bf16.msra.mxu0 %v7622_v54  ;;  %5488 = vmatpush1.bf16.msra.mxu1 %v7625_v55  ;;  %v7709_v54 = vld [vmem:[%s8224_s3 + $0x3e8] ss:$48 sps:$4 sm:$0xff]   ;;  %v7714_v55 = vld [vmem:[%s8224_s3 + $0x444] ss:$48 sps:$4 sm:$0xff]  }
 0x227   : > { %5325 = vmatprep.subr.bf16.mxu0 %v7630_v56  ;;  %5489 = vmatprep.subr.bf16.mxu1 %v7633_v57  ;;  %v7717_v56 = vld [vmem:[%s8224_s3 + $0x44c] ss:$48 sps:$4 sm:$0xff]   ;;  %v7712_v57 = vld [vmem:[%s8224_s3 + $0x440] ss:$48 sps:$4 sm:$0xff]  }
 0x22a   : > { %5326 = vmatpush1.bf16.msra.mxu0 %v7628_v58  ;;  %5490 = vmatpush1.bf16.msra.mxu1 %v7631_v59  ;;  %v7715_v58 = vld [vmem:[%s8224_s3 + $0x448] ss:$48 sps:$4 sm:$0xff]   ;;  %v7720_v59 = vld [vmem:[%s8224_s3 + $0x4a4] ss:$48 sps:$4 sm:$0xff]  }
 0x22b   : > { %5327 = vmatprep.subr.bf16.mxu0 %v7636_v60  ;;  %5491 = vmatprep.subr.bf16.mxu1 %v7639_v61  ;;  %v7723_v60 = vld [vmem:[%s8224_s3 + $0x4ac] ss:$48 sps:$4 sm:$0xff]   ;;  %v7718_v61 = vld [vmem:[%s8224_s3 + $0x4a0] ss:$48 sps:$4 sm:$0xff]  }
 0x22e   : > { %5328 = vmatpush1.bf16.msra.mxu0 %v7634_v62  ;;  %5492 = vmatpush1.bf16.msra.mxu1 %v7637_v63  ;;  %v7721_v62 = vld [vmem:[%s8224_s3 + $0x4a8] ss:$48 sps:$4 sm:$0xff]   ;;  %v7726_v63 = vld [vmem:[%s8224_s3 + $0x504] ss:$48 sps:$4 sm:$0xff]  }
 0x22f   : > { %5329 = vmatprep.subr.bf16.mxu0 %v7642_v0  ;;  %5493 = vmatprep.subr.bf16.mxu1 %v7645_v1  ;;  %v7729_v0 = vld [vmem:[%s8224_s3 + $0x50c] ss:$48 sps:$4 sm:$0xff]   ;;  %v7724_v1 = vld [vmem:[%s8224_s3 + $0x500] ss:$48 sps:$4 sm:$0xff]  }
 0x232   : > { %5330 = vmatpush1.bf16.msra.mxu0 %v7640_v2  ;;  %5494 = vmatpush1.bf16.msra.mxu1 %v7643_v3  ;;  %v7727_v2 = vld [vmem:[%s8224_s3 + $0x508] ss:$48 sps:$4 sm:$0xff]   ;;  %v7732_v3 = vld [vmem:[%s8224_s3 + $0x564] ss:$48 sps:$4 sm:$0xff]  }
 0x233   : > { %5504 = vmatprep.subr.bf16.mxu0 %v7648_v4  ;;  %5668 = vmatprep.subr.bf16.mxu1 %v7651_v6  ;;  %v7735_v4 = vld [vmem:[%s8224_s3 + $0x56c] ss:$48 sps:$4 sm:$0xff]   ;;  %v7730_v6 = vld [vmem:[%s8224_s3 + $0x560] ss:$48 sps:$4 sm:$0xff]  }
 0x235   : > { %5332 = vmatmul.mubr.bf16.vlgmr.msra.gmra.mrb[4].mxu0 %v8546_v28  ;;  %5496 = vmatmul.mubr.bf16.vlgmr.msra.gmra.mrb[4].mxu1 %v8546_v28 }
 0x236   : > { %5505 = vmatpush1.bf16.msra.mxu0 %v7646_v7  ;;  %5669 = vmatpush1.bf16.msra.mxu1 %v7649_v8  ;;  %v7733_v7 = vld [vmem:[%s8224_s3 + $0x568] ss:$48 sps:$4 sm:$0xff]   ;;  %v7738_v8 = vld [vmem:[%s8224_s3 + $0x5c4] ss:$48 sps:$4 sm:$0xff]  }
 0x237   : > { %5506 = vmatprep.subr.bf16.mxu0 %v7654_v9  ;;  %5670 = vmatprep.subr.bf16.mxu1 %v7657_v11  ;;  %v7741_v9 = vld [vmem:[%s8224_s3 + $0x5cc] ss:$48 sps:$4 sm:$0xff]   ;;  %v7736_v11 = vld [vmem:[%s8224_s3 + $0x5c0] ss:$48 sps:$4 sm:$0xff]  }
 0x238   : > { %5536 = vmatprep.mubr.bf16.mxu0 %v8280_v48  ;;  %5700 = vmatprep.mubr.bf16.mxu1 %v8280_v48  ;;  %v7672_v48 = vld [vmem:[%s8224_s3 + $0x1a4] ss:$48 sps:$4 sm:$0xff]  }
 0x23a   : > { %5507 = vmatpush1.bf16.msra.mxu0 %v7652_v12  ;;  %5671 = vmatpush1.bf16.msra.mxu1 %v7655_v14  ;;  %v7739_v12 = vld [vmem:[%s8224_s3 + $0x5c8] ss:$48 sps:$4 sm:$0xff]   ;;  %v7744_v14 = vld [vmem:[%s8224_s3 + $0x624] ss:$48 sps:$4 sm:$0xff]  }
 0x23b   : > { %5508 = vmatprep.subr.bf16.mxu0 %v7660_v16  ;;  %5672 = vmatprep.subr.bf16.mxu1 %v7663_v17  ;;  %v7747_v16 = vld [vmem:[%s8224_s3 + $0x62c] ss:$48 sps:$4 sm:$0xff]   ;;  %v7742_v17 = vld [vmem:[%s8224_s3 + $0x620] ss:$48 sps:$4 sm:$0xff]  }
 0x23e   : > { %5509 = vmatpush1.bf16.msra.mxu0 %v7658_v18  ;;  %5673 = vmatpush1.bf16.msra.mxu1 %v7661_v19  ;;  %v7745_v18 = vld [vmem:[%s8224_s3 + $0x628] ss:$48 sps:$4 sm:$0xff]   ;;  %v7750_v19 = vld [vmem:[%s8224_s3 + $0x684] ss:$48 sps:$4 sm:$0xff]  }
 0x23f   : > { %5510 = vmatprep.subr.bf16.mxu0 %v7666_v22  ;;  %5674 = vmatprep.subr.bf16.mxu1 %v7669_v23  ;;  %v7753_v22 = vld [vmem:[%s8224_s3 + $0x68c] ss:$48 sps:$4 sm:$0xff]   ;;  %v7748_v23 = vld [vmem:[%s8224_s3 + $0x680] ss:$48 sps:$4 sm:$0xff]  }
 0x242   : > { %5511 = vmatpush1.bf16.msra.mxu0 %v7664_v13  ;;  %5675 = vmatpush1.bf16.msra.mxu1 %v7667_v25  ;;  %v7751_v13 = vld [vmem:[%s8224_s3 + $0x688] ss:$48 sps:$4 sm:$0xff]   ;;  %v7756_v25 = vld [vmem:[%s8224_s3 + $0x6e4] ss:$48 sps:$4 sm:$0xff]  }
 0x243   : > { %5512 = vmatprep.subr.bf16.mxu0 %v7672_v48  ;;  %5676 = vmatprep.subr.bf16.mxu1 %v7675_v26  ;;  %v7759_v48 = vld [vmem:[%s8224_s3 + $0x6ec] ss:$48 sps:$4 sm:$0xff]   ;;  %v7757_v26 = vld [vmem:[%s8224_s3 + $0x6e8] ss:$48 sps:$4 sm:$0xff]  }
 0x246   : > { %5513 = vmatpush1.bf16.msra.mxu0 %v7670_v27  ;;  %5677 = vmatpush1.bf16.msra.mxu1 %v7673_v29  ;;  %v7762_v27 = vld [vmem:[%s8224_s3 + $0x744] ss:$48 sps:$4 sm:$0xff]   ;;  %v7765_v29 = vld [vmem:[%s8224_s3 + $0x74c] ss:$48 sps:$4 sm:$0xff]  }
 0x247   : > { %5514 = vmatprep.subr.bf16.mxu0 %v7678_v31  ;;  %5678 = vmatprep.subr.bf16.mxu1 %v7681_v32  ;;  %v7760_v31 = vld [vmem:[%s8224_s3 + $0x740] ss:$48 sps:$4 sm:$0xff]   ;;  %v7763_v32 = vld [vmem:[%s8224_s3 + $0x748] ss:$48 sps:$4 sm:$0xff]  }
 0x24a   : > { %5515 = vmatpush1.bf16.msra.mxu0 %v7676_v33  ;;  %5679 = vmatpush1.bf16.msra.mxu1 %v7679_v34  ;;  %v7771_v33 = vld [vmem:[%s8224_s3 + $0x7ac] ss:$48 sps:$4 sm:$0xff]   ;;  %v7766_v34 = vld [vmem:[%s8224_s3 + $0x7a0] ss:$48 sps:$4 sm:$0xff]  }
 0x24b   : > { %5516 = vmatprep.subr.bf16.mxu0 %v7684_v35  ;;  %5680 = vmatprep.subr.bf16.mxu1 %v7687_v21  ;;  %v7769_v35 = vld [vmem:[%s8224_s3 + $0x7a8] ss:$48 sps:$4 sm:$0xff]   ;;  %v7774_v21 = vld [vmem:[%s8224_s3 + $0x804] ss:$48 sps:$4 sm:$0xff]  }
 0x24e   : > { %5517 = vmatpush1.bf16.msra.mxu0 %v7682_v36  ;;  %5681 = vmatpush1.bf16.msra.mxu1 %v7685_v37  ;;  %v7777_v36 = vld [vmem:[%s8224_s3 + $0x80c] ss:$48 sps:$4 sm:$0xff]   ;;  %v7772_v37 = vld [vmem:[%s8224_s3 + $0x800] ss:$48 sps:$4 sm:$0xff]  }
 0x24f   : > { %5518 = vmatprep.subr.bf16.mxu0 %v7690_v38  ;;  %5682 = vmatprep.subr.bf16.mxu1 %v7693_v39  ;;  %v7775_v38 = vld [vmem:[%s8224_s3 + $0x808] ss:$48 sps:$4 sm:$0xff]   ;;  %v7780_v39 = vld [vmem:[%s8224_s3 + $0x864] ss:$48 sps:$4 sm:$0xff]  }
 0x252   : > { %5519 = vmatpush1.bf16.msra.mxu0 %v7688_v40  ;;  %5683 = vmatpush1.bf16.msra.mxu1 %v7691_v41  ;;  %v7783_v40 = vld [vmem:[%s8224_s3 + $0x86c] ss:$48 sps:$4 sm:$0xff]   ;;  %v7778_v41 = vld [vmem:[%s8224_s3 + $0x860] ss:$48 sps:$4 sm:$0xff]  }
 0x253   : > { %5520 = vmatprep.subr.bf16.mxu0 %v7696_v42  ;;  %5684 = vmatprep.subr.bf16.mxu1 %v7699_v43  ;;  %v7781_v42 = vld [vmem:[%s8224_s3 + $0x868] ss:$48 sps:$4 sm:$0xff]   ;;  %v7786_v43 = vld [vmem:[%s8224_s3 + $0x8c4] ss:$48 sps:$4 sm:$0xff]  }
 0x256   : > { %5521 = vmatpush1.bf16.msra.mxu0 %v7694_v44  ;;  %5685 = vmatpush1.bf16.msra.mxu1 %v7697_v45  ;;  %v7789_v44 = vld [vmem:[%s8224_s3 + $0x8cc] ss:$48 sps:$4 sm:$0xff]   ;;  %v7784_v45 = vld [vmem:[%s8224_s3 + $0x8c0] ss:$48 sps:$4 sm:$0xff]  }
 0x257   : > { %5522 = vmatprep.subr.bf16.mxu0 %v7702_v46  ;;  %5686 = vmatprep.subr.bf16.mxu1 %v7705_v47  ;;  %v7787_v46 = vld [vmem:[%s8224_s3 + $0x8c8] ss:$48 sps:$4 sm:$0xff]   ;;  %v7792_v47 = vld [vmem:[%s8224_s3 + $0x924] ss:$48 sps:$4 sm:$0xff]  }
 0x25a   : > { %5523 = vmatpush1.bf16.msra.mxu0 %v7700_v49  ;;  %5687 = vmatpush1.bf16.msra.mxu1 %v7703_v50  ;;  %v7795_v49 = vld [vmem:[%s8224_s3 + $0x92c] ss:$48 sps:$4 sm:$0xff]   ;;  %v7790_v50 = vld [vmem:[%s8224_s3 + $0x920] ss:$48 sps:$4 sm:$0xff]  }
 0x25b   : > { %5524 = vmatprep.subr.bf16.mxu0 %v7708_v51  ;;  %5688 = vmatprep.subr.bf16.mxu1 %v7711_v52  ;;  %v7793_v51 = vld [vmem:[%s8224_s3 + $0x928] ss:$48 sps:$4 sm:$0xff]   ;;  %v7798_v52 = vld [vmem:[%s8224_s3 + $0x984] ss:$48 sps:$4 sm:$0xff]  }
 0x25e   : > { %5525 = vmatpush1.bf16.msra.mxu0 %v7706_v53  ;;  %5689 = vmatpush1.bf16.msra.mxu1 %v7709_v54  ;;  %v7801_v53 = vld [vmem:[%s8224_s3 + $0x98c] ss:$48 sps:$4 sm:$0xff]   ;;  %v7796_v54 = vld [vmem:[%s8224_s3 + $0x980] ss:$48 sps:$4 sm:$0xff]  }
 0x25f   : > { %5526 = vmatprep.subr.bf16.mxu0 %v7714_v55  ;;  %5690 = vmatprep.subr.bf16.mxu1 %v7717_v56  ;;  %v7799_v55 = vld [vmem:[%s8224_s3 + $0x988] ss:$48 sps:$4 sm:$0xff]   ;;  %v7804_v56 = vld [vmem:[%s8224_s3 + $0x9e4] ss:$48 sps:$4 sm:$0xff]  }
 0x262   : > { %5527 = vmatpush1.bf16.msra.mxu0 %v7712_v57  ;;  %5691 = vmatpush1.bf16.msra.mxu1 %v7715_v58  ;;  %v7807_v57 = vld [vmem:[%s8224_s3 + $0x9ec] ss:$48 sps:$4 sm:$0xff]   ;;  %v7802_v58 = vld [vmem:[%s8224_s3 + $0x9e0] ss:$48 sps:$4 sm:$0xff]  }
 0x263   : > { %5528 = vmatprep.subr.bf16.mxu0 %v7720_v59  ;;  %5692 = vmatprep.subr.bf16.mxu1 %v7723_v60  ;;  %v7805_v59 = vld [vmem:[%s8224_s3 + $0x9e8] ss:$48 sps:$4 sm:$0xff]   ;;  %v7810_v60 = vld [vmem:[%s8224_s3 + $0xa44] ss:$48 sps:$4 sm:$0xff]  }
 0x266   : > { %5529 = vmatpush1.bf16.msra.mxu0 %v7718_v61  ;;  %5693 = vmatpush1.bf16.msra.mxu1 %v7721_v62  ;;  %v7813_v61 = vld [vmem:[%s8224_s3 + $0xa4c] ss:$48 sps:$4 sm:$0xff]   ;;  %v7808_v62 = vld [vmem:[%s8224_s3 + $0xa40] ss:$48 sps:$4 sm:$0xff]  }
 0x267   : > { %5530 = vmatprep.subr.bf16.mxu0 %v7726_v63  ;;  %5694 = vmatprep.subr.bf16.mxu1 %v7729_v0  ;;  %v7811_v63 = vld [vmem:[%s8224_s3 + $0xa48] ss:$48 sps:$4 sm:$0xff]   ;;  %v7816_v0 = vld [vmem:[%s8224_s3 + $0xaa4] ss:$48 sps:$4 sm:$0xff]  }
 0x26a   : > { %5531 = vmatpush1.bf16.msra.mxu0 %v7724_v1  ;;  %5695 = vmatpush1.bf16.msra.mxu1 %v7727_v2  ;;  %v7819_v1 = vld [vmem:[%s8224_s3 + $0xaac] ss:$48 sps:$4 sm:$0xff]   ;;  %v7814_v2 = vld [vmem:[%s8224_s3 + $0xaa0] ss:$48 sps:$4 sm:$0xff]  }
 0x26b   : > { %5532 = vmatprep.subr.bf16.mxu0 %v7732_v3  ;;  %5696 = vmatprep.subr.bf16.mxu1 %v7735_v4  ;;  %v7817_v3 = vld [vmem:[%s8224_s3 + $0xaa8] ss:$48 sps:$4 sm:$0xff]   ;;  %v7822_v4 = vld [vmem:[%s8224_s3 + $0xb04] ss:$48 sps:$4 sm:$0xff]  }
 0x26e   : > { %5533 = vmatpush1.bf16.msra.mxu0 %v7730_v6  ;;  %5697 = vmatpush1.bf16.msra.mxu1 %v7733_v7  ;;  %v7825_v6 = vld [vmem:[%s8224_s3 + $0xb0c] ss:$48 sps:$4 sm:$0xff]   ;;  %v7820_v7 = vld [vmem:[%s8224_s3 + $0xb00] ss:$48 sps:$4 sm:$0xff]  }
 0x26f   : > { %5534 = vmatprep.subr.bf16.mxu0 %v7738_v8  ;;  %5698 = vmatprep.subr.bf16.mxu1 %v7741_v9  ;;  %v7823_v8 = vld [vmem:[%s8224_s3 + $0xb08] ss:$48 sps:$4 sm:$0xff]   ;;  %v7828_v9 = vld [vmem:[%s8224_s3 + $0xb64] ss:$48 sps:$4 sm:$0xff]  }
 0x272   : > { %5535 = vmatpush1.bf16.msra.mxu0 %v7736_v11  ;;  %5699 = vmatpush1.bf16.msra.mxu1 %v7739_v12  ;;  %v7831_v11 = vld [vmem:[%s8224_s3 + $0xb6c] ss:$48 sps:$4 sm:$0xff]   ;;  %v7826_v12 = vld [vmem:[%s8224_s3 + $0xb60] ss:$48 sps:$4 sm:$0xff]  }
 0x273   : > { %5545 = vmatprep.subr.bf16.mxu0 %v7744_v14  ;;  %5709 = vmatprep.subr.bf16.mxu1 %v7747_v16  ;;  %v7829_v14 = vld [vmem:[%s8224_s3 + $0xb68] ss:$48 sps:$4 sm:$0xff]   ;;  %v7834_v16 = vld [vmem:[%s8224_s3 + $0xbc4] ss:$48 sps:$4 sm:$0xff]  }
 0x275   : > { %5537 = vmatmul.mubr.bf16.vlgmr.msra.gmra.mrb[8].mxu0 %v8304_v5  ;;  %5701 = vmatmul.mubr.bf16.vlgmr.msra.gmra.mrb[8].mxu1 %v8304_v5  ;;  %v7754_v5 = vld [vmem:[%s8224_s3 + $0x6e0] ss:$48 sps:$4 sm:$0xff]  }
 0x276   : > { %5546 = vmatpush1.bf16.msra.mxu0 %v7742_v17  ;;  %5710 = vmatpush1.bf16.msra.mxu1 %v7745_v18  ;;  %v7837_v17 = vld [vmem:[%s8224_s3 + $0xbcc] ss:$48 sps:$4 sm:$0xff]   ;;  %v7832_v18 = vld [vmem:[%s8224_s3 + $0xbc0] ss:$48 sps:$4 sm:$0xff]  }
 0x277   : > { %5547 = vmatprep.subr.bf16.mxu0 %v7750_v19  ;;  %5711 = vmatprep.subr.bf16.mxu1 %v7753_v22  ;;  %v7835_v19 = vld [vmem:[%s8224_s3 + $0xbc8] ss:$48 sps:$4 sm:$0xff]   ;;  %v7840_v22 = vld [vmem:[%s8224_s3 + $0xc24] ss:$48 sps:$4 sm:$0xff]  }
 0x278   : > { %5577 = vmatprep.mubr.bf16.mxu0 %v8338_v30  ;;  %5741 = vmatprep.mubr.bf16.mxu1 %v8338_v30  ;;  %v7768_v30 = vld [vmem:[%s8224_s3 + $0x7a4] ss:$48 sps:$4 sm:$0xff]  }
 0x27a   : > { %5548 = vmatpush1.bf16.msra.mxu0 %v7748_v23  ;;  %5712 = vmatpush1.bf16.msra.mxu1 %v7751_v13  ;;  %v7843_v23 = vld [vmem:[%s8224_s3 + $0xc2c] ss:$48 sps:$4 sm:$0xff]   ;;  %v7838_v13 = vld [vmem:[%s8224_s3 + $0xc20] ss:$48 sps:$4 sm:$0xff]  }
 0x27b   : > { %5549 = vmatprep.subr.bf16.mxu0 %v7756_v25  ;;  %5713 = vmatprep.subr.bf16.mxu1 %v7759_v48  ;;  %v7841_v25 = vld [vmem:[%s8224_s3 + $0xc28] ss:$48 sps:$4 sm:$0xff]   ;;  %v7846_v48 = vld [vmem:[%s8224_s3 + $0xc84] ss:$48 sps:$4 sm:$0xff]  }
 0x27e   : > { %5550 = vmatpush1.bf16.msra.mxu0 %v7754_v5  ;;  %5714 = vmatpush1.bf16.msra.mxu1 %v7757_v26  ;;  %v7849_v5 = vld [vmem:[%s8224_s3 + $0xc8c] ss:$48 sps:$4 sm:$0xff]   ;;  %v7844_v26 = vld [vmem:[%s8224_s3 + $0xc80] ss:$48 sps:$4 sm:$0xff]  }
 0x27f   : > { %5551 = vmatprep.subr.bf16.mxu0 %v7762_v27  ;;  %5715 = vmatprep.subr.bf16.mxu1 %v7765_v29  ;;  %v7847_v27 = vld [vmem:[%s8224_s3 + $0xc88] ss:$48 sps:$4 sm:$0xff]   ;;  %v7852_v29 = vld [vmem:[%s8224_s3 + $0xce4] ss:$48 sps:$4 sm:$0xff]  }
 0x282   : > { %5552 = vmatpush1.bf16.msra.mxu0 %v7760_v31  ;;  %5716 = vmatpush1.bf16.msra.mxu1 %v7763_v32  ;;  %v7855_v31 = vld [vmem:[%s8224_s3 + $0xcec] ss:$48 sps:$4 sm:$0xff]   ;;  %v7853_v32 = vld [vmem:[%s8224_s3 + $0xce8] ss:$48 sps:$4 sm:$0xff]  }
 0x283   : > { %5553 = vmatprep.subr.bf16.mxu0 %v7768_v30  ;;  %5717 = vmatprep.subr.bf16.mxu1 %v7771_v33  ;;  %v7858_v30 = vld [vmem:[%s8224_s3 + $0xd44] ss:$48 sps:$4 sm:$0xff]   ;;  %v7861_v33 = vld [vmem:[%s8224_s3 + $0xd4c] ss:$48 sps:$4 sm:$0xff]  }
 0x286   : > { %5554 = vmatpush1.bf16.msra.mxu0 %v7766_v34  ;;  %5718 = vmatpush1.bf16.msra.mxu1 %v7769_v35  ;;  %v7856_v34 = vld [vmem:[%s8224_s3 + $0xd40] ss:$48 sps:$4 sm:$0xff]   ;;  %v7859_v35 = vld [vmem:[%s8224_s3 + $0xd48] ss:$48 sps:$4 sm:$0xff]  }
 0x287   : > { %5555 = vmatprep.subr.bf16.mxu0 %v7774_v21  ;;  %5719 = vmatprep.subr.bf16.mxu1 %v7777_v36  ;;  %v7867_v21 = vld [vmem:[%s8224_s3 + $0xdac] ss:$48 sps:$4 sm:$0xff]   ;;  %v7862_v36 = vld [vmem:[%s8224_s3 + $0xda0] ss:$48 sps:$4 sm:$0xff]  }
 0x28a   : > { %5556 = vmatpush1.bf16.msra.mxu0 %v7772_v37  ;;  %5720 = vmatpush1.bf16.msra.mxu1 %v7775_v38  ;;  %v7865_v37 = vld [vmem:[%s8224_s3 + $0xda8] ss:$48 sps:$4 sm:$0xff]   ;;  %v7870_v38 = vld [vmem:[%s8224_s3 + $0xe04] ss:$48 sps:$4 sm:$0xff]  }
 0x28b   : > { %5557 = vmatprep.subr.bf16.mxu0 %v7780_v39  ;;  %5721 = vmatprep.subr.bf16.mxu1 %v7783_v40  ;;  %v7873_v39 = vld [vmem:[%s8224_s3 + $0xe0c] ss:$48 sps:$4 sm:$0xff]   ;;  %v7868_v40 = vld [vmem:[%s8224_s3 + $0xe00] ss:$48 sps:$4 sm:$0xff]  }
 0x28e   : > { %5558 = vmatpush1.bf16.msra.mxu0 %v7778_v41  ;;  %5722 = vmatpush1.bf16.msra.mxu1 %v7781_v42  ;;  %v7871_v41 = vld [vmem:[%s8224_s3 + $0xe08] ss:$48 sps:$4 sm:$0xff]   ;;  %v7876_v42 = vld [vmem:[%s8224_s3 + $0xe64] ss:$48 sps:$4 sm:$0xff]  }
 0x28f   : > { %5559 = vmatprep.subr.bf16.mxu0 %v7786_v43  ;;  %5723 = vmatprep.subr.bf16.mxu1 %v7789_v44  ;;  %v7879_v43 = vld [vmem:[%s8224_s3 + $0xe6c] ss:$48 sps:$4 sm:$0xff]   ;;  %v7874_v44 = vld [vmem:[%s8224_s3 + $0xe60] ss:$48 sps:$4 sm:$0xff]  }
 0x292   : > { %5560 = vmatpush1.bf16.msra.mxu0 %v7784_v45  ;;  %5724 = vmatpush1.bf16.msra.mxu1 %v7787_v46  ;;  %v7877_v45 = vld [vmem:[%s8224_s3 + $0xe68] ss:$48 sps:$4 sm:$0xff]   ;;  %v7882_v46 = vld [vmem:[%s8224_s3 + $0xec4] ss:$48 sps:$4 sm:$0xff]  }
 0x293   : > { %5561 = vmatprep.subr.bf16.mxu0 %v7792_v47  ;;  %5725 = vmatprep.subr.bf16.mxu1 %v7795_v49  ;;  %v7885_v47 = vld [vmem:[%s8224_s3 + $0xecc] ss:$48 sps:$4 sm:$0xff]   ;;  %v7880_v49 = vld [vmem:[%s8224_s3 + $0xec0] ss:$48 sps:$4 sm:$0xff]  }
 0x296   : > { %5562 = vmatpush1.bf16.msra.mxu0 %v7790_v50  ;;  %5726 = vmatpush1.bf16.msra.mxu1 %v7793_v51  ;;  %v7883_v50 = vld [vmem:[%s8224_s3 + $0xec8] ss:$48 sps:$4 sm:$0xff]   ;;  %v7888_v51 = vld [vmem:[%s8224_s3 + $0xf24] ss:$48 sps:$4 sm:$0xff]  }
 0x297   : > { %5563 = vmatprep.subr.bf16.mxu0 %v7798_v52  ;;  %5727 = vmatprep.subr.bf16.mxu1 %v7801_v53  ;;  %v7891_v52 = vld [vmem:[%s8224_s3 + $0xf2c] ss:$48 sps:$4 sm:$0xff]   ;;  %v7886_v53 = vld [vmem:[%s8224_s3 + $0xf20] ss:$48 sps:$4 sm:$0xff]  }
 0x29a   : > { %5564 = vmatpush1.bf16.msra.mxu0 %v7796_v54  ;;  %5728 = vmatpush1.bf16.msra.mxu1 %v7799_v55  ;;  %v7889_v54 = vld [vmem:[%s8224_s3 + $0xf28] ss:$48 sps:$4 sm:$0xff]   ;;  %v7894_v55 = vld [vmem:[%s8224_s3 + $0xf84] ss:$48 sps:$4 sm:$0xff]  }
 0x29b   : > { %5565 = vmatprep.subr.bf16.mxu0 %v7804_v56  ;;  %5729 = vmatprep.subr.bf16.mxu1 %v7807_v57  ;;  %v7897_v56 = vld [vmem:[%s8224_s3 + $0xf8c] ss:$48 sps:$4 sm:$0xff]   ;;  %v7892_v57 = vld [vmem:[%s8224_s3 + $0xf80] ss:$48 sps:$4 sm:$0xff]  }
 0x29e   : > { %5566 = vmatpush1.bf16.msra.mxu0 %v7802_v58  ;;  %5730 = vmatpush1.bf16.msra.mxu1 %v7805_v59  ;;  %v7895_v58 = vld [vmem:[%s8224_s3 + $0xf88] ss:$48 sps:$4 sm:$0xff]   ;;  %v7900_v59 = vld [vmem:[%s8224_s3 + $0xfe4] ss:$48 sps:$4 sm:$0xff]  }
 0x29f   : > { %5567 = vmatprep.subr.bf16.mxu0 %v7810_v60  ;;  %5731 = vmatprep.subr.bf16.mxu1 %v7813_v61  ;;  %v7903_v60 = vld [vmem:[%s8224_s3 + $0xfec] ss:$48 sps:$4 sm:$0xff]   ;;  %v7898_v61 = vld [vmem:[%s8224_s3 + $0xfe0] ss:$48 sps:$4 sm:$0xff]  }
 0x2a2   : > { %5568 = vmatpush1.bf16.msra.mxu0 %v7808_v62  ;;  %5732 = vmatpush1.bf16.msra.mxu1 %v7811_v63  ;;  %v7901_v62 = vld [vmem:[%s8224_s3 + $0xfe8] ss:$48 sps:$4 sm:$0xff]   ;;  %v7906_v63 = vld [vmem:[%s8224_s3 + $0x1044] ss:$48 sps:$4 sm:$0xff]  }
 0x2a3   : > { %5569 = vmatprep.subr.bf16.mxu0 %v7816_v0  ;;  %5733 = vmatprep.subr.bf16.mxu1 %v7819_v1  ;;  %v7909_v0 = vld [vmem:[%s8224_s3 + $0x104c] ss:$48 sps:$4 sm:$0xff]   ;;  %v7904_v1 = vld [vmem:[%s8224_s3 + $0x1040] ss:$48 sps:$4 sm:$0xff]  }
 0x2a6   : > { %5570 = vmatpush1.bf16.msra.mxu0 %v7814_v2  ;;  %5734 = vmatpush1.bf16.msra.mxu1 %v7817_v3  ;;  %v7907_v2 = vld [vmem:[%s8224_s3 + $0x1048] ss:$48 sps:$4 sm:$0xff]   ;;  %v7912_v3 = vld [vmem:[%s8224_s3 + $0x10a4] ss:$48 sps:$4 sm:$0xff]  }
 0x2a7   : > { %5571 = vmatprep.subr.bf16.mxu0 %v7822_v4  ;;  %5735 = vmatprep.subr.bf16.mxu1 %v7825_v6  ;;  %v7915_v4 = vld [vmem:[%s8224_s3 + $0x10ac] ss:$48 sps:$4 sm:$0xff]   ;;  %v7910_v6 = vld [vmem:[%s8224_s3 + $0x10a0] ss:$48 sps:$4 sm:$0xff]  }
 0x2aa   : > { %5572 = vmatpush1.bf16.msra.mxu0 %v7820_v7  ;;  %5736 = vmatpush1.bf16.msra.mxu1 %v7823_v8  ;;  %v7913_v7 = vld [vmem:[%s8224_s3 + $0x10a8] ss:$48 sps:$4 sm:$0xff]   ;;  %v7918_v8 = vld [vmem:[%s8224_s3 + $0x1104] ss:$48 sps:$4 sm:$0xff]  }
 0x2ab   : > { %5573 = vmatprep.subr.bf16.mxu0 %v7828_v9  ;;  %5737 = vmatprep.subr.bf16.mxu1 %v7831_v11  ;;  %v7921_v9 = vld [vmem:[%s8224_s3 + $0x110c] ss:$48 sps:$4 sm:$0xff]   ;;  %v7916_v11 = vld [vmem:[%s8224_s3 + $0x1100] ss:$48 sps:$4 sm:$0xff]  }
 0x2ae   : > { %5574 = vmatpush1.bf16.msra.mxu0 %v7826_v12  ;;  %5738 = vmatpush1.bf16.msra.mxu1 %v7829_v14  ;;  %v7919_v12 = vld [vmem:[%s8224_s3 + $0x1108] ss:$48 sps:$4 sm:$0xff]   ;;  %v7924_v14 = vld [vmem:[%s8224_s3 + $0x1164] ss:$48 sps:$4 sm:$0xff]  }
 0x2af   : > { %5575 = vmatprep.subr.bf16.mxu0 %v7834_v16  ;;  %5739 = vmatprep.subr.bf16.mxu1 %v7837_v17  ;;  %v7927_v16 = vld [vmem:[%s8224_s3 + $0x116c] ss:$48 sps:$4 sm:$0xff]   ;;  %v7922_v17 = vld [vmem:[%s8224_s3 + $0x1160] ss:$48 sps:$4 sm:$0xff]  }
 0x2b2   : > { %5576 = vmatpush1.bf16.msra.mxu0 %v7832_v18  ;;  %5740 = vmatpush1.bf16.msra.mxu1 %v7835_v19  ;;  %v7925_v18 = vld [vmem:[%s8224_s3 + $0x1168] ss:$48 sps:$4 sm:$0xff]   ;;  %v7930_v19 = vld [vmem:[%s8224_s3 + $0x11c4] ss:$48 sps:$4 sm:$0xff]  }
 0x2b3   : > { %5586 = vmatprep.subr.bf16.mxu0 %v7840_v22  ;;  %5750 = vmatprep.subr.bf16.mxu1 %v7843_v23  ;;  %v7933_v22 = vld [vmem:[%s8224_s3 + $0x11cc] ss:$48 sps:$4 sm:$0xff]   ;;  %v7928_v23 = vld [vmem:[%s8224_s3 + $0x11c0] ss:$48 sps:$4 sm:$0xff]  }
 0x2b5   : > { %5578 = vmatmul.mubr.bf16.vlgmr.msra.gmra.mrb[8].mxu0 %v8385_v10  ;;  %5742 = vmatmul.mubr.bf16.vlgmr.msra.gmra.mrb[8].mxu1 %v8385_v10  ;;  %v7850_v10 = vld [vmem:[%s8224_s3 + $0xce0] ss:$48 sps:$4 sm:$0xff]  }
 0x2b6   : > { %5587 = vmatpush1.bf16.msra.mxu0 %v7838_v13  ;;  %5751 = vmatpush1.bf16.msra.mxu1 %v7841_v25  ;;  %v7931_v13 = vld [vmem:[%s8224_s3 + $0x11c8] ss:$48 sps:$4 sm:$0xff]   ;;  %v7936_v25 = vld [vmem:[%s8224_s3 + $0x1224] ss:$48 sps:$4 sm:$0xff]  }
 0x2b7   : > { %5588 = vmatprep.subr.bf16.mxu0 %v7846_v48  ;;  %5752 = vmatprep.subr.bf16.mxu1 %v7849_v5  ;;  %v7939_v48 = vld [vmem:[%s8224_s3 + $0x122c] ss:$48 sps:$4 sm:$0xff]   ;;  %v7934_v5 = vld [vmem:[%s8224_s3 + $0x1220] ss:$48 sps:$4 sm:$0xff]  }
 0x2b8   : > { %5618 = vmatprep.mubr.bf16.mxu0 %v8397_v15  ;;  %5782 = vmatprep.mubr.bf16.mxu1 %v8397_v15  ;;  %v7864_v15 = vld [vmem:[%s8224_s3 + $0xda4] ss:$48 sps:$4 sm:$0xff]  }
 0x2ba   : > { %5589 = vmatpush1.bf16.msra.mxu0 %v7844_v26  ;;  %5753 = vmatpush1.bf16.msra.mxu1 %v7847_v27  ;;  %v7937_v26 = vld [vmem:[%s8224_s3 + $0x1228] ss:$48 sps:$4 sm:$0xff]   ;;  %v7942_v27 = vld [vmem:[%s8224_s3 + $0x1284] ss:$48 sps:$4 sm:$0xff]  }
 0x2bb   : > { %5590 = vmatprep.subr.bf16.mxu0 %v7852_v29  ;;  %5754 = vmatprep.subr.bf16.mxu1 %v7855_v31  ;;  %v7945_v29 = vld [vmem:[%s8224_s3 + $0x128c] ss:$48 sps:$4 sm:$0xff]   ;;  %v7940_v31 = vld [vmem:[%s8224_s3 + $0x1280] ss:$48 sps:$4 sm:$0xff]  }
 0x2be   : > { %5591 = vmatpush1.bf16.msra.mxu0 %v7850_v10  ;;  %5755 = vmatpush1.bf16.msra.mxu1 %v7853_v32  ;;  %v7943_v10 = vld [vmem:[%s8224_s3 + $0x1288] ss:$48 sps:$4 sm:$0xff]   ;;  %v7948_v32 = vld [vmem:[%s8224_s3 + $0x12e4] ss:$48 sps:$4 sm:$0xff]  }
 0x2bf   : > { %5592 = vmatprep.subr.bf16.mxu0 %v7858_v30  ;;  %5756 = vmatprep.subr.bf16.mxu1 %v7861_v33  ;;  %v7951_v30 = vld [vmem:[%s8224_s3 + $0x12ec] ss:$48 sps:$4 sm:$0xff]   ;;  %v7949_v33 = vld [vmem:[%s8224_s3 + $0x12e8] ss:$48 sps:$4 sm:$0xff]  }
 0x2c2   : > { %5593 = vmatpush1.bf16.msra.mxu0 %v7856_v34  ;;  %5757 = vmatpush1.bf16.msra.mxu1 %v7859_v35  ;;  %v7954_v34 = vld [vmem:[%s8224_s3 + $0x1344] ss:$48 sps:$4 sm:$0xff]   ;;  %v7957_v35 = vld [vmem:[%s8224_s3 + $0x134c] ss:$48 sps:$4 sm:$0xff]  }
 0x2c3   : > { %5594 = vmatprep.subr.bf16.mxu0 %v7864_v15  ;;  %5758 = vmatprep.subr.bf16.mxu1 %v7867_v21  ;;  %v7952_v15 = vld [vmem:[%s8224_s3 + $0x1340] ss:$48 sps:$4 sm:$0xff]   ;;  %v7955_v21 = vld [vmem:[%s8224_s3 + $0x1348] ss:$48 sps:$4 sm:$0xff]  }
 0x2c6   : > { %5595 = vmatpush1.bf16.msra.mxu0 %v7862_v36  ;;  %5759 = vmatpush1.bf16.msra.mxu1 %v7865_v37  ;;  %v7963_v36 = vld [vmem:[%s8224_s3 + $0x13ac] ss:$48 sps:$4 sm:$0xff]   ;;  %v7958_v37 = vld [vmem:[%s8224_s3 + $0x13a0] ss:$48 sps:$4 sm:$0xff]  }
 0x2c7   : > { %5596 = vmatprep.subr.bf16.mxu0 %v7870_v38  ;;  %5760 = vmatprep.subr.bf16.mxu1 %v7873_v39  ;;  %v7961_v38 = vld [vmem:[%s8224_s3 + $0x13a8] ss:$48 sps:$4 sm:$0xff]   ;;  %v7966_v39 = vld [vmem:[%s8224_s3 + $0x1404] ss:$48 sps:$4 sm:$0xff]  }
 0x2ca   : > { %5597 = vmatpush1.bf16.msra.mxu0 %v7868_v40  ;;  %5761 = vmatpush1.bf16.msra.mxu1 %v7871_v41  ;;  %v7969_v40 = vld [vmem:[%s8224_s3 + $0x140c] ss:$48 sps:$4 sm:$0xff]   ;;  %v7964_v41 = vld [vmem:[%s8224_s3 + $0x1400] ss:$48 sps:$4 sm:$0xff]  }
 0x2cb   : > { %5598 = vmatprep.subr.bf16.mxu0 %v7876_v42  ;;  %5762 = vmatprep.subr.bf16.mxu1 %v7879_v43  ;;  %v7967_v42 = vld [vmem:[%s8224_s3 + $0x1408] ss:$48 sps:$4 sm:$0xff]   ;;  %v7972_v43 = vld [vmem:[%s8224_s3 + $0x1464] ss:$48 sps:$4 sm:$0xff]  }
 0x2ce   : > { %5599 = vmatpush1.bf16.msra.mxu0 %v7874_v44  ;;  %5763 = vmatpush1.bf16.msra.mxu1 %v7877_v45  ;;  %v7975_v44 = vld [vmem:[%s8224_s3 + $0x146c] ss:$48 sps:$4 sm:$0xff]  }
 0x2cf   : > { %5600 = vmatprep.subr.bf16.mxu0 %v7882_v46  ;;  %5764 = vmatprep.subr.bf16.mxu1 %v7885_v47 }
 0x2d2   : > { %5601 = vmatpush1.bf16.msra.mxu0 %v7880_v49  ;;  %5765 = vmatpush1.bf16.msra.mxu1 %v7883_v50 }
 0x2d3   : > { %5602 = vmatprep.subr.bf16.mxu0 %v7888_v51  ;;  %5766 = vmatprep.subr.bf16.mxu1 %v7891_v52  ;;  %v7970_v52 = vld [vmem:[%s8224_s3 + $0x1460] ss:$48 sps:$4 sm:$0xff]  }
 0x2d6   : > { %5603 = vmatpush1.bf16.msra.mxu0 %v7886_v53  ;;  %5767 = vmatpush1.bf16.msra.mxu1 %v7889_v54  ;;  %v7973_v53 = vld [vmem:[%s8224_s3 + $0x1468] ss:$48 sps:$4 sm:$0xff]  }
 0x2d7   : > { %5604 = vmatprep.subr.bf16.mxu0 %v7894_v55  ;;  %5768 = vmatprep.subr.bf16.mxu1 %v7897_v56  ;;  %v7978_v56 = vld [vmem:[%s8224_s3 + $0x14c4] ss:$48 sps:$4 sm:$0xff]  }
 0x2da   : > { %5605 = vmatpush1.bf16.msra.mxu0 %v7892_v57  ;;  %5769 = vmatpush1.bf16.msra.mxu1 %v7895_v58  ;;  %v7981_v57 = vld [vmem:[%s8224_s3 + $0x14cc] ss:$48 sps:$4 sm:$0xff]   ;;  %v7976_v58 = vld [vmem:[%s8224_s3 + $0x14c0] ss:$48 sps:$4 sm:$0xff]  }
 0x2db   : > { %5606 = vmatprep.subr.bf16.mxu0 %v7900_v59  ;;  %5770 = vmatprep.subr.bf16.mxu1 %v7903_v60  ;;  %v7979_v59 = vld [vmem:[%s8224_s3 + $0x14c8] ss:$48 sps:$4 sm:$0xff]   ;;  %v7984_v60 = vld [vmem:[%s8224_s3 + $0x1524] ss:$48 sps:$4 sm:$0xff]  }
 0x2de   : > { %5607 = vmatpush1.bf16.msra.mxu0 %v7898_v61  ;;  %5771 = vmatpush1.bf16.msra.mxu1 %v7901_v62  ;;  %v7987_v61 = vld [vmem:[%s8224_s3 + $0x152c] ss:$48 sps:$4 sm:$0xff]   ;;  %v7982_v62 = vld [vmem:[%s8224_s3 + $0x1520] ss:$48 sps:$4 sm:$0xff]  }
 0x2df   : > { %5608 = vmatprep.subr.bf16.mxu0 %v7906_v63  ;;  %5772 = vmatprep.subr.bf16.mxu1 %v7909_v0  ;;  %v7985_v63 = vld [vmem:[%s8224_s3 + $0x1528] ss:$48 sps:$4 sm:$0xff]   ;;  %v7990_v0 = vld [vmem:[%s8224_s3 + $0x1584] ss:$48 sps:$4 sm:$0xff]  }
 0x2e2   : > { %5609 = vmatpush1.bf16.msra.mxu0 %v7904_v1  ;;  %5773 = vmatpush1.bf16.msra.mxu1 %v7907_v2  ;;  %v7993_v1 = vld [vmem:[%s8224_s3 + $0x158c] ss:$48 sps:$4 sm:$0xff]   ;;  %v7988_v2 = vld [vmem:[%s8224_s3 + $0x1580] ss:$48 sps:$4 sm:$0xff]  }
 0x2e3   : > { %5610 = vmatprep.subr.bf16.mxu0 %v7912_v3  ;;  %5774 = vmatprep.subr.bf16.mxu1 %v7915_v4  ;;  %v7991_v3 = vld [vmem:[%s8224_s3 + $0x1588] ss:$48 sps:$4 sm:$0xff]   ;;  %v7996_v4 = vld [vmem:[%s8224_s3 + $0x15e4] ss:$48 sps:$4 sm:$0xff]  }
 0x2e6   : > { %5611 = vmatpush1.bf16.msra.mxu0 %v7910_v6  ;;  %5775 = vmatpush1.bf16.msra.mxu1 %v7913_v7  ;;  %v7999_v6 = vld [vmem:[%s8224_s3 + $0x15ec] ss:$48 sps:$4 sm:$0xff]   ;;  %v7994_v7 = vld [vmem:[%s8224_s3 + $0x15e0] ss:$48 sps:$4 sm:$0xff]  }
 0x2e7   : > { %5612 = vmatprep.subr.bf16.mxu0 %v7918_v8  ;;  %5776 = vmatprep.subr.bf16.mxu1 %v7921_v9  ;;  %v7997_v8 = vld [vmem:[%s8224_s3 + $0x15e8] ss:$48 sps:$4 sm:$0xff]   ;;  %v8002_v9 = vld [vmem:[%s8224_s3 + $0x1644] ss:$48 sps:$4 sm:$0xff]  }
 0x2ea   : > { %5613 = vmatpush1.bf16.msra.mxu0 %v7916_v11  ;;  %5777 = vmatpush1.bf16.msra.mxu1 %v7919_v12  ;;  %v8005_v11 = vld [vmem:[%s8224_s3 + $0x164c] ss:$48 sps:$4 sm:$0xff]   ;;  %v8000_v12 = vld [vmem:[%s8224_s3 + $0x1640] ss:$48 sps:$4 sm:$0xff]  }
 0x2eb   : > { %5614 = vmatprep.subr.bf16.mxu0 %v7924_v14  ;;  %5778 = vmatprep.subr.bf16.mxu1 %v7927_v16  ;;  %v8003_v14 = vld [vmem:[%s8224_s3 + $0x1648] ss:$48 sps:$4 sm:$0xff]   ;;  %v8008_v16 = vld [vmem:[%s8224_s3 + $0x16a4] ss:$48 sps:$4 sm:$0xff]  }
 0x2ee   : > { %5615 = vmatpush1.bf16.msra.mxu0 %v7922_v17  ;;  %5779 = vmatpush1.bf16.msra.mxu1 %v7925_v18  ;;  %v8011_v17 = vld [vmem:[%s8224_s3 + $0x16ac] ss:$48 sps:$4 sm:$0xff]   ;;  %v8006_v18 = vld [vmem:[%s8224_s3 + $0x16a0] ss:$48 sps:$4 sm:$0xff]  }
 0x2ef   : > { %5616 = vmatprep.subr.bf16.mxu0 %v7930_v19  ;;  %5780 = vmatprep.subr.bf16.mxu1 %v7933_v22  ;;  %v8009_v19 = vld [vmem:[%s8224_s3 + $0x16a8] ss:$48 sps:$4 sm:$0xff]   ;;  %v8014_v22 = vld [vmem:[%s8224_s3 + $0x1704] ss:$48 sps:$4 sm:$0xff]  }
 0x2f2   : > { %5617 = vmatpush1.bf16.msra.mxu0 %v7928_v23  ;;  %5781 = vmatpush1.bf16.msra.mxu1 %v7931_v13  ;;  %v8017_v23 = vld [vmem:[%s8224_s3 + $0x170c] ss:$48 sps:$4 sm:$0xff]   ;;  %v8012_v13 = vld [vmem:[%s8224_s3 + $0x1700] ss:$48 sps:$4 sm:$0xff]  }
 0x2f3   : > { %5627 = vmatprep.subr.bf16.mxu0 %v7936_v25  ;;  %5791 = vmatprep.subr.bf16.mxu1 %v7939_v48  ;;  %v8015_v25 = vld [vmem:[%s8224_s3 + $0x1708] ss:$48 sps:$4 sm:$0xff]   ;;  %v8020_v48 = vld [vmem:[%s8224_s3 + $0x1764] ss:$48 sps:$4 sm:$0xff]  }
 0x2f5   : > { %5619 = vmatmul.mubr.bf16.vlgmr.msra.gmra.mrb[8].mxu0 %v8467_v20  ;;  %5783 = vmatmul.mubr.bf16.vlgmr.msra.gmra.mrb[8].mxu1 %v8467_v20  ;;  %v7946_v20 = vld [vmem:[%s8224_s3 + $0x12e0] ss:$48 sps:$4 sm:$0xff]  }
 0x2f6   : > { %5628 = vmatpush1.bf16.msra.mxu0 %v7934_v5  ;;  %5792 = vmatpush1.bf16.msra.mxu1 %v7937_v26  ;;  %v8023_v5 = vld [vmem:[%s8224_s3 + $0x176c] ss:$48 sps:$4 sm:$0xff]   ;;  %v8018_v26 = vld [vmem:[%s8224_s3 + $0x1760] ss:$48 sps:$4 sm:$0xff]  }
 0x2f7   : > { %5629 = vmatprep.subr.bf16.mxu0 %v7942_v27  ;;  %5793 = vmatprep.subr.bf16.mxu1 %v7945_v29  ;;  %v8021_v27 = vld [vmem:[%s8224_s3 + $0x1768] ss:$48 sps:$4 sm:$0xff]   ;;  %v8026_v29 = vld [vmem:[%s8224_s3 + $0x17c4] ss:$48 sps:$4 sm:$0xff]  }
 0x2f8   : > { %5659 = vmatprep.mubr.bf16.mxu0 %v8478_v24  ;;  %5823 = vmatprep.mubr.bf16.mxu1 %v8478_v24  ;;  %v7960_v24 = vld [vmem:[%s8224_s3 + $0x13a4] ss:$48 sps:$4 sm:$0xff]  }
 0x2fa   : > { %5630 = vmatpush1.bf16.msra.mxu0 %v7940_v31  ;;  %5794 = vmatpush1.bf16.msra.mxu1 %v7943_v10  ;;  %v8029_v31 = vld [vmem:[%s8224_s3 + $0x17cc] ss:$48 sps:$4 sm:$0xff]   ;;  %v8024_v10 = vld [vmem:[%s8224_s3 + $0x17c0] ss:$48 sps:$4 sm:$0xff]  }
 0x2fb   : > { %5631 = vmatprep.subr.bf16.mxu0 %v7948_v32  ;;  %5795 = vmatprep.subr.bf16.mxu1 %v7951_v30  ;;  %v8027_v32 = vld [vmem:[%s8224_s3 + $0x17c8] ss:$48 sps:$4 sm:$0xff]  }
 0x2fe   : > { %5632 = vmatpush1.bf16.msra.mxu0 %v7946_v20  ;;  %5796 = vmatpush1.bf16.msra.mxu1 %v7949_v33 }
 0x2ff   : > { %5633 = vmatprep.subr.bf16.mxu0 %v7954_v34  ;;  %5797 = vmatprep.subr.bf16.mxu1 %v7957_v35 }
 0x302   : > { %5634 = vmatpush1.bf16.msra.mxu0 %v7952_v15  ;;  %5798 = vmatpush1.bf16.msra.mxu1 %v7955_v21 }
 0x303   : > { %5635 = vmatprep.subr.bf16.mxu0 %v7960_v24  ;;  %5799 = vmatprep.subr.bf16.mxu1 %v7963_v36 }
 0x306   : > { %5636 = vmatpush1.bf16.msra.mxu0 %v7958_v37  ;;  %5800 = vmatpush1.bf16.msra.mxu1 %v7961_v38 }
 0x307   : > { %5637 = vmatprep.subr.bf16.mxu0 %v7966_v39  ;;  %5801 = vmatprep.subr.bf16.mxu1 %v7969_v40 }
 0x308   : > { %v5333_v45 = vpop.f32.mrb[4].mxu0  ;;  %v5497_v46 = vpop.f32.mrb[4].mxu1 }
 0x309   : > { %5836 = vst [vmem:[%s8780_s15 + $0x20] sm:$0xff] %v5333_v45  ;;  %5838 = vst [vmem:[%s8780_s15 + $0x30] sm:$0xff] %v5497_v46  ;;  %v5335_v47 = vpop.f32.mrb[5].mxu0  ;;  %v5499_v49 = vpop.f32.mrb[5].mxu1 }
 0x30a   : > { %5837 = vst [vmem:[%s8780_s15 + $0x28] sm:$0xff] %v5335_v47  ;;  %5839 = vst [vmem:[%s8780_s15 + $0x38] sm:$0xff] %v5499_v49  ;;  %v5337_v50 = vpop.f32.mrb[6].mxu0  ;;  %v5501_v51 = vpop.f32.mrb[6].mxu1  ;;  %5638 = vmatpush1.bf16.msra.mxu0 %v7964_v41  ;;  %5802 = vmatpush1.bf16.msra.mxu1 %v7967_v42 }
 0x30b   : > { %v5338_v54 = vpop.f32.mrb[7].mxu0  ;;  %v5502_v55 = vpop.f32.mrb[7].mxu1  ;;  %5639 = vmatprep.subr.bf16.mxu0 %v7972_v43  ;;  %5803 = vmatprep.subr.bf16.mxu1 %v7975_v44 }
 0x30e   : > { %5640 = vmatpush1.bf16.msra.mxu0 %v7970_v52  ;;  %5804 = vmatpush1.bf16.msra.mxu1 %v7973_v53 }
 0x30f   : > { %5641 = vmatprep.subr.bf16.mxu0 %v7978_v56  ;;  %5805 = vmatprep.subr.bf16.mxu1 %v7981_v57 }
 0x312   : > { %5642 = vmatpush1.bf16.msra.mxu0 %v7976_v58  ;;  %5806 = vmatpush1.bf16.msra.mxu1 %v7979_v59 }
 0x313   : > { %5643 = vmatprep.subr.bf16.mxu0 %v7984_v60  ;;  %5807 = vmatprep.subr.bf16.mxu1 %v7987_v61 }
 0x316   : > { %5644 = vmatpush1.bf16.msra.mxu0 %v7982_v62  ;;  %5808 = vmatpush1.bf16.msra.mxu1 %v7985_v63 }
 0x317   : > { %5645 = vmatprep.subr.bf16.mxu0 %v7990_v0  ;;  %5809 = vmatprep.subr.bf16.mxu1 %v7993_v1 }
 0x31a   : > { %5646 = vmatpush1.bf16.msra.mxu0 %v7988_v2  ;;  %5810 = vmatpush1.bf16.msra.mxu1 %v7991_v3 }
 0x31b   : > { %5647 = vmatprep.subr.bf16.mxu0 %v7996_v4  ;;  %5811 = vmatprep.subr.bf16.mxu1 %v7999_v6 }
 0x31e   : > { %5648 = vmatpush1.bf16.msra.mxu0 %v7994_v7  ;;  %5812 = vmatpush1.bf16.msra.mxu1 %v7997_v8 }
 0x31f   : > { %5649 = vmatprep.subr.bf16.mxu0 %v8002_v9  ;;  %5813 = vmatprep.subr.bf16.mxu1 %v8005_v11 }
 0x322   : > { %5650 = vmatpush1.bf16.msra.mxu0 %v8000_v12  ;;  %5814 = vmatpush1.bf16.msra.mxu1 %v8003_v14 }
 0x323   : > { %5651 = vmatprep.subr.bf16.mxu0 %v8008_v16  ;;  %5815 = vmatprep.subr.bf16.mxu1 %v8011_v17 }
 0x326   : > { %5652 = vmatpush1.bf16.msra.mxu0 %v8006_v18  ;;  %5816 = vmatpush1.bf16.msra.mxu1 %v8009_v19 }
 0x327   : > { %5653 = vmatprep.subr.bf16.mxu0 %v8014_v22  ;;  %5817 = vmatprep.subr.bf16.mxu1 %v8017_v23 }
 0x32a   : > { %5654 = vmatpush1.bf16.msra.mxu0 %v8012_v13  ;;  %5818 = vmatpush1.bf16.msra.mxu1 %v8015_v25 }
 0x32b   : > { %5655 = vmatprep.subr.bf16.mxu0 %v8020_v48  ;;  %5819 = vmatprep.subr.bf16.mxu1 %v8023_v5 }
 0x32e   : > { %5656 = vmatpush1.bf16.msra.mxu0 %v8018_v26  ;;  %5820 = vmatpush1.bf16.msra.mxu1 %v8021_v27 }
 0x32f   : > { %5657 = vmatprep.subr.bf16.mxu0 %v8026_v29  ;;  %5821 = vmatprep.subr.bf16.mxu1 %v8029_v31 }
 0x332   : > { %5658 = vmatpush1.bf16.msra.mxu0 %v8024_v10  ;;  %5822 = vmatpush1.bf16.msra.mxu1 %v8027_v32 }
 0x335   : > { %5660 = vmatmul.mubr.bf16.vlgmr.msra.gmra.mrb[8].mxu0 %v8546_v28  ;;  %5824 = vmatmul.mubr.bf16.vlgmr.msra.gmra.mrb[8].mxu1 %v8546_v28 }
 0x408   : > { %v5661_v30 = vpop.f32.mrb[8].mxu0  ;;  %v5825_v20 = vpop.f32.mrb[8].mxu1 }
 0x409   : > { %5840 = vst [vmem:[%s8780_s15 + $0x40] sm:$0xff] %v5661_v30  ;;  %5842 = vst [vmem:[%s8780_s15 + $0x50] sm:$0xff] %v5825_v20  ;;  %v5663_v33 = vpop.f32.mrb[9].mxu0  ;;  %v5827_v34 = vpop.f32.mrb[9].mxu1 }
 0x40a   : > { %5841 = vst [vmem:[%s8780_s15 + $0x48] sm:$0xff] %v5663_v33  ;;  %5843 = vst [vmem:[%s8780_s15 + $0x58] sm:$0xff] %v5827_v34  ;;  %v5665_v35 = vpop.f32.mrb[10].mxu0  ;;  %v5829_v15 = vpop.f32.mrb[10].mxu1 }
 0x40b   : > { %v5666_v21 = vpop.f32.mrb[11].mxu0  ;;  %v5830_v24 = vpop.f32.mrb[11].mxu1 }
 0x40c PF: > { %s15_s14 = sadd.s32 1, %s8110_s14   ;;  %s9134_s9 = smov %s8094_s10 }
 0x40d   : > { %p12_p9 = scmp.ge.s32.totalorder %s15_s14, 5   ;;  %s9135_s10 = smov %s8098_s11 }
 0x40e   : > { %s9136_s11 = smov %s8176_s20  ;;  %s9137_s12 = smov %s8106_s13 }
 0x40f   : > { %s9138_s13 = smov %s9140_s16  ;;  %14 = sbr.rel (!%p12_p9) target bundleno = 4 (0x4), region = 71 }
 0x416   :  { %5874 = vsyncpa [#allocation3], 1 }
 0x417   :  { %5876 = vsyncpa [#allocation3 + $0x1], 1 }

// kernel: generator_forward.10
= control target key start
LH: loop header
LB: loop body
LE: loop exit
PB: predicated region body
PF: predicated region fallthrough
CT: control target
= control target key end

     0   :  { %vm75_vm0 = vcmask 1041408   ;;  %s1352_s0 = inlined_call_operand.vmem [shape: f32[162,256], index: 0, kind: input, shape index: {}]   ;;  %s1353_s1 = inlined_call_operand.vmem [shape: f32[1,256], index: 1, kind: input, shape index: {}]   ;;  %s1354_s2 = inlined_call_operand.vmem [shape: f32[1,256], index: 2, kind: input, shape index: {}]   ;;  %s1355_s3 = inlined_call_operand.vmem [shape: bf16[162,256], index: 3, kind: output, shape index: {}]  }
   0x1   :  { %v640_v0 = vld [vmem:[%s1352_s0] sm:$0xff]  ;;  %v645_v1 = vld [vmem:[%s1352_s0 + $0x8] sm:$0xff]  ;;  %v650_v2 = vld [vmem:[%s1352_s0 + $0x10] sm:$0xff] }
   0x2   :  { %v655_v3 = vld [vmem:[%s1352_s0 + $0x18] sm:$0xff]  ;;  %v660_v4 = vld [vmem:[%s1352_s0 + $0x20] sm:$0xff]  ;;  %v665_v5 = vld [vmem:[%s1352_s0 + $0x28] sm:$0xff]  ;;  %v56_v6 = vadd.f32 %v650_v2, %v640_v0 }
   0x3   :  { %v672_v7 = vld [vmem:[%s1352_s0 + $0x30] sm:$0xff]  ;;  %v84_v8 = vadd.f32 %v655_v3, %v645_v1  ;;  %v679_v9 = vld [vmem:[%s1352_s0 + $0x38] sm:$0xff]  ;;  %v685_v11 = vld [vmem:[%s1352_s0 + $0x40] sm:$0xff] }
   0x4   :  { %v57_v10 = vadd.f32 %v56_v6, %v660_v4  ;;  %v691_v13 = vld [vmem:[%s1352_s0 + $0x48] sm:$0xff]  ;;  %v697_v15 = vld [vmem:[%s1352_s0 + $0x50] sm:$0xff]  ;;  %v703_v17 = vld [vmem:[%s1352_s0 + $0x58] sm:$0xff] }
   0x5   :  { %v85_v12 = vadd.f32 %v84_v8, %v665_v5  ;;  %v709_v19 = vld [vmem:[%s1352_s0 + $0x60] sm:$0xff]  ;;  %v715_v21 = vld [vmem:[%s1352_s0 + $0x68] sm:$0xff]  ;;  %v721_v23 = vld [vmem:[%s1352_s0 + $0x70] sm:$0xff] }
   0x6   :  { %v58_v14 = vadd.f32 %v57_v10, %v672_v7  ;;  %v727_v25 = vld [vmem:[%s1352_s0 + $0x78] sm:$0xff]  ;;  %v733_v27 = vld [vmem:[%s1352_s0 + $0x80] sm:$0xff]  ;;  %v739_v29 = vld [vmem:[%s1352_s0 + $0x88] sm:$0xff] }
   0x7   :  { %v86_v16 = vadd.f32 %v85_v12, %v679_v9  ;;  %v745_v31 = vld [vmem:[%s1352_s0 + $0x90] sm:$0xff]  ;;  %v751_v33 = vld [vmem:[%s1352_s0 + $0x98] sm:$0xff]  ;;  %v757_v35 = vld [vmem:[%s1352_s0 + $0xa0] sm:$0xff] }
   0x8   :  { %v59_v18 = vadd.f32 %v58_v14, %v685_v11  ;;  %v763_v37 = vld [vmem:[%s1352_s0 + $0xa8] sm:$0xff]  ;;  %v769_v39 = vld [vmem:[%s1352_s0 + $0xb0] sm:$0xff]  ;;  %v775_v41 = vld [vmem:[%s1352_s0 + $0xb8] sm:$0xff] }
   0x9   :  { %v87_v20 = vadd.f32 %v86_v16, %v691_v13  ;;  %v781_v43 = vld [vmem:[%s1352_s0 + $0xc0] sm:$0xff]  ;;  %v787_v45 = vld [vmem:[%s1352_s0 + $0xc8] sm:$0xff]  ;;  %v793_v47 = vld [vmem:[%s1352_s0 + $0xd0] sm:$0xff] }
   0xa   :  { %v60_v22 = vadd.f32 %v59_v18, %v697_v15  ;;  %v799_v49 = vld [vmem:[%s1352_s0 + $0xd8] sm:$0xff]  ;;  %v805_v51 = vld [vmem:[%s1352_s0 + $0xe0] sm:$0xff]  ;;  %v811_v53 = vld [vmem:[%s1352_s0 + $0xe8] sm:$0xff] }
   0xb   :  { %v88_v24 = vadd.f32 %v87_v20, %v703_v17  ;;  %v817_v55 = vld [vmem:[%s1352_s0 + $0xf0] sm:$0xff]  ;;  %v823_v57 = vld [vmem:[%s1352_s0 + $0xf8] sm:$0xff]  ;;  %v829_v59 = vld [vmem:[%s1352_s0 + $0x100] sm:$0xff] }
   0xc   :  { %v61_v26 = vadd.f32 %v60_v22, %v709_v19  ;;  %v835_v61 = vld [vmem:[%s1352_s0 + $0x108] sm:$0xff]  ;;  %v841_v63 = vld [vmem:[%s1352_s0 + $0x110] sm:$0xff]  ;;  %v847_v8 = vld [vmem:[%s1352_s0 + $0x118] sm:$0xff] }
   0xd   :  { %v89_v28 = vadd.f32 %v88_v24, %v715_v21  ;;  %v853_v12 = vld [vmem:[%s1352_s0 + $0x120] sm:$0xff]  ;;  %v859_v16 = vld [vmem:[%s1352_s0 + $0x128] sm:$0xff]  ;;  %v870_v22 = vld [vmem:[%s1352_s0 + $0x130] sm:$0xff] }
   0xe   :  { %v62_v30 = vadd.f32 %v61_v26, %v721_v23  ;;  %v864_v18 = vld [vmem:[%s1352_s0 + $0x140] sm:$0x3]  ;;  %v875_v24 = vld [vmem:[%s1352_s0 + $0x148] sm:$0x3] }
   0xf   :  { %v90_v32 = vadd.f32 %v89_v28, %v727_v25  ;;  %v881_v28 = vld [vmem:[%s1352_s0 + $0x138] sm:$0xff] }
  0x10   :  { %v63_v34 = vadd.f32 %v62_v30, %v733_v27 }
  0x11   :  { %v91_v36 = vadd.f32 %v90_v32, %v739_v29  ;;  %v76_v32 = vsel %vm75_vm0, %v864_v18, 0.0 }
  0x12   :  { %v64_v38 = vadd.f32 %v63_v34, %v745_v31 }
  0x13   :  { %v92_v40 = vadd.f32 %v91_v36, %v751_v33 }
  0x14   :  { %v65_v42 = vadd.f32 %v64_v38, %v757_v35  ;;  %v103_v38 = vsel %vm75_vm0, %v875_v24, 0.0 }
  0x15   :  { %v93_v44 = vadd.f32 %v92_v40, %v763_v37 }
  0x16   :  { %v66_v46 = vadd.f32 %v65_v42, %v769_v39 }
  0x17   :  { %v94_v48 = vadd.f32 %v93_v44, %v775_v41 }
  0x18   :  { %v67_v50 = vadd.f32 %v66_v46, %v781_v43 }
  0x19   :  { %v95_v52 = vadd.f32 %v94_v48, %v787_v45 }
  0x1a   :  { %v68_v54 = vadd.f32 %v67_v50, %v793_v47 }
  0x1b   :  { %v96_v56 = vadd.f32 %v95_v52, %v799_v49 }
  0x1c   :  { %v69_v58 = vadd.f32 %v68_v54, %v805_v51 }
  0x1d   :  { %v97_v60 = vadd.f32 %v96_v56, %v811_v53 }
  0x1e   :  { %v70_v62 = vadd.f32 %v69_v58, %v817_v55 }
  0x1f   :  { %v98_v6 = vadd.f32 %v97_v60, %v823_v57 }
  0x20   :  { %v71_v10 = vadd.f32 %v70_v62, %v829_v59 }
  0x21   :  { %v99_v14 = vadd.f32 %v98_v6, %v835_v61 }
  0x22   :  { %v72_v20 = vadd.f32 %v71_v10, %v841_v63 }
  0x23   :  { %v100_v26 = vadd.f32 %v99_v14, %v847_v8 }
  0x24   :  { %v73_v30 = vadd.f32 %v72_v20, %v853_v12 }
  0x25   :  { %v101_v34 = vadd.f32 %v100_v26, %v859_v16 }
  0x26   :  { %v74_v36 = vadd.f32 %v73_v30, %v870_v22 }
  0x27   :  { %v102_v40 = vadd.f32 %v101_v34, %v881_v28 }
  0x28   :  { %v77_v42 = vadd.f32 %v76_v32, %v74_v36 }
  0x29   :  { %v104_v44 = vadd.f32 %v103_v38, %v102_v40 }
  0x2a   :  { %v78_v46 = vrot.slane %v77_v42, 4 }
  0x2b   :  { %v105_v48 = vrot.slane %v104_v44, 4 }
  0x2c   :  { %v79_v50 = vadd.f32 %v78_v46, %v77_v42 }
  0x2d   :  { %v106_v52 = vadd.f32 %v105_v48, %v104_v44 }
  0x2e   :  { %v80_v54 = vrot.slane %v79_v50, 2 }
  0x2f   :  { %v107_v56 = vrot.slane %v106_v52, 2 }
  0x30   :  { %v81_v58 = vadd.f32 %v80_v54, %v79_v50 }
  0x31   :  { %v108_v60 = vadd.f32 %v107_v56, %v106_v52 }
  0x32   :  { %v82_v62 = vrot.slane %v81_v58, 1 }
  0x33   :  { %v109_v6 = vrot.slane %v108_v60, 1 }
  0x34   :  { %v83_v10 = vadd.f32 %v82_v62, %v81_v58 }
  0x35   :  { %v110_v14 = vadd.f32 %v109_v6, %v108_v60 }
  0x36   :  { %v891_v20 = vmul.f32 0.0061728396, %v83_v10 }
  0x37   :  { %v893_v26 = vmul.f32 0.0061728396, %v110_v14 }
  0x38   :  { %v897_v30 = vsub.f32 %v640_v0, %v891_v20  ;;  %v905_v34 = vsub.f32 %v650_v2, %v891_v20  ;;  %v913_v38 = vsub.f32 %v660_v4, %v891_v20  ;;  %v949_v46 = vsub.f32 %v697_v15, %v891_v20 }
  0x39   :  { %v901_v32 = vsub.f32 %v645_v1, %v893_v26  ;;  %v909_v36 = vsub.f32 %v655_v3, %v893_v26  ;;  %v917_v0 = vsub.f32 %v665_v5, %v893_v26  ;;  %v921_v1 = vsub.f32 %v672_v7, %v891_v20 }
  0x3a   :  { %v925_v2 = vsub.f32 %v679_v9, %v893_v26  ;;  %v156_v3 = vmul.f32 %v897_v30, %v897_v30  ;;  %v158_v4 = vmul.f32 %v905_v34, %v905_v34  ;;  %v937_v7 = vsub.f32 %v685_v11, %v891_v20 }
  0x3b   :  { %v157_v40 = vmul.f32 %v901_v32, %v901_v32  ;;  %v159_v5 = vmul.f32 %v909_v36, %v909_v36  ;;  %v941_v9 = vsub.f32 %v691_v13, %v893_v26  ;;  %v160_v42 = vmul.f32 %v913_v38, %v913_v38 }
  0x3c   :  { %v161_v44 = vmul.f32 %v917_v0, %v917_v0  ;;  %v953_v48 = vsub.f32 %v703_v17, %v893_v26  ;;  %v162_v11 = vmul.f32 %v921_v1, %v921_v1  ;;  %v163_v13 = vmul.f32 %v925_v2, %v925_v2 }
  0x3d   :  { %v198_v50 = vadd.f32 %v158_v4, %v156_v3  ;;  %v225_v52 = vadd.f32 %v159_v5, %v157_v40  ;;  %v961_v54 = vsub.f32 %v709_v19, %v891_v20  ;;  %v965_v15 = vsub.f32 %v715_v21, %v893_v26 }
  0x3e   :  { %v164_v17 = vmul.f32 %v937_v7, %v937_v7  ;;  %v165_v56 = vmul.f32 %v941_v9, %v941_v9  ;;  %v973_v62 = vsub.f32 %v721_v23, %v891_v20  ;;  %v977_v19 = vsub.f32 %v727_v25, %v893_v26 }
  0x3f   :  { %v199_v58 = vadd.f32 %v198_v50, %v160_v42  ;;  %v226_v60 = vadd.f32 %v225_v52, %v161_v44  ;;  %v166_v21 = vmul.f32 %v949_v46, %v949_v46  ;;  %v167_v6 = vmul.f32 %v953_v48, %v953_v48 }
  0x40   :  { %v985_v3 = vsub.f32 %v733_v27, %v891_v20  ;;  %v989_v23 = vsub.f32 %v739_v29, %v893_v26  ;;  %v168_v25 = vmul.f32 %v961_v54, %v961_v54  ;;  %v169_v40 = vmul.f32 %v965_v15, %v965_v15 }
  0x41   :  { %v200_v10 = vadd.f32 %v199_v58, %v162_v11  ;;  %v227_v14 = vadd.f32 %v226_v60, %v163_v13  ;;  %v997_v42 = vsub.f32 %v745_v31, %v891_v20  ;;  %v1001_v27 = vsub.f32 %v751_v33, %v893_v26 }
  0x42   :  { %v170_v29 = vmul.f32 %v973_v62, %v973_v62  ;;  %v171_v44 = vmul.f32 %v977_v19, %v977_v19  ;;  %v1009_v50 = vsub.f32 %v757_v35, %v891_v20  ;;  %v1013_v31 = vsub.f32 %v763_v37, %v893_v26 }
  0x43   :  { %v201_v4 = vadd.f32 %v200_v10, %v164_v17  ;;  %v228_v5 = vadd.f32 %v227_v14, %v165_v56  ;;  %v172_v33 = vmul.f32 %v985_v3, %v985_v3  ;;  %v173_v52 = vmul.f32 %v989_v23, %v989_v23 }
  0x44   :  { %v1021_v58 = vsub.f32 %v769_v39, %v891_v20  ;;  %v1025_v35 = vsub.f32 %v775_v41, %v893_v26  ;;  %v174_v37 = vmul.f32 %v997_v42, %v997_v42  ;;  %v175_v60 = vmul.f32 %v1001_v27, %v1001_v27 }
  0x45   :  { %v202_v11 = vadd.f32 %v201_v4, %v166_v21  ;;  %v229_v13 = vadd.f32 %v228_v5, %v167_v6  ;;  %v1033_v10 = vsub.f32 %v781_v43, %v891_v20  ;;  %v1037_v39 = vsub.f32 %v787_v45, %v893_v26 }
  0x46   :  { %v176_v41 = vmul.f32 %v1009_v50, %v1009_v50  ;;  %v177_v14 = vmul.f32 %v1013_v31, %v1013_v31  ;;  %v1045_v4 = vsub.f32 %v793_v47, %v891_v20  ;;  %v1049_v43 = vsub.f32 %v799_v49, %v893_v26 }
  0x47   :  { %v203_v17 = vadd.f32 %v202_v11, %v168_v25  ;;  %v230_v56 = vadd.f32 %v229_v13, %v169_v40  ;;  %v178_v45 = vmul.f32 %v1021_v58, %v1021_v58  ;;  %v179_v5 = vmul.f32 %v1025_v35, %v1025_v35 }
  0x48   :  { %v1057_v11 = vsub.f32 %v805_v51, %v891_v20  ;;  %v1061_v47 = vsub.f32 %v811_v53, %v893_v26  ;;  %v180_v49 = vmul.f32 %v1033_v10, %v1033_v10  ;;  %v181_v13 = vmul.f32 %v1037_v39, %v1037_v39 }
  0x49   :  { %v204_v21 = vadd.f32 %v203_v17, %v170_v29  ;;  %v231_v6 = vadd.f32 %v230_v56, %v171_v44  ;;  %v1069_v17 = vsub.f32 %v817_v55, %v891_v20  ;;  %v1073_v51 = vsub.f32 %v823_v57, %v893_v26 }
  0x4a   :  { %v182_v53 = vmul.f32 %v1045_v4, %v1045_v4  ;;  %v183_v56 = vmul.f32 %v1049_v43, %v1049_v43  ;;  %v1085_v55 = vsub.f32 %v835_v61, %v893_v26  ;;  %v184_v57 = vmul.f32 %v1057_v11, %v1057_v11 }
  0x4b   :  { %v205_v25 = vadd.f32 %v204_v21, %v172_v33  ;;  %v232_v40 = vadd.f32 %v231_v6, %v173_v52  ;;  %v1081_v21 = vsub.f32 %v829_v59, %v891_v20  ;;  %v185_v6 = vmul.f32 %v1061_v47, %v1061_v47 }
  0x4c   :  { %v1097_v59 = vsub.f32 %v847_v8, %v893_v26  ;;  %v186_v61 = vmul.f32 %v1069_v17, %v1069_v17 }
  0x4d   :  { %v206_v29 = vadd.f32 %v205_v25, %v174_v37  ;;  %v233_v44 = vadd.f32 %v232_v40, %v175_v60  ;;  %v1093_v25 = vsub.f32 %v841_v63, %v891_v20  ;;  %v187_v40 = vmul.f32 %v1073_v51, %v1073_v51 }
  0x4e   :  { %v1109_v63 = vsub.f32 %v859_v16, %v893_v26  ;;  %v188_v8 = vmul.f32 %v1081_v21, %v1081_v21  ;;  %v1125_v16 = vsub.f32 %v864_v18, %v891_v20 }
  0x4f   :  { %v207_v33 = vadd.f32 %v206_v29, %v176_v41  ;;  %v234_v52 = vadd.f32 %v233_v44, %v177_v14  ;;  %v1105_v29 = vsub.f32 %v853_v12, %v891_v20  ;;  %v189_v44 = vmul.f32 %v1085_v55, %v1085_v55 }
  0x50   :  { %1363 = vst [vmem:[#allocation3_spill] sm:$0xff] %v1109_v63  ;;  %v1121_v12 = vsub.f32 %v881_v28, %v893_v26  ;;  %1366 = vst [vmem:[#allocation6_spill] sm:$0xff] %v1125_v16 }
  0x51   :  { %v208_v37 = vadd.f32 %v207_v33, %v178_v45  ;;  %v235_v60 = vadd.f32 %v234_v52, %v179_v5  ;;  %1362 = vst [vmem:[#allocation2_spill] sm:$0xff] %v1105_v29  ;;  %v1117_v33 = vsub.f32 %v870_v22, %v891_v20  ;;  %v1129_v52 = vsub.f32 %v875_v24, %v893_v26 }
  0x52   :  { %1365 = vst [vmem:[#allocation5_spill] sm:$0xff] %v1121_v12  ;;  %v192_v28 = vmul.f32 %v1105_v29, %v1105_v29  ;;  %v196_v24 = vmul.f32 %v1125_v16, %v1125_v16 }
  0x53   :  { %v209_v41 = vadd.f32 %v208_v37, %v180_v49  ;;  %v236_v14 = vadd.f32 %v235_v60, %v181_v13  ;;  %1364 = vst [vmem:[#allocation4_spill] sm:$0xff] %v1117_v33  ;;  %1367 = vst [vmem:[#allocation7_spill] sm:$0xff] %v1129_v52  ;;  %v193_v60 = vmul.f32 %v1109_v63, %v1109_v63 }
  0x54   :  { %v197_v26 = vmul.f32 %v1129_v52, %v1129_v52 }
  0x55   :  { %v210_v45 = vadd.f32 %v209_v41, %v182_v53  ;;  %v237_v5 = vadd.f32 %v236_v14, %v183_v56  ;;  %v190_v53 = vmul.f32 %v1093_v25, %v1093_v25  ;;  %v191_v56 = vmul.f32 %v1097_v59, %v1097_v59 }
  0x57   :  { %v211_v49 = vadd.f32 %v210_v45, %v184_v57  ;;  %v238_v13 = vadd.f32 %v237_v5, %v185_v6  ;;  %v194_v57 = vmul.f32 %v1117_v33, %v1117_v33  ;;  %v195_v6 = vmul.f32 %v1121_v12, %v1121_v12 }
  0x58   :  { %v217_v45 = vsel %vm75_vm0, %v196_v24, 0.0  ;;  %v244_v5 = vsel %vm75_vm0, %v197_v26, 0.0 }
  0x59   :  { %v212_v22 = vadd.f32 %v211_v49, %v186_v61  ;;  %v239_v37 = vadd.f32 %v238_v13, %v187_v40 }
  0x5b   :  { %v213_v18 = vadd.f32 %v212_v22, %v188_v8  ;;  %v240_v20 = vadd.f32 %v239_v37, %v189_v44 }
  0x5d   :  { %v214_v41 = vadd.f32 %v213_v18, %v190_v53  ;;  %v241_v14 = vadd.f32 %v240_v20, %v191_v56  ;;  %v260_v18 = vlaneseq }
  0x5f   :  { %v215_v61 = vadd.f32 %v214_v41, %v192_v28  ;;  %v242_v40 = vadd.f32 %v241_v14, %v193_v60  ;;  %v258_v14 = vld [vmem:[%s1353_s1] sm:$0x3] }
  0x61   :  { %v216_v8 = vadd.f32 %v215_v61, %v194_v57  ;;  %v243_v44 = vadd.f32 %v242_v40, %v195_v6  ;;  %v261_v6 = vshrl.u32 %v260_v18, 7 }
  0x63   :  { %v218_v49 = vadd.f32 %v217_v45, %v216_v8  ;;  %v245_v13 = vadd.f32 %v244_v5, %v243_v44  ;;  %v262_v41 = vsub.s32 0, %v261_v6  ;;  %v266_v61 = vsub.s32 1, %v261_v6 }
  0x65   :  { %v219_v22 = vrot.slane %v218_v49, 4  ;;  %v246_v37 = vrot.slane %v245_v13, 4 }
  0x67   :  { %v220_v52 = vadd.f32 %v219_v22, %v218_v49  ;;  %v247_v16 = vadd.f32 %v246_v37, %v245_v13 }
  0x69   :  { %v221_v33 = vrot.slane %v220_v52, 2  ;;  %v248_v63 = vrot.slane %v247_v16, 2 }
  0x6b   :  { %v222_v29 = vadd.f32 %v221_v33, %v220_v52  ;;  %v249_v12 = vadd.f32 %v248_v63, %v247_v16  ;;  %v263_v33 = vrot.slane %v258_v14, %v262_v41  ;;  %v267_v63 = vrot.slane %v258_v14, %v266_v61 }
  0x6d   :  { %v223_v53 = vrot.slane %v222_v29, 1  ;;  %v250_v56 = vrot.slane %v249_v12, 1 }
  0x6f   :  { %v224_v28 = vadd.f32 %v223_v53, %v222_v29  ;;  %v251_v60 = vadd.f32 %v250_v56, %v249_v12  ;;  %v322_v29 = vld [vmem:[%s1354_s2] sm:$0x3] }
  0x70   :  { %v1157_v5 = vrot.slane %v322_v29, %v262_v41  ;;  %v1161_v44 = vrot.slane %v322_v29, %v266_v61 }
  0x71   :  { %v252_v20 = vmul.f32 0.0061728396, %v224_v28  ;;  %v253_v24 = vmul.f32 0.0061728396, %v251_v60 }
  0x73   :  { %v254_v26 = vadd.f32 1e-05, %v252_v20  ;;  %v255_v57 = vadd.f32 1e-05, %v253_v24 }
  0x75   :  { %613 = vrsqrt.f32 %v254_v26 }
  0x76   :  { %615 = vrsqrt.f32 %v255_v57 }
  0x7f   :  { %v614_v16 = vpop.eup %613 }
  0x80   :  { %v616_v12 = vpop.eup %615  ;;  %v270_v52 = vmul.f32 %v614_v16, %v263_v33 }
  0x81   :  { %v271_v40 = vmul.f32 %v616_v12, %v267_v63 }
  0x82   :  { %v1155_v45 = vrot.slane %v270_v52, %v262_v41 }
  0x83   :  { %v1159_v8 = vrot.slane %v271_v40, %v262_v41 }
  0x84   :  { %v280_v49 = vmul.f32 %v1155_v45, %v897_v30  ;;  %v282_v13 = vmul.f32 %v1155_v45, %v905_v34  ;;  %v284_v22 = vmul.f32 %v1155_v45, %v913_v38  ;;  %v286_v37 = vmul.f32 %v1155_v45, %v921_v1 }
  0x85   :  { %v281_v53 = vmul.f32 %v1159_v8, %v901_v32  ;;  %v283_v56 = vmul.f32 %v1159_v8, %v909_v36  ;;  %v285_v28 = vmul.f32 %v1159_v8, %v917_v0  ;;  %v287_v30 = vmul.f32 %v1159_v8, %v925_v2 }
  0x86   :  { %v334_v34 = vadd.f32 %v1157_v5, %v280_v49  ;;  %v336_v60 = vadd.f32 %v1157_v5, %v282_v13  ;;  %v338_v38 = vadd.f32 %v1157_v5, %v284_v22  ;;  %v340_v1 = vadd.f32 %v1157_v5, %v286_v37 }
  0x87   :  { %v335_v18 = vadd.f32 %v1161_v44, %v281_v53  ;;  %v337_v32 = vadd.f32 %v1161_v44, %v283_v56  ;;  %v339_v36 = vadd.f32 %v1161_v44, %v285_v28  ;;  %v341_v20 = vadd.f32 %v1161_v44, %v287_v30 }
  0x88   :  { %v376_v0 = vmax.f32 %v334_v34, 0.0  ;;  %v378_v24 = vmax.f32 %v336_v60, 0.0  ;;  %v380_v26 = vmax.f32 %v338_v38, 0.0  ;;  %v382_v2 = vmax.f32 %v340_v1, 0.0 }
  0x89   :  { %v377_v57 = vmax.f32 %v335_v18, 0.0  ;;  %v379_v6 = vmax.f32 %v337_v32, 0.0  ;;  %v381_v41 = vmax.f32 %v339_v36, 0.0  ;;  %v383_v14 = vmax.f32 %v341_v20, 0.0 }
  0x8a   :  { %v288_v61 = vmul.f32 %v1155_v45, %v937_v7  ;;  %v289_v33 = vmul.f32 %v1159_v8, %v941_v9  ;;  %v290_v63 = vmul.f32 %v1155_v45, %v949_v46  ;;  %v291_v16 = vmul.f32 %v1159_v8, %v953_v48 }
  0x8b   :  { %v592_v29 = vpack.c.bf16 %v377_v57, %v376_v0  ;;  %v593_v12 = vpack.c.bf16 %v379_v6, %v378_v24  ;;  %v594_v52 = vpack.c.bf16 %v381_v41, %v380_v26  ;;  %v595_v40 = vpack.c.bf16 %v383_v14, %v382_v2 }
  0x8c   :  { %v342_v49 = vadd.f32 %v1157_v5, %v288_v61  ;;  %v343_v13 = vadd.f32 %v1161_v44, %v289_v33  ;;  %v344_v22 = vadd.f32 %v1157_v5, %v290_v63  ;;  %v345_v7 = vadd.f32 %v1161_v44, %v291_v16 }
  0x8d   :  { %546 = vst [vmem:[%s1355_s3] sm:$0xff] %v592_v29  ;;  %547 = vst [vmem:[%s1355_s3 + $0x8] sm:$0xff] %v593_v12  ;;  %v292_v9 = vmul.f32 %v1155_v45, %v961_v54  ;;  %v293_v46 = vmul.f32 %v1159_v8, %v965_v15  ;;  %v294_v48 = vmul.f32 %v1155_v45, %v973_v62 }
  0x8e   :  { %548 = vst [vmem:[%s1355_s3 + $0x10] sm:$0xff] %v594_v52  ;;  %549 = vst [vmem:[%s1355_s3 + $0x18] sm:$0xff] %v595_v40  ;;  %v295_v37 = vmul.f32 %v1159_v8, %v977_v19  ;;  %v384_v53 = vmax.f32 %v342_v49, 0.0  ;;  %v385_v56 = vmax.f32 %v343_v13, 0.0  ;;  %v386_v28 = vmax.f32 %v344_v22, 0.0 }
  0x8f   :  { %v387_v30 = vmax.f32 %v345_v7, 0.0  ;;  %v346_v34 = vadd.f32 %v1157_v5, %v292_v9  ;;  %v347_v60 = vadd.f32 %v1161_v44, %v293_v46  ;;  %v348_v38 = vadd.f32 %v1157_v5, %v294_v48 }
  0x90   :  { %v349_v54 = vadd.f32 %v1161_v44, %v295_v37  ;;  %v596_v1 = vpack.c.bf16 %v385_v56, %v384_v53  ;;  %v296_v62 = vmul.f32 %v1155_v45, %v985_v3  ;;  %v297_v19 = vmul.f32 %v1159_v8, %v989_v23 }
  0x91   :  { %v597_v15 = vpack.c.bf16 %v387_v30, %v386_v28  ;;  %v388_v18 = vmax.f32 %v346_v34, 0.0  ;;  %v389_v32 = vmax.f32 %v347_v60, 0.0  ;;  %v390_v36 = vmax.f32 %v348_v38, 0.0 }
  0x92   :  { %v391_v20 = vmax.f32 %v349_v54, 0.0  ;;  %550 = vst [vmem:[%s1355_s3 + $0x20] sm:$0xff] %v596_v1  ;;  %v350_v0 = vadd.f32 %v1157_v5, %v296_v62  ;;  %v351_v24 = vadd.f32 %v1161_v44, %v297_v19  ;;  %v298_v3 = vmul.f32 %v1155_v45, %v997_v42 }
  0x93   :  { %551 = vst [vmem:[%s1355_s3 + $0x28] sm:$0xff] %v597_v15  ;;  %v299_v23 = vmul.f32 %v1159_v8, %v1001_v27  ;;  %v598_v26 = vpack.c.bf16 %v389_v32, %v388_v18  ;;  %v300_v57 = vmul.f32 %v1155_v45, %v1009_v50  ;;  %v301_v6 = vmul.f32 %v1159_v8, %v1013_v31 }
  0x94   :  { %v599_v2 = vpack.c.bf16 %v391_v20, %v390_v36  ;;  %v392_v41 = vmax.f32 %v350_v0, 0.0  ;;  %v393_v14 = vmax.f32 %v351_v24, 0.0  ;;  %v352_v61 = vadd.f32 %v1157_v5, %v298_v3 }
  0x95   :  { %v353_v33 = vadd.f32 %v1161_v44, %v299_v23  ;;  %552 = vst [vmem:[%s1355_s3 + $0x30] sm:$0xff] %v598_v26  ;;  %v354_v42 = vadd.f32 %v1157_v5, %v300_v57  ;;  %v355_v27 = vadd.f32 %v1161_v44, %v301_v6  ;;  %v302_v50 = vmul.f32 %v1155_v45, %v1021_v58  ;;  %v1368_v26 = vld [vmem:[#allocation2_spill] sm:$0xff]  ;;  %v1369_v57 = vld [vmem:[#allocation3_spill] sm:$0xff] }
  0x96   :  { %553 = vst [vmem:[%s1355_s3 + $0x38] sm:$0xff] %v599_v2  ;;  %v303_v31 = vmul.f32 %v1159_v8, %v1025_v35  ;;  %v600_v63 = vpack.c.bf16 %v393_v14, %v392_v41  ;;  %v394_v16 = vmax.f32 %v352_v61, 0.0  ;;  %v304_v12 = vmul.f32 %v1155_v45, %v1033_v10 }
  0x97   :  { %v395_v29 = vmax.f32 %v353_v33, 0.0  ;;  %v396_v52 = vmax.f32 %v354_v42, 0.0  ;;  %v397_v40 = vmax.f32 %v355_v27, 0.0  ;;  %v356_v49 = vadd.f32 %v1157_v5, %v302_v50  ;;  %v1370_v42 = vld [vmem:[#allocation4_spill] sm:$0xff]  ;;  %v1371_v50 = vld [vmem:[#allocation5_spill] sm:$0xff] }
  0x98   :  { %v357_v13 = vadd.f32 %v1161_v44, %v303_v31  ;;  %554 = vst [vmem:[%s1355_s3 + $0x40] sm:$0xff] %v600_v63  ;;  %v305_v35 = vmul.f32 %v1159_v8, %v1037_v39  ;;  %v358_v22 = vadd.f32 %v1157_v5, %v304_v12  ;;  %v306_v7 = vmul.f32 %v1155_v45, %v1045_v4  ;;  %v1372_v12 = vld [vmem:[#allocation6_spill] sm:$0xff] }
  0x99   :  { %v601_v58 = vpack.c.bf16 %v395_v29, %v394_v16  ;;  %v602_v10 = vpack.c.bf16 %v397_v40, %v396_v52  ;;  %v398_v9 = vmax.f32 %v356_v49, 0.0  ;;  %v307_v48 = vmul.f32 %v1159_v8, %v1049_v43 }
  0x9a   :  { %v399_v46 = vmax.f32 %v357_v13, 0.0  ;;  %v359_v37 = vadd.f32 %v1161_v44, %v305_v35  ;;  %v400_v53 = vmax.f32 %v358_v22, 0.0  ;;  %v360_v39 = vadd.f32 %v1157_v5, %v306_v7  ;;  %v1373_v22 = vld [vmem:[#allocation7_spill] sm:$0xff] }
  0x9b   :  { %555 = vst [vmem:[%s1355_s3 + $0x48] sm:$0xff] %v601_v58  ;;  %v308_v56 = vmul.f32 %v1155_v45, %v1057_v11  ;;  %556 = vst [vmem:[%s1355_s3 + $0x50] sm:$0xff] %v602_v10  ;;  %v361_v28 = vadd.f32 %v1161_v44, %v307_v48  ;;  %v309_v43 = vmul.f32 %v1159_v8, %v1061_v47 }
  0x9c   :  { %v603_v4 = vpack.c.bf16 %v399_v46, %v398_v9  ;;  %v310_v30 = vmul.f32 %v1155_v45, %v1069_v17  ;;  %v401_v34 = vmax.f32 %v359_v37, 0.0  ;;  %v402_v60 = vmax.f32 %v360_v39, 0.0 }
  0x9d   :  { %v362_v38 = vadd.f32 %v1157_v5, %v308_v56  ;;  %v311_v11 = vmul.f32 %v1159_v8, %v1073_v51  ;;  %v403_v54 = vmax.f32 %v361_v28, 0.0  ;;  %v363_v1 = vadd.f32 %v1161_v44, %v309_v43 }
  0x9e   :  { %557 = vst [vmem:[%s1355_s3 + $0x58] sm:$0xff] %v603_v4  ;;  %v364_v15 = vadd.f32 %v1157_v5, %v310_v30  ;;  %v312_v47 = vmul.f32 %v1155_v45, %v1081_v21  ;;  %v604_v17 = vpack.c.bf16 %v401_v34, %v400_v53  ;;  %v313_v18 = vmul.f32 %v1159_v8, %v1085_v55 }
  0x9f   :  { %v404_v62 = vmax.f32 %v362_v38, 0.0  ;;  %v365_v19 = vadd.f32 %v1161_v44, %v311_v11  ;;  %v605_v51 = vpack.c.bf16 %v403_v54, %v402_v60  ;;  %v405_v32 = vmax.f32 %v363_v1, 0.0 }
  0xa0   :  { %v406_v36 = vmax.f32 %v364_v15, 0.0  ;;  %v366_v20 = vadd.f32 %v1157_v5, %v312_v47  ;;  %558 = vst [vmem:[%s1355_s3 + $0x60] sm:$0xff] %v604_v17  ;;  %v367_v24 = vadd.f32 %v1161_v44, %v313_v18  ;;  %v314_v21 = vmul.f32 %v1155_v45, %v1093_v25 }
  0xa1   :  { %v407_v0 = vmax.f32 %v365_v19, 0.0  ;;  %v315_v3 = vmul.f32 %v1159_v8, %v1097_v59  ;;  %559 = vst [vmem:[%s1355_s3 + $0x68] sm:$0xff] %v605_v51  ;;  %v606_v55 = vpack.c.bf16 %v405_v32, %v404_v62  ;;  %v316_v2 = vmul.f32 %v1155_v45, %v1368_v26 }
  0xa2   :  { %v408_v23 = vmax.f32 %v366_v20, 0.0  ;;  %v317_v6 = vmul.f32 %v1159_v8, %v1369_v57  ;;  %v409_v14 = vmax.f32 %v367_v24, 0.0  ;;  %v368_v61 = vadd.f32 %v1157_v5, %v314_v21 }
  0xa3   :  { %v607_v41 = vpack.c.bf16 %v407_v0, %v406_v36  ;;  %v369_v25 = vadd.f32 %v1161_v44, %v315_v3  ;;  %560 = vst [vmem:[%s1355_s3 + $0x70] sm:$0xff] %v606_v55  ;;  %v370_v59 = vadd.f32 %v1157_v5, %v316_v2  ;;  %v318_v27 = vmul.f32 %v1155_v45, %v1370_v42 }
  0xa4   :  { %v371_v33 = vadd.f32 %v1161_v44, %v317_v6  ;;  %v319_v31 = vmul.f32 %v1159_v8, %v1371_v50  ;;  %v608_v63 = vpack.c.bf16 %v409_v14, %v408_v23  ;;  %v410_v16 = vmax.f32 %v368_v61, 0.0 }
  0xa5   :  { %561 = vst [vmem:[%s1355_s3 + $0x78] sm:$0xff] %v607_v41  ;;  %v411_v29 = vmax.f32 %v369_v25, 0.0  ;;  %v320_v52 = vmul.f32 %v1155_v45, %v1372_v12  ;;  %v412_v40 = vmax.f32 %v370_v59, 0.0  ;;  %v372_v13 = vadd.f32 %v1157_v5, %v318_v27 }
  0xa6   :  { %v413_v49 = vmax.f32 %v371_v33, 0.0  ;;  %v373_v58 = vadd.f32 %v1161_v44, %v319_v31  ;;  %562 = vst [vmem:[%s1355_s3 + $0x80] sm:$0xff] %v608_v63  ;;  %v321_v7 = vmul.f32 %v1159_v8, %v1373_v22 }
  0xa7   :  { %v609_v35 = vpack.c.bf16 %v411_v29, %v410_v16  ;;  %v374_v10 = vadd.f32 %v1157_v5, %v320_v52  ;;  %v414_v46 = vmax.f32 %v372_v13, 0.0 }
  0xa8   :  { %v610_v9 = vpack.c.bf16 %v413_v49, %v412_v40  ;;  %v415_v48 = vmax.f32 %v373_v58, 0.0  ;;  %v375_v45 = vadd.f32 %v1161_v44, %v321_v7 }
  0xa9   :  { %563 = vst [vmem:[%s1355_s3 + $0x88] sm:$0xff] %v609_v35  ;;  %v416_v37 = vmax.f32 %v374_v10, 0.0 }
  0xaa   :  { %564 = vst [vmem:[%s1355_s3 + $0x90] sm:$0xff] %v610_v9  ;;  %v611_v53 = vpack.c.bf16 %v415_v48, %v414_v46  ;;  %v417_v39 = vmax.f32 %v375_v45, 0.0 }
  0xac   :  { %565 = vst [vmem:[%s1355_s3 + $0x98] sm:$0xff] %v611_v53  ;;  %v612_v5 = vpack.c.bf16 %v417_v39, %v416_v37 }
  0xae   :  { %566 = vst [vmem:[%s1355_s3 + $0xa0] sm:$0x11] %v612_v5 }

// kernel: generator_forward.11
= control target key start
LH: loop header
LB: loop body
LE: loop exit
PB: predicated region body
PF: predicated region fallthrough
CT: control target
= control target key end

     0   :  { %s2977_s9 = smov 0   ;;  %s2979_s10 = smov 0   ;;  %s4025_s0 = inlined_call_operand.vmem [shape: bf16[168,256], index: 0, kind: input, shape index: {}]   ;;  %s4026_s1 = inlined_call_operand.vmem [shape: bf16[256,6272], index: 1, kind: input, shape index: {}]   ;;  %s4027_s2 = inlined_call_operand.vmem [shape: f32[168,6272], index: 2, kind: output, shape index: {}]  }
   0x1   :  { %s2981_s11 = smov 0   ;;  %s2983_s12 = smov 0  }
   0x2   :  { %s2985_s13 = smov 0  }
   0x3 LB: > { %s21_s14 = sadd.s32 1, %s2956_s12  ;;  %s2395_s15 = sadd.s32 4294967295, %s2960_s13   ;;  %s2960_s13 = sphi %s2985_s13, %s12_s13   ;;  %s2956_s12 = sphi %s2983_s12, %s4032_s12   ;;  %s2952_s11 = sphi %s2981_s11, %s4031_s11   ;;  %s2948_s10 = sphi %s2979_s10, %s4030_s10   ;;  %s2944_s9 = sphi %s2977_s9, %s4029_s9  }
   0x4   : > { %p22_p0 = scmp.ge.s32.totalorder %s21_s14, 7  ;;  %p64_p1 = scmp.ne.s32.totalorder %s2948_s10, %s2944_s9 }
   0x5   : > { %p65_p2 = scmp.eq.s32.totalorder %s2960_s13, 0  ;;  %p96_p4 = scmp.eq.s32.totalorder %s2395_s15, 6 }
   0x6   : > { %s4034_s14 = smov (%p22_p0, %s21_s14), 0  ;;  %s57_s17 = sadd.s32 1, %s2948_s10 }
   0x7   : > { %p66_p3 = por %p65_p2, %p64_p1  ;;  %s54_s16 = ssub.s32 %s2956_s12, %s4034_s14 }
   0x8   : > { %p55_p5 = scmp.eq.s32.totalorder %s54_s16, 0  ;;  %p3012_p6 = por %p96_p4, %p64_p1 }
   0x9   : > { %p2399_p7 = scmp.ge.s32.totalorder %s2960_s13, 7 }
   0xa   : > { %s3017_s19 = scalar_select %p55_p5, %s2948_s10, %s57_s17  }
   0xb   : > { %128 = sbr.rel (%p2399_p7) target bundleno = 92 (0x5c), region = 20 }
  0x12   : > { %131 = sbr.rel (!%p66_p3) target bundleno = 92 (0x5c), region = 24  ;;  %s133_s20 = sand.u32 (%p66_p3), 1, %s2948_s10  }
  0x13   : > { %s2603_s21 = smul.u32 (%p66_p3), 28, %s2956_s12 }
  0x14   : > { %s2687_s22 = smul.u32 (%p66_p3), 896, %s133_s20 }
  0x15   : > { %s3025_s25 = scalar_lea.vmem (%p66_p3), %s4026_s1, %s2603_s21 }
  0x16   : > { %v153_v0 = vld [vmem:[%s3025_s25] sm:$0xff] (%p66_p3)  ;;  %v155_v1 = vld [vmem:[%s3025_s25 + $0x8] sm:$0xff] (%p66_p3)  ;;  %v157_v2 = vld [vmem:[%s3025_s25 + $0x10] sm:$0xff] (%p66_p3)  ;;  %s3030_s26 = scalar_lea.vmem (%p66_p3), [#allocation2], %s2687_s22 }
  0x17   : > { %154 = vst [vmem:[%s3030_s26] sm:$0xff] (%p66_p3), %v153_v0  ;;  %156 = vst [vmem:[%s3030_s26 + $0x8] sm:$0xff] (%p66_p3), %v155_v1  ;;  %v159_v3 = vld [vmem:[%s3025_s25 + $0xc4] sm:$0xff] (%p66_p3)  ;;  %v161_v4 = vld [vmem:[%s3025_s25 + $0xcc] sm:$0xff] (%p66_p3) }
  0x18   : > { %158 = vst [vmem:[%s3030_s26 + $0x10] sm:$0xff] (%p66_p3), %v157_v2  ;;  %v163_v5 = vld [vmem:[%s3025_s25 + $0xd4] sm:$0xff] (%p66_p3)  ;;  %160 = vst [vmem:[%s3030_s26 + $0x1c] sm:$0xff] (%p66_p3), %v159_v3  ;;  %v165_v6 = vld [vmem:[%s3025_s25 + $0x188] sm:$0xff] (%p66_p3) }
  0x19   : > { %162 = vst [vmem:[%s3030_s26 + $0x24] sm:$0xff] %v161_v4  ;;  %164 = vst [vmem:[%s3030_s26 + $0x2c] sm:$0xff] %v163_v5  ;;  %v167_v7 = vld [vmem:[%s3025_s25 + $0x190] sm:$0xff]  ;;  %v169_v8 = vld [vmem:[%s3025_s25 + $0x198] sm:$0xff] }
  0x1a   : > { %166 = vst [vmem:[%s3030_s26 + $0x38] sm:$0xff] %v165_v6  ;;  %168 = vst [vmem:[%s3030_s26 + $0x40] sm:$0xff] %v167_v7  ;;  %v171_v9 = vld [vmem:[%s3025_s25 + $0x24c] sm:$0xff]  ;;  %v173_v10 = vld [vmem:[%s3025_s25 + $0x254] sm:$0xff] }
  0x1b   : > { %170 = vst [vmem:[%s3030_s26 + $0x48] sm:$0xff] %v169_v8  ;;  %v175_v11 = vld [vmem:[%s3025_s25 + $0x25c] sm:$0xff]  ;;  %172 = vst [vmem:[%s3030_s26 + $0x54] sm:$0xff] %v171_v9  ;;  %v177_v12 = vld [vmem:[%s3025_s25 + $0x310] sm:$0xff] }
  0x1c   : > { %174 = vst [vmem:[%s3030_s26 + $0x5c] sm:$0xff] %v173_v10  ;;  %176 = vst [vmem:[%s3030_s26 + $0x64] sm:$0xff] %v175_v11  ;;  %v179_v13 = vld [vmem:[%s3025_s25 + $0x318] sm:$0xff]  ;;  %v181_v14 = vld [vmem:[%s3025_s25 + $0x320] sm:$0xff] }
  0x1d   : > { %178 = vst [vmem:[%s3030_s26 + $0x70] sm:$0xff] %v177_v12  ;;  %180 = vst [vmem:[%s3030_s26 + $0x78] sm:$0xff] %v179_v13  ;;  %v183_v15 = vld [vmem:[%s3025_s25 + $0x3d4] sm:$0xff]  ;;  %v185_v16 = vld [vmem:[%s3025_s25 + $0x3dc] sm:$0xff] }
  0x1e   : > { %182 = vst [vmem:[%s3030_s26 + $0x80] sm:$0xff] %v181_v14  ;;  %v187_v17 = vld [vmem:[%s3025_s25 + $0x3e4] sm:$0xff]  ;;  %184 = vst [vmem:[%s3030_s26 + $0x8c] sm:$0xff] %v183_v15  ;;  %v189_v18 = vld [vmem:[%s3025_s25 + $0x498] sm:$0xff] }
  0x1f   : > { %186 = vst [vmem:[%s3030_s26 + $0x94] sm:$0xff] %v185_v16  ;;  %188 = vst [vmem:[%s3030_s26 + $0x9c] sm:$0xff] %v187_v17  ;;  %v191_v19 = vld [vmem:[%s3025_s25 + $0x4a0] sm:$0xff]  ;;  %v193_v20 = vld [vmem:[%s3025_s25 + $0x4a8] sm:$0xff] }
  0x20   : > { %190 = vst [vmem:[%s3030_s26 + $0xa8] sm:$0xff] %v189_v18  ;;  %192 = vst [vmem:[%s3030_s26 + $0xb0] sm:$0xff] %v191_v19  ;;  %v195_v21 = vld [vmem:[%s3025_s25 + $0x55c] sm:$0xff]  ;;  %v197_v22 = vld [vmem:[%s3025_s25 + $0x564] sm:$0xff] }
  0x21   : > { %194 = vst [vmem:[%s3030_s26 + $0xb8] sm:$0xff] %v193_v20  ;;  %v199_v23 = vld [vmem:[%s3025_s25 + $0x56c] sm:$0xff]  ;;  %196 = vst [vmem:[%s3030_s26 + $0xc4] sm:$0xff] %v195_v21  ;;  %v201_v24 = vld [vmem:[%s3025_s25 + $0x620] sm:$0xff] }
  0x22   : > { %198 = vst [vmem:[%s3030_s26 + $0xcc] sm:$0xff] %v197_v22  ;;  %200 = vst [vmem:[%s3030_s26 + $0xd4] sm:$0xff] %v199_v23  ;;  %v203_v25 = vld [vmem:[%s3025_s25 + $0x628] sm:$0xff]  ;;  %v205_v26 = vld [vmem:[%s3025_s25 + $0x630] sm:$0xff] }
  0x23   : > { %202 = vst [vmem:[%s3030_s26 + $0xe0] sm:$0xff] %v201_v24  ;;  %204 = vst [vmem:[%s3030_s26 + $0xe8] sm:$0xff] %v203_v25  ;;  %v207_v27 = vld [vmem:[%s3025_s25 + $0x6e4] sm:$0xff]  ;;  %v209_v28 = vld [vmem:[%s3025_s25 + $0x6ec] sm:$0xff] }
  0x24   : > { %206 = vst [vmem:[%s3030_s26 + $0xf0] sm:$0xff] %v205_v26  ;;  %v211_v29 = vld [vmem:[%s3025_s25 + $0x6f4] sm:$0xff]  ;;  %208 = vst [vmem:[%s3030_s26 + $0xfc] sm:$0xff] %v207_v27  ;;  %v213_v30 = vld [vmem:[%s3025_s25 + $0x7a8] sm:$0xff] }
  0x25   : > { %210 = vst [vmem:[%s3030_s26 + $0x104] sm:$0xff] %v209_v28  ;;  %212 = vst [vmem:[%s3030_s26 + $0x10c] sm:$0xff] %v211_v29  ;;  %v215_v31 = vld [vmem:[%s3025_s25 + $0x7b0] sm:$0xff]  ;;  %v217_v32 = vld [vmem:[%s3025_s25 + $0x7b8] sm:$0xff] }
  0x26   : > { %214 = vst [vmem:[%s3030_s26 + $0x118] sm:$0xff] %v213_v30  ;;  %216 = vst [vmem:[%s3030_s26 + $0x120] sm:$0xff] %v215_v31  ;;  %v219_v33 = vld [vmem:[%s3025_s25 + $0x86c] sm:$0xff]  ;;  %v221_v34 = vld [vmem:[%s3025_s25 + $0x874] sm:$0xff] }
  0x27   : > { %218 = vst [vmem:[%s3030_s26 + $0x128] sm:$0xff] %v217_v32  ;;  %v223_v35 = vld [vmem:[%s3025_s25 + $0x87c] sm:$0xff]  ;;  %220 = vst [vmem:[%s3030_s26 + $0x134] sm:$0xff] %v219_v33  ;;  %v225_v36 = vld [vmem:[%s3025_s25 + $0x930] sm:$0xff] }
  0x28   : > { %222 = vst [vmem:[%s3030_s26 + $0x13c] sm:$0xff] %v221_v34  ;;  %224 = vst [vmem:[%s3030_s26 + $0x144] sm:$0xff] %v223_v35  ;;  %v227_v37 = vld [vmem:[%s3025_s25 + $0x938] sm:$0xff]  ;;  %v229_v38 = vld [vmem:[%s3025_s25 + $0x940] sm:$0xff] }
  0x29   : > { %226 = vst [vmem:[%s3030_s26 + $0x150] sm:$0xff] %v225_v36  ;;  %228 = vst [vmem:[%s3030_s26 + $0x158] sm:$0xff] %v227_v37  ;;  %v231_v39 = vld [vmem:[%s3025_s25 + $0x9f4] sm:$0xff]  ;;  %v233_v40 = vld [vmem:[%s3025_s25 + $0x9fc] sm:$0xff] }
  0x2a   : > { %230 = vst [vmem:[%s3030_s26 + $0x160] sm:$0xff] %v229_v38  ;;  %v235_v41 = vld [vmem:[%s3025_s25 + $0xa04] sm:$0xff]  ;;  %232 = vst [vmem:[%s3030_s26 + $0x16c] sm:$0xff] %v231_v39  ;;  %v237_v42 = vld [vmem:[%s3025_s25 + $0xab8] sm:$0xff] }
  0x2b   : > { %234 = vst [vmem:[%s3030_s26 + $0x174] sm:$0xff] %v233_v40  ;;  %236 = vst [vmem:[%s3030_s26 + $0x17c] sm:$0xff] %v235_v41  ;;  %v239_v43 = vld [vmem:[%s3025_s25 + $0xac0] sm:$0xff]  ;;  %v241_v44 = vld [vmem:[%s3025_s25 + $0xac8] sm:$0xff] }
  0x2c   : > { %238 = vst [vmem:[%s3030_s26 + $0x188] sm:$0xff] %v237_v42  ;;  %240 = vst [vmem:[%s3030_s26 + $0x190] sm:$0xff] %v239_v43  ;;  %v243_v45 = vld [vmem:[%s3025_s25 + $0xb7c] sm:$0xff]  ;;  %v245_v46 = vld [vmem:[%s3025_s25 + $0xb84] sm:$0xff] }
  0x2d   : > { %242 = vst [vmem:[%s3030_s26 + $0x198] sm:$0xff] %v241_v44  ;;  %v247_v47 = vld [vmem:[%s3025_s25 + $0xb8c] sm:$0xff]  ;;  %244 = vst [vmem:[%s3030_s26 + $0x1a4] sm:$0xff] %v243_v45  ;;  %v249_v48 = vld [vmem:[%s3025_s25 + $0xc40] sm:$0xff] }
  0x2e   : > { %246 = vst [vmem:[%s3030_s26 + $0x1ac] sm:$0xff] %v245_v46  ;;  %248 = vst [vmem:[%s3030_s26 + $0x1b4] sm:$0xff] %v247_v47  ;;  %v251_v49 = vld [vmem:[%s3025_s25 + $0xc48] sm:$0xff]  ;;  %v253_v50 = vld [vmem:[%s3025_s25 + $0xc50] sm:$0xff] }
  0x2f   : > { %250 = vst [vmem:[%s3030_s26 + $0x1c0] sm:$0xff] %v249_v48  ;;  %252 = vst [vmem:[%s3030_s26 + $0x1c8] sm:$0xff] %v251_v49  ;;  %v255_v51 = vld [vmem:[%s3025_s25 + $0xd04] sm:$0xff]  ;;  %v257_v52 = vld [vmem:[%s3025_s25 + $0xd0c] sm:$0xff] }
  0x30   : > { %254 = vst [vmem:[%s3030_s26 + $0x1d0] sm:$0xff] %v253_v50  ;;  %v259_v53 = vld [vmem:[%s3025_s25 + $0xd14] sm:$0xff]  ;;  %256 = vst [vmem:[%s3030_s26 + $0x1dc] sm:$0xff] %v255_v51  ;;  %v261_v54 = vld [vmem:[%s3025_s25 + $0xdc8] sm:$0xff] }
  0x31   : > { %258 = vst [vmem:[%s3030_s26 + $0x1e4] sm:$0xff] %v257_v52  ;;  %260 = vst [vmem:[%s3030_s26 + $0x1ec] sm:$0xff] %v259_v53  ;;  %v263_v55 = vld [vmem:[%s3025_s25 + $0xdd0] sm:$0xff]  ;;  %v265_v56 = vld [vmem:[%s3025_s25 + $0xdd8] sm:$0xff] }
  0x32   : > { %262 = vst [vmem:[%s3030_s26 + $0x1f8] sm:$0xff] %v261_v54  ;;  %264 = vst [vmem:[%s3030_s26 + $0x200] sm:$0xff] %v263_v55  ;;  %v267_v57 = vld [vmem:[%s3025_s25 + $0xe8c] sm:$0xff]  ;;  %v269_v58 = vld [vmem:[%s3025_s25 + $0xe94] sm:$0xff] }
  0x33   : > { %266 = vst [vmem:[%s3030_s26 + $0x208] sm:$0xff] %v265_v56  ;;  %v271_v59 = vld [vmem:[%s3025_s25 + $0xe9c] sm:$0xff]  ;;  %268 = vst [vmem:[%s3030_s26 + $0x214] sm:$0xff] %v267_v57  ;;  %v273_v60 = vld [vmem:[%s3025_s25 + $0xf50] sm:$0xff] }
  0x34   : > { %270 = vst [vmem:[%s3030_s26 + $0x21c] sm:$0xff] %v269_v58  ;;  %272 = vst [vmem:[%s3030_s26 + $0x224] sm:$0xff] %v271_v59  ;;  %v275_v61 = vld [vmem:[%s3025_s25 + $0xf58] sm:$0xff]  ;;  %v277_v62 = vld [vmem:[%s3025_s25 + $0xf60] sm:$0xff] }
  0x35   : > { %274 = vst [vmem:[%s3030_s26 + $0x230] sm:$0xff] %v273_v60  ;;  %276 = vst [vmem:[%s3030_s26 + $0x238] sm:$0xff] %v275_v61  ;;  %v279_v63 = vld [vmem:[%s3025_s25 + $0x1014] sm:$0xff]  ;;  %v281_v0 = vld [vmem:[%s3025_s25 + $0x101c] sm:$0xff] }
  0x36   : > { %278 = vst [vmem:[%s3030_s26 + $0x240] sm:$0xff] %v277_v62  ;;  %v283_v1 = vld [vmem:[%s3025_s25 + $0x1024] sm:$0xff]  ;;  %280 = vst [vmem:[%s3030_s26 + $0x24c] sm:$0xff] %v279_v63  ;;  %v285_v2 = vld [vmem:[%s3025_s25 + $0x10d8] sm:$0xff] }
  0x37   : > { %282 = vst [vmem:[%s3030_s26 + $0x254] sm:$0xff] %v281_v0  ;;  %284 = vst [vmem:[%s3030_s26 + $0x25c] sm:$0xff] %v283_v1  ;;  %v287_v3 = vld [vmem:[%s3025_s25 + $0x10e0] sm:$0xff]  ;;  %v289_v4 = vld [vmem:[%s3025_s25 + $0x10e8] sm:$0xff] }
  0x38   : > { %286 = vst [vmem:[%s3030_s26 + $0x268] sm:$0xff] %v285_v2  ;;  %288 = vst [vmem:[%s3030_s26 + $0x270] sm:$0xff] %v287_v3  ;;  %v291_v5 = vld [vmem:[%s3025_s25 + $0x119c] sm:$0xff]  ;;  %v293_v6 = vld [vmem:[%s3025_s25 + $0x11a4] sm:$0xff] }
  0x39   : > { %290 = vst [vmem:[%s3030_s26 + $0x278] sm:$0xff] %v289_v4  ;;  %v295_v7 = vld [vmem:[%s3025_s25 + $0x11ac] sm:$0xff]  ;;  %292 = vst [vmem:[%s3030_s26 + $0x284] sm:$0xff] %v291_v5  ;;  %v297_v8 = vld [vmem:[%s3025_s25 + $0x1260] sm:$0xff] }
  0x3a   : > { %294 = vst [vmem:[%s3030_s26 + $0x28c] sm:$0xff] %v293_v6  ;;  %296 = vst [vmem:[%s3030_s26 + $0x294] sm:$0xff] %v295_v7  ;;  %v299_v9 = vld [vmem:[%s3025_s25 + $0x1268] sm:$0xff]  ;;  %v301_v10 = vld [vmem:[%s3025_s25 + $0x1270] sm:$0xff] }
  0x3b   : > { %298 = vst [vmem:[%s3030_s26 + $0x2a0] sm:$0xff] %v297_v8  ;;  %300 = vst [vmem:[%s3030_s26 + $0x2a8] sm:$0xff] %v299_v9  ;;  %v303_v11 = vld [vmem:[%s3025_s25 + $0x1324] sm:$0xff]  ;;  %v305_v12 = vld [vmem:[%s3025_s25 + $0x132c] sm:$0xff] }
  0x3c   : > { %302 = vst [vmem:[%s3030_s26 + $0x2b0] sm:$0xff] %v301_v10  ;;  %v307_v13 = vld [vmem:[%s3025_s25 + $0x1334] sm:$0xff]  ;;  %304 = vst [vmem:[%s3030_s26 + $0x2bc] sm:$0xff] %v303_v11  ;;  %v309_v14 = vld [vmem:[%s3025_s25 + $0x13e8] sm:$0xff] }
  0x3d   : > { %306 = vst [vmem:[%s3030_s26 + $0x2c4] sm:$0xff] %v305_v12  ;;  %308 = vst [vmem:[%s3030_s26 + $0x2cc] sm:$0xff] %v307_v13  ;;  %v311_v15 = vld [vmem:[%s3025_s25 + $0x13f0] sm:$0xff]  ;;  %v313_v16 = vld [vmem:[%s3025_s25 + $0x13f8] sm:$0xff] }
  0x3e   : > { %310 = vst [vmem:[%s3030_s26 + $0x2d8] sm:$0xff] %v309_v14  ;;  %312 = vst [vmem:[%s3030_s26 + $0x2e0] sm:$0xff] %v311_v15  ;;  %v315_v17 = vld [vmem:[%s3025_s25 + $0x14ac] sm:$0xff]  ;;  %v317_v18 = vld [vmem:[%s3025_s25 + $0x14b4] sm:$0xff] }
  0x3f   : > { %314 = vst [vmem:[%s3030_s26 + $0x2e8] sm:$0xff] %v313_v16  ;;  %v319_v19 = vld [vmem:[%s3025_s25 + $0x14bc] sm:$0xff]  ;;  %316 = vst [vmem:[%s3030_s26 + $0x2f4] sm:$0xff] %v315_v17  ;;  %v321_v20 = vld [vmem:[%s3025_s25 + $0x1570] sm:$0xff] }
  0x40   : > { %318 = vst [vmem:[%s3030_s26 + $0x2fc] sm:$0xff] %v317_v18  ;;  %320 = vst [vmem:[%s3030_s26 + $0x304] sm:$0xff] %v319_v19  ;;  %v323_v21 = vld [vmem:[%s3025_s25 + $0x1578] sm:$0xff]  ;;  %v325_v22 = vld [vmem:[%s3025_s25 + $0x1580] sm:$0xff] }
  0x41   : > { %322 = vst [vmem:[%s3030_s26 + $0x310] sm:$0xff] %v321_v20  ;;  %324 = vst [vmem:[%s3030_s26 + $0x318] sm:$0xff] %v323_v21  ;;  %v327_v23 = vld [vmem:[%s3025_s25 + $0x1634] sm:$0xff]  ;;  %v329_v24 = vld [vmem:[%s3025_s25 + $0x163c] sm:$0xff] }
  0x42   : > { %326 = vst [vmem:[%s3030_s26 + $0x320] sm:$0xff] %v325_v22  ;;  %v331_v25 = vld [vmem:[%s3025_s25 + $0x1644] sm:$0xff]  ;;  %328 = vst [vmem:[%s3030_s26 + $0x32c] sm:$0xff] %v327_v23  ;;  %v333_v26 = vld [vmem:[%s3025_s25 + $0x16f8] sm:$0xff] }
  0x43   : > { %330 = vst [vmem:[%s3030_s26 + $0x334] sm:$0xff] %v329_v24  ;;  %332 = vst [vmem:[%s3030_s26 + $0x33c] sm:$0xff] %v331_v25  ;;  %v335_v27 = vld [vmem:[%s3025_s25 + $0x1700] sm:$0xff]  ;;  %v337_v28 = vld [vmem:[%s3025_s25 + $0x1708] sm:$0xff] }
  0x44   : > { %334 = vst [vmem:[%s3030_s26 + $0x348] sm:$0xff] %v333_v26  ;;  %336 = vst [vmem:[%s3030_s26 + $0x350] sm:$0xff] %v335_v27  ;;  %v339_v29 = vld [vmem:[%s3025_s25 + $0x17bc] sm:$0xff]  ;;  %v341_v30 = vld [vmem:[%s3025_s25 + $0x17c4] sm:$0xff] }
  0x45   : > { %338 = vst [vmem:[%s3030_s26 + $0x358] sm:$0xff] %v337_v28  ;;  %v343_v31 = vld [vmem:[%s3025_s25 + $0x17cc] sm:$0xff]  ;;  %340 = vst [vmem:[%s3030_s26 + $0x364] sm:$0xff] %v339_v29  ;;  %v2401_v32 = vld [vmem:[%s3025_s25 + $0x18] sm:$0xf] }
  0x46   : > { %342 = vst [vmem:[%s3030_s26 + $0x36c] sm:$0xff] %v341_v30  ;;  %344 = vst [vmem:[%s3030_s26 + $0x374] sm:$0xff] %v343_v31  ;;  %v2403_v33 = vld [vmem:[%s3025_s25 + $0xdc] sm:$0xf]  ;;  %v2405_v34 = vld [vmem:[%s3025_s25 + $0x1a0] sm:$0xf] }
  0x47   : > { %2402 = vst [vmem:[%s3030_s26 + $0x18] sm:$0xf] %v2401_v32  ;;  %2404 = vst [vmem:[%s3030_s26 + $0x34] sm:$0xf] %v2403_v33  ;;  %v2407_v35 = vld [vmem:[%s3025_s25 + $0x264] sm:$0xf] }
  0x48   : > { %2406 = vst [vmem:[%s3030_s26 + $0x50] sm:$0xf] %v2405_v34  ;;  %v2409_v36 = vld [vmem:[%s3025_s25 + $0x328] sm:$0xf]  ;;  %v2411_v37 = vld [vmem:[%s3025_s25 + $0x3ec] sm:$0xf] }
  0x49   : > { %2408 = vst [vmem:[%s3030_s26 + $0x6c] sm:$0xf] %v2407_v35  ;;  %2410 = vst [vmem:[%s3030_s26 + $0x88] sm:$0xf] %v2409_v36  ;;  %v2413_v38 = vld [vmem:[%s3025_s25 + $0x4b0] sm:$0xf] }
  0x4a   : > { %2412 = vst [vmem:[%s3030_s26 + $0xa4] sm:$0xf] %v2411_v37  ;;  %v2415_v39 = vld [vmem:[%s3025_s25 + $0x574] sm:$0xf]  ;;  %v2417_v40 = vld [vmem:[%s3025_s25 + $0x638] sm:$0xf] }
  0x4b   : > { %2414 = vst [vmem:[%s3030_s26 + $0xc0] sm:$0xf] %v2413_v38  ;;  %2416 = vst [vmem:[%s3030_s26 + $0xdc] sm:$0xf] %v2415_v39  ;;  %v2419_v41 = vld [vmem:[%s3025_s25 + $0x6fc] sm:$0xf] }
  0x4c   : > { %2418 = vst [vmem:[%s3030_s26 + $0xf8] sm:$0xf] %v2417_v40  ;;  %v2421_v42 = vld [vmem:[%s3025_s25 + $0x7c0] sm:$0xf]  ;;  %v2423_v43 = vld [vmem:[%s3025_s25 + $0x884] sm:$0xf] }
  0x4d   : > { %2420 = vst [vmem:[%s3030_s26 + $0x114] sm:$0xf] %v2419_v41  ;;  %2422 = vst [vmem:[%s3030_s26 + $0x130] sm:$0xf] %v2421_v42  ;;  %v2425_v44 = vld [vmem:[%s3025_s25 + $0x948] sm:$0xf] }
  0x4e   : > { %2424 = vst [vmem:[%s3030_s26 + $0x14c] sm:$0xf] %v2423_v43  ;;  %v2427_v45 = vld [vmem:[%s3025_s25 + $0xa0c] sm:$0xf]  ;;  %v2429_v46 = vld [vmem:[%s3025_s25 + $0xad0] sm:$0xf] }
  0x4f   : > { %2426 = vst [vmem:[%s3030_s26 + $0x168] sm:$0xf] %v2425_v44  ;;  %2428 = vst [vmem:[%s3030_s26 + $0x184] sm:$0xf] %v2427_v45  ;;  %v2431_v47 = vld [vmem:[%s3025_s25 + $0xb94] sm:$0xf] }
  0x50   : > { %2430 = vst [vmem:[%s3030_s26 + $0x1a0] sm:$0xf] %v2429_v46  ;;  %v2433_v48 = vld [vmem:[%s3025_s25 + $0xc58] sm:$0xf]  ;;  %v2435_v49 = vld [vmem:[%s3025_s25 + $0xd1c] sm:$0xf] }
  0x51   : > { %2432 = vst [vmem:[%s3030_s26 + $0x1bc] sm:$0xf] %v2431_v47  ;;  %2434 = vst [vmem:[%s3030_s26 + $0x1d8] sm:$0xf] %v2433_v48  ;;  %v2437_v50 = vld [vmem:[%s3025_s25 + $0xde0] sm:$0xf] }
  0x52   : > { %2436 = vst [vmem:[%s3030_s26 + $0x1f4] sm:$0xf] %v2435_v49  ;;  %v2439_v51 = vld [vmem:[%s3025_s25 + $0xea4] sm:$0xf]  ;;  %v2441_v52 = vld [vmem:[%s3025_s25 + $0xf68] sm:$0xf] }
  0x53   : > { %2438 = vst [vmem:[%s3030_s26 + $0x210] sm:$0xf] %v2437_v50  ;;  %2440 = vst [vmem:[%s3030_s26 + $0x22c] sm:$0xf] %v2439_v51  ;;  %v2443_v53 = vld [vmem:[%s3025_s25 + $0x102c] sm:$0xf] }
  0x54   : > { %2442 = vst [vmem:[%s3030_s26 + $0x248] sm:$0xf] %v2441_v52  ;;  %v2445_v54 = vld [vmem:[%s3025_s25 + $0x10f0] sm:$0xf]  ;;  %v2447_v55 = vld [vmem:[%s3025_s25 + $0x11b4] sm:$0xf] }
  0x55   : > { %2444 = vst [vmem:[%s3030_s26 + $0x264] sm:$0xf] %v2443_v53  ;;  %2446 = vst [vmem:[%s3030_s26 + $0x280] sm:$0xf] %v2445_v54  ;;  %v2449_v56 = vld [vmem:[%s3025_s25 + $0x1278] sm:$0xf] }
  0x56   : > { %2448 = vst [vmem:[%s3030_s26 + $0x29c] sm:$0xf] %v2447_v55  ;;  %v2451_v57 = vld [vmem:[%s3025_s25 + $0x133c] sm:$0xf]  ;;  %v2453_v58 = vld [vmem:[%s3025_s25 + $0x1400] sm:$0xf] }
  0x57   : > { %2450 = vst [vmem:[%s3030_s26 + $0x2b8] sm:$0xf] %v2449_v56  ;;  %2452 = vst [vmem:[%s3030_s26 + $0x2d4] sm:$0xf] %v2451_v57  ;;  %v2455_v59 = vld [vmem:[%s3025_s25 + $0x14c4] sm:$0xf] }
  0x58   : > { %2454 = vst [vmem:[%s3030_s26 + $0x2f0] sm:$0xf] %v2453_v58  ;;  %v2457_v60 = vld [vmem:[%s3025_s25 + $0x1588] sm:$0xf]  ;;  %v2459_v61 = vld [vmem:[%s3025_s25 + $0x164c] sm:$0xf] }
  0x59   : > { %2456 = vst [vmem:[%s3030_s26 + $0x30c] sm:$0xf] %v2455_v59  ;;  %2458 = vst [vmem:[%s3030_s26 + $0x328] sm:$0xf] %v2457_v60  ;;  %v2461_v62 = vld [vmem:[%s3025_s25 + $0x1710] sm:$0xf] }
  0x5a   : > { %2460 = vst [vmem:[%s3030_s26 + $0x344] sm:$0xf] %v2459_v61  ;;  %v2463_v63 = vld [vmem:[%s3025_s25 + $0x17d4] sm:$0xf]  ;;  %2462 = vst [vmem:[%s3030_s26 + $0x360] sm:$0xf] %v2461_v62 }
  0x5b   : > { %2464 = vst [vmem:[%s3030_s26 + $0x37c] sm:$0xf] %v2463_v63 }
  0x5c PF: > { %p2465_p8 = scmp.ge.s32.totalorder %s2960_s13, 1  ;;  %p420_p9 = scmp.lt.s32.totalorder %s2960_s13, 8 }
  0x5e   : > { %p421_p10 = pnand %p2465_p8, %p420_p9 }
  0x5f   : > { %s427_s27 = sand.u32 (!%p421_p10), 1, %s2944_s9   ;;  %v3291_v0 = vld [vmem:[%s4025_s0 + $0x4] ss:$8 sps:$4 sm:$0xff] (!%p421_p10)  }
  0x60   : > { %424 = sbr.rel (%p421_p10) target bundleno = 592 (0x250), region = 50  ;;  %1328 = vmatprep.mubr.bf16.mxu0 (!%p421_p10), %v3291_v0  ;;  %1469 = vmatprep.mubr.bf16.mxu1 (!%p421_p10), %v3291_v0 }
  0x61   : > { %s2688_s30 = smul.u32 (!%p421_p10), 896, %s427_s27 }
  0x62   : > { %s2689_s7 = smul.u32 (!%p421_p10), 1176, %s427_s27 }
  0x63   : > { %s3297_s3 = scalar_lea.vmem (!%p421_p10), [#allocation2], %s2688_s30 }
  0x64   : > { %v2730_v1 = vld [vmem:[%s3297_s3 + $0x4] ss:$28 sps:$4 sm:$0xff] (!%p421_p10)   ;;  %v2732_v2 = vld [vmem:[%s3297_s3 + $0xc] ss:$28 sps:$4 sm:$0xff] (!%p421_p10)   ;;  %v2736_v5 = vld [vmem:[%s3297_s3 + $0x3c] ss:$28 sps:$4 sm:$0xff] (!%p421_p10)  }
  0x65   : > { %1296 = vmatprep.subr.bf16.mxu0 (!%p421_p10), %v2730_v1  ;;  %v2734_v3 = vld [vmem:[%s3297_s3] ss:$28 sps:$4 sm:$0xff] (!%p421_p10)   ;;  %v2735_v4 = vld [vmem:[%s3297_s3 + $0x8] ss:$28 sps:$4 sm:$0xff] (!%p421_p10)   ;;  %1437 = vmatprep.subr.bf16.mxu1 (!%p421_p10), %v2732_v2  ;;  %v2740_v7 = vld [vmem:[%s3297_s3 + $0x38] ss:$28 sps:$4 sm:$0xff] (!%p421_p10)  }
  0x66   : > { %1297 = vmatpush1.bf16.msra.mxu0 (!%p421_p10), %v2734_v3  ;;  %1438 = vmatpush1.bf16.msra.mxu1 (!%p421_p10), %v2735_v4  ;;  %v2738_v6 = vld [vmem:[%s3297_s3 + $0x44] ss:$28 sps:$4 sm:$0xff] (!%p421_p10)   ;;  %v2742_v9 = vld [vmem:[%s3297_s3 + $0x74] ss:$28 sps:$4 sm:$0xff] (!%p421_p10)   ;;  %v2744_v10 = vld [vmem:[%s3297_s3 + $0x7c] ss:$28 sps:$4 sm:$0xff] (!%p421_p10)  }
  0x67   : > { %1298 = vmatprep.subr.bf16.mxu0 %v2736_v5  ;;  %v2741_v8 = vld [vmem:[%s3297_s3 + $0x40] ss:$28 sps:$4 sm:$0xff]   ;;  %1439 = vmatprep.subr.bf16.mxu1 %v2738_v6  ;;  %v2746_v11 = vld [vmem:[%s3297_s3 + $0x70] ss:$28 sps:$4 sm:$0xff]   ;;  %v2747_v12 = vld [vmem:[%s3297_s3 + $0x78] ss:$28 sps:$4 sm:$0xff]  }
  0x68   : > { %v2748_v13 = vld [vmem:[%s3297_s3 + $0xac] ss:$28 sps:$4 sm:$0xff]   ;;  %v2750_v14 = vld [vmem:[%s3297_s3 + $0xb4] ss:$28 sps:$4 sm:$0xff]   ;;  %v2754_v17 = vld [vmem:[%s3297_s3 + $0xe4] ss:$28 sps:$4 sm:$0xff]  }
  0x69   : > { %v2752_v15 = vld [vmem:[%s3297_s3 + $0xa8] ss:$28 sps:$4 sm:$0xff]   ;;  %v2753_v16 = vld [vmem:[%s3297_s3 + $0xb0] ss:$28 sps:$4 sm:$0xff]   ;;  %v2758_v19 = vld [vmem:[%s3297_s3 + $0xe0] ss:$28 sps:$4 sm:$0xff]  }
  0x6a   : > { %1299 = vmatpush1.bf16.msra.mxu0 %v2740_v7  ;;  %1440 = vmatpush1.bf16.msra.mxu1 %v2741_v8  ;;  %v2756_v18 = vld [vmem:[%s3297_s3 + $0xec] ss:$28 sps:$4 sm:$0xff]   ;;  %v2760_v21 = vld [vmem:[%s3297_s3 + $0x11c] ss:$28 sps:$4 sm:$0xff]   ;;  %v2762_v22 = vld [vmem:[%s3297_s3 + $0x124] ss:$28 sps:$4 sm:$0xff]  }
  0x6b   : > { %1300 = vmatprep.subr.bf16.mxu0 %v2742_v9  ;;  %1441 = vmatprep.subr.bf16.mxu1 %v2744_v10  ;;  %v2759_v20 = vld [vmem:[%s3297_s3 + $0xe8] ss:$28 sps:$4 sm:$0xff]   ;;  %v2764_v23 = vld [vmem:[%s3297_s3 + $0x118] ss:$28 sps:$4 sm:$0xff]   ;;  %v2765_v24 = vld [vmem:[%s3297_s3 + $0x120] ss:$28 sps:$4 sm:$0xff]  }
  0x6c   : > { %v2766_v25 = vld [vmem:[%s3297_s3 + $0x154] ss:$28 sps:$4 sm:$0xff]   ;;  %v2768_v26 = vld [vmem:[%s3297_s3 + $0x15c] ss:$28 sps:$4 sm:$0xff]   ;;  %v2772_v29 = vld [vmem:[%s3297_s3 + $0x18c] ss:$28 sps:$4 sm:$0xff]  }
  0x6d   : > { %v2770_v27 = vld [vmem:[%s3297_s3 + $0x150] ss:$28 sps:$4 sm:$0xff]   ;;  %v2771_v28 = vld [vmem:[%s3297_s3 + $0x158] ss:$28 sps:$4 sm:$0xff]   ;;  %v2776_v31 = vld [vmem:[%s3297_s3 + $0x188] ss:$28 sps:$4 sm:$0xff]  }
  0x6e   : > { %1301 = vmatpush1.bf16.msra.mxu0 %v2746_v11  ;;  %1442 = vmatpush1.bf16.msra.mxu1 %v2747_v12  ;;  %v2774_v30 = vld [vmem:[%s3297_s3 + $0x194] ss:$28 sps:$4 sm:$0xff]   ;;  %v2778_v33 = vld [vmem:[%s3297_s3 + $0x1c4] ss:$28 sps:$4 sm:$0xff]   ;;  %v2780_v34 = vld [vmem:[%s3297_s3 + $0x1cc] ss:$28 sps:$4 sm:$0xff]  }
  0x6f   : > { %1302 = vmatprep.subr.bf16.mxu0 %v2748_v13  ;;  %1443 = vmatprep.subr.bf16.mxu1 %v2750_v14  ;;  %v2777_v32 = vld [vmem:[%s3297_s3 + $0x190] ss:$28 sps:$4 sm:$0xff]   ;;  %v2782_v35 = vld [vmem:[%s3297_s3 + $0x1c0] ss:$28 sps:$4 sm:$0xff]   ;;  %v2783_v36 = vld [vmem:[%s3297_s3 + $0x1c8] ss:$28 sps:$4 sm:$0xff]  }
  0x70   : > { %v2784_v37 = vld [vmem:[%s3297_s3 + $0x1fc] ss:$28 sps:$4 sm:$0xff]   ;;  %v2786_v38 = vld [vmem:[%s3297_s3 + $0x204] ss:$28 sps:$4 sm:$0xff]   ;;  %v2790_v41 = vld [vmem:[%s3297_s3 + $0x234] ss:$28 sps:$4 sm:$0xff]  }
  0x71   : > { %v2788_v39 = vld [vmem:[%s3297_s3 + $0x1f8] ss:$28 sps:$4 sm:$0xff]   ;;  %v2789_v40 = vld [vmem:[%s3297_s3 + $0x200] ss:$28 sps:$4 sm:$0xff]   ;;  %v2794_v43 = vld [vmem:[%s3297_s3 + $0x230] ss:$28 sps:$4 sm:$0xff]  }
  0x72   : > { %1303 = vmatpush1.bf16.msra.mxu0 %v2752_v15  ;;  %1444 = vmatpush1.bf16.msra.mxu1 %v2753_v16  ;;  %v2792_v42 = vld [vmem:[%s3297_s3 + $0x23c] ss:$28 sps:$4 sm:$0xff]   ;;  %v2796_v45 = vld [vmem:[%s3297_s3 + $0x26c] ss:$28 sps:$4 sm:$0xff]   ;;  %v2798_v46 = vld [vmem:[%s3297_s3 + $0x274] ss:$28 sps:$4 sm:$0xff]  }
  0x73   : > { %1304 = vmatprep.subr.bf16.mxu0 %v2754_v17  ;;  %1445 = vmatprep.subr.bf16.mxu1 %v2756_v18  ;;  %v2795_v44 = vld [vmem:[%s3297_s3 + $0x238] ss:$28 sps:$4 sm:$0xff]   ;;  %v2800_v47 = vld [vmem:[%s3297_s3 + $0x268] ss:$28 sps:$4 sm:$0xff]   ;;  %v2801_v48 = vld [vmem:[%s3297_s3 + $0x270] ss:$28 sps:$4 sm:$0xff]  }
  0x74   : > { %v2802_v49 = vld [vmem:[%s3297_s3 + $0x2a4] ss:$28 sps:$4 sm:$0xff]   ;;  %v2804_v50 = vld [vmem:[%s3297_s3 + $0x2ac] ss:$28 sps:$4 sm:$0xff]   ;;  %v2808_v53 = vld [vmem:[%s3297_s3 + $0x2dc] ss:$28 sps:$4 sm:$0xff]  }
  0x75   : > { %v2806_v51 = vld [vmem:[%s3297_s3 + $0x2a0] ss:$28 sps:$4 sm:$0xff]   ;;  %v2807_v52 = vld [vmem:[%s3297_s3 + $0x2a8] ss:$28 sps:$4 sm:$0xff]   ;;  %v2812_v55 = vld [vmem:[%s3297_s3 + $0x2d8] ss:$28 sps:$4 sm:$0xff]  }
  0x76   : > { %1305 = vmatpush1.bf16.msra.mxu0 %v2758_v19  ;;  %1446 = vmatpush1.bf16.msra.mxu1 %v2759_v20  ;;  %v2810_v54 = vld [vmem:[%s3297_s3 + $0x2e4] ss:$28 sps:$4 sm:$0xff]   ;;  %v2814_v57 = vld [vmem:[%s3297_s3 + $0x314] ss:$28 sps:$4 sm:$0xff]   ;;  %v2816_v58 = vld [vmem:[%s3297_s3 + $0x31c] ss:$28 sps:$4 sm:$0xff]  }
  0x77   : > { %1306 = vmatprep.subr.bf16.mxu0 %v2760_v21  ;;  %1447 = vmatprep.subr.bf16.mxu1 %v2762_v22  ;;  %v2813_v56 = vld [vmem:[%s3297_s3 + $0x2e0] ss:$28 sps:$4 sm:$0xff]   ;;  %v2818_v59 = vld [vmem:[%s3297_s3 + $0x310] ss:$28 sps:$4 sm:$0xff]   ;;  %v2819_v60 = vld [vmem:[%s3297_s3 + $0x318] ss:$28 sps:$4 sm:$0xff]  }
  0x78   : > { %v2820_v61 = vld [vmem:[%s3297_s3 + $0x34c] ss:$28 sps:$4 sm:$0xff]   ;;  %v2822_v62 = vld [vmem:[%s3297_s3 + $0x354] ss:$28 sps:$4 sm:$0xff]   ;;  %v2843_v12 = vld [vmem:[%s3297_s3 + $0x84] ss:$28 sps:$4 sm:$0xff]  }
  0x79   : > { %v2824_v63 = vld [vmem:[%s3297_s3 + $0x348] ss:$28 sps:$4 sm:$0xff]   ;;  %v2825_v1 = vld [vmem:[%s3297_s3 + $0x350] ss:$28 sps:$4 sm:$0xff]   ;;  %v2829_v2 = vld [vmem:[%s3297_s3 + $0x1d8] ss:$28 sps:$4 sm:$0xff]  }
  0x7a   : > { %1307 = vmatpush1.bf16.msra.mxu0 %v2764_v23  ;;  %1448 = vmatpush1.bf16.msra.mxu1 %v2765_v24  ;;  %v2832_v3 = vld [vmem:[%s3297_s3 + $0x14] ss:$28 sps:$4 sm:$0xff]   ;;  %v3368_v4 = vld [vmem:[%s4025_s0] ss:$8 sps:$4 sm:$0xff]   ;;  %v3395_v15 = vld [vmem:[%s4025_s0 + $0x24] ss:$8 sps:$4 sm:$0xff]  }
  0x7b   : > { %1308 = vmatprep.subr.bf16.mxu0 %v2766_v25  ;;  %1449 = vmatprep.subr.bf16.mxu1 %v2768_v26  ;;  %v2830_v5 = vld [vmem:[%s3297_s3 + $0x10] ss:$28 sps:$4 sm:$0xff]   ;;  %v3374_v6 = vld [vmem:[%s4025_s0 + $0x14] ss:$8 sps:$4 sm:$0xff]   ;;  %v2836_v10 = vld [vmem:[%s3297_s3 + $0x48] ss:$28 sps:$4 sm:$0xff]  }
  0x7c   : > { %v2833_v7 = vld [vmem:[%s3297_s3 + $0x18] ss:$28 sps:$4 sm:$0xff]   ;;  %v2838_v8 = vld [vmem:[%s3297_s3 + $0x4c] ss:$28 sps:$4 sm:$0xff]   ;;  %v2841_v16 = vld [vmem:[%s3297_s3 + $0x80] ss:$28 sps:$4 sm:$0xff]  }
  0x7d   : > { %v2840_v9 = vld [vmem:[%s3297_s3 + $0x210] ss:$28 sps:$4 sm:$0xff]   ;;  %v2851_v13 = vld [vmem:[%s3297_s3 + $0x248] ss:$28 sps:$4 sm:$0xff]   ;;  %v2850_v17 = vld [vmem:[%s3297_s3 + $0xbc] ss:$28 sps:$4 sm:$0xff]  }
  0x7e   : > { %1309 = vmatpush1.bf16.msra.mxu0 %v2770_v27  ;;  %1450 = vmatpush1.bf16.msra.mxu1 %v2771_v28  ;;  %v2844_v11 = vld [vmem:[%s3297_s3 + $0x50] ss:$28 sps:$4 sm:$0xff]   ;;  %v2857_v18 = vld [vmem:[%s3297_s3 + $0x88] ss:$28 sps:$4 sm:$0xff]   ;;  %v2865_v19 = vld [vmem:[%s3297_s3 + $0x280] ss:$28 sps:$4 sm:$0xff]  }
  0x7f   : > { %1310 = vmatprep.subr.bf16.mxu0 %v2772_v29  ;;  %1451 = vmatprep.subr.bf16.mxu1 %v2774_v30  ;;  %v3390_v14 = vld [vmem:[%s4025_s0 + $0x10] ss:$8 sps:$4 sm:$0xff]   ;;  %v3410_v22 = vld [vmem:[%s4025_s0 + $0x20] ss:$8 sps:$4 sm:$0xff]   ;;  %v3416_v24 = vld [vmem:[%s4025_s0 + $0x34] ss:$8 sps:$4 sm:$0xff]  }
  0x80   : > { %v2848_v20 = vld [vmem:[%s3297_s3 + $0xb8] ss:$28 sps:$4 sm:$0xff]   ;;  %v2869_v23 = vld [vmem:[%s3297_s3 + $0xc0] ss:$28 sps:$4 sm:$0xff]   ;;  %v2854_v25 = vld [vmem:[%s3297_s3 + $0xf0] ss:$28 sps:$4 sm:$0xff]  }
  0x81   : > { %v2856_v21 = vld [vmem:[%s3297_s3 + $0xf4] ss:$28 sps:$4 sm:$0xff]   ;;  %v2861_v26 = vld [vmem:[%s3297_s3 + $0x12c] ss:$28 sps:$4 sm:$0xff]   ;;  %s3559_s8 = scalar_lea.vmem [#allocation3], %s2689_s7  ;;  %s2604_s9 = smul.u32 (%p3012_p6), 56, %s2952_s11 }
  0x82   : > { %1311 = vmatpush1.bf16.msra.mxu0 %v2776_v31  ;;  %1452 = vmatpush1.bf16.msra.mxu1 %v2777_v32  ;;  %v2876_v27 = vld [vmem:[%s3297_s3 + $0x2b8] ss:$28 sps:$4 sm:$0xff]   ;;  %v2889_v29 = vld [vmem:[%s3297_s3 + $0x2f0] ss:$28 sps:$4 sm:$0xff]   ;;  %v2859_v30 = vld [vmem:[%s3297_s3 + $0x128] ss:$28 sps:$4 sm:$0xff]  }
  0x83   : > { %1312 = vmatprep.subr.bf16.mxu0 %v2778_v33  ;;  %1453 = vmatprep.subr.bf16.mxu1 %v2780_v34  ;;  %v2880_v28 = vld [vmem:[%s3297_s3 + $0xf8] ss:$28 sps:$4 sm:$0xff]   ;;  %v2868_v31 = vld [vmem:[%s3297_s3 + $0x164] ss:$28 sps:$4 sm:$0xff]   ;;  %v2894_v32 = vld [vmem:[%s3297_s3 + $0x130] ss:$28 sps:$4 sm:$0xff]   ;;  %s3720_s15 = scalar_lea.vmem (%p3012_p6), %s4027_s2, %s2604_s9 }
  0x84   : > { %v3433_v33 = vld [vmem:[%s4025_s0 + $0x30] ss:$8 sps:$4 sm:$0xff]   ;;  %v3438_v34 = vld [vmem:[%s4025_s0 + $0x44] ss:$8 sps:$4 sm:$0xff]  }
  0x86   : > { %1313 = vmatpush1.bf16.msra.mxu0 %v2782_v35  ;;  %1454 = vmatpush1.bf16.msra.mxu1 %v2783_v36  ;;  %v2866_v35 = vld [vmem:[%s3297_s3 + $0x160] ss:$28 sps:$4 sm:$0xff]   ;;  %v2901_v36 = vld [vmem:[%s3297_s3 + $0x328] ss:$28 sps:$4 sm:$0xff]  }
  0x87   : > { %1314 = vmatprep.subr.bf16.mxu0 %v2784_v37  ;;  %1455 = vmatprep.subr.bf16.mxu1 %v2786_v38  ;;  %v2875_v37 = vld [vmem:[%s3297_s3 + $0x19c] ss:$28 sps:$4 sm:$0xff]   ;;  %v2905_v38 = vld [vmem:[%s3297_s3 + $0x168] ss:$28 sps:$4 sm:$0xff]  }
  0x8a   : > { %1315 = vmatpush1.bf16.msra.mxu0 %v2788_v39  ;;  %1456 = vmatpush1.bf16.msra.mxu1 %v2789_v40  ;;  %v2912_v39 = vld [vmem:[%s3297_s3 + $0x360] ss:$28 sps:$4 sm:$0xff]   ;;  %v2873_v40 = vld [vmem:[%s3297_s3 + $0x198] ss:$28 sps:$4 sm:$0xff]  }
  0x8b   : > { %1316 = vmatprep.subr.bf16.mxu0 %v2790_v41  ;;  %1457 = vmatprep.subr.bf16.mxu1 %v2792_v42  ;;  %v2879_v41 = vld [vmem:[%s3297_s3 + $0x1d4] ss:$28 sps:$4 sm:$0xff]   ;;  %v2916_v42 = vld [vmem:[%s3297_s3 + $0x1a0] ss:$28 sps:$4 sm:$0xff]  }
  0x8e   : > { %1317 = vmatpush1.bf16.msra.mxu0 %v2794_v43  ;;  %1458 = vmatpush1.bf16.msra.mxu1 %v2795_v44  ;;  %v3455_v43 = vld [vmem:[%s4025_s0 + $0x40] ss:$8 sps:$4 sm:$0xff]   ;;  %v3460_v44 = vld [vmem:[%s4025_s0 + $0x54] ss:$8 sps:$4 sm:$0xff]  }
  0x8f   : > { %1318 = vmatprep.subr.bf16.mxu0 %v2796_v45  ;;  %1459 = vmatprep.subr.bf16.mxu1 %v2798_v46  ;;  %v2877_v45 = vld [vmem:[%s3297_s3 + $0x1d0] ss:$28 sps:$4 sm:$0xff]  }
  0x90   : > { %v2886_v46 = vld [vmem:[%s3297_s3 + $0x20c] ss:$28 sps:$4 sm:$0xff]  }
  0x92   : > { %1319 = vmatpush1.bf16.msra.mxu0 %v2800_v47  ;;  %1460 = vmatpush1.bf16.msra.mxu1 %v2801_v48  ;;  %v2884_v47 = vld [vmem:[%s3297_s3 + $0x208] ss:$28 sps:$4 sm:$0xff]  }
  0x93   : > { %1320 = vmatprep.subr.bf16.mxu0 %v2802_v49  ;;  %1461 = vmatprep.subr.bf16.mxu1 %v2804_v50  ;;  %v2893_v48 = vld [vmem:[%s3297_s3 + $0x244] ss:$28 sps:$4 sm:$0xff]   ;;  %v3473_v49 = vld [vmem:[%s4025_s0 + $0x50] ss:$8 sps:$4 sm:$0xff]  }
  0x94   : > { %v3478_v50 = vld [vmem:[%s4025_s0 + $0x64] ss:$8 sps:$4 sm:$0xff]  }
  0x96   : > { %1321 = vmatpush1.bf16.msra.mxu0 %v2806_v51  ;;  %1462 = vmatpush1.bf16.msra.mxu1 %v2807_v52  ;;  %v2891_v51 = vld [vmem:[%s3297_s3 + $0x240] ss:$28 sps:$4 sm:$0xff]  }
  0x97   : > { %1322 = vmatprep.subr.bf16.mxu0 %v2808_v53  ;;  %1463 = vmatprep.subr.bf16.mxu1 %v2810_v54  ;;  %v2897_v52 = vld [vmem:[%s3297_s3 + $0x27c] ss:$28 sps:$4 sm:$0xff]   ;;  %v2904_v54 = vld [vmem:[%s3297_s3 + $0x2b4] ss:$28 sps:$4 sm:$0xff]  }
  0x98   : > { %v2895_v53 = vld [vmem:[%s3297_s3 + $0x278] ss:$28 sps:$4 sm:$0xff]  }
  0x9a   : > { %1323 = vmatpush1.bf16.msra.mxu0 %v2812_v55  ;;  %1464 = vmatpush1.bf16.msra.mxu1 %v2813_v56  ;;  %v3491_v55 = vld [vmem:[%s4025_s0 + $0x60] ss:$8 sps:$4 sm:$0xff]   ;;  %v3496_v56 = vld [vmem:[%s4025_s0 + $0x74] ss:$8 sps:$4 sm:$0xff]  }
  0x9b   : > { %1324 = vmatprep.subr.bf16.mxu0 %v2814_v57  ;;  %1465 = vmatprep.subr.bf16.mxu1 %v2816_v58  ;;  %v2902_v57 = vld [vmem:[%s3297_s3 + $0x2b0] ss:$28 sps:$4 sm:$0xff]  }
  0x9c   : > { %v2911_v58 = vld [vmem:[%s3297_s3 + $0x2ec] ss:$28 sps:$4 sm:$0xff]  }
  0x9e   : > { %1325 = vmatpush1.bf16.msra.mxu0 %v2818_v59  ;;  %1466 = vmatpush1.bf16.msra.mxu1 %v2819_v60  ;;  %v2909_v59 = vld [vmem:[%s3297_s3 + $0x2e8] ss:$28 sps:$4 sm:$0xff]  }
  0x9f   : > { %1326 = vmatprep.subr.bf16.mxu0 %v2820_v61  ;;  %1467 = vmatprep.subr.bf16.mxu1 %v2822_v62  ;;  %v2915_v60 = vld [vmem:[%s3297_s3 + $0x324] ss:$28 sps:$4 sm:$0xff]   ;;  %v2890_v61 = vld [vmem:[%s4025_s0 + $0x70] ss:$8 sps:$4 sm:$0xff]  }
  0xa0   : > { %v2898_v62 = vld [vmem:[%s4025_s0 + $0x84] ss:$8 sps:$4 sm:$0xff]  }
  0xa2   : > { %1327 = vmatpush1.bf16.msra.mxu0 %v2824_v63  ;;  %1468 = vmatpush1.bf16.msra.mxu1 %v2825_v1  ;;  %v2913_v63 = vld [vmem:[%s3297_s3 + $0x320] ss:$28 sps:$4 sm:$0xff]  }
  0xa3   : > { %2605 = vmatprep.subr.bf16.mxu1 %v2829_v2  ;;  %1578 = vmatprep.subr.bf16.mxu0 %v2832_v3  ;;  %v2921_v1 = vld [vmem:[%s3297_s3 + $0x35c] ss:$28 sps:$4 sm:$0xff]   ;;  %v2900_v3 = vld [vmem:[%s4025_s0 + $0x80] ss:$8 sps:$4 sm:$0xff]  }
  0xa4   : > { %v2919_v2 = vld [vmem:[%s3297_s3 + $0x358] ss:$28 sps:$4 sm:$0xff]  }
  0xa5   : > { %1329 = vmatmul.mubr.bf16.vlgmr.msra.gmra.mrb[0].mxu0 %v3368_v4  ;;  %1470 = vmatmul.mubr.bf16.vlgmr.msra.gmra.mrb[0].mxu1 %v3368_v4 }
  0xa6   : > { %2606 = vmatpush3.bf16.msra.mxu1 %v2833_v7  ;;  %1579 = vmatpush1.bf16.msra.mxu0 %v2830_v5  ;;  %v2906_v5 = vld [vmem:[%s4025_s0 + $0x94] ss:$8 sps:$4 sm:$0xff]   ;;  %v484_v7 = vld [vmem:[%s4025_s0 + $0xa0] sm:$0xff] }
  0xa7   : > { %1338 = vmatprep.mubr.bf16.mxu0 %v3374_v6  ;;  %1479 = vmatprep.mubr.bf16.mxu1 %v3374_v6 }
  0xa8   : > { %1580 = vmatprep.subr.bf16.mxu0 %v2838_v8  ;;  %2607 = vmatprep.subr.bf16.mxu1 %v2840_v9  ;;  %v2908_v8 = vld [vmem:[%s4025_s0 + $0x90] ss:$8 sps:$4 sm:$0xff]   ;;  %v2487_v9 = vcombine.high %v484_v7, %v484_v7 }
  0xaa   : > { %1581 = vmatpush1.bf16.msra.mxu0 %v2836_v10  ;;  %2608 = vmatpush3.bf16.msra.mxu1 %v2844_v11  ;;  %v2486_v10 = vcombine.low %v484_v7, %v484_v7 }
  0xab   : > { %1582 = vmatprep.subr.bf16.mxu0 %v2843_v12  ;;  %2609 = vmatprep.subr.bf16.mxu1 %v2851_v13 }
  0xad   : > { %1339 = vmatmul.mubr.bf16.gmra.mrb[4].mxu0 %v3390_v14  ;;  %1480 = vmatmul.mubr.bf16.gmra.mrb[4].mxu1 %v3390_v14 }
  0xae   : > { %1583 = vmatpush1.bf16.msra.mxu0 %v2841_v16  ;;  %1348 = vmatprep.mubr.bf16.mxu0 %v3395_v15 }
  0xaf   : > { %1489 = vmatprep.mubr.bf16.mxu1 %v3395_v15  ;;  %1584 = vmatprep.subr.bf16.mxu0 %v2850_v17 }
  0xb0   : > { %2610 = vmatpush3.bf16.msra.mxu1 %v2857_v18 }
  0xb1   : > { %2611 = vmatprep.subr.bf16.mxu1 %v2865_v19 }
  0xb2   : > { %1585 = vmatpush1.bf16.msra.mxu0 %v2848_v20 }
  0xb3   : > { %1586 = vmatprep.subr.bf16.mxu0 %v2856_v21 }
  0xb4   : > { %2612 = vmatpush3.bf16.msra.mxu1 %v2869_v23 }
  0xb5   : > { %1349 = vmatmul.mubr.bf16.gmra.mrb[8].mxu0 %v3410_v22  ;;  %1490 = vmatmul.mubr.bf16.gmra.mrb[8].mxu1 %v3410_v22 }
  0xb6   : > { %1358 = vmatprep.mubr.bf16.mxu0 %v3416_v24  ;;  %1499 = vmatprep.mubr.bf16.mxu1 %v3416_v24 }
  0xb7   : > { %1587 = vmatpush1.bf16.msra.mxu0 %v2854_v25  ;;  %2613 = vmatprep.subr.bf16.mxu1 %v2876_v27 }
  0xb8   : > { %1588 = vmatprep.subr.bf16.mxu0 %v2861_v26  ;;  %2614 = vmatpush3.bf16.msra.mxu1 %v2880_v28 }
  0xb9   : > { %2615 = vmatprep.subr.bf16.mxu1 %v2889_v29 }
  0xbb   : > { %1589 = vmatpush1.bf16.msra.mxu0 %v2859_v30 }
  0xbc   : > { %1590 = vmatprep.subr.bf16.mxu0 %v2868_v31  ;;  %2616 = vmatpush3.bf16.msra.mxu1 %v2894_v32 }
  0xbd   : > { %1359 = vmatmul.mubr.bf16.gmra.mrb[12].mxu0 %v3433_v33  ;;  %1500 = vmatmul.mubr.bf16.gmra.mrb[12].mxu1 %v3433_v33 }
  0xbe   : > { %1368 = vmatprep.mubr.bf16.mxu0 %v3438_v34  ;;  %1509 = vmatprep.mubr.bf16.mxu1 %v3438_v34 }
  0xbf   : > { %1591 = vmatpush1.bf16.msra.mxu0 %v2866_v35  ;;  %2617 = vmatprep.subr.bf16.mxu1 %v2901_v36 }
  0xc0   : > { %1592 = vmatprep.subr.bf16.mxu0 %v2875_v37  ;;  %2618 = vmatpush3.bf16.msra.mxu1 %v2905_v38 }
  0xc1   : > { %2619 = vmatprep.subr.bf16.mxu1 %v2912_v39 }
  0xc3   : > { %1593 = vmatpush1.bf16.msra.mxu0 %v2873_v40 }
  0xc4   : > { %1594 = vmatprep.subr.bf16.mxu0 %v2879_v41  ;;  %2620 = vmatpush3.bf16.msra.mxu1 %v2916_v42 }
  0xc5   : > { %1369 = vmatmul.mubr.bf16.gmra.mrb[16].mxu0 %v3455_v43  ;;  %1510 = vmatmul.mubr.bf16.gmra.mrb[16].mxu1 %v3455_v43 }
  0xc6   : > { %1378 = vmatprep.mubr.bf16.mxu0 %v3460_v44  ;;  %1519 = vmatprep.mubr.bf16.mxu1 %v3460_v44 }
  0xc7   : > { %1595 = vmatpush1.bf16.msra.mxu0 %v2877_v45 }
  0xc8   : > { %1596 = vmatprep.subr.bf16.mxu0 %v2886_v46 }
  0xcb   : > { %1597 = vmatpush1.bf16.msra.mxu0 %v2884_v47 }
  0xcc   : > { %1598 = vmatprep.subr.bf16.mxu0 %v2893_v48 }
  0xcd   : > { %1379 = vmatmul.mubr.bf16.gmra.mrb[20].mxu0 %v3473_v49  ;;  %1520 = vmatmul.mubr.bf16.gmra.mrb[20].mxu1 %v3473_v49 }
  0xce   : > { %1388 = vmatprep.mubr.bf16.mxu0 %v3478_v50  ;;  %1529 = vmatprep.mubr.bf16.mxu1 %v3478_v50 }
  0xcf   : > { %1599 = vmatpush1.bf16.msra.mxu0 %v2891_v51 }
  0xd0   : > { %1600 = vmatprep.subr.bf16.mxu0 %v2897_v52 }
  0xd3   : > { %1601 = vmatpush1.bf16.msra.mxu0 %v2895_v53 }
  0xd4   : > { %1602 = vmatprep.subr.bf16.mxu0 %v2904_v54 }
  0xd5   : > { %1389 = vmatmul.mubr.bf16.gmra.mrb[24].mxu0 %v3491_v55  ;;  %1530 = vmatmul.mubr.bf16.gmra.mrb[24].mxu1 %v3491_v55 }
  0xd6   : > { %1398 = vmatprep.mubr.bf16.mxu0 %v3496_v56  ;;  %1539 = vmatprep.mubr.bf16.mxu1 %v3496_v56 }
  0xd7   : > { %1603 = vmatpush1.bf16.msra.mxu0 %v2902_v57 }
  0xd8   : > { %1604 = vmatprep.subr.bf16.mxu0 %v2911_v58 }
  0xdb   : > { %1605 = vmatpush1.bf16.msra.mxu0 %v2909_v59 }
  0xdc   : > { %1606 = vmatprep.subr.bf16.mxu0 %v2915_v60 }
  0xdd   : > { %1399 = vmatmul.mubr.bf16.gmra.mrb[28].mxu0 %v2890_v61  ;;  %1540 = vmatmul.mubr.bf16.gmra.mrb[28].mxu1 %v2890_v61 }
  0xde   : > { %1408 = vmatprep.mubr.bf16.mxu0 %v2898_v62  ;;  %1549 = vmatprep.mubr.bf16.mxu1 %v2898_v62 }
  0xdf   : > { %1607 = vmatpush1.bf16.msra.mxu0 %v2913_v63 }
  0xe0   : > { %1608 = vmatprep.subr.bf16.mxu0 %v2921_v1 }
  0xe3   : > { %1609 = vmatpush1.bf16.msra.mxu0 %v2919_v2 }
  0xe5   : > { %1409 = vmatmul.mubr.bf16.gmra.mrb[32].mxu0 %v2900_v3  ;;  %1550 = vmatmul.mubr.bf16.gmra.mrb[32].mxu1 %v2900_v3 }
  0xe6   : > { %1418 = vmatprep.mubr.bf16.mxu0 %v2906_v5  ;;  %1559 = vmatprep.mubr.bf16.mxu1 %v2906_v5 }
  0xed   : > { %1419 = vmatmul.mubr.bf16.gmra.mrb[36].mxu0 %v2908_v8  ;;  %1560 = vmatmul.mubr.bf16.gmra.mrb[36].mxu1 %v2908_v8 }
  0xee   : > { %1428 = vmatprep.mubr.bf16.mxu0 %v2487_v9  ;;  %1569 = vmatprep.mubr.bf16.mxu1 %v2487_v9 }
  0xf5   : > { %1429 = vmatmul.mubr.bf16.gmra.mrb[40].mxu0 %v2486_v10  ;;  %1570 = vmatmul.mubr.bf16.gmra.mrb[40].mxu1 %v2486_v10 }
  0xf6   : > { %1610 = vmatprep.mubr.bf16.mxu0 %v3291_v0  ;;  %1751 = vmatprep.mubr.bf16.mxu1 %v3291_v0 }
  0xfd   : > { %1611 = vmatmul.mubr.bf16.vlgmr.msra.gmra.mrb[44].mxu0 %v3368_v4  ;;  %1752 = vmatmul.mubr.bf16.vlgmr.msra.gmra.mrb[44].mxu1 %v3368_v4 }
  0xfe   : > { %1620 = vmatprep.mubr.bf16.mxu0 %v3374_v6  ;;  %1759 = vmatprep.mubr.bf16.mxu1 %v3374_v6 }
 0x105   : > { %1621 = vmatmul.mubr.bf16.gmra.mrb[48].mxu0 %v3390_v14  ;;  %1760 = vmatmul.mubr.bf16.gmra.mrb[48].mxu1 %v3390_v14 }
 0x106   : > { %1630 = vmatprep.mubr.bf16.mxu0 %v3395_v15  ;;  %1767 = vmatprep.mubr.bf16.mxu1 %v3395_v15 }
 0x10d   : > { %1631 = vmatmul.mubr.bf16.gmra.mrb[52].mxu0 %v3410_v22  ;;  %1768 = vmatmul.mubr.bf16.gmra.mrb[52].mxu1 %v3410_v22 }
 0x10e   : > { %1640 = vmatprep.mubr.bf16.mxu0 %v3416_v24  ;;  %1775 = vmatprep.mubr.bf16.mxu1 %v3416_v24 }
 0x115   : > { %1641 = vmatmul.mubr.bf16.gmra.mrb[56].mxu0 %v3433_v33  ;;  %1776 = vmatmul.mubr.bf16.gmra.mrb[56].mxu1 %v3433_v33 }
 0x116   : > { %1650 = vmatprep.mubr.bf16.mxu0 %v3438_v34  ;;  %1783 = vmatprep.mubr.bf16.mxu1 %v3438_v34 }
 0x11d   : > { %1651 = vmatmul.mubr.bf16.gmra.mrb[60].mxu0 %v3455_v43  ;;  %1784 = vmatmul.mubr.bf16.gmra.mrb[60].mxu1 %v3455_v43 }
 0x11e   : > { %1660 = vmatprep.mubr.bf16.mxu0 %v3460_v44  ;;  %1791 = vmatprep.mubr.bf16.mxu1 %v3460_v44 }
 0x125   : > { %1661 = vmatmul.mubr.bf16.gmra.mrb[64].mxu0 %v3473_v49  ;;  %1792 = vmatmul.mubr.bf16.gmra.mrb[64].mxu1 %v3473_v49 }
 0x126   : > { %1670 = vmatprep.mubr.bf16.mxu0 %v3478_v50  ;;  %1799 = vmatprep.mubr.bf16.mxu1 %v3478_v50 }
 0x12d   : > { %1671 = vmatmul.mubr.bf16.gmra.mrb[68].mxu0 %v3491_v55  ;;  %1800 = vmatmul.mubr.bf16.gmra.mrb[68].mxu1 %v3491_v55 }
 0x12e   : > { %1680 = vmatprep.mubr.bf16.mxu0 %v3496_v56  ;;  %1807 = vmatprep.mubr.bf16.mxu1 %v3496_v56 }
 0x135   : > { %1681 = vmatmul.mubr.bf16.gmra.mrb[72].mxu0 %v2890_v61  ;;  %1808 = vmatmul.mubr.bf16.gmra.mrb[72].mxu1 %v2890_v61 }
 0x136   : > { %1690 = vmatprep.mubr.bf16.mxu0 %v2898_v62  ;;  %1815 = vmatprep.mubr.bf16.mxu1 %v2898_v62 }
 0x13d   : > { %1691 = vmatmul.mubr.bf16.gmra.mrb[76].mxu0 %v2900_v3  ;;  %1816 = vmatmul.mubr.bf16.gmra.mrb[76].mxu1 %v2900_v3 }
 0x13e   : > { %1700 = vmatprep.mubr.bf16.mxu0 %v2906_v5  ;;  %1823 = vmatprep.mubr.bf16.mxu1 %v2906_v5 }
 0x145   : > { %1701 = vmatmul.mubr.bf16.gmra.mrb[80].mxu0 %v2908_v8  ;;  %1824 = vmatmul.mubr.bf16.gmra.mrb[80].mxu1 %v2908_v8 }
 0x146   : > { %1710 = vmatprep.mubr.bf16.mxu0 %v2487_v9  ;;  %1831 = vmatprep.mubr.bf16.mxu1 %v2487_v9 }
 0x14d   : > { %1711 = vmatmul.mubr.bf16.gmra.mrb[84].mxu0 %v2486_v10  ;;  %1832 = vmatmul.mubr.bf16.gmra.mrb[84].mxu1 %v2486_v10 }
 0x178   : > { %v1330_v0 = vpop.f32.mrb[0].mxu0  ;;  %v1471_v4 = vpop.f32.mrb[0].mxu1 }
 0x179   : > { %1839 = vst [vmem:[%s3559_s8] sm:$0xff] %v1330_v0  ;;  %1841 = vst [vmem:[%s3559_s8 + $0x10] sm:$0xff] %v1471_v4  ;;  %v1332_v6 = vpop.f32.mrb[1].mxu0  ;;  %v1473_v11 = vpop.f32.mrb[1].mxu1 }
 0x17a   : > { %1840 = vst [vmem:[%s3559_s8 + $0x8] sm:$0xff] %v1332_v6  ;;  %1842 = vst [vmem:[%s3559_s8 + $0x18] sm:$0xff] %v1473_v11  ;;  %v1334_v12 = vpop.f32.mrb[2].mxu0  ;;  %v1475_v13 = vpop.f32.mrb[2].mxu1 }
 0x17b   : > { %1846 = vst [vmem:[%s3559_s8 + $0x38] sm:$0xff] %v1334_v12  ;;  %1848 = vst [vmem:[%s3559_s8 + $0x48] sm:$0xff] %v1475_v13  ;;  %v1336_v14 = vpop.f32.mrb[3].mxu0  ;;  %v1477_v15 = vpop.f32.mrb[3].mxu1 }
 0x17c   : > { %1847 = vst [vmem:[%s3559_s8 + $0x40] sm:$0xff] %v1336_v14  ;;  %1849 = vst [vmem:[%s3559_s8 + $0x50] sm:$0xff] %v1477_v15 }
 0x180   : > { %v1340_v16 = vpop.f32.mrb[4].mxu0  ;;  %v1481_v17 = vpop.f32.mrb[4].mxu1 }
 0x181   : > { %1853 = vst [vmem:[%s3559_s8 + $0x70] sm:$0xff] %v1340_v16  ;;  %1855 = vst [vmem:[%s3559_s8 + $0x80] sm:$0xff] %v1481_v17  ;;  %v1342_v18 = vpop.f32.mrb[5].mxu0  ;;  %v1483_v19 = vpop.f32.mrb[5].mxu1 }
 0x182   : > { %1854 = vst [vmem:[%s3559_s8 + $0x78] sm:$0xff] %v1342_v18  ;;  %1856 = vst [vmem:[%s3559_s8 + $0x88] sm:$0xff] %v1483_v19  ;;  %v1344_v20 = vpop.f32.mrb[6].mxu0  ;;  %v1485_v21 = vpop.f32.mrb[6].mxu1 }
 0x183   : > { %1860 = vst [vmem:[%s3559_s8 + $0xa8] sm:$0xff] %v1344_v20  ;;  %1862 = vst [vmem:[%s3559_s8 + $0xb8] sm:$0xff] %v1485_v21  ;;  %v1346_v22 = vpop.f32.mrb[7].mxu0  ;;  %v1487_v23 = vpop.f32.mrb[7].mxu1 }
 0x184   : > { %1861 = vst [vmem:[%s3559_s8 + $0xb0] sm:$0xff] %v1346_v22  ;;  %1863 = vst [vmem:[%s3559_s8 + $0xc0] sm:$0xff] %v1487_v23 }
 0x188   : > { %v1350_v24 = vpop.f32.mrb[8].mxu0  ;;  %v1491_v25 = vpop.f32.mrb[8].mxu1 }
 0x189   : > { %1867 = vst [vmem:[%s3559_s8 + $0xe0] sm:$0xff] %v1350_v24  ;;  %1869 = vst [vmem:[%s3559_s8 + $0xf0] sm:$0xff] %v1491_v25  ;;  %v1352_v26 = vpop.f32.mrb[9].mxu0  ;;  %v1493_v27 = vpop.f32.mrb[9].mxu1 }
 0x18a   : > { %1868 = vst [vmem:[%s3559_s8 + $0xe8] sm:$0xff] %v1352_v26  ;;  %1870 = vst [vmem:[%s3559_s8 + $0xf8] sm:$0xff] %v1493_v27  ;;  %v1354_v28 = vpop.f32.mrb[10].mxu0  ;;  %v1495_v29 = vpop.f32.mrb[10].mxu1 }
 0x18b   : > { %1874 = vst [vmem:[%s3559_s8 + $0x118] sm:$0xff] %v1354_v28  ;;  %1876 = vst [vmem:[%s3559_s8 + $0x128] sm:$0xff] %v1495_v29  ;;  %v1356_v30 = vpop.f32.mrb[11].mxu0  ;;  %v1497_v31 = vpop.f32.mrb[11].mxu1 }
 0x18c   : > { %1875 = vst [vmem:[%s3559_s8 + $0x120] sm:$0xff] %v1356_v30  ;;  %1877 = vst [vmem:[%s3559_s8 + $0x130] sm:$0xff] %v1497_v31 }
 0x190   : > { %v1360_v32 = vpop.f32.mrb[12].mxu0  ;;  %v1501_v33 = vpop.f32.mrb[12].mxu1 }
 0x191   : > { %1881 = vst [vmem:[%s3559_s8 + $0x150] sm:$0xff] %v1360_v32  ;;  %1883 = vst [vmem:[%s3559_s8 + $0x160] sm:$0xff] %v1501_v33  ;;  %v1362_v34 = vpop.f32.mrb[13].mxu0  ;;  %v1503_v35 = vpop.f32.mrb[13].mxu1 }
 0x192   : > { %1882 = vst [vmem:[%s3559_s8 + $0x158] sm:$0xff] %v1362_v34  ;;  %1884 = vst [vmem:[%s3559_s8 + $0x168] sm:$0xff] %v1503_v35  ;;  %v1364_v36 = vpop.f32.mrb[14].mxu0  ;;  %v1505_v37 = vpop.f32.mrb[14].mxu1 }
 0x193   : > { %1888 = vst [vmem:[%s3559_s8 + $0x188] sm:$0xff] %v1364_v36  ;;  %1890 = vst [vmem:[%s3559_s8 + $0x198] sm:$0xff] %v1505_v37  ;;  %v1366_v38 = vpop.f32.mrb[15].mxu0  ;;  %v1507_v39 = vpop.f32.mrb[15].mxu1 }
 0x194   : > { %1889 = vst [vmem:[%s3559_s8 + $0x190] sm:$0xff] %v1366_v38  ;;  %1891 = vst [vmem:[%s3559_s8 + $0x1a0] sm:$0xff] %v1507_v39 }
 0x198   : > { %v1370_v40 = vpop.f32.mrb[16].mxu0  ;;  %v1511_v41 = vpop.f32.mrb[16].mxu1 }
 0x199   : > { %1895 = vst [vmem:[%s3559_s8 + $0x1c0] sm:$0xff] %v1370_v40  ;;  %1897 = vst [vmem:[%s3559_s8 + $0x1d0] sm:$0xff] %v1511_v41  ;;  %v1372_v42 = vpop.f32.mrb[17].mxu0  ;;  %v1513_v43 = vpop.f32.mrb[17].mxu1 }
 0x19a   : > { %1896 = vst [vmem:[%s3559_s8 + $0x1c8] sm:$0xff] %v1372_v42  ;;  %1898 = vst [vmem:[%s3559_s8 + $0x1d8] sm:$0xff] %v1513_v43  ;;  %v1374_v44 = vpop.f32.mrb[18].mxu0  ;;  %v1515_v45 = vpop.f32.mrb[18].mxu1 }
 0x19b   : > { %1902 = vst [vmem:[%s3559_s8 + $0x1f8] sm:$0xff] %v1374_v44  ;;  %1904 = vst [vmem:[%s3559_s8 + $0x208] sm:$0xff] %v1515_v45  ;;  %v1376_v46 = vpop.f32.mrb[19].mxu0  ;;  %v1517_v47 = vpop.f32.mrb[19].mxu1 }
 0x19c   : > { %1903 = vst [vmem:[%s3559_s8 + $0x200] sm:$0xff] %v1376_v46  ;;  %1905 = vst [vmem:[%s3559_s8 + $0x210] sm:$0xff] %v1517_v47 }
 0x1a0   : > { %v1380_v48 = vpop.f32.mrb[20].mxu0  ;;  %v1521_v49 = vpop.f32.mrb[20].mxu1 }
 0x1a1   : > { %1909 = vst [vmem:[%s3559_s8 + $0x230] sm:$0xff] %v1380_v48  ;;  %1911 = vst [vmem:[%s3559_s8 + $0x240] sm:$0xff] %v1521_v49  ;;  %v1382_v50 = vpop.f32.mrb[21].mxu0  ;;  %v1523_v51 = vpop.f32.mrb[21].mxu1 }
 0x1a2   : > { %1910 = vst [vmem:[%s3559_s8 + $0x238] sm:$0xff] %v1382_v50  ;;  %1912 = vst [vmem:[%s3559_s8 + $0x248] sm:$0xff] %v1523_v51  ;;  %v1384_v52 = vpop.f32.mrb[22].mxu0  ;;  %v1525_v53 = vpop.f32.mrb[22].mxu1 }
 0x1a3   : > { %1916 = vst [vmem:[%s3559_s8 + $0x268] sm:$0xff] %v1384_v52  ;;  %1918 = vst [vmem:[%s3559_s8 + $0x278] sm:$0xff] %v1525_v53  ;;  %v1386_v54 = vpop.f32.mrb[23].mxu0  ;;  %v1527_v55 = vpop.f32.mrb[23].mxu1 }
 0x1a4   : > { %1917 = vst [vmem:[%s3559_s8 + $0x270] sm:$0xff] %v1386_v54  ;;  %1919 = vst [vmem:[%s3559_s8 + $0x280] sm:$0xff] %v1527_v55 }
 0x1a8   : > { %v1390_v56 = vpop.f32.mrb[24].mxu0  ;;  %v1531_v57 = vpop.f32.mrb[24].mxu1 }
 0x1a9   : > { %1923 = vst [vmem:[%s3559_s8 + $0x2a0] sm:$0xff] %v1390_v56  ;;  %1925 = vst [vmem:[%s3559_s8 + $0x2b0] sm:$0xff] %v1531_v57  ;;  %v1392_v58 = vpop.f32.mrb[25].mxu0  ;;  %v1533_v59 = vpop.f32.mrb[25].mxu1 }
 0x1aa   : > { %1924 = vst [vmem:[%s3559_s8 + $0x2a8] sm:$0xff] %v1392_v58  ;;  %1926 = vst [vmem:[%s3559_s8 + $0x2b8] sm:$0xff] %v1533_v59  ;;  %v1394_v60 = vpop.f32.mrb[26].mxu0  ;;  %v1535_v61 = vpop.f32.mrb[26].mxu1 }
 0x1ab   : > { %1930 = vst [vmem:[%s3559_s8 + $0x2d8] sm:$0xff] %v1394_v60  ;;  %1932 = vst [vmem:[%s3559_s8 + $0x2e8] sm:$0xff] %v1535_v61  ;;  %v1396_v62 = vpop.f32.mrb[27].mxu0  ;;  %v1537_v63 = vpop.f32.mrb[27].mxu1 }
 0x1ac   : > { %1931 = vst [vmem:[%s3559_s8 + $0x2e0] sm:$0xff] %v1396_v62  ;;  %1933 = vst [vmem:[%s3559_s8 + $0x2f0] sm:$0xff] %v1537_v63 }
 0x1b0   : > { %v1400_v1 = vpop.f32.mrb[28].mxu0  ;;  %v1541_v2 = vpop.f32.mrb[28].mxu1 }
 0x1b1   : > { %1937 = vst [vmem:[%s3559_s8 + $0x310] sm:$0xff] %v1400_v1  ;;  %1939 = vst [vmem:[%s3559_s8 + $0x320] sm:$0xff] %v1541_v2  ;;  %v1402_v3 = vpop.f32.mrb[29].mxu0  ;;  %v1543_v5 = vpop.f32.mrb[29].mxu1 }
 0x1b2   : > { %1938 = vst [vmem:[%s3559_s8 + $0x318] sm:$0xff] %v1402_v3  ;;  %1940 = vst [vmem:[%s3559_s8 + $0x328] sm:$0xff] %v1543_v5  ;;  %v1404_v7 = vpop.f32.mrb[30].mxu0  ;;  %v1545_v8 = vpop.f32.mrb[30].mxu1 }
 0x1b3   : > { %1944 = vst [vmem:[%s3559_s8 + $0x348] sm:$0xff] %v1404_v7  ;;  %1946 = vst [vmem:[%s3559_s8 + $0x358] sm:$0xff] %v1545_v8  ;;  %v1406_v9 = vpop.f32.mrb[31].mxu0  ;;  %v1547_v10 = vpop.f32.mrb[31].mxu1 }
 0x1b4   : > { %1945 = vst [vmem:[%s3559_s8 + $0x350] sm:$0xff] %v1406_v9  ;;  %1947 = vst [vmem:[%s3559_s8 + $0x360] sm:$0xff] %v1547_v10 }
 0x1b8   : > { %v1410_v0 = vpop.f32.mrb[32].mxu0  ;;  %v1551_v4 = vpop.f32.mrb[32].mxu1 }
 0x1b9   : > { %1951 = vst [vmem:[%s3559_s8 + $0x380] sm:$0xff] %v1410_v0  ;;  %1953 = vst [vmem:[%s3559_s8 + $0x390] sm:$0xff] %v1551_v4  ;;  %v1412_v6 = vpop.f32.mrb[33].mxu0  ;;  %v1553_v11 = vpop.f32.mrb[33].mxu1 }
 0x1ba   : > { %1952 = vst [vmem:[%s3559_s8 + $0x388] sm:$0xff] %v1412_v6  ;;  %1954 = vst [vmem:[%s3559_s8 + $0x398] sm:$0xff] %v1553_v11  ;;  %v1414_v12 = vpop.f32.mrb[34].mxu0  ;;  %v1555_v13 = vpop.f32.mrb[34].mxu1 }
 0x1bb   : > { %1958 = vst [vmem:[%s3559_s8 + $0x3b8] sm:$0xff] %v1414_v12  ;;  %1960 = vst [vmem:[%s3559_s8 + $0x3c8] sm:$0xff] %v1555_v13  ;;  %v1416_v14 = vpop.f32.mrb[35].mxu0  ;;  %v1557_v15 = vpop.f32.mrb[35].mxu1 }
 0x1bc   : > { %1959 = vst [vmem:[%s3559_s8 + $0x3c0] sm:$0xff] %v1416_v14  ;;  %1961 = vst [vmem:[%s3559_s8 + $0x3d0] sm:$0xff] %v1557_v15 }
 0x1c0   : > { %v1420_v16 = vpop.f32.mrb[36].mxu0  ;;  %v1561_v17 = vpop.f32.mrb[36].mxu1 }
 0x1c1   : > { %1965 = vst [vmem:[%s3559_s8 + $0x3f0] sm:$0xff] %v1420_v16  ;;  %1967 = vst [vmem:[%s3559_s8 + $0x400] sm:$0xff] %v1561_v17  ;;  %v1422_v18 = vpop.f32.mrb[37].mxu0  ;;  %v1563_v19 = vpop.f32.mrb[37].mxu1 }
 0x1c2   : > { %1966 = vst [vmem:[%s3559_s8 + $0x3f8] sm:$0xff] %v1422_v18  ;;  %1968 = vst [vmem:[%s3559_s8 + $0x408] sm:$0xff] %v1563_v19  ;;  %v1424_v20 = vpop.f32.mrb[38].mxu0  ;;  %v1565_v21 = vpop.f32.mrb[38].mxu1 }
 0x1c3   : > { %1972 = vst [vmem:[%s3559_s8 + $0x428] sm:$0xff] %v1424_v20  ;;  %1974 = vst [vmem:[%s3559_s8 + $0x438] sm:$0xff] %v1565_v21  ;;  %v1426_v22 = vpop.f32.mrb[39].mxu0  ;;  %v1567_v23 = vpop.f32.mrb[39].mxu1 }
 0x1c4   : > { %1973 = vst [vmem:[%s3559_s8 + $0x430] sm:$0xff] %v1426_v22  ;;  %1975 = vst [vmem:[%s3559_s8 + $0x440] sm:$0xff] %v1567_v23 }
 0x1c8   : > { %v1430_v24 = vpop.f32.mrb[40].mxu0  ;;  %v1571_v25 = vpop.f32.mrb[40].mxu1 }
 0x1c9   : > { %1979 = vst [vmem:[%s3559_s8 + $0x460] sm:$0xff] %v1430_v24  ;;  %1981 = vst [vmem:[%s3559_s8 + $0x470] sm:$0xff] %v1571_v25  ;;  %v1432_v26 = vpop.f32.mrb[41].mxu0  ;;  %v1573_v27 = vpop.f32.mrb[41].mxu1 }
 0x1ca   : > { %1980 = vst [vmem:[%s3559_s8 + $0x468] sm:$0xff] %v1432_v26  ;;  %1982 = vst [vmem:[%s3559_s8 + $0x478] sm:$0xff] %v1573_v27  ;;  %v1434_v28 = vpop.f32.mrb[42].mxu0  ;;  %v1575_v29 = vpop.f32.mrb[42].mxu1 }
 0x1cb   : > { %v1435_v30 = vpop.f32.mrb[43].mxu0  ;;  %v1576_v31 = vpop.f32.mrb[43].mxu1 }
 0x1d0   : > { %v1612_v32 = vpop.f32.mrb[44].mxu0  ;;  %v2621_v33 = vpop.f32.mrb[44].mxu1 }
 0x1d1   : > { %1843 = vst [vmem:[%s3559_s8 + $0x20] sm:$0xff] %v1612_v32  ;;  %v1614_v34 = vpop.f32.mrb[45].mxu0  ;;  %v2622_v35 = vpop.f32.mrb[45].mxu1 }
 0x1d2   : > { %1844 = vst [vmem:[%s3559_s8 + $0x28] sm:$0xff] %v1614_v34  ;;  %v2623_v36 = vadd.f32 %v2622_v35, %v2621_v33  ;;  %v1616_v37 = vpop.f32.mrb[46].mxu0  ;;  %v2624_v38 = vpop.f32.mrb[46].mxu1 }
 0x1d3   : > { %1850 = vst [vmem:[%s3559_s8 + $0x58] sm:$0xff] %v1616_v37  ;;  %v1618_v39 = vpop.f32.mrb[47].mxu0  ;;  %v2625_v40 = vpop.f32.mrb[47].mxu1 }
 0x1d4   : > { %1845 = vst [vmem:[%s3559_s8 + $0x30] sm:$0xff] %v2623_v36  ;;  %1851 = vst [vmem:[%s3559_s8 + $0x60] sm:$0xff] %v1618_v39  ;;  %v2626_v41 = vadd.f32 %v2625_v40, %v2624_v38 }
 0x1d6   : > { %1852 = vst [vmem:[%s3559_s8 + $0x68] sm:$0xff] %v2626_v41 }
 0x1d8   : > { %v1622_v42 = vpop.f32.mrb[48].mxu0  ;;  %v2627_v43 = vpop.f32.mrb[48].mxu1 }
 0x1d9   : > { %1857 = vst [vmem:[%s3559_s8 + $0x90] sm:$0xff] %v1622_v42  ;;  %v1624_v44 = vpop.f32.mrb[49].mxu0  ;;  %v2628_v45 = vpop.f32.mrb[49].mxu1 }
 0x1da   : > { %1858 = vst [vmem:[%s3559_s8 + $0x98] sm:$0xff] %v1624_v44  ;;  %v2629_v46 = vadd.f32 %v2628_v45, %v2627_v43  ;;  %v1626_v47 = vpop.f32.mrb[50].mxu0  ;;  %v2630_v48 = vpop.f32.mrb[50].mxu1 }
 0x1db   : > { %1864 = vst [vmem:[%s3559_s8 + $0xc8] sm:$0xff] %v1626_v47  ;;  %v1628_v49 = vpop.f32.mrb[51].mxu0  ;;  %v2631_v50 = vpop.f32.mrb[51].mxu1 }
 0x1dc   : > { %1859 = vst [vmem:[%s3559_s8 + $0xa0] sm:$0xff] %v2629_v46  ;;  %1865 = vst [vmem:[%s3559_s8 + $0xd0] sm:$0xff] %v1628_v49  ;;  %v2632_v51 = vadd.f32 %v2631_v50, %v2630_v48 }
 0x1de   : > { %1866 = vst [vmem:[%s3559_s8 + $0xd8] sm:$0xff] %v2632_v51 }
 0x1e0   : > { %v1632_v52 = vpop.f32.mrb[52].mxu0  ;;  %v2633_v53 = vpop.f32.mrb[52].mxu1 }
 0x1e1   : > { %1871 = vst [vmem:[%s3559_s8 + $0x100] sm:$0xff] %v1632_v52  ;;  %v1634_v54 = vpop.f32.mrb[53].mxu0  ;;  %v2634_v55 = vpop.f32.mrb[53].mxu1 }
 0x1e2   : > { %1872 = vst [vmem:[%s3559_s8 + $0x108] sm:$0xff] %v1634_v54  ;;  %v2635_v56 = vadd.f32 %v2634_v55, %v2633_v53  ;;  %v1636_v57 = vpop.f32.mrb[54].mxu0  ;;  %v2636_v58 = vpop.f32.mrb[54].mxu1 }
 0x1e3   : > { %1878 = vst [vmem:[%s3559_s8 + $0x138] sm:$0xff] %v1636_v57  ;;  %v1638_v59 = vpop.f32.mrb[55].mxu0  ;;  %v2637_v60 = vpop.f32.mrb[55].mxu1 }
 0x1e4   : > { %1873 = vst [vmem:[%s3559_s8 + $0x110] sm:$0xff] %v2635_v56  ;;  %1879 = vst [vmem:[%s3559_s8 + $0x140] sm:$0xff] %v1638_v59  ;;  %v2638_v61 = vadd.f32 %v2637_v60, %v2636_v58 }
 0x1e6   : > { %1880 = vst [vmem:[%s3559_s8 + $0x148] sm:$0xff] %v2638_v61 }
 0x1e8   : > { %v1642_v62 = vpop.f32.mrb[56].mxu0  ;;  %v2639_v63 = vpop.f32.mrb[56].mxu1 }
 0x1e9   : > { %1885 = vst [vmem:[%s3559_s8 + $0x170] sm:$0xff] %v1642_v62  ;;  %v1644_v1 = vpop.f32.mrb[57].mxu0  ;;  %v2640_v2 = vpop.f32.mrb[57].mxu1 }
 0x1ea   : > { %1886 = vst [vmem:[%s3559_s8 + $0x178] sm:$0xff] %v1644_v1  ;;  %v2641_v3 = vadd.f32 %v2640_v2, %v2639_v63  ;;  %v1646_v5 = vpop.f32.mrb[58].mxu0  ;;  %v2642_v7 = vpop.f32.mrb[58].mxu1 }
 0x1eb   : > { %1892 = vst [vmem:[%s3559_s8 + $0x1a8] sm:$0xff] %v1646_v5  ;;  %v1648_v8 = vpop.f32.mrb[59].mxu0  ;;  %v2643_v9 = vpop.f32.mrb[59].mxu1 }
 0x1ec   : > { %1887 = vst [vmem:[%s3559_s8 + $0x180] sm:$0xff] %v2641_v3  ;;  %1893 = vst [vmem:[%s3559_s8 + $0x1b0] sm:$0xff] %v1648_v8  ;;  %v2644_v10 = vadd.f32 %v2643_v9, %v2642_v7 }
 0x1ee   : > { %1894 = vst [vmem:[%s3559_s8 + $0x1b8] sm:$0xff] %v2644_v10 }
 0x1f0   : > { %v1652_v0 = vpop.f32.mrb[60].mxu0  ;;  %v2645_v4 = vpop.f32.mrb[60].mxu1 }
 0x1f1   : > { %1899 = vst [vmem:[%s3559_s8 + $0x1e0] sm:$0xff] %v1652_v0  ;;  %v1654_v6 = vpop.f32.mrb[61].mxu0  ;;  %v2646_v11 = vpop.f32.mrb[61].mxu1 }
 0x1f2   : > { %1900 = vst [vmem:[%s3559_s8 + $0x1e8] sm:$0xff] %v1654_v6  ;;  %v2647_v12 = vadd.f32 %v2646_v11, %v2645_v4  ;;  %v1656_v13 = vpop.f32.mrb[62].mxu0  ;;  %v2648_v14 = vpop.f32.mrb[62].mxu1 }
 0x1f3   : > { %1906 = vst [vmem:[%s3559_s8 + $0x218] sm:$0xff] %v1656_v13  ;;  %v1658_v15 = vpop.f32.mrb[63].mxu0  ;;  %v2649_v16 = vpop.f32.mrb[63].mxu1  ;;  %v2011_v13 = vld [vmem:[%s3559_s8] sm:$0xff] (%p3012_p6) }
 0x1f4   : > { %1901 = vst [vmem:[%s3559_s8 + $0x1f0] sm:$0xff] %v2647_v12  ;;  %1907 = vst [vmem:[%s3559_s8 + $0x220] sm:$0xff] %v1658_v15  ;;  %v2650_v17 = vadd.f32 %v2649_v16, %v2648_v14  ;;  %v2013_v14 = vld [vmem:[%s3559_s8 + $0x8] sm:$0xff] (%p3012_p6)  ;;  %v2015_v15 = vld [vmem:[%s3559_s8 + $0x10] sm:$0xff] (%p3012_p6) }
 0x1f5   : > { %v2017_v16 = vld [vmem:[%s3559_s8 + $0x18] sm:$0xff] (%p3012_p6)  ;;  %2012 = vst [vmem:[%s3720_s15] sm:$0xff] (%p3012_p6), %v2011_v13  ;;  %2014 = vst [vmem:[%s3720_s15 + $0x8] sm:$0xff] (%p3012_p6), %v2013_v14  ;;  %v2139_v13 = vld [vmem:[%s3559_s8 + $0x200] sm:$0xff] (%p3012_p6) }
 0x1f6   : > { %1908 = vst [vmem:[%s3559_s8 + $0x228] sm:$0xff] %v2650_v17  ;;  %v2019_v17 = vld [vmem:[%s3559_s8 + $0x20] sm:$0xff] (%p3012_p6)  ;;  %2016 = vst [vmem:[%s3720_s15 + $0x10] sm:$0xff] (%p3012_p6), %v2015_v15  ;;  %v2141_v14 = vld [vmem:[%s3559_s8 + $0x208] sm:$0xff] (%p3012_p6) }
 0x1f7   : > { %2018 = vst [vmem:[%s3720_s15 + $0x18] sm:$0xff] (%p3012_p6), %v2017_v16  ;;  %2020 = vst [vmem:[%s3720_s15 + $0x20] sm:$0xff] (%p3012_p6), %v2019_v17  ;;  %v2143_v15 = vld [vmem:[%s3559_s8 + $0x210] sm:$0xff] (%p3012_p6) }
 0x1f8   : > { %v1662_v18 = vpop.f32.mrb[64].mxu0  ;;  %v2651_v19 = vpop.f32.mrb[64].mxu1  ;;  %2140 = vst [vmem:[%s3720_s15 + $0xdd0] sm:$0xff] (%p3012_p6), %v2139_v13  ;;  %2142 = vst [vmem:[%s3720_s15 + $0xdd8] sm:$0xff] (%p3012_p6), %v2141_v14  ;;  %v2267_v13 = vld [vmem:[%s3559_s8 + $0x400] sm:$0xff] (%p3012_p6)  ;;  %v2269_v14 = vld [vmem:[%s3559_s8 + $0x408] sm:$0xff] (%p3012_p6) }
 0x1f9   : > { %1913 = vst [vmem:[%s3559_s8 + $0x250] sm:$0xff] %v1662_v18  ;;  %v1664_v20 = vpop.f32.mrb[65].mxu0  ;;  %v2652_v21 = vpop.f32.mrb[65].mxu1  ;;  %v2021_v18 = vld [vmem:[%s3559_s8 + $0x28] sm:$0xff] (%p3012_p6)  ;;  %2144 = vst [vmem:[%s3720_s15 + $0xde0] sm:$0xff] (%p3012_p6), %v2143_v15 }
 0x1fa   : > { %1914 = vst [vmem:[%s3559_s8 + $0x258] sm:$0xff] %v1664_v20  ;;  %v2653_v22 = vadd.f32 %v2652_v21, %v2651_v19  ;;  %v1666_v23 = vpop.f32.mrb[66].mxu0  ;;  %v2654_v24 = vpop.f32.mrb[66].mxu1  ;;  %v2023_v19 = vld [vmem:[%s3559_s8 + $0x30] sm:$0xff] (%p3012_p6)  ;;  %v2025_v20 = vld [vmem:[%s3559_s8 + $0x38] sm:$0xff] (%p3012_p6)  ;;  %v2027_v21 = vld [vmem:[%s3559_s8 + $0x40] sm:$0xff] (%p3012_p6) }
 0x1fb   : > { %1920 = vst [vmem:[%s3559_s8 + $0x288] sm:$0xff] %v1666_v23  ;;  %v1668_v25 = vpop.f32.mrb[67].mxu0  ;;  %v2655_v26 = vpop.f32.mrb[67].mxu1  ;;  %2022 = vst [vmem:[%s3720_s15 + $0x28] sm:$0xff] (%p3012_p6), %v2021_v18  ;;  %v2031_v23 = vld [vmem:[%s3559_s8 + $0x50] sm:$0xff] (%p3012_p6)  ;;  %v2145_v16 = vld [vmem:[%s3559_s8 + $0x218] sm:$0xff] (%p3012_p6) }
 0x1fc   : > { %1915 = vst [vmem:[%s3559_s8 + $0x260] sm:$0xff] %v2653_v22  ;;  %1921 = vst [vmem:[%s3559_s8 + $0x290] sm:$0xff] %v1668_v25  ;;  %v2656_v27 = vadd.f32 %v2655_v26, %v2654_v24  ;;  %v2029_v22 = vld [vmem:[%s3559_s8 + $0x48] sm:$0xff] (%p3012_p6)  ;;  %v2033_v24 = vld [vmem:[%s3559_s8 + $0x58] sm:$0xff] (%p3012_p6) }
 0x1fd   : > { %2024 = vst [vmem:[%s3720_s15 + $0x30] sm:$0xff] (%p3012_p6), %v2023_v19  ;;  %2026 = vst [vmem:[%s3720_s15 + $0x188] sm:$0xff] (%p3012_p6), %v2025_v20  ;;  %v2035_v25 = vld [vmem:[%s3559_s8 + $0x60] sm:$0xff] (%p3012_p6)  ;;  %v2037_v26 = vld [vmem:[%s3559_s8 + $0x68] sm:$0xff] (%p3012_p6) }
 0x1fe   : > { %1922 = vst [vmem:[%s3559_s8 + $0x298] sm:$0xff] %v2656_v27  ;;  %2028 = vst [vmem:[%s3720_s15 + $0x190] sm:$0xff] (%p3012_p6), %v2027_v21  ;;  %v2039_v27 = vld [vmem:[%s3559_s8 + $0x70] sm:$0xff] (%p3012_p6)  ;;  %v2147_v17 = vld [vmem:[%s3559_s8 + $0x220] sm:$0xff] (%p3012_p6) }
 0x1ff   : > { %2030 = vst [vmem:[%s3720_s15 + $0x198] sm:$0xff] (%p3012_p6), %v2029_v22  ;;  %2032 = vst [vmem:[%s3720_s15 + $0x1a0] sm:$0xff] (%p3012_p6), %v2031_v23  ;;  %v2149_v18 = vld [vmem:[%s3559_s8 + $0x228] sm:$0xff] (%p3012_p6)  ;;  %v2151_v19 = vld [vmem:[%s3559_s8 + $0x230] sm:$0xff] (%p3012_p6) }
 0x200   : > { %v1672_v28 = vpop.f32.mrb[68].mxu0  ;;  %v2657_v29 = vpop.f32.mrb[68].mxu1  ;;  %2034 = vst [vmem:[%s3720_s15 + $0x1a8] sm:$0xff] (%p3012_p6), %v2033_v24  ;;  %2036 = vst [vmem:[%s3720_s15 + $0x1b0] sm:$0xff] (%p3012_p6), %v2035_v25  ;;  %v2153_v20 = vld [vmem:[%s3559_s8 + $0x238] sm:$0xff] (%p3012_p6)  ;;  %v2155_v21 = vld [vmem:[%s3559_s8 + $0x240] sm:$0xff] (%p3012_p6) }
 0x201   : > { %1927 = vst [vmem:[%s3559_s8 + $0x2c0] sm:$0xff] %v1672_v28  ;;  %v1674_v30 = vpop.f32.mrb[69].mxu0  ;;  %v2658_v31 = vpop.f32.mrb[69].mxu1  ;;  %2038 = vst [vmem:[%s3720_s15 + $0x1b8] sm:$0xff] (%p3012_p6), %v2037_v26  ;;  %v2041_v28 = vld [vmem:[%s3559_s8 + $0x78] sm:$0xff] (%p3012_p6)  ;;  %v2157_v22 = vld [vmem:[%s3559_s8 + $0x248] sm:$0xff] (%p3012_p6) }
 0x202   : > { %1928 = vst [vmem:[%s3559_s8 + $0x2c8] sm:$0xff] %v1674_v30  ;;  %v2659_v32 = vadd.f32 %v2658_v31, %v2657_v29  ;;  %v1676_v33 = vpop.f32.mrb[70].mxu0  ;;  %v2660_v34 = vpop.f32.mrb[70].mxu1  ;;  %2040 = vst [vmem:[%s3720_s15 + $0x310] sm:$0xff] (%p3012_p6), %v2039_v27  ;;  %v2043_v29 = vld [vmem:[%s3559_s8 + $0x80] sm:$0xff] (%p3012_p6)  ;;  %v2045_v30 = vld [vmem:[%s3559_s8 + $0x88] sm:$0xff] (%p3012_p6) }
 0x203   : > { %1934 = vst [vmem:[%s3559_s8 + $0x2f8] sm:$0xff] %v1676_v33  ;;  %v1678_v35 = vpop.f32.mrb[71].mxu0  ;;  %v2661_v36 = vpop.f32.mrb[71].mxu1  ;;  %2042 = vst [vmem:[%s3720_s15 + $0x318] sm:$0xff] (%p3012_p6), %v2041_v28  ;;  %v2047_v31 = vld [vmem:[%s3559_s8 + $0x90] sm:$0xff] (%p3012_p6)  ;;  %v2051_v33 = vld [vmem:[%s3559_s8 + $0xa0] sm:$0xff] (%p3012_p6) }
 0x204   : > { %1929 = vst [vmem:[%s3559_s8 + $0x2d0] sm:$0xff] %v2659_v32  ;;  %1935 = vst [vmem:[%s3559_s8 + $0x300] sm:$0xff] %v1678_v35  ;;  %v2662_v37 = vadd.f32 %v2661_v36, %v2660_v34  ;;  %v2049_v32 = vld [vmem:[%s3559_s8 + $0x98] sm:$0xff] (%p3012_p6)  ;;  %v2053_v34 = vld [vmem:[%s3559_s8 + $0xa8] sm:$0xff] (%p3012_p6) }
 0x205   : > { %2044 = vst [vmem:[%s3720_s15 + $0x320] sm:$0xff] (%p3012_p6), %v2043_v29  ;;  %2046 = vst [vmem:[%s3720_s15 + $0x328] sm:$0xff] (%p3012_p6), %v2045_v30  ;;  %v2055_v35 = vld [vmem:[%s3559_s8 + $0xb0] sm:$0xff] (%p3012_p6)  ;;  %v2057_v36 = vld [vmem:[%s3559_s8 + $0xb8] sm:$0xff] (%p3012_p6) }
 0x206   : > { %1936 = vst [vmem:[%s3559_s8 + $0x308] sm:$0xff] %v2662_v37  ;;  %2048 = vst [vmem:[%s3720_s15 + $0x330] sm:$0xff] (%p3012_p6), %v2047_v31  ;;  %v2059_v37 = vld [vmem:[%s3559_s8 + $0xc0] sm:$0xff] (%p3012_p6)  ;;  %v2159_v23 = vld [vmem:[%s3559_s8 + $0x250] sm:$0xff] (%p3012_p6) }
 0x207   : > { %2050 = vst [vmem:[%s3720_s15 + $0x338] sm:$0xff] (%p3012_p6), %v2049_v32  ;;  %2052 = vst [vmem:[%s3720_s15 + $0x340] sm:$0xff] (%p3012_p6), %v2051_v33  ;;  %v2161_v24 = vld [vmem:[%s3559_s8 + $0x258] sm:$0xff] (%p3012_p6)  ;;  %v2163_v25 = vld [vmem:[%s3559_s8 + $0x260] sm:$0xff] (%p3012_p6) }
 0x208   : > { %v1682_v38 = vpop.f32.mrb[72].mxu0  ;;  %v2663_v39 = vpop.f32.mrb[72].mxu1  ;;  %2054 = vst [vmem:[%s3720_s15 + $0x498] sm:$0xff] (%p3012_p6), %v2053_v34  ;;  %2056 = vst [vmem:[%s3720_s15 + $0x4a0] sm:$0xff] (%p3012_p6), %v2055_v35  ;;  %v2165_v26 = vld [vmem:[%s3559_s8 + $0x268] sm:$0xff] (%p3012_p6)  ;;  %v2167_v27 = vld [vmem:[%s3559_s8 + $0x270] sm:$0xff] (%p3012_p6) }
 0x209   : > { %1941 = vst [vmem:[%s3559_s8 + $0x330] sm:$0xff] %v1682_v38  ;;  %v1684_v40 = vpop.f32.mrb[73].mxu0  ;;  %v2664_v41 = vpop.f32.mrb[73].mxu1  ;;  %2058 = vst [vmem:[%s3720_s15 + $0x4a8] sm:$0xff] (%p3012_p6), %v2057_v36  ;;  %v2061_v38 = vld [vmem:[%s3559_s8 + $0xc8] sm:$0xff] (%p3012_p6)  ;;  %v2169_v28 = vld [vmem:[%s3559_s8 + $0x278] sm:$0xff] (%p3012_p6) }
 0x20a   : > { %1942 = vst [vmem:[%s3559_s8 + $0x338] sm:$0xff] %v1684_v40  ;;  %v2665_v42 = vadd.f32 %v2664_v41, %v2663_v39  ;;  %v1686_v43 = vpop.f32.mrb[74].mxu0  ;;  %v2666_v44 = vpop.f32.mrb[74].mxu1  ;;  %v2063_v39 = vld [vmem:[%s3559_s8 + $0xd0] sm:$0xff] (%p3012_p6)  ;;  %2060 = vst [vmem:[%s3720_s15 + $0x4b0] sm:$0xff] (%p3012_p6), %v2059_v37  ;;  %v2065_v40 = vld [vmem:[%s3559_s8 + $0xd8] sm:$0xff] (%p3012_p6) }
 0x20b   : > { %1948 = vst [vmem:[%s3559_s8 + $0x368] sm:$0xff] %v1686_v43  ;;  %v1688_v45 = vpop.f32.mrb[75].mxu0  ;;  %v2667_v46 = vpop.f32.mrb[75].mxu1  ;;  %2062 = vst [vmem:[%s3720_s15 + $0x4b8] sm:$0xff] (%p3012_p6), %v2061_v38  ;;  %v2067_v41 = vld [vmem:[%s3559_s8 + $0xe0] sm:$0xff] (%p3012_p6)  ;;  %v2071_v43 = vld [vmem:[%s3559_s8 + $0xf0] sm:$0xff] (%p3012_p6) }
 0x20c   : > { %1943 = vst [vmem:[%s3559_s8 + $0x340] sm:$0xff] %v2665_v42  ;;  %1949 = vst [vmem:[%s3559_s8 + $0x370] sm:$0xff] %v1688_v45  ;;  %v2668_v47 = vadd.f32 %v2667_v46, %v2666_v44  ;;  %v2069_v42 = vld [vmem:[%s3559_s8 + $0xe8] sm:$0xff] (%p3012_p6)  ;;  %v2073_v44 = vld [vmem:[%s3559_s8 + $0xf8] sm:$0xff] (%p3012_p6) }
 0x20d   : > { %2064 = vst [vmem:[%s3720_s15 + $0x4c0] sm:$0xff] (%p3012_p6), %v2063_v39  ;;  %2066 = vst [vmem:[%s3720_s15 + $0x4c8] sm:$0xff] (%p3012_p6), %v2065_v40  ;;  %v2075_v45 = vld [vmem:[%s3559_s8 + $0x100] sm:$0xff] (%p3012_p6)  ;;  %v2077_v46 = vld [vmem:[%s3559_s8 + $0x108] sm:$0xff] (%p3012_p6) }
 0x20e   : > { %1950 = vst [vmem:[%s3559_s8 + $0x378] sm:$0xff] %v2668_v47  ;;  %2068 = vst [vmem:[%s3720_s15 + $0x620] sm:$0xff] (%p3012_p6), %v2067_v41  ;;  %v2079_v47 = vld [vmem:[%s3559_s8 + $0x110] sm:$0xff] (%p3012_p6)  ;;  %v2171_v29 = vld [vmem:[%s3559_s8 + $0x280] sm:$0xff] (%p3012_p6) }
 0x20f   : > { %2070 = vst [vmem:[%s3720_s15 + $0x628] sm:$0xff] (%p3012_p6), %v2069_v42  ;;  %2072 = vst [vmem:[%s3720_s15 + $0x630] sm:$0xff] (%p3012_p6), %v2071_v43  ;;  %v2173_v30 = vld [vmem:[%s3559_s8 + $0x288] sm:$0xff] (%p3012_p6)  ;;  %v2175_v31 = vld [vmem:[%s3559_s8 + $0x290] sm:$0xff] (%p3012_p6) }
 0x210   : > { %v1692_v48 = vpop.f32.mrb[76].mxu0  ;;  %v2669_v49 = vpop.f32.mrb[76].mxu1  ;;  %2074 = vst [vmem:[%s3720_s15 + $0x638] sm:$0xff] (%p3012_p6), %v2073_v44  ;;  %2076 = vst [vmem:[%s3720_s15 + $0x640] sm:$0xff] (%p3012_p6), %v2075_v45  ;;  %v2177_v32 = vld [vmem:[%s3559_s8 + $0x298] sm:$0xff] (%p3012_p6)  ;;  %v2179_v33 = vld [vmem:[%s3559_s8 + $0x2a0] sm:$0xff] (%p3012_p6) }
 0x211   : > { %1955 = vst [vmem:[%s3559_s8 + $0x3a0] sm:$0xff] %v1692_v48  ;;  %v1694_v50 = vpop.f32.mrb[77].mxu0  ;;  %v2670_v51 = vpop.f32.mrb[77].mxu1  ;;  %v2081_v48 = vld [vmem:[%s3559_s8 + $0x118] sm:$0xff] (%p3012_p6)  ;;  %2078 = vst [vmem:[%s3720_s15 + $0x648] sm:$0xff] (%p3012_p6), %v2077_v46  ;;  %v2181_v34 = vld [vmem:[%s3559_s8 + $0x2a8] sm:$0xff] (%p3012_p6) }
 0x212   : > { %1956 = vst [vmem:[%s3559_s8 + $0x3a8] sm:$0xff] %v1694_v50  ;;  %v2671_v52 = vadd.f32 %v2670_v51, %v2669_v49  ;;  %v1696_v53 = vpop.f32.mrb[78].mxu0  ;;  %v2672_v54 = vpop.f32.mrb[78].mxu1  ;;  %2080 = vst [vmem:[%s3720_s15 + $0x650] sm:$0xff] (%p3012_p6), %v2079_v47  ;;  %v2083_v49 = vld [vmem:[%s3559_s8 + $0x120] sm:$0xff] (%p3012_p6)  ;;  %v2085_v50 = vld [vmem:[%s3559_s8 + $0x128] sm:$0xff] (%p3012_p6) }
 0x213   : > { %1962 = vst [vmem:[%s3559_s8 + $0x3d8] sm:$0xff] %v1696_v53  ;;  %v1698_v55 = vpop.f32.mrb[79].mxu0  ;;  %v2673_v56 = vpop.f32.mrb[79].mxu1  ;;  %2082 = vst [vmem:[%s3720_s15 + $0x7a8] sm:$0xff] (%p3012_p6), %v2081_v48  ;;  %v2087_v51 = vld [vmem:[%s3559_s8 + $0x130] sm:$0xff] (%p3012_p6)  ;;  %v2091_v53 = vld [vmem:[%s3559_s8 + $0x140] sm:$0xff] (%p3012_p6) }
 0x214   : > { %1957 = vst [vmem:[%s3559_s8 + $0x3b0] sm:$0xff] %v2671_v52  ;;  %1963 = vst [vmem:[%s3559_s8 + $0x3e0] sm:$0xff] %v1698_v55  ;;  %v2674_v57 = vadd.f32 %v2673_v56, %v2672_v54  ;;  %v2089_v52 = vld [vmem:[%s3559_s8 + $0x138] sm:$0xff] (%p3012_p6)  ;;  %v2093_v54 = vld [vmem:[%s3559_s8 + $0x148] sm:$0xff] (%p3012_p6) }
 0x215   : > { %2084 = vst [vmem:[%s3720_s15 + $0x7b0] sm:$0xff] (%p3012_p6), %v2083_v49  ;;  %2086 = vst [vmem:[%s3720_s15 + $0x7b8] sm:$0xff] (%p3012_p6), %v2085_v50  ;;  %v2095_v55 = vld [vmem:[%s3559_s8 + $0x150] sm:$0xff] (%p3012_p6)  ;;  %v2097_v56 = vld [vmem:[%s3559_s8 + $0x158] sm:$0xff] (%p3012_p6) }
 0x216   : > { %1964 = vst [vmem:[%s3559_s8 + $0x3e8] sm:$0xff] %v2674_v57  ;;  %2088 = vst [vmem:[%s3720_s15 + $0x7c0] sm:$0xff] (%p3012_p6), %v2087_v51  ;;  %v2099_v57 = vld [vmem:[%s3559_s8 + $0x160] sm:$0xff] (%p3012_p6)  ;;  %v2183_v35 = vld [vmem:[%s3559_s8 + $0x2b0] sm:$0xff] (%p3012_p6) }
 0x217   : > { %2090 = vst [vmem:[%s3720_s15 + $0x7c8] sm:$0xff] (%p3012_p6), %v2089_v52  ;;  %2092 = vst [vmem:[%s3720_s15 + $0x7d0] sm:$0xff] (%p3012_p6), %v2091_v53  ;;  %v2185_v36 = vld [vmem:[%s3559_s8 + $0x2b8] sm:$0xff] (%p3012_p6)  ;;  %v2187_v37 = vld [vmem:[%s3559_s8 + $0x2c0] sm:$0xff] (%p3012_p6) }
 0x218   : > { %v1702_v58 = vpop.f32.mrb[80].mxu0  ;;  %v2675_v59 = vpop.f32.mrb[80].mxu1  ;;  %2094 = vst [vmem:[%s3720_s15 + $0x7d8] sm:$0xff] (%p3012_p6), %v2093_v54  ;;  %2096 = vst [vmem:[%s3720_s15 + $0x930] sm:$0xff] (%p3012_p6), %v2095_v55  ;;  %v2189_v38 = vld [vmem:[%s3559_s8 + $0x2c8] sm:$0xff] (%p3012_p6)  ;;  %v2191_v39 = vld [vmem:[%s3559_s8 + $0x2d0] sm:$0xff] (%p3012_p6) }
 0x219   : > { %1969 = vst [vmem:[%s3559_s8 + $0x410] sm:$0xff] %v1702_v58  ;;  %v1704_v60 = vpop.f32.mrb[81].mxu0  ;;  %v2676_v61 = vpop.f32.mrb[81].mxu1  ;;  %2098 = vst [vmem:[%s3720_s15 + $0x938] sm:$0xff] (%p3012_p6), %v2097_v56  ;;  %v2101_v58 = vld [vmem:[%s3559_s8 + $0x168] sm:$0xff] (%p3012_p6)  ;;  %v2193_v40 = vld [vmem:[%s3559_s8 + $0x2d8] sm:$0xff] (%p3012_p6) }
 0x21a   : > { %1970 = vst [vmem:[%s3559_s8 + $0x418] sm:$0xff] %v1704_v60  ;;  %v2677_v62 = vadd.f32 %v2676_v61, %v2675_v59  ;;  %v1706_v63 = vpop.f32.mrb[82].mxu0  ;;  %v2678_v1 = vpop.f32.mrb[82].mxu1  ;;  %2100 = vst [vmem:[%s3720_s15 + $0x940] sm:$0xff] (%p3012_p6), %v2099_v57  ;;  %v2103_v59 = vld [vmem:[%s3559_s8 + $0x170] sm:$0xff] (%p3012_p6)  ;;  %v2105_v60 = vld [vmem:[%s3559_s8 + $0x178] sm:$0xff] (%p3012_p6) }
 0x21b   : > { %1976 = vst [vmem:[%s3559_s8 + $0x448] sm:$0xff] %v1706_v63  ;;  %v1708_v2 = vpop.f32.mrb[83].mxu0  ;;  %v2679_v3 = vpop.f32.mrb[83].mxu1  ;;  %2102 = vst [vmem:[%s3720_s15 + $0x948] sm:$0xff] (%p3012_p6), %v2101_v58  ;;  %v2107_v61 = vld [vmem:[%s3559_s8 + $0x180] sm:$0xff] (%p3012_p6)  ;;  %v2111_v63 = vld [vmem:[%s3559_s8 + $0x190] sm:$0xff] (%p3012_p6) }
 0x21c   : > { %1971 = vst [vmem:[%s3559_s8 + $0x420] sm:$0xff] %v2677_v62  ;;  %1977 = vst [vmem:[%s3559_s8 + $0x450] sm:$0xff] %v1708_v2  ;;  %v2680_v5 = vadd.f32 %v2679_v3, %v2678_v1  ;;  %v2109_v62 = vld [vmem:[%s3559_s8 + $0x188] sm:$0xff] (%p3012_p6)  ;;  %v2113_v1 = vld [vmem:[%s3559_s8 + $0x198] sm:$0xff] (%p3012_p6) }
 0x21d   : > { %2104 = vst [vmem:[%s3720_s15 + $0x950] sm:$0xff] (%p3012_p6), %v2103_v59  ;;  %2106 = vst [vmem:[%s3720_s15 + $0x958] sm:$0xff] (%p3012_p6), %v2105_v60  ;;  %v2115_v2 = vld [vmem:[%s3559_s8 + $0x1a0] sm:$0xff] (%p3012_p6)  ;;  %v2117_v3 = vld [vmem:[%s3559_s8 + $0x1a8] sm:$0xff] (%p3012_p6) }
 0x21e   : > { %1978 = vst [vmem:[%s3559_s8 + $0x458] sm:$0xff] %v2680_v5  ;;  %1992 = sbr.rel (!%p3012_p6) target bundleno = 592 (0x250), region = 58  ;;  %2108 = vst [vmem:[%s3720_s15 + $0x960] sm:$0xff] (%p3012_p6), %v2107_v61  ;;  %v2119_v5 = vld [vmem:[%s3559_s8 + $0x1b0] sm:$0xff] (%p3012_p6)  ;;  %v2195_v41 = vld [vmem:[%s3559_s8 + $0x2e0] sm:$0xff] (%p3012_p6) }
 0x21f   : > { %2110 = vst [vmem:[%s3720_s15 + $0xab8] sm:$0xff] (%p3012_p6), %v2109_v62  ;;  %2112 = vst [vmem:[%s3720_s15 + $0xac0] sm:$0xff] (%p3012_p6), %v2111_v63  ;;  %v2197_v42 = vld [vmem:[%s3559_s8 + $0x2e8] sm:$0xff] (%p3012_p6)  ;;  %v2199_v43 = vld [vmem:[%s3559_s8 + $0x2f0] sm:$0xff] (%p3012_p6) }
 0x220   : > { %v1712_v7 = vpop.f32.mrb[84].mxu0  ;;  %v2681_v8 = vpop.f32.mrb[84].mxu1  ;;  %2114 = vst [vmem:[%s3720_s15 + $0xac8] sm:$0xff] (%p3012_p6), %v2113_v1  ;;  %2116 = vst [vmem:[%s3720_s15 + $0xad0] sm:$0xff] (%p3012_p6), %v2115_v2  ;;  %v2201_v44 = vld [vmem:[%s3559_s8 + $0x2f8] sm:$0xff] (%p3012_p6)  ;;  %v2203_v45 = vld [vmem:[%s3559_s8 + $0x300] sm:$0xff] (%p3012_p6) }
 0x221   : > { %1983 = vst [vmem:[%s3559_s8 + $0x480] sm:$0xff] %v1712_v7  ;;  %v1714_v9 = vpop.f32.mrb[85].mxu0  ;;  %v2682_v10 = vpop.f32.mrb[85].mxu1  ;;  %2118 = vst [vmem:[%s3720_s15 + $0xad8] sm:$0xff] (%p3012_p6), %v2117_v3  ;;  %v2121_v7 = vld [vmem:[%s3559_s8 + $0x1b8] sm:$0xff] (%p3012_p6)  ;;  %v2205_v46 = vld [vmem:[%s3559_s8 + $0x308] sm:$0xff] (%p3012_p6) }
 0x222   : > { %1984 = vst [vmem:[%s3559_s8 + $0x488] sm:$0xff] %v1714_v9  ;;  %v2683_v0 = vadd.f32 %v2682_v10, %v2681_v8  ;;  %v1716_v4 = vpop.f32.mrb[86].mxu0  ;;  %v2684_v6 = vpop.f32.mrb[86].mxu1  ;;  %v2123_v8 = vld [vmem:[%s3559_s8 + $0x1c0] sm:$0xff] (%p3012_p6)  ;;  %2120 = vst [vmem:[%s3720_s15 + $0xae0] sm:$0xff] (%p3012_p6), %v2119_v5  ;;  %v2125_v9 = vld [vmem:[%s3559_s8 + $0x1c8] sm:$0xff] (%p3012_p6) }
 0x223   : > { %v1717_v11 = vpop.f32.mrb[87].mxu0  ;;  %v2685_v12 = vpop.f32.mrb[87].mxu1  ;;  %2122 = vst [vmem:[%s3720_s15 + $0xae8] sm:$0xff] (%p3012_p6), %v2121_v7  ;;  %2124 = vst [vmem:[%s3720_s15 + $0xc40] sm:$0xff] (%p3012_p6), %v2123_v8  ;;  %v2127_v10 = vld [vmem:[%s3559_s8 + $0x1d0] sm:$0xff] (%p3012_p6)  ;;  %v2131_v4 = vld [vmem:[%s3559_s8 + $0x1e0] sm:$0xff] (%p3012_p6) }
 0x224   : > { %1985 = vst [vmem:[%s3559_s8 + $0x490] sm:$0xff] %v2683_v0  ;;  %v2129_v0 = vld [vmem:[%s3559_s8 + $0x1d8] sm:$0xff] (%p3012_p6)  ;;  %2126 = vst [vmem:[%s3720_s15 + $0xc48] sm:$0xff] (%p3012_p6), %v2125_v9  ;;  %v2133_v6 = vld [vmem:[%s3559_s8 + $0x1e8] sm:$0xff] (%p3012_p6) }
 0x225   : > { %2128 = vst [vmem:[%s3720_s15 + $0xc50] sm:$0xff] %v2127_v10  ;;  %2130 = vst [vmem:[%s3720_s15 + $0xc58] sm:$0xff] %v2129_v0  ;;  %v2135_v11 = vld [vmem:[%s3559_s8 + $0x1f0] sm:$0xff]  ;;  %v2137_v12 = vld [vmem:[%s3559_s8 + $0x1f8] sm:$0xff] }
 0x226   : > { %2132 = vst [vmem:[%s3720_s15 + $0xc60] sm:$0xff] %v2131_v4  ;;  %2134 = vst [vmem:[%s3720_s15 + $0xc68] sm:$0xff] %v2133_v6  ;;  %v2207_v47 = vld [vmem:[%s3559_s8 + $0x310] sm:$0xff]  ;;  %v2209_v48 = vld [vmem:[%s3559_s8 + $0x318] sm:$0xff] }
 0x227   : > { %2136 = vst [vmem:[%s3720_s15 + $0xc70] sm:$0xff] %v2135_v11  ;;  %2138 = vst [vmem:[%s3720_s15 + $0xdc8] sm:$0xff] %v2137_v12  ;;  %v2211_v49 = vld [vmem:[%s3559_s8 + $0x320] sm:$0xff]  ;;  %v2213_v50 = vld [vmem:[%s3559_s8 + $0x328] sm:$0xff] }
 0x228   : > { %2146 = vst [vmem:[%s3720_s15 + $0xde8] sm:$0xff] %v2145_v16  ;;  %2148 = vst [vmem:[%s3720_s15 + $0xdf0] sm:$0xff] %v2147_v17  ;;  %v2215_v51 = vld [vmem:[%s3559_s8 + $0x330] sm:$0xff]  ;;  %v2217_v52 = vld [vmem:[%s3559_s8 + $0x338] sm:$0xff] }
 0x229   : > { %2150 = vst [vmem:[%s3720_s15 + $0xdf8] sm:$0xff] %v2149_v18  ;;  %2152 = vst [vmem:[%s3720_s15 + $0xf50] sm:$0xff] %v2151_v19  ;;  %v2219_v53 = vld [vmem:[%s3559_s8 + $0x340] sm:$0xff]  ;;  %v2221_v54 = vld [vmem:[%s3559_s8 + $0x348] sm:$0xff] }
 0x22a   : > { %2154 = vst [vmem:[%s3720_s15 + $0xf58] sm:$0xff] %v2153_v20  ;;  %2156 = vst [vmem:[%s3720_s15 + $0xf60] sm:$0xff] %v2155_v21  ;;  %v2223_v55 = vld [vmem:[%s3559_s8 + $0x350] sm:$0xff]  ;;  %v2225_v56 = vld [vmem:[%s3559_s8 + $0x358] sm:$0xff] }
 0x22b   : > { %2158 = vst [vmem:[%s3720_s15 + $0xf68] sm:$0xff] %v2157_v22  ;;  %2160 = vst [vmem:[%s3720_s15 + $0xf70] sm:$0xff] %v2159_v23  ;;  %v2227_v57 = vld [vmem:[%s3559_s8 + $0x360] sm:$0xff]  ;;  %v2229_v58 = vld [vmem:[%s3559_s8 + $0x368] sm:$0xff] }
 0x22c   : > { %2162 = vst [vmem:[%s3720_s15 + $0xf78] sm:$0xff] %v2161_v24  ;;  %2164 = vst [vmem:[%s3720_s15 + $0xf80] sm:$0xff] %v2163_v25  ;;  %v2231_v59 = vld [vmem:[%s3559_s8 + $0x370] sm:$0xff]  ;;  %v2233_v60 = vld [vmem:[%s3559_s8 + $0x378] sm:$0xff] }
 0x22d   : > { %2166 = vst [vmem:[%s3720_s15 + $0x10d8] sm:$0xff] %v2165_v26  ;;  %2168 = vst [vmem:[%s3720_s15 + $0x10e0] sm:$0xff] %v2167_v27  ;;  %v2235_v61 = vld [vmem:[%s3559_s8 + $0x380] sm:$0xff]  ;;  %v2237_v62 = vld [vmem:[%s3559_s8 + $0x388] sm:$0xff] }
 0x22e   : > { %2170 = vst [vmem:[%s3720_s15 + $0x10e8] sm:$0xff] %v2169_v28  ;;  %2172 = vst [vmem:[%s3720_s15 + $0x10f0] sm:$0xff] %v2171_v29  ;;  %v2239_v63 = vld [vmem:[%s3559_s8 + $0x390] sm:$0xff]  ;;  %v2241_v1 = vld [vmem:[%s3559_s8 + $0x398] sm:$0xff] }
 0x22f   : > { %2174 = vst [vmem:[%s3720_s15 + $0x10f8] sm:$0xff] %v2173_v30  ;;  %2176 = vst [vmem:[%s3720_s15 + $0x1100] sm:$0xff] %v2175_v31  ;;  %v2243_v2 = vld [vmem:[%s3559_s8 + $0x3a0] sm:$0xff]  ;;  %v2245_v3 = vld [vmem:[%s3559_s8 + $0x3a8] sm:$0xff] }
 0x230   : > { %2178 = vst [vmem:[%s3720_s15 + $0x1108] sm:$0xff] %v2177_v32  ;;  %2180 = vst [vmem:[%s3720_s15 + $0x1260] sm:$0xff] %v2179_v33  ;;  %v2247_v5 = vld [vmem:[%s3559_s8 + $0x3b0] sm:$0xff]  ;;  %v2249_v7 = vld [vmem:[%s3559_s8 + $0x3b8] sm:$0xff] }
 0x231   : > { %2182 = vst [vmem:[%s3720_s15 + $0x1268] sm:$0xff] %v2181_v34  ;;  %2184 = vst [vmem:[%s3720_s15 + $0x1270] sm:$0xff] %v2183_v35  ;;  %v2251_v8 = vld [vmem:[%s3559_s8 + $0x3c0] sm:$0xff]  ;;  %v2253_v9 = vld [vmem:[%s3559_s8 + $0x3c8] sm:$0xff] }
 0x232   : > { %2186 = vst [vmem:[%s3720_s15 + $0x1278] sm:$0xff] %v2185_v36  ;;  %2188 = vst [vmem:[%s3720_s15 + $0x1280] sm:$0xff] %v2187_v37  ;;  %v2255_v10 = vld [vmem:[%s3559_s8 + $0x3d0] sm:$0xff]  ;;  %v2257_v0 = vld [vmem:[%s3559_s8 + $0x3d8] sm:$0xff] }
 0x233   : > { %2190 = vst [vmem:[%s3720_s15 + $0x1288] sm:$0xff] %v2189_v38  ;;  %2192 = vst [vmem:[%s3720_s15 + $0x1290] sm:$0xff] %v2191_v39  ;;  %v2259_v4 = vld [vmem:[%s3559_s8 + $0x3e0] sm:$0xff]  ;;  %v2261_v6 = vld [vmem:[%s3559_s8 + $0x3e8] sm:$0xff] }
 0x234   : > { %2194 = vst [vmem:[%s3720_s15 + $0x13e8] sm:$0xff] %v2193_v40  ;;  %2196 = vst [vmem:[%s3720_s15 + $0x13f0] sm:$0xff] %v2195_v41  ;;  %v2263_v11 = vld [vmem:[%s3559_s8 + $0x3f0] sm:$0xff]  ;;  %v2265_v12 = vld [vmem:[%s3559_s8 + $0x3f8] sm:$0xff] }
 0x235   : > { %2198 = vst [vmem:[%s3720_s15 + $0x13f8] sm:$0xff] %v2197_v42  ;;  %2200 = vst [vmem:[%s3720_s15 + $0x1400] sm:$0xff] %v2199_v43  ;;  %v2271_v15 = vld [vmem:[%s3559_s8 + $0x410] sm:$0xff]  ;;  %v2273_v16 = vld [vmem:[%s3559_s8 + $0x418] sm:$0xff] }
 0x236   : > { %2202 = vst [vmem:[%s3720_s15 + $0x1408] sm:$0xff] %v2201_v44  ;;  %2204 = vst [vmem:[%s3720_s15 + $0x1410] sm:$0xff] %v2203_v45  ;;  %v2275_v17 = vld [vmem:[%s3559_s8 + $0x420] sm:$0xff]  ;;  %v2277_v18 = vld [vmem:[%s3559_s8 + $0x428] sm:$0xff] }
 0x237   : > { %2206 = vst [vmem:[%s3720_s15 + $0x1418] sm:$0xff] %v2205_v46  ;;  %2208 = vst [vmem:[%s3720_s15 + $0x1570] sm:$0xff] %v2207_v47  ;;  %v2279_v19 = vld [vmem:[%s3559_s8 + $0x430] sm:$0xff]  ;;  %v2281_v20 = vld [vmem:[%s3559_s8 + $0x438] sm:$0xff] }
 0x238   : > { %2210 = vst [vmem:[%s3720_s15 + $0x1578] sm:$0xff] %v2209_v48  ;;  %2212 = vst [vmem:[%s3720_s15 + $0x1580] sm:$0xff] %v2211_v49  ;;  %v2283_v21 = vld [vmem:[%s3559_s8 + $0x440] sm:$0xff]  ;;  %v2285_v22 = vld [vmem:[%s3559_s8 + $0x448] sm:$0xff] }
 0x239   : > { %2214 = vst [vmem:[%s3720_s15 + $0x1588] sm:$0xff] %v2213_v50  ;;  %2216 = vst [vmem:[%s3720_s15 + $0x1590] sm:$0xff] %v2215_v51  ;;  %v2287_v23 = vld [vmem:[%s3559_s8 + $0x450] sm:$0xff]  ;;  %v2289_v24 = vld [vmem:[%s3559_s8 + $0x458] sm:$0xff] }
 0x23a   : > { %2218 = vst [vmem:[%s3720_s15 + $0x1598] sm:$0xff] %v2217_v52  ;;  %2220 = vst [vmem:[%s3720_s15 + $0x15a0] sm:$0xff] %v2219_v53  ;;  %v2291_v25 = vld [vmem:[%s3559_s8 + $0x460] sm:$0xff]  ;;  %v2293_v26 = vld [vmem:[%s3559_s8 + $0x468] sm:$0xff] }
 0x23b   : > { %2222 = vst [vmem:[%s3720_s15 + $0x16f8] sm:$0xff] %v2221_v54  ;;  %2224 = vst [vmem:[%s3720_s15 + $0x1700] sm:$0xff] %v2223_v55  ;;  %v2295_v27 = vld [vmem:[%s3559_s8 + $0x470] sm:$0xff]  ;;  %v2297_v28 = vld [vmem:[%s3559_s8 + $0x478] sm:$0xff] }
 0x23c   : > { %2226 = vst [vmem:[%s3720_s15 + $0x1708] sm:$0xff] %v2225_v56  ;;  %2228 = vst [vmem:[%s3720_s15 + $0x1710] sm:$0xff] %v2227_v57  ;;  %v2299_v29 = vld [vmem:[%s3559_s8 + $0x480] sm:$0xff]  ;;  %v2301_v30 = vld [vmem:[%s3559_s8 + $0x488] sm:$0xff] }
 0x23d   : > { %2230 = vst [vmem:[%s3720_s15 + $0x1718] sm:$0xff] %v2229_v58  ;;  %2232 = vst [vmem:[%s3720_s15 + $0x1720] sm:$0xff] %v2231_v59  ;;  %v2303_v31 = vld [vmem:[%s3559_s8 + $0x490] sm:$0xff] }
 0x23e   : > { %2234 = vst [vmem:[%s3720_s15 + $0x1728] sm:$0xff] %v2233_v60  ;;  %2236 = vst [vmem:[%s3720_s15 + $0x1880] sm:$0xff] %v2235_v61 }
 0x23f   : > { %2238 = vst [vmem:[%s3720_s15 + $0x1888] sm:$0xff] %v2237_v62  ;;  %2240 = vst [vmem:[%s3720_s15 + $0x1890] sm:$0xff] %v2239_v63 }
 0x240   : > { %2242 = vst [vmem:[%s3720_s15 + $0x1898] sm:$0xff] %v2241_v1  ;;  %2244 = vst [vmem:[%s3720_s15 + $0x18a0] sm:$0xff] %v2243_v2 }
 0x241   : > { %2246 = vst [vmem:[%s3720_s15 + $0x18a8] sm:$0xff] %v2245_v3  ;;  %2248 = vst [vmem:[%s3720_s15 + $0x18b0] sm:$0xff] %v2247_v5 }
 0x242   : > { %2250 = vst [vmem:[%s3720_s15 + $0x1a08] sm:$0xff] %v2249_v7  ;;  %2252 = vst [vmem:[%s3720_s15 + $0x1a10] sm:$0xff] %v2251_v8 }
 0x243   : > { %2254 = vst [vmem:[%s3720_s15 + $0x1a18] sm:$0xff] %v2253_v9  ;;  %2256 = vst [vmem:[%s3720_s15 + $0x1a20] sm:$0xff] %v2255_v10 }
 0x244   : > { %2258 = vst [vmem:[%s3720_s15 + $0x1a28] sm:$0xff] %v2257_v0  ;;  %2260 = vst [vmem:[%s3720_s15 + $0x1a30] sm:$0xff] %v2259_v4 }
 0x245   : > { %2262 = vst [vmem:[%s3720_s15 + $0x1a38] sm:$0xff] %v2261_v6  ;;  %2264 = vst [vmem:[%s3720_s15 + $0x1b90] sm:$0xff] %v2263_v11 }
 0x246   : > { %2266 = vst [vmem:[%s3720_s15 + $0x1b98] sm:$0xff] %v2265_v12  ;;  %2268 = vst [vmem:[%s3720_s15 + $0x1ba0] sm:$0xff] %v2267_v13 }
 0x247   : > { %2270 = vst [vmem:[%s3720_s15 + $0x1ba8] sm:$0xff] %v2269_v14  ;;  %2272 = vst [vmem:[%s3720_s15 + $0x1bb0] sm:$0xff] %v2271_v15 }
 0x248   : > { %2274 = vst [vmem:[%s3720_s15 + $0x1bb8] sm:$0xff] %v2273_v16  ;;  %2276 = vst [vmem:[%s3720_s15 + $0x1bc0] sm:$0xff] %v2275_v17 }
 0x249   : > { %2278 = vst [vmem:[%s3720_s15 + $0x1d18] sm:$0xff] %v2277_v18  ;;  %2280 = vst [vmem:[%s3720_s15 + $0x1d20] sm:$0xff] %v2279_v19 }
 0x24a   : > { %2282 = vst [vmem:[%s3720_s15 + $0x1d28] sm:$0xff] %v2281_v20  ;;  %2284 = vst [vmem:[%s3720_s15 + $0x1d30] sm:$0xff] %v2283_v21 }
 0x24b   : > { %2286 = vst [vmem:[%s3720_s15 + $0x1d38] sm:$0xff] %v2285_v22  ;;  %2288 = vst [vmem:[%s3720_s15 + $0x1d40] sm:$0xff] %v2287_v23 }
 0x24c   : > { %2290 = vst [vmem:[%s3720_s15 + $0x1d48] sm:$0xff] %v2289_v24  ;;  %2292 = vst [vmem:[%s3720_s15 + $0x1ea0] sm:$0xff] %v2291_v25 }
 0x24d   : > { %2294 = vst [vmem:[%s3720_s15 + $0x1ea8] sm:$0xff] %v2293_v26  ;;  %2296 = vst [vmem:[%s3720_s15 + $0x1eb0] sm:$0xff] %v2295_v27 }
 0x24e   : > { %2298 = vst [vmem:[%s3720_s15 + $0x1eb8] sm:$0xff] %v2297_v28  ;;  %2300 = vst [vmem:[%s3720_s15 + $0x1ec0] sm:$0xff] %v2299_v29 }
 0x24f   : > { %2302 = vst [vmem:[%s3720_s15 + $0x1ec8] sm:$0xff] %v2301_v30  ;;  %2304 = vst [vmem:[%s3720_s15 + $0x1ed0] sm:$0xff] %v2303_v31 }
 0x250 PF: > { %s12_s13 = sadd.s32 1, %s2960_s13   ;;  %s4029_s9 = smov %s2948_s10 }
 0x251   : > { %p9_p11 = scmp.ge.s32.totalorder %s12_s13, 9   ;;  %s4030_s10 = smov %s3017_s19 }
 0x252   : > { %s4031_s11 = smov %s2956_s12  ;;  %s4032_s12 = smov %s4034_s14 }
 0x253   :  { %11 = sbr.rel (!%p9_p11) target bundleno = 3 (0x3), region = 121 }

// kernel: generator_forward.12
= control target key start
LH: loop header
LB: loop body
LE: loop exit
PB: predicated region body
PF: predicated region fallthrough
CT: control target
= control target key end

     0   :  { %vm234_vm0 = vcmask 1041408   ;;  %s3866_s0 = inlined_call_operand.vmem [shape: f32[882,128], index: 0, kind: input, shape index: {}]   ;;  %s3867_s1 = inlined_call_operand.vmem [shape: f32[1,128], index: 1, kind: input, shape index: {}]   ;;  %s3868_s2 = inlined_call_operand.vmem [shape: f32[1,128], index: 2, kind: input, shape index: {}]   ;;  %s3869_s3 = inlined_call_operand.vmem [shape: bf16[882,128], index: 3, kind: output, shape index: {}]  }
   0x1   :  { %v2070_v0 = vld [vmem:[%s3866_s0] sm:$0xff]  ;;  %v2075_v1 = vld [vmem:[%s3866_s0 + $0x8] sm:$0xff]  ;;  %v2080_v2 = vld [vmem:[%s3866_s0 + $0x10] sm:$0xff] }
   0x2   :  { %v125_v3 = vadd.f32 %v2075_v1, %v2070_v0  ;;  %v2087_v4 = vld [vmem:[%s3866_s0 + $0x18] sm:$0xff]  ;;  %v2093_v6 = vld [vmem:[%s3866_s0 + $0x20] sm:$0xff]  ;;  %v2099_v8 = vld [vmem:[%s3866_s0 + $0x28] sm:$0xff] }
   0x3   :  { %v2105_v10 = vld [vmem:[%s3866_s0 + $0x30] sm:$0xff]  ;;  %v2111_v12 = vld [vmem:[%s3866_s0 + $0x38] sm:$0xff]  ;;  %v2117_v14 = vld [vmem:[%s3866_s0 + $0x40] sm:$0xff] }
   0x4   :  { %v126_v5 = vadd.f32 %v125_v3, %v2080_v2  ;;  %v2123_v16 = vld [vmem:[%s3866_s0 + $0x48] sm:$0xff]  ;;  %v2129_v18 = vld [vmem:[%s3866_s0 + $0x50] sm:$0xff]  ;;  %v2135_v20 = vld [vmem:[%s3866_s0 + $0x58] sm:$0xff] }
   0x5   :  { %v2141_v22 = vld [vmem:[%s3866_s0 + $0x60] sm:$0xff]  ;;  %v2147_v24 = vld [vmem:[%s3866_s0 + $0x68] sm:$0xff]  ;;  %v2153_v26 = vld [vmem:[%s3866_s0 + $0x70] sm:$0xff] }
   0x6   :  { %v127_v7 = vadd.f32 %v126_v5, %v2087_v4  ;;  %v2159_v28 = vld [vmem:[%s3866_s0 + $0x78] sm:$0xff]  ;;  %v2165_v30 = vld [vmem:[%s3866_s0 + $0x80] sm:$0xff]  ;;  %v2171_v32 = vld [vmem:[%s3866_s0 + $0x88] sm:$0xff] }
   0x7   :  { %v2177_v34 = vld [vmem:[%s3866_s0 + $0x90] sm:$0xff]  ;;  %v2183_v36 = vld [vmem:[%s3866_s0 + $0x98] sm:$0xff]  ;;  %v2189_v38 = vld [vmem:[%s3866_s0 + $0xa0] sm:$0xff] }
   0x8   :  { %v128_v9 = vadd.f32 %v127_v7, %v2093_v6  ;;  %v2195_v40 = vld [vmem:[%s3866_s0 + $0xa8] sm:$0xff]  ;;  %v2201_v42 = vld [vmem:[%s3866_s0 + $0xb0] sm:$0xff]  ;;  %v2207_v44 = vld [vmem:[%s3866_s0 + $0xb8] sm:$0xff] }
   0x9   :  { %v2213_v46 = vld [vmem:[%s3866_s0 + $0xc0] sm:$0xff]  ;;  %v2219_v48 = vld [vmem:[%s3866_s0 + $0xc8] sm:$0xff]  ;;  %v2225_v50 = vld [vmem:[%s3866_s0 + $0xd0] sm:$0xff] }
   0xa   :  { %v129_v11 = vadd.f32 %v128_v9, %v2099_v8  ;;  %v2231_v52 = vld [vmem:[%s3866_s0 + $0xd8] sm:$0xff]  ;;  %v2237_v54 = vld [vmem:[%s3866_s0 + $0xe0] sm:$0xff]  ;;  %v2243_v56 = vld [vmem:[%s3866_s0 + $0xe8] sm:$0xff] }
   0xb   :  { %v2249_v58 = vld [vmem:[%s3866_s0 + $0xf0] sm:$0xff]  ;;  %v2255_v60 = vld [vmem:[%s3866_s0 + $0xf8] sm:$0xff]  ;;  %v2261_v62 = vld [vmem:[%s3866_s0 + $0x100] sm:$0xff] }
   0xc   :  { %v130_v13 = vadd.f32 %v129_v11, %v2105_v10  ;;  %v2267_v3 = vld [vmem:[%s3866_s0 + $0x108] sm:$0xff]  ;;  %v2273_v7 = vld [vmem:[%s3866_s0 + $0x110] sm:$0xff]  ;;  %v2279_v11 = vld [vmem:[%s3866_s0 + $0x118] sm:$0xff] }
   0xe   :  { %v131_v15 = vadd.f32 %v130_v13, %v2111_v12 }
  0x10   :  { %v132_v17 = vadd.f32 %v131_v15, %v2117_v14  ;;  %v2285_v15 = vld [vmem:[%s3866_s0 + $0x120] sm:$0xff] }
  0x12   :  { %v133_v19 = vadd.f32 %v132_v17, %v2123_v16 }
  0x14   :  { %v134_v21 = vadd.f32 %v133_v19, %v2129_v18  ;;  %v2291_v19 = vld [vmem:[%s3866_s0 + $0x128] sm:$0xff] }
  0x16   :  { %v135_v23 = vadd.f32 %v134_v21, %v2135_v20 }
  0x18   :  { %v136_v25 = vadd.f32 %v135_v23, %v2141_v22  ;;  %v2297_v23 = vld [vmem:[%s3866_s0 + $0x130] sm:$0xff] }
  0x19   :  { %3998 = vst [vmem:[#allocation2_spill] sm:$0xff] %v2297_v23 }
  0x1a   :  { %v137_v27 = vadd.f32 %v136_v25, %v2147_v24 }
  0x1c   :  { %v138_v29 = vadd.f32 %v137_v27, %v2153_v26  ;;  %v2303_v27 = vld [vmem:[%s3866_s0 + $0x138] sm:$0xff] }
  0x1d   :  { %3999 = vst [vmem:[#allocation3_spill] sm:$0xff] %v2303_v27 }
  0x1e   :  { %v139_v31 = vadd.f32 %v138_v29, %v2159_v28 }
  0x20   :  { %v140_v33 = vadd.f32 %v139_v31, %v2165_v30  ;;  %v2309_v31 = vld [vmem:[%s3866_s0 + $0x140] sm:$0xff] }
  0x21   :  { %4000 = vst [vmem:[#allocation4_spill] sm:$0xff] %v2309_v31 }
  0x22   :  { %v141_v35 = vadd.f32 %v140_v33, %v2171_v32 }
  0x24   :  { %v142_v37 = vadd.f32 %v141_v35, %v2177_v34  ;;  %v2315_v35 = vld [vmem:[%s3866_s0 + $0x148] sm:$0xff] }
  0x25   :  { %4001 = vst [vmem:[#allocation5_spill] sm:$0xff] %v2315_v35 }
  0x26   :  { %v143_v39 = vadd.f32 %v142_v37, %v2183_v36 }
  0x28   :  { %v144_v41 = vadd.f32 %v143_v39, %v2189_v38  ;;  %v2321_v39 = vld [vmem:[%s3866_s0 + $0x150] sm:$0xff] }
  0x29   :  { %4002 = vst [vmem:[#allocation6_spill] sm:$0xff] %v2321_v39 }
  0x2a   :  { %v145_v43 = vadd.f32 %v144_v41, %v2195_v40 }
  0x2c   :  { %v146_v45 = vadd.f32 %v145_v43, %v2201_v42  ;;  %v2327_v43 = vld [vmem:[%s3866_s0 + $0x158] sm:$0xff] }
  0x2d   :  { %4003 = vst [vmem:[#allocation7_spill] sm:$0xff] %v2327_v43 }
  0x2e   :  { %v147_v47 = vadd.f32 %v146_v45, %v2207_v44 }
  0x30   :  { %v148_v49 = vadd.f32 %v147_v47, %v2213_v46  ;;  %v2333_v47 = vld [vmem:[%s3866_s0 + $0x160] sm:$0xff] }
  0x31   :  { %4004 = vst [vmem:[#allocation8_spill] sm:$0xff] %v2333_v47 }
  0x32   :  { %v149_v51 = vadd.f32 %v148_v49, %v2219_v48 }
  0x34   :  { %v150_v53 = vadd.f32 %v149_v51, %v2225_v50  ;;  %v2339_v51 = vld [vmem:[%s3866_s0 + $0x168] sm:$0xff] }
  0x35   :  { %4005 = vst [vmem:[#allocation9_spill] sm:$0xff] %v2339_v51 }
  0x36   :  { %v151_v55 = vadd.f32 %v150_v53, %v2231_v52 }
  0x38   :  { %v152_v57 = vadd.f32 %v151_v55, %v2237_v54  ;;  %v2345_v55 = vld [vmem:[%s3866_s0 + $0x170] sm:$0xff] }
  0x39   :  { %4006 = vst [vmem:[#allocation10_spill] sm:$0xff] %v2345_v55 }
  0x3a   :  { %v153_v59 = vadd.f32 %v152_v57, %v2243_v56 }
  0x3c   :  { %v154_v61 = vadd.f32 %v153_v59, %v2249_v58  ;;  %v2351_v59 = vld [vmem:[%s3866_s0 + $0x178] sm:$0xff] }
  0x3d   :  { %4007 = vst [vmem:[#allocation11_spill] sm:$0xff] %v2351_v59 }
  0x3e   :  { %v155_v63 = vadd.f32 %v154_v61, %v2255_v60 }
  0x40   :  { %v156_v5 = vadd.f32 %v155_v63, %v2261_v62  ;;  %v2357_v63 = vld [vmem:[%s3866_s0 + $0x180] sm:$0xff] }
  0x41   :  { %4008 = vst [vmem:[#allocation12_spill] sm:$0xff] %v2357_v63 }
  0x42   :  { %v157_v9 = vadd.f32 %v156_v5, %v2267_v3 }
  0x44   :  { %v158_v13 = vadd.f32 %v157_v9, %v2273_v7  ;;  %v2363_v9 = vld [vmem:[%s3866_s0 + $0x188] sm:$0xff] }
  0x45   :  { %4009 = vst [vmem:[#allocation13_spill] sm:$0xff] %v2363_v9 }
  0x46   :  { %v159_v17 = vadd.f32 %v158_v13, %v2279_v11 }
  0x48   :  { %v160_v21 = vadd.f32 %v159_v17, %v2285_v15  ;;  %v2369_v17 = vld [vmem:[%s3866_s0 + $0x190] sm:$0xff] }
  0x49   :  { %4010 = vst [vmem:[#allocation14_spill] sm:$0xff] %v2369_v17 }
  0x4a   :  { %v161_v25 = vadd.f32 %v160_v21, %v2291_v19 }
  0x4c   :  { %v162_v29 = vadd.f32 %v161_v25, %v2297_v23  ;;  %v2375_v25 = vld [vmem:[%s3866_s0 + $0x198] sm:$0xff] }
  0x4d   :  { %4011 = vst [vmem:[#allocation15_spill] sm:$0xff] %v2375_v25 }
  0x4e   :  { %v163_v33 = vadd.f32 %v162_v29, %v2303_v27 }
  0x50   :  { %v164_v37 = vadd.f32 %v163_v33, %v2309_v31  ;;  %v2381_v33 = vld [vmem:[%s3866_s0 + $0x1a0] sm:$0xff] }
  0x51   :  { %4012 = vst [vmem:[#allocation16_spill] sm:$0xff] %v2381_v33 }
  0x52   :  { %v165_v41 = vadd.f32 %v164_v37, %v2315_v35 }
  0x54   :  { %v166_v45 = vadd.f32 %v165_v41, %v2321_v39  ;;  %v2387_v41 = vld [vmem:[%s3866_s0 + $0x1a8] sm:$0xff] }
  0x55   :  { %4013 = vst [vmem:[#allocation17_spill] sm:$0xff] %v2387_v41 }
  0x56   :  { %v167_v49 = vadd.f32 %v166_v45, %v2327_v43 }
  0x58   :  { %v168_v53 = vadd.f32 %v167_v49, %v2333_v47  ;;  %v2393_v49 = vld [vmem:[%s3866_s0 + $0x1b0] sm:$0xff] }
  0x59   :  { %4014 = vst [vmem:[#allocation18_spill] sm:$0xff] %v2393_v49 }
  0x5a   :  { %v169_v57 = vadd.f32 %v168_v53, %v2339_v51 }
  0x5c   :  { %v170_v61 = vadd.f32 %v169_v57, %v2345_v55  ;;  %v2399_v57 = vld [vmem:[%s3866_s0 + $0x1b8] sm:$0xff] }
  0x5d   :  { %4015 = vst [vmem:[#allocation19_spill] sm:$0xff] %v2399_v57 }
  0x5e   :  { %v171_v5 = vadd.f32 %v170_v61, %v2351_v59 }
  0x60   :  { %v172_v13 = vadd.f32 %v171_v5, %v2357_v63  ;;  %v2405_v5 = vld [vmem:[%s3866_s0 + $0x1c0] sm:$0xff] }
  0x61   :  { %4016 = vst [vmem:[#allocation20_spill] sm:$0xff] %v2405_v5 }
  0x62   :  { %v173_v21 = vadd.f32 %v172_v13, %v2363_v9 }
  0x64   :  { %v174_v29 = vadd.f32 %v173_v21, %v2369_v17  ;;  %v2411_v21 = vld [vmem:[%s3866_s0 + $0x1c8] sm:$0xff] }
  0x65   :  { %4017 = vst [vmem:[#allocation21_spill] sm:$0xff] %v2411_v21 }
  0x66   :  { %v175_v37 = vadd.f32 %v174_v29, %v2375_v25  ;;  %v119_v25 = vld [vmem:[%s3866_s0 + $0x348] sm:$0xff] }
  0x68   :  { %v176_v45 = vadd.f32 %v175_v37, %v2381_v33  ;;  %v2417_v37 = vld [vmem:[%s3866_s0 + $0x1d0] sm:$0xff]  ;;  %v118_v33 = vld [vmem:[%s3866_s0 + $0x340] sm:$0xff] }
  0x69   :  { %4018 = vst [vmem:[#allocation22_spill] sm:$0xff] %v2417_v37 }
  0x6a   :  { %v177_v53 = vadd.f32 %v176_v45, %v2387_v41  ;;  %v116_v41 = vld [vmem:[%s3866_s0 + $0x330] sm:$0xff] }
  0x6c   :  { %v178_v61 = vadd.f32 %v177_v53, %v2393_v49  ;;  %v2423_v53 = vld [vmem:[%s3866_s0 + $0x1d8] sm:$0xff] }
  0x6d   :  { %4019 = vst [vmem:[#allocation23_spill] sm:$0xff] %v2423_v53 }
  0x6e   :  { %v179_v13 = vadd.f32 %v178_v61, %v2399_v57  ;;  %v2429_v57 = vld [vmem:[%s3866_s0 + $0x1e0] sm:$0xff] }
  0x6f   :  { %4020 = vst [vmem:[#allocation24_spill] sm:$0xff] %v2429_v57 }
  0x70   :  { %v180_v29 = vadd.f32 %v179_v13, %v2405_v5  ;;  %v2435_v5 = vld [vmem:[%s3866_s0 + $0x1e8] sm:$0xff] }
  0x71   :  { %4021 = vst [vmem:[#allocation25_spill] sm:$0xff] %v2435_v5 }
  0x72   :  { %v181_v45 = vadd.f32 %v180_v29, %v2411_v21  ;;  %v2441_v21 = vld [vmem:[%s3866_s0 + $0x1f0] sm:$0xff] }
  0x73   :  { %4022 = vst [vmem:[#allocation26_spill] sm:$0xff] %v2441_v21 }
  0x74   :  { %v182_v61 = vadd.f32 %v181_v45, %v2417_v37  ;;  %v2447_v37 = vld [vmem:[%s3866_s0 + $0x1f8] sm:$0xff] }
  0x75   :  { %4023 = vst [vmem:[#allocation27_spill] sm:$0xff] %v2447_v37 }
  0x76   :  { %v183_v13 = vadd.f32 %v182_v61, %v2423_v53  ;;  %v2453_v53 = vld [vmem:[%s3866_s0 + $0x200] sm:$0xff] }
  0x77   :  { %4024 = vst [vmem:[#allocation28_spill] sm:$0xff] %v2453_v53 }
  0x78   :  { %v184_v29 = vadd.f32 %v183_v13, %v2429_v57  ;;  %v2459_v57 = vld [vmem:[%s3866_s0 + $0x208] sm:$0xff] }
  0x79   :  { %4025 = vst [vmem:[#allocation29_spill] sm:$0xff] %v2459_v57 }
  0x7a   :  { %v185_v45 = vadd.f32 %v184_v29, %v2435_v5  ;;  %v2465_v5 = vld [vmem:[%s3866_s0 + $0x210] sm:$0xff] }
  0x7b   :  { %4026 = vst [vmem:[#allocation30_spill] sm:$0xff] %v2465_v5 }
  0x7c   :  { %v186_v61 = vadd.f32 %v185_v45, %v2441_v21  ;;  %v2471_v21 = vld [vmem:[%s3866_s0 + $0x218] sm:$0xff] }
  0x7d   :  { %4027 = vst [vmem:[#allocation31_spill] sm:$0xff] %v2471_v21 }
  0x7e   :  { %v187_v13 = vadd.f32 %v186_v61, %v2447_v37  ;;  %v2477_v37 = vld [vmem:[%s3866_s0 + $0x220] sm:$0xff] }
  0x7f   :  { %4028 = vst [vmem:[#allocation32_spill] sm:$0xff] %v2477_v37 }
  0x80   :  { %v188_v29 = vadd.f32 %v187_v13, %v2453_v53  ;;  %v2483_v53 = vld [vmem:[%s3866_s0 + $0x228] sm:$0xff] }
  0x81   :  { %4029 = vst [vmem:[#allocation33_spill] sm:$0xff] %v2483_v53 }
  0x82   :  { %v189_v45 = vadd.f32 %v188_v29, %v2459_v57  ;;  %v2489_v57 = vld [vmem:[%s3866_s0 + $0x230] sm:$0xff] }
  0x83   :  { %4030 = vst [vmem:[#allocation34_spill] sm:$0xff] %v2489_v57 }
  0x84   :  { %v190_v61 = vadd.f32 %v189_v45, %v2465_v5  ;;  %v2495_v5 = vld [vmem:[%s3866_s0 + $0x238] sm:$0xff] }
  0x85   :  { %4031 = vst [vmem:[#allocation35_spill] sm:$0xff] %v2495_v5 }
  0x86   :  { %v191_v13 = vadd.f32 %v190_v61, %v2471_v21  ;;  %v2501_v21 = vld [vmem:[%s3866_s0 + $0x240] sm:$0xff] }
  0x87   :  { %4032 = vst [vmem:[#allocation36_spill] sm:$0xff] %v2501_v21 }
  0x88   :  { %v192_v29 = vadd.f32 %v191_v13, %v2477_v37  ;;  %v2507_v37 = vld [vmem:[%s3866_s0 + $0x248] sm:$0xff] }
  0x89   :  { %4033 = vst [vmem:[#allocation37_spill] sm:$0xff] %v2507_v37 }
  0x8a   :  { %v193_v45 = vadd.f32 %v192_v29, %v2483_v53  ;;  %v2513_v53 = vld [vmem:[%s3866_s0 + $0x250] sm:$0xff] }
  0x8b   :  { %4034 = vst [vmem:[#allocation38_spill] sm:$0xff] %v2513_v53 }
  0x8c   :  { %v194_v61 = vadd.f32 %v193_v45, %v2489_v57  ;;  %v2519_v57 = vld [vmem:[%s3866_s0 + $0x258] sm:$0xff] }
  0x8d   :  { %4035 = vst [vmem:[#allocation39_spill] sm:$0xff] %v2519_v57 }
  0x8e   :  { %v195_v13 = vadd.f32 %v194_v61, %v2495_v5  ;;  %v2525_v5 = vld [vmem:[%s3866_s0 + $0x260] sm:$0xff] }
  0x8f   :  { %4036 = vst [vmem:[#allocation40_spill] sm:$0xff] %v2525_v5 }
  0x90   :  { %v196_v29 = vadd.f32 %v195_v13, %v2501_v21  ;;  %v2531_v21 = vld [vmem:[%s3866_s0 + $0x268] sm:$0xff] }
  0x91   :  { %4037 = vst [vmem:[#allocation41_spill] sm:$0xff] %v2531_v21 }
  0x92   :  { %v197_v45 = vadd.f32 %v196_v29, %v2507_v37  ;;  %v2537_v37 = vld [vmem:[%s3866_s0 + $0x270] sm:$0xff] }
  0x93   :  { %4038 = vst [vmem:[#allocation42_spill] sm:$0xff] %v2537_v37 }
  0x94   :  { %v198_v61 = vadd.f32 %v197_v45, %v2513_v53  ;;  %v2543_v53 = vld [vmem:[%s3866_s0 + $0x278] sm:$0xff] }
  0x95   :  { %4039 = vst [vmem:[#allocation43_spill] sm:$0xff] %v2543_v53 }
  0x96   :  { %v199_v13 = vadd.f32 %v198_v61, %v2519_v57  ;;  %v2549_v57 = vld [vmem:[%s3866_s0 + $0x280] sm:$0xff] }
  0x97   :  { %4040 = vst [vmem:[#allocation44_spill] sm:$0xff] %v2549_v57 }
  0x98   :  { %v200_v29 = vadd.f32 %v199_v13, %v2525_v5  ;;  %v2555_v5 = vld [vmem:[%s3866_s0 + $0x288] sm:$0xff] }
  0x99   :  { %4041 = vst [vmem:[#allocation45_spill] sm:$0xff] %v2555_v5 }
  0x9a   :  { %v201_v45 = vadd.f32 %v200_v29, %v2531_v21  ;;  %v2561_v21 = vld [vmem:[%s3866_s0 + $0x290] sm:$0xff] }
  0x9b   :  { %4042 = vst [vmem:[#allocation46_spill] sm:$0xff] %v2561_v21 }
  0x9c   :  { %v202_v61 = vadd.f32 %v201_v45, %v2537_v37  ;;  %v2567_v37 = vld [vmem:[%s3866_s0 + $0x298] sm:$0xff] }
  0x9d   :  { %4043 = vst [vmem:[#allocation47_spill] sm:$0xff] %v2567_v37 }
  0x9e   :  { %v203_v13 = vadd.f32 %v202_v61, %v2543_v53  ;;  %v2573_v53 = vld [vmem:[%s3866_s0 + $0x2a0] sm:$0xff] }
  0x9f   :  { %4044 = vst [vmem:[#allocation48_spill] sm:$0xff] %v2573_v53 }
  0xa0   :  { %v204_v29 = vadd.f32 %v203_v13, %v2549_v57  ;;  %v2579_v57 = vld [vmem:[%s3866_s0 + $0x2a8] sm:$0xff] }
  0xa1   :  { %4045 = vst [vmem:[#allocation49_spill] sm:$0xff] %v2579_v57 }
  0xa2   :  { %v205_v45 = vadd.f32 %v204_v29, %v2555_v5  ;;  %v2585_v5 = vld [vmem:[%s3866_s0 + $0x2b0] sm:$0xff] }
  0xa3   :  { %4046 = vst [vmem:[#allocation50_spill] sm:$0xff] %v2585_v5 }
  0xa4   :  { %v206_v61 = vadd.f32 %v205_v45, %v2561_v21  ;;  %v2591_v21 = vld [vmem:[%s3866_s0 + $0x2b8] sm:$0xff] }
  0xa5   :  { %4047 = vst [vmem:[#allocation51_spill] sm:$0xff] %v2591_v21 }
  0xa6   :  { %v207_v13 = vadd.f32 %v206_v61, %v2567_v37  ;;  %v2597_v37 = vld [vmem:[%s3866_s0 + $0x2c0] sm:$0xff] }
  0xa7   :  { %4048 = vst [vmem:[#allocation52_spill] sm:$0xff] %v2597_v37 }
  0xa8   :  { %v208_v29 = vadd.f32 %v207_v13, %v2573_v53  ;;  %v2603_v53 = vld [vmem:[%s3866_s0 + $0x2c8] sm:$0xff] }
  0xa9   :  { %4049 = vst [vmem:[#allocation53_spill] sm:$0xff] %v2603_v53 }
  0xaa   :  { %v209_v45 = vadd.f32 %v208_v29, %v2579_v57  ;;  %v2609_v57 = vld [vmem:[%s3866_s0 + $0x2d0] sm:$0xff] }
  0xab   :  { %4050 = vst [vmem:[#allocation54_spill] sm:$0xff] %v2609_v57 }
  0xac   :  { %v210_v61 = vadd.f32 %v209_v45, %v2585_v5  ;;  %v2615_v5 = vld [vmem:[%s3866_s0 + $0x2d8] sm:$0xff] }
  0xad   :  { %4051 = vst [vmem:[#allocation55_spill] sm:$0xff] %v2615_v5 }
  0xae   :  { %v211_v13 = vadd.f32 %v210_v61, %v2591_v21  ;;  %v2621_v21 = vld [vmem:[%s3866_s0 + $0x2e0] sm:$0xff] }
  0xaf   :  { %4052 = vst [vmem:[#allocation56_spill] sm:$0xff] %v2621_v21 }
  0xb0   :  { %v212_v29 = vadd.f32 %v211_v13, %v2597_v37  ;;  %v2627_v37 = vld [vmem:[%s3866_s0 + $0x2e8] sm:$0xff] }
  0xb1   :  { %4053 = vst [vmem:[#allocation57_spill] sm:$0xff] %v2627_v37 }
  0xb2   :  { %v213_v45 = vadd.f32 %v212_v29, %v2603_v53  ;;  %v2633_v53 = vld [vmem:[%s3866_s0 + $0x2f0] sm:$0xff] }
  0xb3   :  { %4054 = vst [vmem:[#allocation58_spill] sm:$0xff] %v2633_v53 }
  0xb4   :  { %v214_v61 = vadd.f32 %v213_v45, %v2609_v57  ;;  %v2639_v57 = vld [vmem:[%s3866_s0 + $0x2f8] sm:$0xff] }
  0xb5   :  { %4055 = vst [vmem:[#allocation59_spill] sm:$0xff] %v2639_v57 }
  0xb6   :  { %v215_v13 = vadd.f32 %v214_v61, %v2615_v5  ;;  %v2645_v5 = vld [vmem:[%s3866_s0 + $0x300] sm:$0xff] }
  0xb7   :  { %4056 = vst [vmem:[#allocation60_spill] sm:$0xff] %v2645_v5 }
  0xb8   :  { %v216_v29 = vadd.f32 %v215_v13, %v2621_v21  ;;  %v2651_v21 = vld [vmem:[%s3866_s0 + $0x308] sm:$0xff] }
  0xb9   :  { %4057 = vst [vmem:[#allocation61_spill] sm:$0xff] %v2651_v21 }
  0xba   :  { %v217_v45 = vadd.f32 %v216_v29, %v2627_v37  ;;  %v112_v37 = vld [vmem:[%s3866_s0 + $0x310] sm:$0xff] }
  0xbc   :  { %v218_v61 = vadd.f32 %v217_v45, %v2633_v53  ;;  %v113_v53 = vld [vmem:[%s3866_s0 + $0x318] sm:$0xff] }
  0xbe   :  { %v219_v13 = vadd.f32 %v218_v61, %v2639_v57  ;;  %v114_v61 = vld [vmem:[%s3866_s0 + $0x320] sm:$0xff] }
  0xc0   :  { %v220_v29 = vadd.f32 %v219_v13, %v2645_v5  ;;  %v115_v13 = vld [vmem:[%s3866_s0 + $0x328] sm:$0xff] }
  0xc2   :  { %v221_v45 = vadd.f32 %v220_v29, %v2651_v21  ;;  %v117_v21 = vld [vmem:[%s3866_s0 + $0x338] sm:$0xff] }
  0xc4   :  { %v222_v49 = vadd.f32 %v221_v45, %v112_v37 }
  0xc6   :  { %v223_v57 = vadd.f32 %v222_v49, %v113_v53 }
  0xc8   :  { %v224_v5 = vadd.f32 %v223_v57, %v114_v61 }
  0xca   :  { %v225_v29 = vadd.f32 %v224_v5, %v115_v13  ;;  %v120_v5 = vld [vmem:[%s3866_s0 + $0x350] sm:$0xff] }
  0xcc   :  { %v226_v45 = vadd.f32 %v225_v29, %v116_v41  ;;  %v121_v29 = vld [vmem:[%s3866_s0 + $0x358] sm:$0xff] }
  0xce   :  { %v227_v49 = vadd.f32 %v226_v45, %v117_v21  ;;  %v122_v45 = vld [vmem:[%s3866_s0 + $0x360] sm:$0xff] }
  0xd0   :  { %v228_v57 = vadd.f32 %v227_v49, %v118_v33  ;;  %v123_v49 = vld [vmem:[%s3866_s0 + $0x368] sm:$0xff] }
  0xd2   :  { %v229_v17 = vadd.f32 %v228_v57, %v119_v25  ;;  %v2694_v57 = vld [vmem:[%s3866_s0 + $0x370] sm:$0x3] }
  0xd3   :  { %4058 = vst [vmem:[#allocation62_spill] sm:$0xff] %v2694_v57  ;;  %v235_v55 = vsel %vm234_vm0, %v2694_v57, 0.0 }
  0xd4   :  { %v230_v9 = vadd.f32 %v229_v17, %v120_v5 }
  0xd6   :  { %v231_v63 = vadd.f32 %v230_v9, %v121_v29 }
  0xd8   :  { %v232_v59 = vadd.f32 %v231_v63, %v122_v45 }
  0xda   :  { %v233_v17 = vadd.f32 %v232_v59, %v123_v49 }
  0xdc   :  { %v236_v9 = vadd.f32 %v235_v55, %v233_v17 }
  0xde   :  { %v237_v51 = vrot.slane %v236_v9, 4 }
  0xe0   :  { %v238_v47 = vadd.f32 %v237_v51, %v236_v9 }
  0xe2   :  { %v239_v43 = vrot.slane %v238_v47, 2 }
  0xe4   :  { %v240_v39 = vadd.f32 %v239_v43, %v238_v47 }
  0xe6   :  { %v241_v63 = vrot.slane %v240_v39, 1 }
  0xe8   :  { %v242_v35 = vadd.f32 %v241_v63, %v240_v39 }
  0xea   :  { %v2698_v31 = vmul.f32 0.0011337869, %v242_v35 }
  0xec   :  { %v2701_v27 = vsub.f32 %v112_v37, %v2698_v31  ;;  %v2704_v23 = vsub.f32 %v113_v53, %v2698_v31  ;;  %v2707_v59 = vsub.f32 %v114_v61, %v2698_v31  ;;  %v2710_v57 = vsub.f32 %v115_v13, %v2698_v31 }
  0xed   :  { %v2713_v51 = vsub.f32 %v116_v41, %v2698_v31  ;;  %v2716_v43 = vsub.f32 %v117_v21, %v2698_v31  ;;  %v2719_v35 = vsub.f32 %v118_v33, %v2698_v31  ;;  %v2722_v39 = vsub.f32 %v119_v25, %v2698_v31 }
  0xee   :  { %v2725_v47 = vsub.f32 %v120_v5, %v2698_v31  ;;  %v2728_v55 = vsub.f32 %v121_v29, %v2698_v31  ;;  %v2731_v37 = vsub.f32 %v122_v45, %v2698_v31  ;;  %v2734_v41 = vsub.f32 %v123_v49, %v2698_v31 }
  0xef   :  { %4059 = vst [vmem:[#allocation63_spill] sm:$0xff] %v2713_v51  ;;  %4060 = vst [vmem:[#allocation64_spill] sm:$0xff] %v2722_v39  ;;  %v2738_v21 = vsub.f32 %v2070_v0, %v2698_v31  ;;  %v2742_v25 = vsub.f32 %v2075_v1, %v2698_v31  ;;  %v2746_v33 = vsub.f32 %v2080_v2, %v2698_v31 }
  0xf0   :  { %4061 = vst [vmem:[#allocation65_spill] sm:$0xff] %v2725_v47  ;;  %4062 = vst [vmem:[#allocation66_spill] sm:$0xff] %v2728_v55  ;;  %v2750_v53 = vsub.f32 %v2087_v4, %v2698_v31  ;;  %v2758_v0 = vsub.f32 %v2093_v6, %v2698_v31  ;;  %v2764_v2 = vsub.f32 %v2099_v8, %v2698_v31 }
  0xf1   :  { %4063 = vst [vmem:[#allocation67_spill] sm:$0xff] %v2731_v37  ;;  %v356_v61 = vmul.f32 %v2738_v21, %v2738_v21  ;;  %v357_v13 = vmul.f32 %v2742_v25, %v2742_v25  ;;  %v358_v1 = vmul.f32 %v2746_v33, %v2746_v33  ;;  %v2770_v29 = vsub.f32 %v2105_v10, %v2698_v31 }
  0xf2   :  { %v359_v4 = vmul.f32 %v2750_v53, %v2750_v53  ;;  %v360_v45 = vmul.f32 %v2758_v0, %v2758_v0  ;;  %v2776_v49 = vsub.f32 %v2111_v12, %v2698_v31  ;;  %v361_v8 = vmul.f32 %v2764_v2, %v2764_v2 }
  0xf3   :  { %v467_v5 = vadd.f32 %v357_v13, %v356_v61  ;;  %v2782_v9 = vsub.f32 %v2117_v14, %v2698_v31  ;;  %v362_v10 = vmul.f32 %v2770_v29, %v2770_v29  ;;  %v2788_v61 = vsub.f32 %v2123_v16, %v2698_v31 }
  0xf4   :  { %v363_v12 = vmul.f32 %v2776_v49, %v2776_v49 }
  0xf5   :  { %v468_v6 = vadd.f32 %v467_v5, %v358_v1  ;;  %v2794_v1 = vsub.f32 %v2129_v18, %v2698_v31  ;;  %v364_v14 = vmul.f32 %v2782_v9, %v2782_v9  ;;  %v2800_v5 = vsub.f32 %v2135_v20, %v2698_v31 }
  0xf6   :  { %v365_v16 = vmul.f32 %v2788_v61, %v2788_v61 }
  0xf7   :  { %v469_v17 = vadd.f32 %v468_v6, %v359_v4  ;;  %v2806_v6 = vsub.f32 %v2141_v22, %v2698_v31  ;;  %v366_v18 = vmul.f32 %v2794_v1, %v2794_v1  ;;  %v367_v20 = vmul.f32 %v2800_v5, %v2800_v5 }
  0xf9   :  { %v470_v63 = vadd.f32 %v469_v17, %v360_v45  ;;  %v2812_v17 = vsub.f32 %v2147_v24, %v2698_v31  ;;  %v368_v22 = vmul.f32 %v2806_v6, %v2806_v6 }
  0xfb   :  { %v471_v13 = vadd.f32 %v470_v63, %v361_v8  ;;  %v2818_v63 = vsub.f32 %v2153_v26, %v2698_v31  ;;  %v369_v24 = vmul.f32 %v2812_v17, %v2812_v17 }
  0xfd   :  { %v472_v4 = vadd.f32 %v471_v13, %v362_v10  ;;  %v2824_v13 = vsub.f32 %v2159_v28, %v2698_v31  ;;  %v370_v26 = vmul.f32 %v2818_v63, %v2818_v63 }
  0xff   :  { %v473_v45 = vadd.f32 %v472_v4, %v363_v12  ;;  %v2830_v4 = vsub.f32 %v2165_v30, %v2698_v31  ;;  %v371_v28 = vmul.f32 %v2824_v13, %v2824_v13 }
 0x101   :  { %v474_v8 = vadd.f32 %v473_v45, %v364_v14  ;;  %v2836_v45 = vsub.f32 %v2171_v32, %v2698_v31  ;;  %v372_v30 = vmul.f32 %v2830_v4, %v2830_v4 }
 0x103   :  { %v475_v10 = vadd.f32 %v474_v8, %v365_v16  ;;  %v2842_v8 = vsub.f32 %v2177_v34, %v2698_v31  ;;  %v373_v32 = vmul.f32 %v2836_v45, %v2836_v45 }
 0x105   :  { %v476_v12 = vadd.f32 %v475_v10, %v366_v18  ;;  %v2848_v10 = vsub.f32 %v2183_v36, %v2698_v31  ;;  %v374_v34 = vmul.f32 %v2842_v8, %v2842_v8 }
 0x107   :  { %v477_v14 = vadd.f32 %v476_v12, %v367_v20  ;;  %v2854_v12 = vsub.f32 %v2189_v38, %v2698_v31  ;;  %v375_v36 = vmul.f32 %v2848_v10, %v2848_v10 }
 0x109   :  { %v478_v16 = vadd.f32 %v477_v14, %v368_v22  ;;  %v2860_v14 = vsub.f32 %v2195_v40, %v2698_v31  ;;  %v376_v38 = vmul.f32 %v2854_v12, %v2854_v12 }
 0x10b   :  { %v479_v18 = vadd.f32 %v478_v16, %v369_v24  ;;  %v2866_v16 = vsub.f32 %v2201_v42, %v2698_v31  ;;  %v377_v40 = vmul.f32 %v2860_v14, %v2860_v14 }
 0x10d   :  { %v480_v20 = vadd.f32 %v479_v18, %v370_v26  ;;  %v2872_v18 = vsub.f32 %v2207_v44, %v2698_v31  ;;  %v378_v42 = vmul.f32 %v2866_v16, %v2866_v16 }
 0x10f   :  { %v481_v22 = vadd.f32 %v480_v20, %v371_v28  ;;  %v2878_v20 = vsub.f32 %v2213_v46, %v2698_v31  ;;  %v379_v44 = vmul.f32 %v2872_v18, %v2872_v18 }
 0x111   :  { %v482_v24 = vadd.f32 %v481_v22, %v372_v30  ;;  %v2884_v22 = vsub.f32 %v2219_v48, %v2698_v31  ;;  %v380_v46 = vmul.f32 %v2878_v20, %v2878_v20 }
 0x113   :  { %v483_v26 = vadd.f32 %v482_v24, %v373_v32  ;;  %v2890_v24 = vsub.f32 %v2225_v50, %v2698_v31  ;;  %v381_v48 = vmul.f32 %v2884_v22, %v2884_v22 }
 0x115   :  { %v484_v28 = vadd.f32 %v483_v26, %v374_v34  ;;  %v2896_v26 = vsub.f32 %v2231_v52, %v2698_v31  ;;  %v382_v50 = vmul.f32 %v2890_v24, %v2890_v24 }
 0x117   :  { %v485_v30 = vadd.f32 %v484_v28, %v375_v36  ;;  %v2902_v28 = vsub.f32 %v2237_v54, %v2698_v31  ;;  %v383_v52 = vmul.f32 %v2896_v26, %v2896_v26 }
 0x119   :  { %v486_v32 = vadd.f32 %v485_v30, %v376_v38  ;;  %v2908_v30 = vsub.f32 %v2243_v56, %v2698_v31  ;;  %v384_v54 = vmul.f32 %v2902_v28, %v2902_v28 }
 0x11b   :  { %v487_v34 = vadd.f32 %v486_v32, %v377_v40  ;;  %v2914_v32 = vsub.f32 %v2249_v58, %v2698_v31  ;;  %v385_v56 = vmul.f32 %v2908_v30, %v2908_v30 }
 0x11d   :  { %v488_v36 = vadd.f32 %v487_v34, %v378_v42  ;;  %v2920_v34 = vsub.f32 %v2255_v60, %v2698_v31  ;;  %v386_v58 = vmul.f32 %v2914_v32, %v2914_v32 }
 0x11f   :  { %v489_v38 = vadd.f32 %v488_v36, %v379_v44  ;;  %v2926_v36 = vsub.f32 %v2261_v62, %v2698_v31  ;;  %v387_v60 = vmul.f32 %v2920_v34, %v2920_v34 }
 0x121   :  { %v490_v40 = vadd.f32 %v489_v38, %v380_v46  ;;  %v2932_v38 = vsub.f32 %v2267_v3, %v2698_v31  ;;  %v388_v62 = vmul.f32 %v2926_v36, %v2926_v36 }
 0x123   :  { %v491_v42 = vadd.f32 %v490_v40, %v381_v48  ;;  %v2938_v40 = vsub.f32 %v2273_v7, %v2698_v31  ;;  %v389_v3 = vmul.f32 %v2932_v38, %v2932_v38 }
 0x125   :  { %v492_v44 = vadd.f32 %v491_v42, %v382_v50  ;;  %4064 = vst [vmem:[#allocation68_spill] sm:$0xff] %v2938_v40  ;;  %v2944_v42 = vsub.f32 %v2279_v11, %v2698_v31  ;;  %v390_v7 = vmul.f32 %v2938_v40, %v2938_v40 }
 0x127   :  { %v493_v46 = vadd.f32 %v492_v44, %v383_v52  ;;  %4065 = vst [vmem:[#allocation69_spill] sm:$0xff] %v2944_v42  ;;  %v2950_v44 = vsub.f32 %v2285_v15, %v2698_v31  ;;  %v391_v11 = vmul.f32 %v2944_v42, %v2944_v42 }
 0x129   :  { %v494_v48 = vadd.f32 %v493_v46, %v384_v54  ;;  %4066 = vst [vmem:[#allocation70_spill] sm:$0xff] %v2950_v44  ;;  %v2956_v46 = vsub.f32 %v2291_v19, %v2698_v31  ;;  %v392_v15 = vmul.f32 %v2950_v44, %v2950_v44 }
 0x12b   :  { %v495_v50 = vadd.f32 %v494_v48, %v385_v56  ;;  %4067 = vst [vmem:[#allocation71_spill] sm:$0xff] %v2956_v46  ;;  %v4068_v48 = vld [vmem:[#allocation2_spill] sm:$0xff]  ;;  %v393_v19 = vmul.f32 %v2956_v46, %v2956_v46 }
 0x12d   :  { %v496_v52 = vadd.f32 %v495_v50, %v386_v58  ;;  %v2962_v50 = vsub.f32 %v4068_v48, %v2698_v31  ;;  %v4074_v48 = vld [vmem:[#allocation5_spill] sm:$0xff] }
 0x12e   :  { %v2980_v44 = vsub.f32 %v4074_v48, %v2698_v31  ;;  %v4080_v48 = vld [vmem:[#allocation8_spill] sm:$0xff] }
 0x12f   :  { %v497_v54 = vadd.f32 %v496_v52, %v387_v60  ;;  %4069 = vst [vmem:[#allocation2_spill] sm:$0xff] %v2962_v50  ;;  %v4070_v52 = vld [vmem:[#allocation3_spill] sm:$0xff] }
 0x130   :  { %v2968_v40 = vsub.f32 %v4070_v52, %v2698_v31  ;;  %4075 = vst [vmem:[#allocation5_spill] sm:$0xff] %v2980_v44  ;;  %v4076_v52 = vld [vmem:[#allocation6_spill] sm:$0xff] }
 0x131   :  { %v498_v56 = vadd.f32 %v497_v54, %v388_v62  ;;  %v4072_v54 = vld [vmem:[#allocation4_spill] sm:$0xff]  ;;  %v2986_v46 = vsub.f32 %v4076_v52, %v2698_v31  ;;  %v4082_v52 = vld [vmem:[#allocation9_spill] sm:$0xff] }
 0x132   :  { %4071 = vst [vmem:[#allocation3_spill] sm:$0xff] %v2968_v40  ;;  %v2974_v42 = vsub.f32 %v4072_v54, %v2698_v31  ;;  %v4078_v54 = vld [vmem:[#allocation7_spill] sm:$0xff] }
 0x133   :  { %v499_v58 = vadd.f32 %v498_v56, %v389_v3  ;;  %v394_v3 = vmul.f32 %v2962_v50, %v2962_v50  ;;  %4077 = vst [vmem:[#allocation6_spill] sm:$0xff] %v2986_v46  ;;  %v2992_v50 = vsub.f32 %v4078_v54, %v2698_v31  ;;  %v4084_v54 = vld [vmem:[#allocation10_spill] sm:$0xff] }
 0x134   :  { %4073 = vst [vmem:[#allocation4_spill] sm:$0xff] %v2974_v42 }
 0x135   :  { %v500_v60 = vadd.f32 %v499_v58, %v390_v7  ;;  %v395_v7 = vmul.f32 %v2968_v40, %v2968_v40  ;;  %4079 = vst [vmem:[#allocation7_spill] sm:$0xff] %v2992_v50  ;;  %v2998_v40 = vsub.f32 %v4080_v48, %v2698_v31  ;;  %v4086_v48 = vld [vmem:[#allocation11_spill] sm:$0xff] }
 0x137   :  { %v501_v62 = vadd.f32 %v500_v60, %v391_v11  ;;  %v396_v11 = vmul.f32 %v2974_v42, %v2974_v42  ;;  %4081 = vst [vmem:[#allocation8_spill] sm:$0xff] %v2998_v40  ;;  %v3004_v42 = vsub.f32 %v4082_v52, %v2698_v31  ;;  %v4088_v52 = vld [vmem:[#allocation12_spill] sm:$0xff] }
 0x139   :  { %v502_v56 = vadd.f32 %v501_v62, %v392_v15  ;;  %v397_v15 = vmul.f32 %v2980_v44, %v2980_v44  ;;  %4083 = vst [vmem:[#allocation9_spill] sm:$0xff] %v3004_v42  ;;  %v3010_v44 = vsub.f32 %v4084_v54, %v2698_v31  ;;  %v4090_v54 = vld [vmem:[#allocation13_spill] sm:$0xff] }
 0x13b   :  { %v503_v58 = vadd.f32 %v502_v56, %v393_v19  ;;  %v398_v19 = vmul.f32 %v2986_v46, %v2986_v46  ;;  %4085 = vst [vmem:[#allocation10_spill] sm:$0xff] %v3010_v44  ;;  %v3016_v46 = vsub.f32 %v4086_v48, %v2698_v31  ;;  %v4092_v48 = vld [vmem:[#allocation14_spill] sm:$0xff] }
 0x13d   :  { %v504_v60 = vadd.f32 %v503_v58, %v394_v3  ;;  %v399_v3 = vmul.f32 %v2992_v50, %v2992_v50  ;;  %4087 = vst [vmem:[#allocation11_spill] sm:$0xff] %v3016_v46  ;;  %v3022_v50 = vsub.f32 %v4088_v52, %v2698_v31  ;;  %v4094_v52 = vld [vmem:[#allocation15_spill] sm:$0xff] }
 0x13f   :  { %v505_v62 = vadd.f32 %v504_v60, %v395_v7  ;;  %v400_v7 = vmul.f32 %v2998_v40, %v2998_v40  ;;  %4089 = vst [vmem:[#allocation12_spill] sm:$0xff] %v3022_v50  ;;  %v3028_v40 = vsub.f32 %v4090_v54, %v2698_v31  ;;  %v4096_v54 = vld [vmem:[#allocation16_spill] sm:$0xff] }
 0x141   :  { %v506_v56 = vadd.f32 %v505_v62, %v396_v11  ;;  %v401_v11 = vmul.f32 %v3004_v42, %v3004_v42  ;;  %4091 = vst [vmem:[#allocation13_spill] sm:$0xff] %v3028_v40  ;;  %v3034_v42 = vsub.f32 %v4092_v48, %v2698_v31  ;;  %v4098_v48 = vld [vmem:[#allocation17_spill] sm:$0xff] }
 0x143   :  { %v507_v58 = vadd.f32 %v506_v56, %v397_v15  ;;  %v402_v15 = vmul.f32 %v3010_v44, %v3010_v44  ;;  %4093 = vst [vmem:[#allocation14_spill] sm:$0xff] %v3034_v42  ;;  %v3040_v44 = vsub.f32 %v4094_v52, %v2698_v31  ;;  %v4100_v52 = vld [vmem:[#allocation18_spill] sm:$0xff] }
 0x145   :  { %v508_v60 = vadd.f32 %v507_v58, %v398_v19  ;;  %v403_v19 = vmul.f32 %v3016_v46, %v3016_v46  ;;  %4095 = vst [vmem:[#allocation15_spill] sm:$0xff] %v3040_v44  ;;  %v3046_v46 = vsub.f32 %v4096_v54, %v2698_v31  ;;  %v4102_v54 = vld [vmem:[#allocation19_spill] sm:$0xff] }
 0x147   :  { %v509_v62 = vadd.f32 %v508_v60, %v399_v3  ;;  %v404_v3 = vmul.f32 %v3022_v50, %v3022_v50  ;;  %4097 = vst [vmem:[#allocation16_spill] sm:$0xff] %v3046_v46  ;;  %v3052_v50 = vsub.f32 %v4098_v48, %v2698_v31  ;;  %v4104_v48 = vld [vmem:[#allocation20_spill] sm:$0xff] }
 0x149   :  { %v510_v56 = vadd.f32 %v509_v62, %v400_v7  ;;  %v405_v7 = vmul.f32 %v3028_v40, %v3028_v40  ;;  %4099 = vst [vmem:[#allocation17_spill] sm:$0xff] %v3052_v50  ;;  %v3058_v40 = vsub.f32 %v4100_v52, %v2698_v31  ;;  %v4106_v52 = vld [vmem:[#allocation21_spill] sm:$0xff] }
 0x14b   :  { %v511_v58 = vadd.f32 %v510_v56, %v401_v11  ;;  %v406_v11 = vmul.f32 %v3034_v42, %v3034_v42  ;;  %4101 = vst [vmem:[#allocation18_spill] sm:$0xff] %v3058_v40  ;;  %v3064_v42 = vsub.f32 %v4102_v54, %v2698_v31  ;;  %v4108_v54 = vld [vmem:[#allocation22_spill] sm:$0xff] }
 0x14d   :  { %v512_v60 = vadd.f32 %v511_v58, %v402_v15  ;;  %v407_v15 = vmul.f32 %v3040_v44, %v3040_v44  ;;  %4103 = vst [vmem:[#allocation19_spill] sm:$0xff] %v3064_v42  ;;  %v3070_v44 = vsub.f32 %v4104_v48, %v2698_v31  ;;  %v4110_v48 = vld [vmem:[#allocation23_spill] sm:$0xff] }
 0x14f   :  { %v513_v62 = vadd.f32 %v512_v60, %v403_v19  ;;  %v408_v19 = vmul.f32 %v3046_v46, %v3046_v46  ;;  %4105 = vst [vmem:[#allocation20_spill] sm:$0xff] %v3070_v44  ;;  %v3076_v46 = vsub.f32 %v4106_v52, %v2698_v31  ;;  %v4112_v52 = vld [vmem:[#allocation24_spill] sm:$0xff] }
 0x151   :  { %v514_v56 = vadd.f32 %v513_v62, %v404_v3  ;;  %v409_v3 = vmul.f32 %v3052_v50, %v3052_v50  ;;  %4107 = vst [vmem:[#allocation21_spill] sm:$0xff] %v3076_v46  ;;  %v3082_v50 = vsub.f32 %v4108_v54, %v2698_v31  ;;  %v4114_v54 = vld [vmem:[#allocation25_spill] sm:$0xff] }
 0x153   :  { %v515_v58 = vadd.f32 %v514_v56, %v405_v7  ;;  %v410_v7 = vmul.f32 %v3058_v40, %v3058_v40  ;;  %4109 = vst [vmem:[#allocation22_spill] sm:$0xff] %v3082_v50  ;;  %v3088_v40 = vsub.f32 %v4110_v48, %v2698_v31  ;;  %v4116_v48 = vld [vmem:[#allocation26_spill] sm:$0xff] }
 0x155   :  { %v516_v60 = vadd.f32 %v515_v58, %v406_v11  ;;  %v411_v11 = vmul.f32 %v3064_v42, %v3064_v42  ;;  %4111 = vst [vmem:[#allocation23_spill] sm:$0xff] %v3088_v40  ;;  %v3094_v42 = vsub.f32 %v4112_v52, %v2698_v31  ;;  %v4118_v52 = vld [vmem:[#allocation27_spill] sm:$0xff] }
 0x157   :  { %v517_v62 = vadd.f32 %v516_v60, %v407_v15  ;;  %v412_v15 = vmul.f32 %v3070_v44, %v3070_v44  ;;  %4113 = vst [vmem:[#allocation24_spill] sm:$0xff] %v3094_v42  ;;  %v3100_v44 = vsub.f32 %v4114_v54, %v2698_v31  ;;  %v4120_v54 = vld [vmem:[#allocation28_spill] sm:$0xff] }
 0x159   :  { %v518_v56 = vadd.f32 %v517_v62, %v408_v19  ;;  %v413_v19 = vmul.f32 %v3076_v46, %v3076_v46  ;;  %4115 = vst [vmem:[#allocation25_spill] sm:$0xff] %v3100_v44  ;;  %v3106_v46 = vsub.f32 %v4116_v48, %v2698_v31  ;;  %v4122_v48 = vld [vmem:[#allocation29_spill] sm:$0xff] }
 0x15b   :  { %v519_v58 = vadd.f32 %v518_v56, %v409_v3  ;;  %v414_v3 = vmul.f32 %v3082_v50, %v3082_v50  ;;  %4117 = vst [vmem:[#allocation26_spill] sm:$0xff] %v3106_v46  ;;  %v3112_v50 = vsub.f32 %v4118_v52, %v2698_v31  ;;  %v4124_v52 = vld [vmem:[#allocation30_spill] sm:$0xff] }
 0x15d   :  { %v520_v60 = vadd.f32 %v519_v58, %v410_v7  ;;  %v415_v7 = vmul.f32 %v3088_v40, %v3088_v40  ;;  %4119 = vst [vmem:[#allocation27_spill] sm:$0xff] %v3112_v50  ;;  %v3118_v40 = vsub.f32 %v4120_v54, %v2698_v31  ;;  %v4126_v54 = vld [vmem:[#allocation31_spill] sm:$0xff] }
 0x15f   :  { %v521_v62 = vadd.f32 %v520_v60, %v411_v11  ;;  %v416_v11 = vmul.f32 %v3094_v42, %v3094_v42  ;;  %4121 = vst [vmem:[#allocation28_spill] sm:$0xff] %v3118_v40  ;;  %v3124_v42 = vsub.f32 %v4122_v48, %v2698_v31  ;;  %v4128_v48 = vld [vmem:[#allocation32_spill] sm:$0xff] }
 0x161   :  { %v522_v56 = vadd.f32 %v521_v62, %v412_v15  ;;  %v417_v15 = vmul.f32 %v3100_v44, %v3100_v44  ;;  %4123 = vst [vmem:[#allocation29_spill] sm:$0xff] %v3124_v42  ;;  %v3130_v44 = vsub.f32 %v4124_v52, %v2698_v31  ;;  %v4130_v52 = vld [vmem:[#allocation33_spill] sm:$0xff] }
 0x163   :  { %v523_v58 = vadd.f32 %v522_v56, %v413_v19  ;;  %v418_v19 = vmul.f32 %v3106_v46, %v3106_v46  ;;  %4125 = vst [vmem:[#allocation30_spill] sm:$0xff] %v3130_v44  ;;  %v3136_v46 = vsub.f32 %v4126_v54, %v2698_v31  ;;  %v4132_v54 = vld [vmem:[#allocation34_spill] sm:$0xff] }
 0x165   :  { %v524_v60 = vadd.f32 %v523_v58, %v414_v3  ;;  %v419_v3 = vmul.f32 %v3112_v50, %v3112_v50  ;;  %4127 = vst [vmem:[#allocation31_spill] sm:$0xff] %v3136_v46  ;;  %v3142_v50 = vsub.f32 %v4128_v48, %v2698_v31  ;;  %v4134_v48 = vld [vmem:[#allocation35_spill] sm:$0xff] }
 0x167   :  { %v525_v62 = vadd.f32 %v524_v60, %v415_v7  ;;  %v420_v7 = vmul.f32 %v3118_v40, %v3118_v40  ;;  %4129 = vst [vmem:[#allocation32_spill] sm:$0xff] %v3142_v50  ;;  %v3148_v40 = vsub.f32 %v4130_v52, %v2698_v31  ;;  %v4136_v52 = vld [vmem:[#allocation36_spill] sm:$0xff] }
 0x169   :  { %v526_v56 = vadd.f32 %v525_v62, %v416_v11  ;;  %v421_v11 = vmul.f32 %v3124_v42, %v3124_v42  ;;  %4131 = vst [vmem:[#allocation33_spill] sm:$0xff] %v3148_v40  ;;  %v3154_v42 = vsub.f32 %v4132_v54, %v2698_v31  ;;  %v4138_v54 = vld [vmem:[#allocation37_spill] sm:$0xff] }
 0x16b   :  { %v527_v58 = vadd.f32 %v526_v56, %v417_v15  ;;  %v422_v15 = vmul.f32 %v3130_v44, %v3130_v44  ;;  %4133 = vst [vmem:[#allocation34_spill] sm:$0xff] %v3154_v42  ;;  %v3160_v44 = vsub.f32 %v4134_v48, %v2698_v31  ;;  %v4140_v48 = vld [vmem:[#allocation38_spill] sm:$0xff] }
 0x16d   :  { %v528_v60 = vadd.f32 %v527_v58, %v418_v19  ;;  %v423_v19 = vmul.f32 %v3136_v46, %v3136_v46  ;;  %4135 = vst [vmem:[#allocation35_spill] sm:$0xff] %v3160_v44  ;;  %v3166_v46 = vsub.f32 %v4136_v52, %v2698_v31  ;;  %v4142_v52 = vld [vmem:[#allocation39_spill] sm:$0xff] }
 0x16f   :  { %v529_v62 = vadd.f32 %v528_v60, %v419_v3  ;;  %v424_v3 = vmul.f32 %v3142_v50, %v3142_v50  ;;  %4137 = vst [vmem:[#allocation36_spill] sm:$0xff] %v3166_v46  ;;  %v3172_v50 = vsub.f32 %v4138_v54, %v2698_v31  ;;  %v4144_v54 = vld [vmem:[#allocation40_spill] sm:$0xff] }
 0x171   :  { %v530_v56 = vadd.f32 %v529_v62, %v420_v7  ;;  %v425_v7 = vmul.f32 %v3148_v40, %v3148_v40  ;;  %4139 = vst [vmem:[#allocation37_spill] sm:$0xff] %v3172_v50  ;;  %v3178_v40 = vsub.f32 %v4140_v48, %v2698_v31  ;;  %v4146_v48 = vld [vmem:[#allocation41_spill] sm:$0xff] }
 0x173   :  { %v531_v58 = vadd.f32 %v530_v56, %v421_v11  ;;  %v426_v11 = vmul.f32 %v3154_v42, %v3154_v42  ;;  %4141 = vst [vmem:[#allocation38_spill] sm:$0xff] %v3178_v40  ;;  %v3184_v42 = vsub.f32 %v4142_v52, %v2698_v31  ;;  %v4148_v52 = vld [vmem:[#allocation42_spill] sm:$0xff] }
 0x175   :  { %v532_v60 = vadd.f32 %v531_v58, %v422_v15  ;;  %v427_v15 = vmul.f32 %v3160_v44, %v3160_v44  ;;  %4143 = vst [vmem:[#allocation39_spill] sm:$0xff] %v3184_v42  ;;  %v3190_v44 = vsub.f32 %v4144_v54, %v2698_v31  ;;  %v4150_v54 = vld [vmem:[#allocation43_spill] sm:$0xff] }
 0x177   :  { %v533_v62 = vadd.f32 %v532_v60, %v423_v19  ;;  %v428_v19 = vmul.f32 %v3166_v46, %v3166_v46  ;;  %4145 = vst [vmem:[#allocation40_spill] sm:$0xff] %v3190_v44  ;;  %v3196_v46 = vsub.f32 %v4146_v48, %v2698_v31  ;;  %v4152_v48 = vld [vmem:[#allocation44_spill] sm:$0xff] }
 0x179   :  { %v534_v56 = vadd.f32 %v533_v62, %v424_v3  ;;  %v429_v3 = vmul.f32 %v3172_v50, %v3172_v50  ;;  %4147 = vst [vmem:[#allocation41_spill] sm:$0xff] %v3196_v46  ;;  %v3202_v50 = vsub.f32 %v4148_v52, %v2698_v31  ;;  %v4154_v52 = vld [vmem:[#allocation45_spill] sm:$0xff] }
 0x17b   :  { %v535_v58 = vadd.f32 %v534_v56, %v425_v7  ;;  %v430_v7 = vmul.f32 %v3178_v40, %v3178_v40  ;;  %4149 = vst [vmem:[#allocation42_spill] sm:$0xff] %v3202_v50  ;;  %v3208_v40 = vsub.f32 %v4150_v54, %v2698_v31  ;;  %v4156_v54 = vld [vmem:[#allocation46_spill] sm:$0xff] }
 0x17d   :  { %v536_v60 = vadd.f32 %v535_v58, %v426_v11  ;;  %v431_v11 = vmul.f32 %v3184_v42, %v3184_v42  ;;  %4151 = vst [vmem:[#allocation43_spill] sm:$0xff] %v3208_v40  ;;  %v3214_v42 = vsub.f32 %v4152_v48, %v2698_v31  ;;  %v4158_v48 = vld [vmem:[#allocation47_spill] sm:$0xff] }
 0x17f   :  { %v537_v62 = vadd.f32 %v536_v60, %v427_v15  ;;  %v432_v15 = vmul.f32 %v3190_v44, %v3190_v44  ;;  %4153 = vst [vmem:[#allocation44_spill] sm:$0xff] %v3214_v42  ;;  %v3220_v44 = vsub.f32 %v4154_v52, %v2698_v31  ;;  %v4160_v52 = vld [vmem:[#allocation48_spill] sm:$0xff] }
 0x181   :  { %v538_v56 = vadd.f32 %v537_v62, %v428_v19  ;;  %v433_v19 = vmul.f32 %v3196_v46, %v3196_v46  ;;  %4155 = vst [vmem:[#allocation45_spill] sm:$0xff] %v3220_v44  ;;  %v3226_v46 = vsub.f32 %v4156_v54, %v2698_v31  ;;  %v4162_v54 = vld [vmem:[#allocation49_spill] sm:$0xff] }
 0x183   :  { %v539_v58 = vadd.f32 %v538_v56, %v429_v3  ;;  %v434_v3 = vmul.f32 %v3202_v50, %v3202_v50  ;;  %4157 = vst [vmem:[#allocation46_spill] sm:$0xff] %v3226_v46  ;;  %v3232_v50 = vsub.f32 %v4158_v48, %v2698_v31  ;;  %v4164_v48 = vld [vmem:[#allocation50_spill] sm:$0xff] }
 0x185   :  { %v540_v60 = vadd.f32 %v539_v58, %v430_v7  ;;  %v435_v7 = vmul.f32 %v3208_v40, %v3208_v40  ;;  %4159 = vst [vmem:[#allocation47_spill] sm:$0xff] %v3232_v50  ;;  %v3238_v40 = vsub.f32 %v4160_v52, %v2698_v31  ;;  %v4166_v52 = vld [vmem:[#allocation51_spill] sm:$0xff] }
 0x187   :  { %v541_v62 = vadd.f32 %v540_v60, %v431_v11  ;;  %v436_v11 = vmul.f32 %v3214_v42, %v3214_v42  ;;  %4161 = vst [vmem:[#allocation48_spill] sm:$0xff] %v3238_v40  ;;  %v3244_v42 = vsub.f32 %v4162_v54, %v2698_v31  ;;  %v4168_v54 = vld [vmem:[#allocation52_spill] sm:$0xff] }
 0x189   :  { %v542_v56 = vadd.f32 %v541_v62, %v432_v15  ;;  %v437_v15 = vmul.f32 %v3220_v44, %v3220_v44  ;;  %4163 = vst [vmem:[#allocation49_spill] sm:$0xff] %v3244_v42  ;;  %v3250_v44 = vsub.f32 %v4164_v48, %v2698_v31  ;;  %v4170_v48 = vld [vmem:[#allocation53_spill] sm:$0xff] }
 0x18b   :  { %v543_v58 = vadd.f32 %v542_v56, %v433_v19  ;;  %v438_v19 = vmul.f32 %v3226_v46, %v3226_v46  ;;  %4165 = vst [vmem:[#allocation50_spill] sm:$0xff] %v3250_v44  ;;  %v3256_v46 = vsub.f32 %v4166_v52, %v2698_v31  ;;  %v4172_v52 = vld [vmem:[#allocation54_spill] sm:$0xff] }
 0x18d   :  { %v544_v60 = vadd.f32 %v543_v58, %v434_v3  ;;  %v439_v3 = vmul.f32 %v3232_v50, %v3232_v50  ;;  %4167 = vst [vmem:[#allocation51_spill] sm:$0xff] %v3256_v46  ;;  %v3262_v50 = vsub.f32 %v4168_v54, %v2698_v31  ;;  %v4174_v54 = vld [vmem:[#allocation55_spill] sm:$0xff] }
 0x18f   :  { %v545_v62 = vadd.f32 %v544_v60, %v435_v7  ;;  %v440_v7 = vmul.f32 %v3238_v40, %v3238_v40  ;;  %4169 = vst [vmem:[#allocation52_spill] sm:$0xff] %v3262_v50  ;;  %v3268_v40 = vsub.f32 %v4170_v48, %v2698_v31  ;;  %v4176_v48 = vld [vmem:[#allocation56_spill] sm:$0xff] }
 0x191   :  { %v546_v56 = vadd.f32 %v545_v62, %v436_v11  ;;  %v441_v11 = vmul.f32 %v3244_v42, %v3244_v42  ;;  %4171 = vst [vmem:[#allocation53_spill] sm:$0xff] %v3268_v40  ;;  %v3274_v42 = vsub.f32 %v4172_v52, %v2698_v31  ;;  %v4178_v52 = vld [vmem:[#allocation57_spill] sm:$0xff] }
 0x193   :  { %v547_v58 = vadd.f32 %v546_v56, %v437_v15  ;;  %v442_v15 = vmul.f32 %v3250_v44, %v3250_v44  ;;  %4173 = vst [vmem:[#allocation54_spill] sm:$0xff] %v3274_v42  ;;  %v3280_v44 = vsub.f32 %v4174_v54, %v2698_v31  ;;  %v4179_v54 = vld [vmem:[#allocation58_spill] sm:$0xff] }
 0x195   :  { %v548_v60 = vadd.f32 %v547_v58, %v438_v19  ;;  %v443_v19 = vmul.f32 %v3256_v46, %v3256_v46  ;;  %4175 = vst [vmem:[#allocation55_spill] sm:$0xff] %v3280_v44  ;;  %v3286_v46 = vsub.f32 %v4176_v48, %v2698_v31  ;;  %v4181_v48 = vld [vmem:[#allocation59_spill] sm:$0xff] }
 0x197   :  { %v549_v62 = vadd.f32 %v548_v60, %v439_v3  ;;  %v444_v3 = vmul.f32 %v3262_v50, %v3262_v50  ;;  %4177 = vst [vmem:[#allocation56_spill] sm:$0xff] %v3286_v46  ;;  %v3292_v50 = vsub.f32 %v4178_v52, %v2698_v31  ;;  %v4183_v52 = vld [vmem:[#allocation60_spill] sm:$0xff] }
 0x199   :  { %v550_v56 = vadd.f32 %v549_v62, %v440_v7  ;;  %v445_v7 = vmul.f32 %v3268_v40, %v3268_v40  ;;  %v3298_v40 = vsub.f32 %v4179_v54, %v2698_v31  ;;  %v4184_v54 = vld [vmem:[#allocation61_spill] sm:$0xff] }
 0x19b   :  { %v551_v58 = vadd.f32 %v550_v56, %v441_v11  ;;  %v446_v11 = vmul.f32 %v3274_v42, %v3274_v42  ;;  %4180 = vst [vmem:[#allocation57_spill] sm:$0xff] %v3298_v40  ;;  %v3304_v42 = vsub.f32 %v4181_v48, %v2698_v31 }
 0x19d   :  { %v552_v60 = vadd.f32 %v551_v58, %v442_v15  ;;  %v447_v15 = vmul.f32 %v3280_v44, %v3280_v44  ;;  %4182 = vst [vmem:[#allocation58_spill] sm:$0xff] %v3304_v42  ;;  %v3310_v44 = vsub.f32 %v4183_v52, %v2698_v31 }
 0x19f   :  { %v553_v62 = vadd.f32 %v552_v60, %v443_v19  ;;  %v448_v19 = vmul.f32 %v3286_v46, %v3286_v46  ;;  %v3316_v46 = vsub.f32 %v4184_v54, %v2698_v31  ;;  %v452_v48 = vmul.f32 %v3310_v44, %v3310_v44 }
 0x1a1   :  { %v554_v56 = vadd.f32 %v553_v62, %v444_v3  ;;  %v449_v3 = vmul.f32 %v3292_v50, %v3292_v50 }
 0x1a3   :  { %v555_v58 = vadd.f32 %v554_v56, %v445_v7  ;;  %v450_v7 = vmul.f32 %v3298_v40, %v3298_v40  ;;  %v454_v40 = vmul.f32 %v2701_v27, %v2701_v27 }
 0x1a5   :  { %v556_v60 = vadd.f32 %v555_v58, %v446_v11  ;;  %v451_v11 = vmul.f32 %v3304_v42, %v3304_v42  ;;  %v456_v42 = vmul.f32 %v2707_v59, %v2707_v59 }
 0x1a7   :  { %v557_v62 = vadd.f32 %v556_v60, %v447_v15  ;;  %v453_v60 = vmul.f32 %v3316_v46, %v3316_v46 }
 0x1a9   :  { %v558_v56 = vadd.f32 %v557_v62, %v448_v19  ;;  %v455_v62 = vmul.f32 %v2704_v23, %v2704_v23 }
 0x1ab   :  { %v559_v58 = vadd.f32 %v558_v56, %v449_v3  ;;  %v457_v56 = vmul.f32 %v2710_v57, %v2710_v57 }
 0x1ad   :  { %v560_v15 = vadd.f32 %v559_v58, %v450_v7  ;;  %v458_v58 = vmul.f32 %v2713_v51, %v2713_v51 }
 0x1af   :  { %v561_v52 = vadd.f32 %v560_v15, %v451_v11  ;;  %v459_v15 = vmul.f32 %v2716_v43, %v2716_v43 }
 0x1b1   :  { %v562_v19 = vadd.f32 %v561_v52, %v452_v48  ;;  %v460_v52 = vmul.f32 %v2719_v35, %v2719_v35 }
 0x1b3   :  { %v563_v54 = vadd.f32 %v562_v19, %v453_v60  ;;  %v461_v19 = vmul.f32 %v2722_v39, %v2722_v39 }
 0x1b5   :  { %v564_v3 = vadd.f32 %v563_v54, %v454_v40  ;;  %v462_v54 = vmul.f32 %v2725_v47, %v2725_v47 }
 0x1b7   :  { %v565_v7 = vadd.f32 %v564_v3, %v455_v62  ;;  %v4185_v3 = vld [vmem:[#allocation62_spill] sm:$0xff] }
 0x1b8   :  { %v3344_v51 = vsub.f32 %v4185_v3, %v2698_v31 }
 0x1b9   :  { %v566_v11 = vadd.f32 %v565_v7, %v456_v42  ;;  %v463_v42 = vmul.f32 %v2728_v55, %v2728_v55  ;;  %v464_v7 = vmul.f32 %v2731_v37, %v2731_v37 }
 0x1ba   :  { %4186 = vst [vmem:[#allocation59_spill] sm:$0xff] %v3344_v51 }
 0x1bb   :  { %v567_v48 = vadd.f32 %v566_v11, %v457_v56  ;;  %v466_v11 = vmul.f32 %v3344_v51, %v3344_v51 }
 0x1bd   :  { %v568_v60 = vadd.f32 %v567_v48, %v458_v58 }
 0x1bf   :  { %v569_v40 = vadd.f32 %v568_v60, %v459_v15  ;;  %v465_v15 = vmul.f32 %v2734_v41, %v2734_v41  ;;  %v576_v60 = vsel %vm234_vm0, %v466_v11, 0.0 }
 0x1c1   :  { %v570_v62 = vadd.f32 %v569_v40, %v460_v52 }
 0x1c3   :  { %v571_v56 = vadd.f32 %v570_v62, %v461_v19 }
 0x1c5   :  { %v572_v58 = vadd.f32 %v571_v56, %v462_v54  ;;  %v589_v56 = vlaneseq }
 0x1c7   :  { %v573_v48 = vadd.f32 %v572_v58, %v463_v42  ;;  %v590_v51 = vshrl.u32 %v589_v56, 7  ;;  %v587_v42 = vld [vmem:[%s3867_s1] sm:$0x1] }
 0x1c9   :  { %v574_v52 = vadd.f32 %v573_v48, %v464_v7  ;;  %v591_v7 = vsub.s32 0, %v590_v51 }
 0x1cb   :  { %v575_v31 = vadd.f32 %v574_v52, %v465_v15 }
 0x1cd   :  { %v577_v40 = vadd.f32 %v576_v60, %v575_v31 }
 0x1cf   :  { %v578_v3 = vrot.slane %v577_v40, 4 }
 0x1d1   :  { %v579_v47 = vadd.f32 %v578_v3, %v577_v40 }
 0x1d3   :  { %v580_v55 = vrot.slane %v579_v47, 2 }
 0x1d5   :  { %v581_v19 = vadd.f32 %v580_v55, %v579_v47  ;;  %v3363_v47 = vld [vmem:[%s3868_s2] ss:$0 sm:$0xff] }
 0x1d7   :  { %v582_v62 = vrot.slane %v581_v19, 1 }
 0x1d9   :  { %v583_v39 = vadd.f32 %v582_v62, %v581_v19 }
 0x1db   :  { %v584_v37 = vmul.f32 0.0011337869, %v583_v39 }
 0x1dd   :  { %v585_v54 = vadd.f32 1e-05, %v584_v37 }
 0x1df   :  { %2045 = vrsqrt.f32 %v585_v54 }
 0x1e9   :  { %v2046_v58 = vpop.eup %2045 }
 0x1ea   :  { %v588_v11 = vmul.f32 %v2046_v58, %v587_v42 }
 0x1ec   :  { %v3358_v15 = vrot.slane %v588_v11, %v591_v7 }
 0x1ee   :  { %v593_v39 = vmul.f32 %v3358_v15, %v2738_v21  ;;  %v594_v55 = vmul.f32 %v3358_v15, %v2742_v25  ;;  %v595_v37 = vmul.f32 %v3358_v15, %v2746_v33  ;;  %v596_v51 = vmul.f32 %v3358_v15, %v2750_v53 }
 0x1ef   :  { %v597_v48 = vmul.f32 %v3358_v15, %v2758_v0  ;;  %v598_v52 = vmul.f32 %v3358_v15, %v2764_v2  ;;  %v599_v60 = vmul.f32 %v3358_v15, %v2770_v29  ;;  %v600_v21 = vmul.f32 %v3358_v15, %v2776_v49 }
 0x1f0   :  { %v711_v25 = vadd.f32 %v3363_v47, %v593_v39  ;;  %v712_v31 = vadd.f32 %v3363_v47, %v594_v55  ;;  %v713_v33 = vadd.f32 %v3363_v47, %v595_v37  ;;  %v714_v53 = vadd.f32 %v3363_v47, %v596_v51 }
 0x1f1   :  { %v715_v40 = vadd.f32 %v3363_v47, %v597_v48  ;;  %v716_v0 = vadd.f32 %v3363_v47, %v598_v52  ;;  %v717_v2 = vadd.f32 %v3363_v47, %v599_v60  ;;  %v718_v3 = vadd.f32 %v3363_v47, %v600_v21 }
 0x1f2   :  { %v822_v29 = vmax.f32 %v711_v25, 0.0  ;;  %v823_v19 = vmax.f32 %v712_v31, 0.0  ;;  %v824_v62 = vmax.f32 %v713_v33, 0.0  ;;  %v825_v49 = vmax.f32 %v714_v53, 0.0 }
 0x1f3   :  { %v826_v54 = vmax.f32 %v715_v40, 0.0  ;;  %v827_v56 = vmax.f32 %v716_v0, 0.0  ;;  %v828_v42 = vmax.f32 %v717_v2, 0.0  ;;  %v829_v7 = vmax.f32 %v718_v3, 0.0 }
 0x1f4   :  { %v1719_v58 = vpack.c.bf16 %v823_v19, %v822_v29  ;;  %v1724_v11 = vpack.c.bf16 %v825_v49, %v824_v62  ;;  %v601_v39 = vmul.f32 %v3358_v15, %v2782_v9  ;;  %v602_v55 = vmul.f32 %v3358_v15, %v2788_v61 }
 0x1f5   :  { %v1729_v37 = vpack.c.bf16 %v827_v56, %v826_v54  ;;  %v1734_v51 = vpack.c.bf16 %v829_v7, %v828_v42  ;;  %v603_v48 = vmul.f32 %v3358_v15, %v2794_v1  ;;  %v604_v52 = vmul.f32 %v3358_v15, %v2800_v5 }
 0x1f6   :  { %1720 = vst [vmem:[%s3869_s3] sm:$0xff] %v1719_v58   ;;  %1991 = vst [vmem:[%s3869_s3 + $0x8] sm:$0xff] %v1724_v11   ;;  %v719_v9 = vadd.f32 %v3363_v47, %v601_v39  ;;  %v720_v61 = vadd.f32 %v3363_v47, %v602_v55  ;;  %v605_v60 = vmul.f32 %v3358_v15, %v2806_v6 }
 0x1f7   :  { %v606_v1 = vmul.f32 %v3358_v15, %v2812_v17  ;;  %1992 = vst [vmem:[%s3869_s3 + $0x10] sm:$0xff] %v1729_v37   ;;  %1993 = vst [vmem:[%s3869_s3 + $0x18] sm:$0xff] %v1734_v51   ;;  %v721_v5 = vadd.f32 %v3363_v47, %v603_v48  ;;  %v722_v21 = vadd.f32 %v3363_v47, %v604_v52 }
 0x1f8   :  { %v607_v25 = vmul.f32 %v3358_v15, %v2818_v63  ;;  %v608_v6 = vmul.f32 %v3358_v15, %v2824_v13  ;;  %v830_v31 = vmax.f32 %v719_v9, 0.0  ;;  %v831_v17 = vmax.f32 %v720_v61, 0.0 }
 0x1f9   :  { %v723_v33 = vadd.f32 %v3363_v47, %v605_v60  ;;  %v724_v53 = vadd.f32 %v3363_v47, %v606_v1  ;;  %v832_v40 = vmax.f32 %v721_v5, 0.0  ;;  %v833_v0 = vmax.f32 %v722_v21, 0.0 }
 0x1fa   :  { %v725_v2 = vadd.f32 %v3363_v47, %v607_v25  ;;  %v726_v3 = vadd.f32 %v3363_v47, %v608_v6  ;;  %v1739_v29 = vpack.c.bf16 %v831_v17, %v830_v31  ;;  %v609_v63 = vmul.f32 %v3358_v15, %v2830_v4 }
 0x1fb   :  { %v834_v19 = vmax.f32 %v723_v33, 0.0  ;;  %v835_v62 = vmax.f32 %v724_v53, 0.0  ;;  %v1744_v49 = vpack.c.bf16 %v833_v0, %v832_v40  ;;  %v610_v56 = vmul.f32 %v3358_v15, %v2836_v45 }
 0x1fc   :  { %v836_v13 = vmax.f32 %v725_v2, 0.0  ;;  %v837_v54 = vmax.f32 %v726_v3, 0.0  ;;  %1994 = vst [vmem:[%s3869_s3 + $0x20] sm:$0xff] %v1739_v29   ;;  %v727_v7 = vadd.f32 %v3363_v47, %v609_v63  ;;  %v611_v58 = vmul.f32 %v3358_v15, %v2842_v8 }
 0x1fd   :  { %v1749_v42 = vpack.c.bf16 %v835_v62, %v834_v19  ;;  %v612_v11 = vmul.f32 %v3358_v15, %v2848_v10  ;;  %1995 = vst [vmem:[%s3869_s3 + $0x28] sm:$0xff] %v1744_v49   ;;  %v728_v45 = vadd.f32 %v3363_v47, %v610_v56  ;;  %v613_v39 = vmul.f32 %v3358_v15, %v2854_v12 }
 0x1fe   :  { %v1754_v4 = vpack.c.bf16 %v837_v54, %v836_v13  ;;  %v614_v55 = vmul.f32 %v3358_v15, %v2860_v14  ;;  %v838_v8 = vmax.f32 %v727_v7, 0.0  ;;  %v729_v10 = vadd.f32 %v3363_v47, %v611_v58 }
 0x1ff   :  { %1996 = vst [vmem:[%s3869_s3 + $0x30] sm:$0xff] %v1749_v42   ;;  %v730_v37 = vadd.f32 %v3363_v47, %v612_v11  ;;  %v615_v51 = vmul.f32 %v3358_v15, %v2866_v16  ;;  %v839_v12 = vmax.f32 %v728_v45, 0.0  ;;  %v731_v48 = vadd.f32 %v3363_v47, %v613_v39 }
 0x200   :  { %1997 = vst [vmem:[%s3869_s3 + $0x38] sm:$0xff] %v1754_v4   ;;  %v732_v14 = vadd.f32 %v3363_v47, %v614_v55  ;;  %v616_v52 = vmul.f32 %v3358_v15, %v2872_v18  ;;  %v840_v9 = vmax.f32 %v729_v10, 0.0  ;;  %v617_v1 = vmul.f32 %v3358_v15, %v2878_v20  ;;  %v4188_v10 = vld [vmem:[#allocation69_spill] sm:$0xff] }
 0x201   :  { %v841_v61 = vmax.f32 %v730_v37, 0.0  ;;  %v733_v60 = vadd.f32 %v3363_v47, %v615_v51  ;;  %v1759_v16 = vpack.c.bf16 %v839_v12, %v838_v8  ;;  %v842_v5 = vmax.f32 %v731_v48, 0.0  ;;  %v4187_v8 = vld [vmem:[#allocation68_spill] sm:$0xff]  ;;  %v4189_v12 = vld [vmem:[#allocation70_spill] sm:$0xff] }
 0x202   :  { %v843_v21 = vmax.f32 %v732_v14, 0.0  ;;  %v734_v25 = vadd.f32 %v3363_v47, %v616_v52  ;;  %v618_v17 = vmul.f32 %v3358_v15, %v2884_v22  ;;  %v735_v33 = vadd.f32 %v3363_v47, %v617_v1  ;;  %v4190_v14 = vld [vmem:[#allocation71_spill] sm:$0xff]  ;;  %v4191_v1 = vld [vmem:[#allocation2_spill] sm:$0xff] }
 0x203   :  { %v1764_v6 = vpack.c.bf16 %v841_v61, %v840_v9  ;;  %v844_v31 = vmax.f32 %v733_v60, 0.0  ;;  %1998 = vst [vmem:[%s3869_s3 + $0x40] sm:$0xff] %v1759_v16   ;;  %v619_v20 = vmul.f32 %v3358_v15, %v2890_v24  ;;  %v620_v40 = vmul.f32 %v3358_v15, %v2896_v26 }
 0x204   :  { %v1769_v18 = vpack.c.bf16 %v843_v21, %v842_v5  ;;  %v845_v53 = vmax.f32 %v734_v25, 0.0  ;;  %v736_v22 = vadd.f32 %v3363_v47, %v618_v17  ;;  %v846_v0 = vmax.f32 %v735_v33, 0.0 }
 0x205   :  { %1999 = vst [vmem:[%s3869_s3 + $0x48] sm:$0xff] %v1764_v6   ;;  %v621_v2 = vmul.f32 %v3358_v15, %v2902_v28  ;;  %v622_v3 = vmul.f32 %v3358_v15, %v2908_v30  ;;  %v737_v26 = vadd.f32 %v3363_v47, %v619_v20  ;;  %v738_v29 = vadd.f32 %v3363_v47, %v620_v40  ;;  %v4192_v6 = vld [vmem:[#allocation3_spill] sm:$0xff] }
 0x206   :  { %2000 = vst [vmem:[%s3869_s3 + $0x50] sm:$0xff] %v1769_v18   ;;  %v1774_v24 = vpack.c.bf16 %v845_v53, %v844_v31  ;;  %v623_v19 = vmul.f32 %v3358_v15, %v2914_v32  ;;  %v847_v62 = vmax.f32 %v736_v22, 0.0  ;;  %v624_v30 = vmul.f32 %v3358_v15, %v2920_v34  ;;  %v4193_v53 = vld [vmem:[#allocation4_spill] sm:$0xff] }
 0x207   :  { %v739_v63 = vadd.f32 %v3363_v47, %v621_v2  ;;  %v740_v28 = vadd.f32 %v3363_v47, %v622_v3  ;;  %v848_v49 = vmax.f32 %v737_v26, 0.0  ;;  %v849_v13 = vmax.f32 %v738_v29, 0.0  ;;  %v4194_v26 = vld [vmem:[#allocation5_spill] sm:$0xff] }
 0x208   :  { %2001 = vst [vmem:[%s3869_s3 + $0x58] sm:$0xff] %v1774_v24   ;;  %v741_v54 = vadd.f32 %v3363_v47, %v623_v19  ;;  %v625_v56 = vmul.f32 %v3358_v15, %v2926_v36  ;;  %v1779_v32 = vpack.c.bf16 %v847_v62, %v846_v0  ;;  %v742_v58 = vadd.f32 %v3363_v47, %v624_v30 }
 0x209   :  { %v850_v42 = vmax.f32 %v739_v63, 0.0  ;;  %v851_v7 = vmax.f32 %v740_v28, 0.0  ;;  %v1784_v11 = vpack.c.bf16 %v849_v13, %v848_v49  ;;  %v626_v34 = vmul.f32 %v3358_v15, %v2932_v38  ;;  %v4195_v28 = vld [vmem:[#allocation6_spill] sm:$0xff]  ;;  %v4196_v49 = vld [vmem:[#allocation7_spill] sm:$0xff] }
 0x20a   :  { %v852_v4 = vmax.f32 %v741_v54, 0.0  ;;  %v743_v45 = vadd.f32 %v3363_v47, %v625_v56  ;;  %2002 = vst [vmem:[%s3869_s3 + $0x60] sm:$0xff] %v1779_v32   ;;  %v853_v55 = vmax.f32 %v742_v58, 0.0  ;;  %v627_v36 = vmul.f32 %v3358_v15, %v4187_v8  ;;  %v4197_v32 = vld [vmem:[#allocation8_spill] sm:$0xff] }
 0x20b   :  { %v1789_v39 = vpack.c.bf16 %v851_v7, %v850_v42  ;;  %v628_v37 = vmul.f32 %v3358_v15, %v4188_v10  ;;  %2003 = vst [vmem:[%s3869_s3 + $0x68] sm:$0xff] %v1784_v11   ;;  %v744_v38 = vadd.f32 %v3363_v47, %v626_v34  ;;  %v629_v48 = vmul.f32 %v3358_v15, %v4189_v12  ;;  %v4198_v7 = vld [vmem:[#allocation9_spill] sm:$0xff]  ;;  %v4200_v10 = vld [vmem:[#allocation11_spill] sm:$0xff] }
 0x20c   :  { %v854_v51 = vmax.f32 %v743_v45, 0.0  ;;  %v630_v52 = vmul.f32 %v3358_v15, %v4190_v14  ;;  %v1794_v9 = vpack.c.bf16 %v853_v55, %v852_v4  ;;  %v745_v61 = vadd.f32 %v3363_v47, %v627_v36  ;;  %v4199_v45 = vld [vmem:[#allocation10_spill] sm:$0xff] }
 0x20d   :  { %2004 = vst [vmem:[%s3869_s3 + $0x70] sm:$0xff] %v1789_v39   ;;  %v746_v60 = vadd.f32 %v3363_v47, %v628_v37  ;;  %v631_v16 = vmul.f32 %v3358_v15, %v4191_v1  ;;  %v855_v5 = vmax.f32 %v744_v38, 0.0  ;;  %v747_v21 = vadd.f32 %v3363_v47, %v629_v48  ;;  %v4201_v48 = vld [vmem:[#allocation12_spill] sm:$0xff] }
 0x20e   :  { %v748_v25 = vadd.f32 %v3363_v47, %v630_v52  ;;  %v632_v31 = vmul.f32 %v3358_v15, %v4192_v6  ;;  %2005 = vst [vmem:[%s3869_s3 + $0x78] sm:$0xff] %v1794_v9   ;;  %v856_v17 = vmax.f32 %v745_v61, 0.0  ;;  %v633_v20 = vmul.f32 %v3358_v15, %v4193_v53 }
 0x20f   :  { %v857_v33 = vmax.f32 %v746_v60, 0.0  ;;  %v749_v18 = vadd.f32 %v3363_v47, %v631_v16  ;;  %v1799_v40 = vpack.c.bf16 %v855_v5, %v854_v51  ;;  %v858_v22 = vmax.f32 %v747_v21, 0.0  ;;  %v4202_v5 = vld [vmem:[#allocation13_spill] sm:$0xff] }
 0x210   :  { %v859_v0 = vmax.f32 %v748_v25, 0.0  ;;  %v750_v2 = vadd.f32 %v3363_v47, %v632_v31  ;;  %v634_v29 = vmul.f32 %v3358_v15, %v4194_v26  ;;  %v751_v19 = vadd.f32 %v3363_v47, %v633_v20 }
 0x211   :  { %v1804_v3 = vpack.c.bf16 %v857_v33, %v856_v17  ;;  %v860_v24 = vmax.f32 %v749_v18, 0.0  ;;  %2006 = vst [vmem:[%s3869_s3 + $0x80] sm:$0xff] %v1799_v40   ;;  %v635_v30 = vmul.f32 %v3358_v15, %v4195_v28  ;;  %v636_v13 = vmul.f32 %v3358_v15, %v4196_v49  ;;  %v4203_v17 = vld [vmem:[#allocation14_spill] sm:$0xff]  ;;  %v4204_v18 = vld [vmem:[#allocation15_spill] sm:$0xff] }
 0x212   :  { %v1809_v62 = vpack.c.bf16 %v859_v0, %v858_v22  ;;  %v861_v63 = vmax.f32 %v750_v2, 0.0  ;;  %v752_v54 = vadd.f32 %v3363_v47, %v634_v29  ;;  %v862_v56 = vmax.f32 %v751_v19, 0.0  ;;  %v4205_v22 = vld [vmem:[#allocation16_spill] sm:$0xff]  ;;  %v4206_v2 = vld [vmem:[#allocation17_spill] sm:$0xff]  ;;  %v4207_v19 = vld [vmem:[#allocation18_spill] sm:$0xff] }
 0x213   :  { %2007 = vst [vmem:[%s3869_s3 + $0x88] sm:$0xff] %v1804_v3   ;;  %v637_v42 = vmul.f32 %v3358_v15, %v4197_v32  ;;  %v638_v58 = vmul.f32 %v3358_v15, %v4198_v7  ;;  %v753_v4 = vadd.f32 %v3363_v47, %v635_v30  ;;  %v754_v34 = vadd.f32 %v3363_v47, %v636_v13  ;;  %v4208_v49 = vld [vmem:[#allocation19_spill] sm:$0xff] }
 0x214   :  { %2008 = vst [vmem:[%s3869_s3 + $0x90] sm:$0xff] %v1809_v62   ;;  %v1814_v11 = vpack.c.bf16 %v861_v63, %v860_v24  ;;  %v639_v39 = vmul.f32 %v3358_v15, %v4199_v45  ;;  %v863_v55 = vmax.f32 %v752_v54, 0.0  ;;  %v640_v37 = vmul.f32 %v3358_v15, %v4200_v10 }
 0x215   :  { %v755_v8 = vadd.f32 %v3363_v47, %v637_v42  ;;  %v756_v36 = vadd.f32 %v3363_v47, %v638_v58  ;;  %v864_v38 = vmax.f32 %v753_v4, 0.0  ;;  %v865_v51 = vmax.f32 %v754_v34, 0.0  ;;  %v4209_v42 = vld [vmem:[#allocation20_spill] sm:$0xff] }
 0x216   :  { %2009 = vst [vmem:[%s3869_s3 + $0x98] sm:$0xff] %v1814_v11   ;;  %v757_v12 = vadd.f32 %v3363_v47, %v639_v39  ;;  %v641_v14 = vmul.f32 %v3358_v15, %v4201_v48  ;;  %v1819_v52 = vpack.c.bf16 %v863_v55, %v862_v56  ;;  %v758_v60 = vadd.f32 %v3363_v47, %v640_v37  ;;  %v4210_v55 = vld [vmem:[#allocation21_spill] sm:$0xff] }
 0x217   :  { %v866_v9 = vmax.f32 %v755_v8, 0.0  ;;  %v867_v61 = vmax.f32 %v756_v36, 0.0  ;;  %v1824_v1 = vpack.c.bf16 %v865_v51, %v864_v38  ;;  %v642_v21 = vmul.f32 %v3358_v15, %v4202_v5  ;;  %v4211_v38 = vld [vmem:[#allocation22_spill] sm:$0xff] }
 0x218   :  { %v868_v16 = vmax.f32 %v757_v12, 0.0  ;;  %v759_v25 = vadd.f32 %v3363_v47, %v641_v14  ;;  %2010 = vst [vmem:[%s3869_s3 + $0xa0] sm:$0xff] %v1819_v52   ;;  %v869_v31 = vmax.f32 %v758_v60, 0.0  ;;  %v643_v33 = vmul.f32 %v3358_v15, %v4203_v17  ;;  %v4212_v12 = vld [vmem:[#allocation23_spill] sm:$0xff]  ;;  %v4214_v60 = vld [vmem:[#allocation25_spill] sm:$0xff] }
 0x219   :  { %v1829_v6 = vpack.c.bf16 %v867_v61, %v866_v9  ;;  %v644_v53 = vmul.f32 %v3358_v15, %v4204_v18  ;;  %2011 = vst [vmem:[%s3869_s3 + $0xa8] sm:$0xff] %v1824_v1   ;;  %v760_v20 = vadd.f32 %v3363_v47, %v642_v21  ;;  %v645_v0 = vmul.f32 %v3358_v15, %v4205_v22  ;;  %v4213_v9 = vld [vmem:[#allocation24_spill] sm:$0xff]  ;;  %v4216_v18 = vld [vmem:[#allocation27_spill] sm:$0xff] }
 0x21a   :  { %v870_v40 = vmax.f32 %v759_v25, 0.0  ;;  %v646_v3 = vmul.f32 %v3358_v15, %v4206_v2  ;;  %v1834_v24 = vpack.c.bf16 %v869_v31, %v868_v16  ;;  %v761_v26 = vadd.f32 %v3363_v47, %v643_v33  ;;  %v4215_v25 = vld [vmem:[#allocation26_spill] sm:$0xff] }
 0x21b   :  { %2012 = vst [vmem:[%s3869_s3 + $0xb0] sm:$0xff] %v1829_v6   ;;  %v762_v29 = vadd.f32 %v3363_v47, %v644_v53  ;;  %v647_v62 = vmul.f32 %v3358_v15, %v4207_v19  ;;  %v871_v63 = vmax.f32 %v760_v20, 0.0  ;;  %v763_v28 = vadd.f32 %v3363_v47, %v645_v0  ;;  %v4217_v0 = vld [vmem:[#allocation28_spill] sm:$0xff] }
 0x21c   :  { %v764_v30 = vadd.f32 %v3363_v47, %v646_v3  ;;  %v648_v13 = vmul.f32 %v3358_v15, %v4208_v49  ;;  %2013 = vst [vmem:[%s3869_s3 + $0xb8] sm:$0xff] %v1834_v24   ;;  %v872_v54 = vmax.f32 %v761_v26, 0.0  ;;  %v649_v7 = vmul.f32 %v3358_v15, %v4209_v42 }
 0x21d   :  { %v873_v56 = vmax.f32 %v762_v29, 0.0  ;;  %v765_v32 = vadd.f32 %v3363_v47, %v647_v62  ;;  %v1839_v58 = vpack.c.bf16 %v871_v63, %v870_v40  ;;  %v874_v11 = vmax.f32 %v763_v28, 0.0  ;;  %v4218_v63 = vld [vmem:[#allocation29_spill] sm:$0xff] }
 0x21e   :  { %v875_v4 = vmax.f32 %v764_v30, 0.0  ;;  %v766_v34 = vadd.f32 %v3363_v47, %v648_v13  ;;  %v650_v8 = vmul.f32 %v3358_v15, %v4210_v55  ;;  %v767_v36 = vadd.f32 %v3363_v47, %v649_v7 }
 0x21f   :  { %v1844_v45 = vpack.c.bf16 %v873_v56, %v872_v54  ;;  %v876_v39 = vmax.f32 %v765_v32, 0.0  ;;  %2014 = vst [vmem:[%s3869_s3 + $0xc0] sm:$0xff] %v1839_v58   ;;  %v651_v51 = vmul.f32 %v3358_v15, %v4211_v38  ;;  %v652_v48 = vmul.f32 %v3358_v15, %v4212_v12  ;;  %v4219_v54 = vld [vmem:[#allocation30_spill] sm:$0xff]  ;;  %v4220_v32 = vld [vmem:[#allocation31_spill] sm:$0xff] }
 0x220   :  { %v1849_v10 = vpack.c.bf16 %v875_v4, %v874_v11  ;;  %v877_v37 = vmax.f32 %v766_v34, 0.0  ;;  %v768_v14 = vadd.f32 %v3363_v47, %v650_v8  ;;  %v878_v52 = vmax.f32 %v767_v36, 0.0  ;;  %v4221_v11 = vld [vmem:[#allocation32_spill] sm:$0xff]  ;;  %v4222_v34 = vld [vmem:[#allocation33_spill] sm:$0xff]  ;;  %v4223_v36 = vld [vmem:[#allocation34_spill] sm:$0xff] }
 0x221   :  { %2015 = vst [vmem:[%s3869_s3 + $0xc8] sm:$0xff] %v1844_v45   ;;  %v653_v61 = vmul.f32 %v3358_v15, %v4213_v9  ;;  %v654_v1 = vmul.f32 %v3358_v15, %v4214_v60  ;;  %v769_v5 = vadd.f32 %v3363_v47, %v651_v51  ;;  %v770_v21 = vadd.f32 %v3363_v47, %v652_v48  ;;  %v4224_v12 = vld [vmem:[#allocation35_spill] sm:$0xff] }
 0x222   :  { %2016 = vst [vmem:[%s3869_s3 + $0xd0] sm:$0xff] %v1849_v10   ;;  %v1854_v16 = vpack.c.bf16 %v877_v37, %v876_v39  ;;  %v655_v6 = vmul.f32 %v3358_v15, %v4215_v25  ;;  %v879_v31 = vmax.f32 %v768_v14, 0.0  ;;  %v656_v53 = vmul.f32 %v3358_v15, %v4216_v18 }
 0x223   :  { %v771_v17 = vadd.f32 %v3363_v47, %v653_v61  ;;  %v772_v33 = vadd.f32 %v3363_v47, %v654_v1  ;;  %v880_v20 = vmax.f32 %v769_v5, 0.0  ;;  %v881_v40 = vmax.f32 %v770_v21, 0.0  ;;  %v4225_v61 = vld [vmem:[#allocation36_spill] sm:$0xff] }
 0x224   :  { %2017 = vst [vmem:[%s3869_s3 + $0xd8] sm:$0xff] %v1854_v16   ;;  %v773_v22 = vadd.f32 %v3363_v47, %v655_v6  ;;  %v657_v2 = vmul.f32 %v3358_v15, %v4217_v0  ;;  %v1859_v3 = vpack.c.bf16 %v879_v31, %v878_v52  ;;  %v774_v29 = vadd.f32 %v3363_v47, %v656_v53  ;;  %v4226_v31 = vld [vmem:[#allocation37_spill] sm:$0xff] }
 0x225   :  { %v882_v24 = vmax.f32 %v771_v17, 0.0  ;;  %v883_v26 = vmax.f32 %v772_v33, 0.0  ;;  %v1864_v19 = vpack.c.bf16 %v881_v40, %v880_v20  ;;  %v658_v28 = vmul.f32 %v3358_v15, %v4218_v63  ;;  %v4227_v20 = vld [vmem:[#allocation38_spill] sm:$0xff] }
 0x226   :  { %v884_v62 = vmax.f32 %v773_v22, 0.0  ;;  %v775_v30 = vadd.f32 %v3363_v47, %v657_v2  ;;  %2018 = vst [vmem:[%s3869_s3 + $0xe0] sm:$0xff] %v1859_v3   ;;  %v885_v13 = vmax.f32 %v774_v29, 0.0  ;;  %v659_v56 = vmul.f32 %v3358_v15, %v4219_v54  ;;  %v4228_v22 = vld [vmem:[#allocation39_spill] sm:$0xff]  ;;  %v4230_v29 = vld [vmem:[#allocation41_spill] sm:$0xff] }
 0x227   :  { %v1869_v49 = vpack.c.bf16 %v883_v26, %v882_v24  ;;  %v660_v42 = vmul.f32 %v3358_v15, %v4220_v32  ;;  %2019 = vst [vmem:[%s3869_s3 + $0xe8] sm:$0xff] %v1864_v19   ;;  %v776_v7 = vadd.f32 %v3363_v47, %v658_v28  ;;  %v661_v4 = vmul.f32 %v3358_v15, %v4221_v11  ;;  %v4229_v24 = vld [vmem:[#allocation40_spill] sm:$0xff]  ;;  %v4232_v32 = vld [vmem:[#allocation43_spill] sm:$0xff] }
 0x228   :  { %v886_v58 = vmax.f32 %v775_v30, 0.0  ;;  %v662_v45 = vmul.f32 %v3358_v15, %v4222_v34  ;;  %v1874_v39 = vpack.c.bf16 %v885_v13, %v884_v62  ;;  %v777_v55 = vadd.f32 %v3363_v47, %v659_v56  ;;  %v4231_v30 = vld [vmem:[#allocation42_spill] sm:$0xff] }
 0x229   :  { %2020 = vst [vmem:[%s3869_s3 + $0xf0] sm:$0xff] %v1869_v49   ;;  %v778_v8 = vadd.f32 %v3363_v47, %v660_v42  ;;  %v663_v10 = vmul.f32 %v3358_v15, %v4223_v36  ;;  %v887_v37 = vmax.f32 %v776_v7, 0.0  ;;  %v779_v38 = vadd.f32 %v3363_v47, %v661_v4  ;;  %v4233_v4 = vld [vmem:[#allocation44_spill] sm:$0xff] }
 0x22a   :  { %v780_v51 = vadd.f32 %v3363_v47, %v662_v45  ;;  %v664_v48 = vmul.f32 %v3358_v15, %v4224_v12  ;;  %2021 = vst [vmem:[%s3869_s3 + $0xf8] sm:$0xff] %v1874_v39   ;;  %v888_v14 = vmax.f32 %v777_v55, 0.0  ;;  %v665_v60 = vmul.f32 %v3358_v15, %v4225_v61 }
 0x22b   :  { %v889_v52 = vmax.f32 %v778_v8, 0.0  ;;  %v781_v9 = vadd.f32 %v3363_v47, %v663_v10  ;;  %v1879_v1 = vpack.c.bf16 %v887_v37, %v886_v58  ;;  %v890_v16 = vmax.f32 %v779_v38, 0.0  ;;  %v4234_v37 = vld [vmem:[#allocation45_spill] sm:$0xff] }
 0x22c   :  { %v891_v5 = vmax.f32 %v780_v51, 0.0  ;;  %v782_v21 = vadd.f32 %v3363_v47, %v664_v48  ;;  %v666_v17 = vmul.f32 %v3358_v15, %v4226_v31  ;;  %v783_v33 = vadd.f32 %v3363_v47, %v665_v60 }
 0x22d   :  { %v1884_v25 = vpack.c.bf16 %v889_v52, %v888_v14  ;;  %v892_v6 = vmax.f32 %v781_v9, 0.0  ;;  %2022 = vst [vmem:[%s3869_s3 + $0x100] sm:$0xff] %v1879_v1   ;;  %v667_v40 = vmul.f32 %v3358_v15, %v4227_v20  ;;  %v668_v0 = vmul.f32 %v3358_v15, %v4228_v22  ;;  %v4235_v14 = vld [vmem:[#allocation46_spill] sm:$0xff]  ;;  %v4236_v9 = vld [vmem:[#allocation47_spill] sm:$0xff] }
 0x22e   :  { %v1889_v18 = vpack.c.bf16 %v891_v5, %v890_v16  ;;  %v893_v53 = vmax.f32 %v782_v21, 0.0  ;;  %v784_v2 = vadd.f32 %v3363_v47, %v666_v17  ;;  %v894_v3 = vmax.f32 %v783_v33, 0.0  ;;  %v4237_v16 = vld [vmem:[#allocation48_spill] sm:$0xff]  ;;  %v4238_v21 = vld [vmem:[#allocation49_spill] sm:$0xff]  ;;  %v4239_v33 = vld [vmem:[#allocation50_spill] sm:$0xff] }
 0x22f   :  { %2023 = vst [vmem:[%s3869_s3 + $0x108] sm:$0xff] %v1884_v25   ;;  %v669_v26 = vmul.f32 %v3358_v15, %v4229_v24  ;;  %v670_v19 = vmul.f32 %v3358_v15, %v4230_v29  ;;  %v785_v63 = vadd.f32 %v3363_v47, %v667_v40  ;;  %v786_v28 = vadd.f32 %v3363_v47, %v668_v0  ;;  %v4240_v22 = vld [vmem:[#allocation51_spill] sm:$0xff] }
 0x230   :  { %2024 = vst [vmem:[%s3869_s3 + $0x110] sm:$0xff] %v1889_v18   ;;  %v1894_v62 = vpack.c.bf16 %v893_v53, %v892_v6  ;;  %v671_v49 = vmul.f32 %v3358_v15, %v4231_v30  ;;  %v895_v13 = vmax.f32 %v784_v2, 0.0  ;;  %v672_v42 = vmul.f32 %v3358_v15, %v4232_v32 }
 0x231   :  { %v787_v54 = vadd.f32 %v3363_v47, %v669_v26  ;;  %v788_v56 = vadd.f32 %v3363_v47, %v670_v19  ;;  %v896_v7 = vmax.f32 %v785_v63, 0.0  ;;  %v897_v58 = vmax.f32 %v786_v28, 0.0  ;;  %v4241_v26 = vld [vmem:[#allocation52_spill] sm:$0xff] }
 0x232   :  { %2025 = vst [vmem:[%s3869_s3 + $0x118] sm:$0xff] %v1894_v62   ;;  %v789_v11 = vadd.f32 %v3363_v47, %v671_v49  ;;  %v673_v34 = vmul.f32 %v3358_v15, %v4233_v4  ;;  %v1899_v45 = vpack.c.bf16 %v895_v13, %v894_v3  ;;  %v790_v8 = vadd.f32 %v3363_v47, %v672_v42  ;;  %v4242_v13 = vld [vmem:[#allocation53_spill] sm:$0xff] }
 0x233   :  { %v898_v39 = vmax.f32 %v787_v54, 0.0  ;;  %v899_v55 = vmax.f32 %v788_v56, 0.0  ;;  %v1904_v36 = vpack.c.bf16 %v897_v58, %v896_v7  ;;  %v674_v38 = vmul.f32 %v3358_v15, %v4234_v37  ;;  %v4243_v7 = vld [vmem:[#allocation54_spill] sm:$0xff] }
 0x234   :  { %v900_v10 = vmax.f32 %v789_v11, 0.0  ;;  %v791_v51 = vadd.f32 %v3363_v47, %v673_v34  ;;  %2026 = vst [vmem:[%s3869_s3 + $0x120] sm:$0xff] %v1899_v45   ;;  %v901_v48 = vmax.f32 %v790_v8, 0.0  ;;  %v675_v52 = vmul.f32 %v3358_v15, %v4235_v14  ;;  %v4244_v11 = vld [vmem:[#allocation55_spill] sm:$0xff] }
 0x235   :  { %v1909_v12 = vpack.c.bf16 %v899_v55, %v898_v39  ;;  %v676_v61 = vmul.f32 %v3358_v15, %v4236_v9  ;;  %2027 = vst [vmem:[%s3869_s3 + $0x128] sm:$0xff] %v1904_v36   ;;  %v792_v60 = vadd.f32 %v3363_v47, %v674_v38  ;;  %v677_v5 = vmul.f32 %v3358_v15, %v4237_v16  ;;  %v4245_v39 = vld [vmem:[#allocation56_spill] sm:$0xff]  ;;  %v4246_v38 = vld [vmem:[#allocation57_spill] sm:$0xff] }
 0x236   :  { %v902_v1 = vmax.f32 %v791_v51, 0.0  ;;  %v678_v25 = vmul.f32 %v3358_v15, %v4238_v21  ;;  %v1914_v6 = vpack.c.bf16 %v901_v48, %v900_v10  ;;  %v793_v31 = vadd.f32 %v3363_v47, %v675_v52  ;;  %v4247_v52 = vld [vmem:[#allocation58_spill] sm:$0xff] }
 0x237   :  { %2028 = vst [vmem:[%s3869_s3 + $0x130] sm:$0xff] %v1909_v12   ;;  %v794_v17 = vadd.f32 %v3363_v47, %v676_v61  ;;  %v679_v18 = vmul.f32 %v3358_v15, %v4239_v33  ;;  %v903_v53 = vmax.f32 %v792_v60, 0.0  ;;  %v795_v20 = vadd.f32 %v3363_v47, %v677_v5 }
 0x238   :  { %v796_v40 = vadd.f32 %v3363_v47, %v678_v25  ;;  %v680_v0 = vmul.f32 %v3358_v15, %v4240_v22  ;;  %2029 = vst [vmem:[%s3869_s3 + $0x138] sm:$0xff] %v1914_v6   ;;  %v904_v2 = vmax.f32 %v793_v31, 0.0  ;;  %v681_v29 = vmul.f32 %v3358_v15, %v4241_v26 }
 0x239   :  { %v905_v3 = vmax.f32 %v794_v17, 0.0  ;;  %v797_v24 = vadd.f32 %v3363_v47, %v679_v18  ;;  %v1919_v19 = vpack.c.bf16 %v903_v53, %v902_v1  ;;  %v906_v62 = vmax.f32 %v795_v20, 0.0 }
 0x23a   :  { %v907_v63 = vmax.f32 %v796_v40, 0.0  ;;  %v798_v28 = vadd.f32 %v3363_v47, %v680_v0  ;;  %v682_v54 = vmul.f32 %v3358_v15, %v4242_v13  ;;  %v799_v56 = vadd.f32 %v3363_v47, %v681_v29 }
 0x23b   :  { %v1924_v30 = vpack.c.bf16 %v905_v3, %v904_v2  ;;  %v908_v49 = vmax.f32 %v797_v24, 0.0  ;;  %2030 = vst [vmem:[%s3869_s3 + $0x140] sm:$0xff] %v1919_v19   ;;  %v683_v58 = vmul.f32 %v3358_v15, %v4243_v7  ;;  %v684_v4 = vmul.f32 %v3358_v15, %v4244_v11  ;;  %v4248_v3 = vld [vmem:[#allocation63_spill] sm:$0xff] }
 0x23c   :  { %v1929_v32 = vpack.c.bf16 %v907_v63, %v906_v62  ;;  %v909_v42 = vmax.f32 %v798_v28, 0.0  ;;  %v800_v34 = vadd.f32 %v3363_v47, %v682_v54  ;;  %v910_v45 = vmax.f32 %v799_v56, 0.0 }
 0x23d   :  { %2031 = vst [vmem:[%s3869_s3 + $0x148] sm:$0xff] %v1924_v30   ;;  %v685_v55 = vmul.f32 %v3358_v15, %v4245_v39  ;;  %v686_v8 = vmul.f32 %v3358_v15, %v3292_v50  ;;  %v801_v10 = vadd.f32 %v3363_v47, %v683_v58  ;;  %v802_v37 = vadd.f32 %v3363_v47, %v684_v4  ;;  %v4250_v4 = vld [vmem:[#allocation65_spill] sm:$0xff] }
 0x23e   :  { %2032 = vst [vmem:[%s3869_s3 + $0x150] sm:$0xff] %v1929_v32   ;;  %v1934_v36 = vpack.c.bf16 %v909_v42, %v908_v49  ;;  %v687_v51 = vmul.f32 %v3358_v15, %v4246_v38  ;;  %v911_v12 = vmax.f32 %v800_v34, 0.0  ;;  %v688_v50 = vmul.f32 %v3358_v15, %v4247_v52  ;;  %v4249_v42 = vld [vmem:[#allocation64_spill] sm:$0xff]  ;;  %v4251_v34 = vld [vmem:[#allocation66_spill] sm:$0xff] }
 0x23f   :  { %v803_v48 = vadd.f32 %v3363_v47, %v685_v55  ;;  %v804_v14 = vadd.f32 %v3363_v47, %v686_v8  ;;  %v912_v9 = vmax.f32 %v801_v10, 0.0  ;;  %v913_v61 = vmax.f32 %v802_v37, 0.0  ;;  %v4252_v8 = vld [vmem:[#allocation67_spill] sm:$0xff] }
 0x240   :  { %2033 = vst [vmem:[%s3869_s3 + $0x158] sm:$0xff] %v1934_v36   ;;  %v805_v60 = vadd.f32 %v3363_v47, %v687_v51  ;;  %v689_v1 = vmul.f32 %v3358_v15, %v3310_v44  ;;  %v1939_v16 = vpack.c.bf16 %v911_v12, %v910_v45  ;;  %v806_v25 = vadd.f32 %v3363_v47, %v688_v50  ;;  %v4253_v12 = vld [vmem:[#allocation59_spill] sm:$0xff] }
 0x241   :  { %v914_v5 = vmax.f32 %v803_v48, 0.0  ;;  %v915_v21 = vmax.f32 %v804_v14, 0.0  ;;  %v1944_v6 = vpack.c.bf16 %v913_v61, %v912_v9  ;;  %v690_v17 = vmul.f32 %v3358_v15, %v3316_v46 }
 0x242   :  { %v916_v31 = vmax.f32 %v805_v60, 0.0  ;;  %v807_v33 = vadd.f32 %v3363_v47, %v689_v1  ;;  %2034 = vst [vmem:[%s3869_s3 + $0x160] sm:$0xff] %v1939_v16   ;;  %v917_v53 = vmax.f32 %v806_v25, 0.0  ;;  %v691_v44 = vmul.f32 %v3358_v15, %v2701_v27 }
 0x243   :  { %v1949_v18 = vpack.c.bf16 %v915_v21, %v914_v5  ;;  %v692_v20 = vmul.f32 %v3358_v15, %v2704_v23  ;;  %2035 = vst [vmem:[%s3869_s3 + $0x168] sm:$0xff] %v1944_v6   ;;  %v808_v46 = vadd.f32 %v3363_v47, %v690_v17  ;;  %v693_v22 = vmul.f32 %v3358_v15, %v2707_v59 }
 0x244   :  { %v918_v40 = vmax.f32 %v807_v33, 0.0  ;;  %v694_v0 = vmul.f32 %v3358_v15, %v2710_v57  ;;  %v1954_v27 = vpack.c.bf16 %v917_v53, %v916_v31  ;;  %v809_v23 = vadd.f32 %v3363_v47, %v691_v44 }
 0x245   :  { %2036 = vst [vmem:[%s3869_s3 + $0x170] sm:$0xff] %v1949_v18   ;;  %v810_v2 = vadd.f32 %v3363_v47, %v692_v20  ;;  %v695_v24 = vmul.f32 %v3358_v15, %v4248_v3  ;;  %v919_v26 = vmax.f32 %v808_v46, 0.0  ;;  %v811_v29 = vadd.f32 %v3363_v47, %v693_v22 }
 0x246   :  { %v812_v59 = vadd.f32 %v3363_v47, %v694_v0  ;;  %v696_v57 = vmul.f32 %v3358_v15, %v2716_v43  ;;  %2037 = vst [vmem:[%s3869_s3 + $0x178] sm:$0xff] %v1954_v27   ;;  %v920_v19 = vmax.f32 %v809_v23, 0.0  ;;  %v697_v28 = vmul.f32 %v3358_v15, %v2719_v35 }
 0x247   :  { %v921_v62 = vmax.f32 %v810_v2, 0.0  ;;  %v813_v63 = vadd.f32 %v3363_v47, %v695_v24  ;;  %v1959_v30 = vpack.c.bf16 %v919_v26, %v918_v40  ;;  %v922_v49 = vmax.f32 %v811_v29, 0.0 }
 0x248   :  { %v923_v13 = vmax.f32 %v812_v59, 0.0  ;;  %v814_v54 = vadd.f32 %v3363_v47, %v696_v57  ;;  %v698_v43 = vmul.f32 %v3358_v15, %v4249_v42  ;;  %v815_v7 = vadd.f32 %v3363_v47, %v697_v28 }
 0x249   :  { %v1964_v56 = vpack.c.bf16 %v921_v62, %v920_v19  ;;  %v924_v32 = vmax.f32 %v813_v63, 0.0  ;;  %2038 = vst [vmem:[%s3869_s3 + $0x180] sm:$0xff] %v1959_v30   ;;  %v699_v35 = vmul.f32 %v3358_v15, %v4250_v4  ;;  %v700_v45 = vmul.f32 %v3358_v15, %v4251_v34 }
 0x24a   :  { %v1969_v58 = vpack.c.bf16 %v923_v13, %v922_v49  ;;  %v925_v11 = vmax.f32 %v814_v54, 0.0  ;;  %v816_v39 = vadd.f32 %v3363_v47, %v698_v43  ;;  %v926_v55 = vmax.f32 %v815_v7, 0.0 }
 0x24b   :  { %2039 = vst [vmem:[%s3869_s3 + $0x188] sm:$0xff] %v1964_v56   ;;  %v701_v36 = vmul.f32 %v3358_v15, %v4252_v8  ;;  %v702_v10 = vmul.f32 %v3358_v15, %v2734_v41  ;;  %v817_v38 = vadd.f32 %v3363_v47, %v699_v35  ;;  %v818_v51 = vadd.f32 %v3363_v47, %v700_v45 }
 0x24c   :  { %2040 = vst [vmem:[%s3869_s3 + $0x190] sm:$0xff] %v1969_v58   ;;  %v1974_v37 = vpack.c.bf16 %v925_v11, %v924_v32  ;;  %v703_v48 = vmul.f32 %v3358_v15, %v4253_v12  ;;  %v927_v14 = vmax.f32 %v816_v39, 0.0 }
 0x24d   :  { %v819_v52 = vadd.f32 %v3363_v47, %v701_v36  ;;  %v820_v50 = vadd.f32 %v3363_v47, %v702_v10  ;;  %v928_v41 = vmax.f32 %v817_v38, 0.0  ;;  %v929_v9 = vmax.f32 %v818_v51, 0.0 }
 0x24e   :  { %2041 = vst [vmem:[%s3869_s3 + $0x198] sm:$0xff] %v1974_v37   ;;  %v821_v61 = vadd.f32 %v3363_v47, %v703_v48  ;;  %v1979_v60 = vpack.c.bf16 %v927_v14, %v926_v55 }
 0x24f   :  { %v930_v1 = vmax.f32 %v819_v52, 0.0  ;;  %v931_v16 = vmax.f32 %v820_v50, 0.0  ;;  %v1984_v5 = vpack.c.bf16 %v929_v9, %v928_v41 }
 0x250   :  { %v932_v21 = vmax.f32 %v821_v61, 0.0  ;;  %2042 = vst [vmem:[%s3869_s3 + $0x1a0] sm:$0xff] %v1979_v60  }
 0x251   :  { %v1989_v15 = vpack.c.bf16 %v931_v16, %v930_v1  ;;  %2043 = vst [vmem:[%s3869_s3 + $0x1a8] sm:$0xff] %v1984_v5  }
 0x252   :  { %v1715_v25 = vpack.c.bf16 %v932_v21, %v932_v21 }
 0x253   :  { %2044 = vst [vmem:[%s3869_s3 + $0x1b0] sm:$0xff] %v1989_v15  }
 0x254   :  { %1488 = vst [vmem:[%s3869_s3 + $0x1b8] sm:$0x1] %v1715_v25 }

// kernel: generator_forward.13
= control target key start
LH: loop header
LB: loop body
LE: loop exit
PB: predicated region body
PF: predicated region fallthrough
CT: control target
= control target key end

     0   :  { %s1228_s9 = smov 0   ;;  %s1230_s10 = smov 0   ;;  %s1485_s0 = inlined_call_operand.vmem [shape: bf16[896,128], index: 0, kind: input, shape index: {}]   ;;  %s1486_s1 = inlined_call_operand.vmem [shape: bf16[128,256], index: 1, kind: input, shape index: {}]   ;;  %s1487_s2 = inlined_call_operand.vmem [shape: f32[896,256], index: 2, kind: output, shape index: {}]  }
   0x1   :  { %s1232_s11 = smov 0  }
   0x2 LB: > { %s24_s12 = sadd.s32 1, %s1206_s10  ;;  %p1044_p0 = scmp.ge.s32.totalorder %s1210_s11, 1  ;;  %s1210_s11 = sphi %s1232_s11, %s12_s11   ;;  %s1206_s10 = sphi %s1230_s10, %s1489_s10   ;;  %s1202_s9 = sphi %s1228_s9, %s1488_s9  }
   0x3   : > { %p26_p1 = scmp.ge.s32.totalorder %s24_s12, 2  ;;  %p138_p2 = scmp.lt.s32.totalorder %s1210_s11, 3 }
   0x5   : > { %s1491_s12 = smov (%p26_p1, %s24_s12), 0  ;;  %p139_p3 = pnand %p1044_p0, %p138_p2 }
   0x6   : > { %v1136_v0 = vld [vmem:[%s1486_s1 + $0x4] ss:$8 sps:$4 sm:$0xff] (!%p139_p3)   ;;  %s170_s15 = smul.u32 (!%p139_p3), 56, %s1202_s9  ;;  %v1138_v1 = vld [vmem:[%s1486_s1] ss:$8 sps:$4 sm:$0xff] (!%p139_p3)   ;;  %v1212_v2 = vmov (!%p139_p3), 0  }
   0x7   : > { %142 = sbr.rel (%p139_p3) target bundleno = 360 (0x168), region = 28  ;;  %547 = vmatprep.mubr.bf16.mxu0 (!%p139_p3), %v1212_v2  ;;  %687 = vmatprep.mubr.bf16.mxu1 (!%p139_p3), %v1212_v2  ;;  %v1139_v3 = vld [vmem:[%s1486_s1 + $0x14] ss:$8 sps:$4 sm:$0xff] (!%p139_p3)   ;;  %v1141_v4 = vld [vmem:[%s1486_s1 + $0x10] ss:$8 sps:$4 sm:$0xff] (!%p139_p3)  }
   0x8   : > { %515 = vmatprep.subr.bf16.mxu0 (!%p139_p3), %v1136_v0  ;;  %1095 = vmatprep.subr.bf16.mxu1 (!%p139_p3), %v1136_v0  ;;  %p171_p4 = scmp.lt.s32.totalorder (!%p139_p3), %s170_s15, 111  ;;  %v1142_v5 = vld [vmem:[%s1486_s1 + $0x24] ss:$8 sps:$4 sm:$0xff] (!%p139_p3)   ;;  %v1144_v6 = vld [vmem:[%s1486_s1 + $0x20] ss:$8 sps:$4 sm:$0xff] (!%p139_p3)  }
   0x9   : > { %516 = vmatpush1.bf16.msra.mxu0 (!%p139_p3), %v1138_v1  ;;  %1103 = vmatpush1.bf16.msra.mxu1 (!%p139_p3), %v1138_v1  ;;  %v1145_v7 = vld [vmem:[%s1486_s1 + $0x34] ss:$8 sps:$4 sm:$0xff] (!%p139_p3)   ;;  %v1147_v8 = vld [vmem:[%s1486_s1 + $0x30] ss:$8 sps:$4 sm:$0xff] (!%p139_p3)   ;;  %v1148_v9 = vld [vmem:[%s1486_s1 + $0x44] ss:$8 sps:$4 sm:$0xff] (!%p139_p3)  }
   0xa   : > { %517 = vmatprep.subr.bf16.mxu0 (!%p139_p3), %v1139_v3  ;;  %1096 = vmatprep.subr.bf16.mxu1 (!%p139_p3), %v1139_v3  ;;  %v1150_v10 = vld [vmem:[%s1486_s1 + $0x40] ss:$8 sps:$4 sm:$0xff] (!%p139_p3)   ;;  %v1151_v11 = vld [vmem:[%s1486_s1 + $0x54] ss:$8 sps:$4 sm:$0xff] (!%p139_p3)   ;;  %v1153_v12 = vld [vmem:[%s1486_s1 + $0x50] ss:$8 sps:$4 sm:$0xff] (!%p139_p3)  }
   0xb   : > { %v1154_v13 = vld [vmem:[%s1486_s1 + $0x64] ss:$8 sps:$4 sm:$0xff] (!%p139_p3)   ;;  %v1156_v14 = vld [vmem:[%s1486_s1 + $0x60] ss:$8 sps:$4 sm:$0xff] (!%p139_p3)   ;;  %v1157_v15 = vld [vmem:[%s1486_s1 + $0x74] ss:$8 sps:$4 sm:$0xff] (!%p139_p3)  }
   0xc   : > { %v1159_v16 = vld [vmem:[%s1486_s1 + $0x70] ss:$8 sps:$4 sm:$0xff] (!%p139_p3)  }
   0xd   : > { %518 = vmatpush1.bf16.msra.mxu0 (!%p139_p3), %v1141_v4  ;;  %1104 = vmatpush1.bf16.msra.mxu1 (!%p139_p3), %v1141_v4 }
   0xe   : > { %s1493_s15 = smov (!%p171_p4, %s170_s15), 111  ;;  %519 = vmatprep.subr.bf16.mxu0 %v1142_v5  ;;  %1097 = vmatprep.subr.bf16.mxu1 %v1142_v5 }
   0xf   : > { %s1045_s24 = sshll.u32 %s1493_s15, 2  ;;  %s1094_s26 = sshll.u32 %s1493_s15, 4 }
  0x10   : > { %s1275_s3 = scalar_lea.vmem %s1485_s0, %s1045_s24  ;;  %s1362_s29 = scalar_lea.vmem %s1487_s2, %s1094_s26 }
  0x11   : > { %520 = vmatpush1.bf16.msra.mxu0 %v1144_v6  ;;  %1105 = vmatpush1.bf16.msra.mxu1 %v1144_v6  ;;  %v1160_v17 = vld [vmem:[%s1275_s3] sm:$0xff]   ;;  %v1161_v18 = vld [vmem:[%s1275_s3 + $0x70] sm:$0xff]   ;;  %v1162_v19 = vld [vmem:[%s1275_s3 + $0x8] sm:$0xff]  }
  0x12   : > { %521 = vmatprep.subr.bf16.mxu0 %v1145_v7  ;;  %1098 = vmatprep.subr.bf16.mxu1 %v1145_v7  ;;  %v1163_v20 = vld [vmem:[%s1275_s3 + $0x78] sm:$0xff]   ;;  %v1164_v21 = vld [vmem:[%s1275_s3 + $0x10] sm:$0xff]   ;;  %v1165_v22 = vld [vmem:[%s1275_s3 + $0x80] sm:$0xff]  }
  0x13   : > { %v1166_v23 = vld [vmem:[%s1275_s3 + $0x18] sm:$0xff]   ;;  %v1167_v24 = vld [vmem:[%s1275_s3 + $0x88] sm:$0xff]   ;;  %v1168_v25 = vld [vmem:[%s1275_s3 + $0x20] sm:$0xff]  }
  0x14   : > { %v1169_v26 = vld [vmem:[%s1275_s3 + $0x90] sm:$0xff]   ;;  %v1170_v27 = vld [vmem:[%s1275_s3 + $0x28] sm:$0xff]   ;;  %v1171_v28 = vld [vmem:[%s1275_s3 + $0x98] sm:$0xff]  }
  0x15   : > { %522 = vmatpush1.bf16.msra.mxu0 %v1147_v8  ;;  %1106 = vmatpush1.bf16.msra.mxu1 %v1147_v8  ;;  %v1172_v29 = vld [vmem:[%s1275_s3 + $0x30] sm:$0xff]   ;;  %v1173_v30 = vld [vmem:[%s1275_s3 + $0xa0] sm:$0xff]   ;;  %v1174_v31 = vld [vmem:[%s1275_s3 + $0x38] sm:$0xff]  }
  0x16   : > { %523 = vmatprep.subr.bf16.mxu0 %v1148_v9  ;;  %1099 = vmatprep.subr.bf16.mxu1 %v1148_v9  ;;  %v1175_v32 = vld [vmem:[%s1275_s3 + $0xa8] sm:$0xff]   ;;  %v1176_v33 = vld [vmem:[%s1275_s3 + $0x40] sm:$0xff]   ;;  %v1177_v34 = vld [vmem:[%s1275_s3 + $0xb0] sm:$0xff]  }
  0x17   : > { %v1178_v35 = vld [vmem:[%s1275_s3 + $0x48] sm:$0xff]   ;;  %v1179_v36 = vld [vmem:[%s1275_s3 + $0xb8] sm:$0xff]   ;;  %v1180_v37 = vld [vmem:[%s1275_s3 + $0x50] sm:$0xff]  }
  0x18   : > { %v1181_v38 = vld [vmem:[%s1275_s3 + $0xc0] sm:$0xff]   ;;  %v1182_v39 = vld [vmem:[%s1275_s3 + $0x58] sm:$0xff]   ;;  %v1183_v40 = vld [vmem:[%s1275_s3 + $0xc8] sm:$0xff]  }
  0x19   : > { %524 = vmatpush1.bf16.msra.mxu0 %v1150_v10  ;;  %1107 = vmatpush1.bf16.msra.mxu1 %v1150_v10  ;;  %v1184_v41 = vld [vmem:[%s1275_s3 + $0x60] sm:$0xff]   ;;  %v1185_v42 = vld [vmem:[%s1275_s3 + $0xd0] sm:$0xff]   ;;  %v1186_v43 = vld [vmem:[%s1275_s3 + $0x68] sm:$0xff]  }
  0x1a   : > { %525 = vmatprep.subr.bf16.mxu0 %v1151_v11  ;;  %1100 = vmatprep.subr.bf16.mxu1 %v1151_v11  ;;  %v1187_v44 = vld [vmem:[%s1275_s3 + $0xd8] sm:$0xff]  }
  0x1d   : > { %526 = vmatpush1.bf16.msra.mxu0 %v1153_v12  ;;  %1108 = vmatpush1.bf16.msra.mxu1 %v1153_v12 }
  0x1e   : > { %527 = vmatprep.subr.bf16.mxu0 %v1154_v13  ;;  %1101 = vmatprep.subr.bf16.mxu1 %v1154_v13 }
  0x21   : > { %528 = vmatpush1.bf16.msra.mxu0 %v1156_v14  ;;  %1109 = vmatpush1.bf16.msra.mxu1 %v1156_v14 }
  0x22   : > { %529 = vmatprep.subr.bf16.mxu0 %v1157_v15  ;;  %1102 = vmatprep.subr.bf16.mxu1 %v1157_v15 }
  0x25   : > { %530 = vmatpush1.bf16.msra.mxu0 %v1159_v16  ;;  %1110 = vmatpush1.bf16.msra.mxu1 %v1159_v16 }
  0x28   : > { %548 = vmatmul.mubr.bf16.vlgmr.msra.gmra.mrb[0].mxu0 %v1160_v17  ;;  %688 = vmatmul.mubr.bf16.vlgmr.msra.gmra.mrb[0].mxu1 %v1161_v18 }
  0x29   : > { %557 = vmatprep.mubr.bf16.mxu0 %v1212_v2  ;;  %697 = vmatprep.mubr.bf16.mxu1 %v1212_v2 }
  0x30   : > { %558 = vmatmul.mubr.bf16.gmra.mrb[4].mxu0 %v1162_v19  ;;  %698 = vmatmul.mubr.bf16.gmra.mrb[4].mxu1 %v1163_v20 }
  0x31   : > { %567 = vmatprep.mubr.bf16.mxu0 %v1212_v2  ;;  %707 = vmatprep.mubr.bf16.mxu1 %v1212_v2 }
  0x38   : > { %568 = vmatmul.mubr.bf16.gmra.mrb[8].mxu0 %v1164_v21  ;;  %708 = vmatmul.mubr.bf16.gmra.mrb[8].mxu1 %v1165_v22 }
  0x39   : > { %577 = vmatprep.mubr.bf16.mxu0 %v1212_v2  ;;  %717 = vmatprep.mubr.bf16.mxu1 %v1212_v2 }
  0x40   : > { %578 = vmatmul.mubr.bf16.gmra.mrb[12].mxu0 %v1166_v23  ;;  %718 = vmatmul.mubr.bf16.gmra.mrb[12].mxu1 %v1167_v24 }
  0x41   : > { %587 = vmatprep.mubr.bf16.mxu0 %v1212_v2  ;;  %727 = vmatprep.mubr.bf16.mxu1 %v1212_v2 }
  0x48   : > { %588 = vmatmul.mubr.bf16.gmra.mrb[16].mxu0 %v1168_v25  ;;  %728 = vmatmul.mubr.bf16.gmra.mrb[16].mxu1 %v1169_v26 }
  0x49   : > { %597 = vmatprep.mubr.bf16.mxu0 %v1212_v2  ;;  %737 = vmatprep.mubr.bf16.mxu1 %v1212_v2 }
  0x50   : > { %598 = vmatmul.mubr.bf16.gmra.mrb[20].mxu0 %v1170_v27  ;;  %738 = vmatmul.mubr.bf16.gmra.mrb[20].mxu1 %v1171_v28 }
  0x51   : > { %607 = vmatprep.mubr.bf16.mxu0 %v1212_v2  ;;  %747 = vmatprep.mubr.bf16.mxu1 %v1212_v2 }
  0x58   : > { %608 = vmatmul.mubr.bf16.gmra.mrb[24].mxu0 %v1172_v29  ;;  %748 = vmatmul.mubr.bf16.gmra.mrb[24].mxu1 %v1173_v30 }
  0x59   : > { %617 = vmatprep.mubr.bf16.mxu0 %v1212_v2  ;;  %757 = vmatprep.mubr.bf16.mxu1 %v1212_v2 }
  0x60   : > { %618 = vmatmul.mubr.bf16.gmra.mrb[28].mxu0 %v1174_v31  ;;  %758 = vmatmul.mubr.bf16.gmra.mrb[28].mxu1 %v1175_v32 }
  0x61   : > { %627 = vmatprep.mubr.bf16.mxu0 %v1212_v2  ;;  %767 = vmatprep.mubr.bf16.mxu1 %v1212_v2 }
  0x68   : > { %628 = vmatmul.mubr.bf16.gmra.mrb[32].mxu0 %v1176_v33  ;;  %768 = vmatmul.mubr.bf16.gmra.mrb[32].mxu1 %v1177_v34 }
  0x69   : > { %637 = vmatprep.mubr.bf16.mxu0 %v1212_v2  ;;  %777 = vmatprep.mubr.bf16.mxu1 %v1212_v2 }
  0x70   : > { %638 = vmatmul.mubr.bf16.gmra.mrb[36].mxu0 %v1178_v35  ;;  %778 = vmatmul.mubr.bf16.gmra.mrb[36].mxu1 %v1179_v36 }
  0x71   : > { %647 = vmatprep.mubr.bf16.mxu0 %v1212_v2  ;;  %787 = vmatprep.mubr.bf16.mxu1 %v1212_v2 }
  0x78   : > { %648 = vmatmul.mubr.bf16.gmra.mrb[40].mxu0 %v1180_v37  ;;  %788 = vmatmul.mubr.bf16.gmra.mrb[40].mxu1 %v1181_v38 }
  0x79   : > { %657 = vmatprep.mubr.bf16.mxu0 %v1212_v2  ;;  %797 = vmatprep.mubr.bf16.mxu1 %v1212_v2 }
  0x80   : > { %658 = vmatmul.mubr.bf16.gmra.mrb[44].mxu0 %v1182_v39  ;;  %798 = vmatmul.mubr.bf16.gmra.mrb[44].mxu1 %v1183_v40 }
  0x81   : > { %667 = vmatprep.mubr.bf16.mxu0 %v1212_v2  ;;  %807 = vmatprep.mubr.bf16.mxu1 %v1212_v2 }
  0x88   : > { %668 = vmatmul.mubr.bf16.gmra.mrb[48].mxu0 %v1184_v41  ;;  %808 = vmatmul.mubr.bf16.gmra.mrb[48].mxu1 %v1185_v42 }
  0x89   : > { %677 = vmatprep.mubr.bf16.mxu0 %v1212_v2  ;;  %817 = vmatprep.mubr.bf16.mxu1 %v1212_v2 }
  0x90   : > { %678 = vmatmul.mubr.bf16.gmra.mrb[52].mxu0 %v1186_v43  ;;  %818 = vmatmul.mubr.bf16.gmra.mrb[52].mxu1 %v1187_v44 }
  0xfb   : > { %v549_v45 = vpop.f32.mrb[0].mxu0  ;;  %v689_v46 = vpop.f32.mrb[0].mxu1 }
  0xfc   : > { %828 = vst [vmem:[%s1362_s29] sm:$0xff] %v549_v45  ;;  %884 = vst [vmem:[%s1362_s29 + $0x1c0] sm:$0xff] %v689_v46  ;;  %v551_v47 = vpop.f32.mrb[1].mxu0  ;;  %v691_v48 = vpop.f32.mrb[1].mxu1 }
  0xfd   : > { %829 = vst [vmem:[%s1362_s29 + $0x8] sm:$0xff] %v551_v47  ;;  %885 = vst [vmem:[%s1362_s29 + $0x1c8] sm:$0xff] %v691_v48  ;;  %v553_v49 = vpop.f32.mrb[2].mxu0  ;;  %v693_v50 = vpop.f32.mrb[2].mxu1 }
  0xfe   : > { %830 = vst [vmem:[%s1362_s29 + $0x10] sm:$0xff] %v553_v49  ;;  %886 = vst [vmem:[%s1362_s29 + $0x1d0] sm:$0xff] %v693_v50  ;;  %v555_v51 = vpop.f32.mrb[3].mxu0  ;;  %v695_v52 = vpop.f32.mrb[3].mxu1 }
  0xff   : > { %831 = vst [vmem:[%s1362_s29 + $0x18] sm:$0xff] %v555_v51  ;;  %887 = vst [vmem:[%s1362_s29 + $0x1d8] sm:$0xff] %v695_v52 }
 0x103   : > { %v559_v53 = vpop.f32.mrb[4].mxu0  ;;  %v699_v54 = vpop.f32.mrb[4].mxu1 }
 0x104   : > { %832 = vst [vmem:[%s1362_s29 + $0x20] sm:$0xff] %v559_v53  ;;  %888 = vst [vmem:[%s1362_s29 + $0x1e0] sm:$0xff] %v699_v54  ;;  %v561_v55 = vpop.f32.mrb[5].mxu0  ;;  %v701_v56 = vpop.f32.mrb[5].mxu1 }
 0x105   : > { %833 = vst [vmem:[%s1362_s29 + $0x28] sm:$0xff] %v561_v55  ;;  %889 = vst [vmem:[%s1362_s29 + $0x1e8] sm:$0xff] %v701_v56  ;;  %v563_v57 = vpop.f32.mrb[6].mxu0  ;;  %v703_v58 = vpop.f32.mrb[6].mxu1 }
 0x106   : > { %834 = vst [vmem:[%s1362_s29 + $0x30] sm:$0xff] %v563_v57  ;;  %890 = vst [vmem:[%s1362_s29 + $0x1f0] sm:$0xff] %v703_v58  ;;  %v565_v59 = vpop.f32.mrb[7].mxu0  ;;  %v705_v60 = vpop.f32.mrb[7].mxu1 }
 0x107   : > { %835 = vst [vmem:[%s1362_s29 + $0x38] sm:$0xff] %v565_v59  ;;  %891 = vst [vmem:[%s1362_s29 + $0x1f8] sm:$0xff] %v705_v60 }
 0x10b   : > { %v569_v61 = vpop.f32.mrb[8].mxu0  ;;  %v709_v62 = vpop.f32.mrb[8].mxu1 }
 0x10c   : > { %836 = vst [vmem:[%s1362_s29 + $0x40] sm:$0xff] %v569_v61  ;;  %892 = vst [vmem:[%s1362_s29 + $0x200] sm:$0xff] %v709_v62  ;;  %v571_v63 = vpop.f32.mrb[9].mxu0  ;;  %v711_v0 = vpop.f32.mrb[9].mxu1 }
 0x10d   : > { %837 = vst [vmem:[%s1362_s29 + $0x48] sm:$0xff] %v571_v63  ;;  %893 = vst [vmem:[%s1362_s29 + $0x208] sm:$0xff] %v711_v0  ;;  %v573_v1 = vpop.f32.mrb[10].mxu0  ;;  %v713_v2 = vpop.f32.mrb[10].mxu1 }
 0x10e   : > { %838 = vst [vmem:[%s1362_s29 + $0x50] sm:$0xff] %v573_v1  ;;  %894 = vst [vmem:[%s1362_s29 + $0x210] sm:$0xff] %v713_v2  ;;  %v575_v3 = vpop.f32.mrb[11].mxu0  ;;  %v715_v4 = vpop.f32.mrb[11].mxu1 }
 0x10f   : > { %839 = vst [vmem:[%s1362_s29 + $0x58] sm:$0xff] %v575_v3  ;;  %895 = vst [vmem:[%s1362_s29 + $0x218] sm:$0xff] %v715_v4 }
 0x113   : > { %v579_v5 = vpop.f32.mrb[12].mxu0  ;;  %v719_v6 = vpop.f32.mrb[12].mxu1 }
 0x114   : > { %840 = vst [vmem:[%s1362_s29 + $0x60] sm:$0xff] %v579_v5  ;;  %896 = vst [vmem:[%s1362_s29 + $0x220] sm:$0xff] %v719_v6  ;;  %v581_v7 = vpop.f32.mrb[13].mxu0  ;;  %v721_v8 = vpop.f32.mrb[13].mxu1 }
 0x115   : > { %841 = vst [vmem:[%s1362_s29 + $0x68] sm:$0xff] %v581_v7  ;;  %897 = vst [vmem:[%s1362_s29 + $0x228] sm:$0xff] %v721_v8  ;;  %v583_v9 = vpop.f32.mrb[14].mxu0  ;;  %v723_v10 = vpop.f32.mrb[14].mxu1 }
 0x116   : > { %842 = vst [vmem:[%s1362_s29 + $0x70] sm:$0xff] %v583_v9  ;;  %898 = vst [vmem:[%s1362_s29 + $0x230] sm:$0xff] %v723_v10  ;;  %v585_v11 = vpop.f32.mrb[15].mxu0  ;;  %v725_v12 = vpop.f32.mrb[15].mxu1 }
 0x117   : > { %843 = vst [vmem:[%s1362_s29 + $0x78] sm:$0xff] %v585_v11  ;;  %899 = vst [vmem:[%s1362_s29 + $0x238] sm:$0xff] %v725_v12 }
 0x11b   : > { %v589_v13 = vpop.f32.mrb[16].mxu0  ;;  %v729_v14 = vpop.f32.mrb[16].mxu1 }
 0x11c   : > { %844 = vst [vmem:[%s1362_s29 + $0x80] sm:$0xff] %v589_v13  ;;  %900 = vst [vmem:[%s1362_s29 + $0x240] sm:$0xff] %v729_v14  ;;  %v591_v15 = vpop.f32.mrb[17].mxu0  ;;  %v731_v16 = vpop.f32.mrb[17].mxu1 }
 0x11d   : > { %845 = vst [vmem:[%s1362_s29 + $0x88] sm:$0xff] %v591_v15  ;;  %901 = vst [vmem:[%s1362_s29 + $0x248] sm:$0xff] %v731_v16  ;;  %v593_v17 = vpop.f32.mrb[18].mxu0  ;;  %v733_v18 = vpop.f32.mrb[18].mxu1 }
 0x11e   : > { %846 = vst [vmem:[%s1362_s29 + $0x90] sm:$0xff] %v593_v17  ;;  %902 = vst [vmem:[%s1362_s29 + $0x250] sm:$0xff] %v733_v18  ;;  %v595_v19 = vpop.f32.mrb[19].mxu0  ;;  %v735_v20 = vpop.f32.mrb[19].mxu1 }
 0x11f   : > { %847 = vst [vmem:[%s1362_s29 + $0x98] sm:$0xff] %v595_v19  ;;  %903 = vst [vmem:[%s1362_s29 + $0x258] sm:$0xff] %v735_v20 }
 0x123   : > { %v599_v21 = vpop.f32.mrb[20].mxu0  ;;  %v739_v22 = vpop.f32.mrb[20].mxu1 }
 0x124   : > { %848 = vst [vmem:[%s1362_s29 + $0xa0] sm:$0xff] %v599_v21  ;;  %904 = vst [vmem:[%s1362_s29 + $0x260] sm:$0xff] %v739_v22  ;;  %v601_v23 = vpop.f32.mrb[21].mxu0  ;;  %v741_v24 = vpop.f32.mrb[21].mxu1 }
 0x125   : > { %849 = vst [vmem:[%s1362_s29 + $0xa8] sm:$0xff] %v601_v23  ;;  %905 = vst [vmem:[%s1362_s29 + $0x268] sm:$0xff] %v741_v24  ;;  %v603_v25 = vpop.f32.mrb[22].mxu0  ;;  %v743_v26 = vpop.f32.mrb[22].mxu1 }
 0x126   : > { %850 = vst [vmem:[%s1362_s29 + $0xb0] sm:$0xff] %v603_v25  ;;  %906 = vst [vmem:[%s1362_s29 + $0x270] sm:$0xff] %v743_v26  ;;  %v605_v27 = vpop.f32.mrb[23].mxu0  ;;  %v745_v28 = vpop.f32.mrb[23].mxu1 }
 0x127   : > { %851 = vst [vmem:[%s1362_s29 + $0xb8] sm:$0xff] %v605_v27  ;;  %907 = vst [vmem:[%s1362_s29 + $0x278] sm:$0xff] %v745_v28 }
 0x12b   : > { %v609_v29 = vpop.f32.mrb[24].mxu0  ;;  %v749_v30 = vpop.f32.mrb[24].mxu1 }
 0x12c   : > { %852 = vst [vmem:[%s1362_s29 + $0xc0] sm:$0xff] %v609_v29  ;;  %908 = vst [vmem:[%s1362_s29 + $0x280] sm:$0xff] %v749_v30  ;;  %v611_v31 = vpop.f32.mrb[25].mxu0  ;;  %v751_v32 = vpop.f32.mrb[25].mxu1 }
 0x12d   : > { %853 = vst [vmem:[%s1362_s29 + $0xc8] sm:$0xff] %v611_v31  ;;  %909 = vst [vmem:[%s1362_s29 + $0x288] sm:$0xff] %v751_v32  ;;  %v613_v33 = vpop.f32.mrb[26].mxu0  ;;  %v753_v34 = vpop.f32.mrb[26].mxu1 }
 0x12e   : > { %854 = vst [vmem:[%s1362_s29 + $0xd0] sm:$0xff] %v613_v33  ;;  %910 = vst [vmem:[%s1362_s29 + $0x290] sm:$0xff] %v753_v34  ;;  %v615_v35 = vpop.f32.mrb[27].mxu0  ;;  %v755_v36 = vpop.f32.mrb[27].mxu1 }
 0x12f   : > { %855 = vst [vmem:[%s1362_s29 + $0xd8] sm:$0xff] %v615_v35  ;;  %911 = vst [vmem:[%s1362_s29 + $0x298] sm:$0xff] %v755_v36 }
 0x133   : > { %v619_v37 = vpop.f32.mrb[28].mxu0  ;;  %v759_v38 = vpop.f32.mrb[28].mxu1 }
 0x134   : > { %856 = vst [vmem:[%s1362_s29 + $0xe0] sm:$0xff] %v619_v37  ;;  %912 = vst [vmem:[%s1362_s29 + $0x2a0] sm:$0xff] %v759_v38  ;;  %v621_v39 = vpop.f32.mrb[29].mxu0  ;;  %v761_v40 = vpop.f32.mrb[29].mxu1 }
 0x135   : > { %857 = vst [vmem:[%s1362_s29 + $0xe8] sm:$0xff] %v621_v39  ;;  %913 = vst [vmem:[%s1362_s29 + $0x2a8] sm:$0xff] %v761_v40  ;;  %v623_v41 = vpop.f32.mrb[30].mxu0  ;;  %v763_v42 = vpop.f32.mrb[30].mxu1 }
 0x136   : > { %858 = vst [vmem:[%s1362_s29 + $0xf0] sm:$0xff] %v623_v41  ;;  %914 = vst [vmem:[%s1362_s29 + $0x2b0] sm:$0xff] %v763_v42  ;;  %v625_v43 = vpop.f32.mrb[31].mxu0  ;;  %v765_v44 = vpop.f32.mrb[31].mxu1 }
 0x137   : > { %859 = vst [vmem:[%s1362_s29 + $0xf8] sm:$0xff] %v625_v43  ;;  %915 = vst [vmem:[%s1362_s29 + $0x2b8] sm:$0xff] %v765_v44 }
 0x13b   : > { %v629_v45 = vpop.f32.mrb[32].mxu0  ;;  %v769_v46 = vpop.f32.mrb[32].mxu1 }
 0x13c   : > { %860 = vst [vmem:[%s1362_s29 + $0x100] sm:$0xff] %v629_v45  ;;  %916 = vst [vmem:[%s1362_s29 + $0x2c0] sm:$0xff] %v769_v46  ;;  %v631_v47 = vpop.f32.mrb[33].mxu0  ;;  %v771_v48 = vpop.f32.mrb[33].mxu1 }
 0x13d   : > { %861 = vst [vmem:[%s1362_s29 + $0x108] sm:$0xff] %v631_v47  ;;  %917 = vst [vmem:[%s1362_s29 + $0x2c8] sm:$0xff] %v771_v48  ;;  %v633_v49 = vpop.f32.mrb[34].mxu0  ;;  %v773_v50 = vpop.f32.mrb[34].mxu1 }
 0x13e   : > { %862 = vst [vmem:[%s1362_s29 + $0x110] sm:$0xff] %v633_v49  ;;  %918 = vst [vmem:[%s1362_s29 + $0x2d0] sm:$0xff] %v773_v50  ;;  %v635_v51 = vpop.f32.mrb[35].mxu0  ;;  %v775_v52 = vpop.f32.mrb[35].mxu1 }
 0x13f   : > { %863 = vst [vmem:[%s1362_s29 + $0x118] sm:$0xff] %v635_v51  ;;  %919 = vst [vmem:[%s1362_s29 + $0x2d8] sm:$0xff] %v775_v52 }
 0x143   : > { %v639_v53 = vpop.f32.mrb[36].mxu0  ;;  %v779_v54 = vpop.f32.mrb[36].mxu1 }
 0x144   : > { %864 = vst [vmem:[%s1362_s29 + $0x120] sm:$0xff] %v639_v53  ;;  %920 = vst [vmem:[%s1362_s29 + $0x2e0] sm:$0xff] %v779_v54  ;;  %v641_v55 = vpop.f32.mrb[37].mxu0  ;;  %v781_v56 = vpop.f32.mrb[37].mxu1 }
 0x145   : > { %865 = vst [vmem:[%s1362_s29 + $0x128] sm:$0xff] %v641_v55  ;;  %921 = vst [vmem:[%s1362_s29 + $0x2e8] sm:$0xff] %v781_v56  ;;  %v643_v57 = vpop.f32.mrb[38].mxu0  ;;  %v783_v58 = vpop.f32.mrb[38].mxu1 }
 0x146   : > { %866 = vst [vmem:[%s1362_s29 + $0x130] sm:$0xff] %v643_v57  ;;  %922 = vst [vmem:[%s1362_s29 + $0x2f0] sm:$0xff] %v783_v58  ;;  %v645_v59 = vpop.f32.mrb[39].mxu0  ;;  %v785_v60 = vpop.f32.mrb[39].mxu1 }
 0x147   : > { %867 = vst [vmem:[%s1362_s29 + $0x138] sm:$0xff] %v645_v59  ;;  %923 = vst [vmem:[%s1362_s29 + $0x2f8] sm:$0xff] %v785_v60 }
 0x14b   : > { %v649_v61 = vpop.f32.mrb[40].mxu0  ;;  %v789_v62 = vpop.f32.mrb[40].mxu1 }
 0x14c   : > { %868 = vst [vmem:[%s1362_s29 + $0x140] sm:$0xff] %v649_v61  ;;  %924 = vst [vmem:[%s1362_s29 + $0x300] sm:$0xff] %v789_v62  ;;  %v651_v63 = vpop.f32.mrb[41].mxu0  ;;  %v791_v0 = vpop.f32.mrb[41].mxu1 }
 0x14d   : > { %869 = vst [vmem:[%s1362_s29 + $0x148] sm:$0xff] %v651_v63  ;;  %925 = vst [vmem:[%s1362_s29 + $0x308] sm:$0xff] %v791_v0  ;;  %v653_v1 = vpop.f32.mrb[42].mxu0  ;;  %v793_v2 = vpop.f32.mrb[42].mxu1 }
 0x14e   : > { %870 = vst [vmem:[%s1362_s29 + $0x150] sm:$0xff] %v653_v1  ;;  %926 = vst [vmem:[%s1362_s29 + $0x310] sm:$0xff] %v793_v2  ;;  %v655_v3 = vpop.f32.mrb[43].mxu0  ;;  %v795_v4 = vpop.f32.mrb[43].mxu1 }
 0x14f   : > { %871 = vst [vmem:[%s1362_s29 + $0x158] sm:$0xff] %v655_v3  ;;  %927 = vst [vmem:[%s1362_s29 + $0x318] sm:$0xff] %v795_v4 }
 0x153   : > { %v659_v5 = vpop.f32.mrb[44].mxu0  ;;  %v799_v6 = vpop.f32.mrb[44].mxu1 }
 0x154   : > { %872 = vst [vmem:[%s1362_s29 + $0x160] sm:$0xff] %v659_v5  ;;  %928 = vst [vmem:[%s1362_s29 + $0x320] sm:$0xff] %v799_v6  ;;  %v661_v7 = vpop.f32.mrb[45].mxu0  ;;  %v801_v8 = vpop.f32.mrb[45].mxu1 }
 0x155   : > { %873 = vst [vmem:[%s1362_s29 + $0x168] sm:$0xff] %v661_v7  ;;  %929 = vst [vmem:[%s1362_s29 + $0x328] sm:$0xff] %v801_v8  ;;  %v663_v9 = vpop.f32.mrb[46].mxu0  ;;  %v803_v10 = vpop.f32.mrb[46].mxu1 }
 0x156   : > { %874 = vst [vmem:[%s1362_s29 + $0x170] sm:$0xff] %v663_v9  ;;  %930 = vst [vmem:[%s1362_s29 + $0x330] sm:$0xff] %v803_v10  ;;  %v665_v11 = vpop.f32.mrb[47].mxu0  ;;  %v805_v12 = vpop.f32.mrb[47].mxu1 }
 0x157   : > { %875 = vst [vmem:[%s1362_s29 + $0x178] sm:$0xff] %v665_v11  ;;  %931 = vst [vmem:[%s1362_s29 + $0x338] sm:$0xff] %v805_v12 }
 0x15b   : > { %v669_v13 = vpop.f32.mrb[48].mxu0  ;;  %v809_v14 = vpop.f32.mrb[48].mxu1 }
 0x15c   : > { %876 = vst [vmem:[%s1362_s29 + $0x180] sm:$0xff] %v669_v13  ;;  %932 = vst [vmem:[%s1362_s29 + $0x340] sm:$0xff] %v809_v14  ;;  %v671_v15 = vpop.f32.mrb[49].mxu0  ;;  %v811_v16 = vpop.f32.mrb[49].mxu1 }
 0x15d   : > { %877 = vst [vmem:[%s1362_s29 + $0x188] sm:$0xff] %v671_v15  ;;  %933 = vst [vmem:[%s1362_s29 + $0x348] sm:$0xff] %v811_v16  ;;  %v673_v17 = vpop.f32.mrb[50].mxu0  ;;  %v813_v18 = vpop.f32.mrb[50].mxu1 }
 0x15e   : > { %878 = vst [vmem:[%s1362_s29 + $0x190] sm:$0xff] %v673_v17  ;;  %934 = vst [vmem:[%s1362_s29 + $0x350] sm:$0xff] %v813_v18  ;;  %v675_v19 = vpop.f32.mrb[51].mxu0  ;;  %v815_v20 = vpop.f32.mrb[51].mxu1 }
 0x15f   : > { %879 = vst [vmem:[%s1362_s29 + $0x198] sm:$0xff] %v675_v19  ;;  %935 = vst [vmem:[%s1362_s29 + $0x358] sm:$0xff] %v815_v20 }
 0x163   : > { %v679_v21 = vpop.f32.mrb[52].mxu0  ;;  %v819_v22 = vpop.f32.mrb[52].mxu1 }
 0x164   : > { %880 = vst [vmem:[%s1362_s29 + $0x1a0] sm:$0xff] %v679_v21  ;;  %936 = vst [vmem:[%s1362_s29 + $0x360] sm:$0xff] %v819_v22  ;;  %v681_v23 = vpop.f32.mrb[53].mxu0  ;;  %v821_v24 = vpop.f32.mrb[53].mxu1 }
 0x165   : > { %881 = vst [vmem:[%s1362_s29 + $0x1a8] sm:$0xff] %v681_v23  ;;  %937 = vst [vmem:[%s1362_s29 + $0x368] sm:$0xff] %v821_v24  ;;  %v683_v25 = vpop.f32.mrb[54].mxu0  ;;  %v823_v26 = vpop.f32.mrb[54].mxu1 }
 0x166   : > { %882 = vst [vmem:[%s1362_s29 + $0x1b0] sm:$0xff] %v683_v25  ;;  %938 = vst [vmem:[%s1362_s29 + $0x370] sm:$0xff] %v823_v26  ;;  %v685_v27 = vpop.f32.mrb[55].mxu0  ;;  %v825_v28 = vpop.f32.mrb[55].mxu1 }
 0x167   : > { %883 = vst [vmem:[%s1362_s29 + $0x1b8] sm:$0xff] %v685_v27  ;;  %939 = vst [vmem:[%s1362_s29 + $0x378] sm:$0xff] %v825_v28 }
 0x168 PF: > { %s12_s11 = sadd.s32 1, %s1210_s11   ;;  %s1488_s9 = smov %s1206_s10 }
 0x169   : > { %p9_p5 = scmp.ge.s32.totalorder %s12_s11, 4   ;;  %s1489_s10 = smov %s1491_s12 }
 0x16b   :  { %11 = sbr.rel (!%p9_p5) target bundleno = 2 (0x2), region = 61 }

</bundles_post_ra>
